<compile_context>
chip_gen: v5e
topology: v5e:2x2
jax: 0.10.0
libtpu: 0.0.40
codegen_flags: <defaults>
</compile_context>

<pallas_src>
import functools
import math

import jax
import jax.numpy as jnp
from jax import lax
from jax.experimental import pallas as pl
from jax.experimental.pallas import tpu as pltpu

EMBED_DIM = 128
NUM_HEADS = 8
HEAD_DIM = EMBED_DIM // NUM_HEADS
FF_DIM = 4 * EMBED_DIM
MEMORY_SIZE = 16          # stands in for the 160 of the full-size module
SEQ_LEN = 32              # must be > MEMORY_SIZE and leave >= 15 frame tokens
BATCH = 2
LN_EPS = 1e-5
NEG_INF = -1e30
DEC_TOKENS = 15


# ----------------------------- in-kernel helpers -----------------------------
def _gelu_exact(x):
    # exact (erf) GELU, matching nn.GELU() default
    return 0.5 * x * (1.0 + lax.erf(x * (1.0 / math.sqrt(2.0))))


def _layernorm(x, w, b):
    mu = jnp.mean(x, axis=-1, keepdims=True)
    xc = x - mu
    var = jnp.mean(xc * xc, axis=-1, keepdims=True)
    return xc * lax.rsqrt(var + LN_EPS) * w + b


def _mha(q, k, v, wo_ref, bo, *, masked):
    """Multi-head attention + output projection, lane-dense (L, 128).

    q: (Lq, E) f32 (the 1/sqrt(Dh) softmax scale is already folded into the
    Q projection weights/bias), k/v: (Lk, E) f32; heads packed along lanes.

    Perf-review changes: K^T is computed once per module (not per head), all
    score/PV matmul operands are bf16 with f32 accumulation, and the 8 head
    outputs are concatenated once and projected with a SINGLE (Lq,128)x(128,128)
    Wo matmul instead of 8 serially-accumulated K=16 matmuls.
    """
    Lq, Lk = q.shape[0], k.shape[0]
    if masked:
        # mirrors ~tril(ones(Lf, S)) of the PyTorch reference: allow j <= i
        rows = lax.broadcasted_iota(jnp.int32, (Lq, Lk), 0)
        cols = lax.broadcasted_iota(jnp.int32, (Lq, Lk), 1)
        allowed = cols <= rows

    q16 = q.astype(jnp.bfloat16)
    kT16 = k.T.astype(jnp.bfloat16)          # one transpose per module
    v16 = v.astype(jnp.bfloat16)

    heads = []
    for h in range(NUM_HEADS):               # unrolled, 8 small MXU passes
        lo = h * HEAD_DIM
        s = jnp.dot(q16[:, lo:lo + HEAD_DIM], kT16[lo:lo + HEAD_DIM, :],
                    preferred_element_type=jnp.float32)            # (Lq, Lk)
        if masked:
            s = jnp.where(allowed, s, NEG_INF)
        p = jnp.exp(s - jnp.max(s, axis=-1, keepdims=True))
        p = p * pl.reciprocal(jnp.sum(p, axis=-1, keepdims=True), approx=True)
        heads.append(jnp.dot(p.astype(jnp.bfloat16), v16[:, lo:lo + HEAD_DIM],
                             preferred_element_type=jnp.float32))  # (Lq, Dh)

    o = jnp.concatenate(heads, axis=-1)                            # (Lq, E)
    return jnp.dot(o.astype(jnp.bfloat16), wo_ref[...],
                   preferred_element_type=jnp.float32) + bo


# -------------------- single fused kernel: block + decoder -------------------
def _block_kernel(x_ref, ln1_w_ref, ln1_b_ref,
                  wqkv_ref, bqkv_ref,
                  wo_g_ref, bo_g_ref, wo_l_ref, bo_l_ref,
                  ffn_lnw_ref, ffn_lnb_ref,
                  w1_ref, b1_ref, w2_ref, b2_ref,
                  dw1_ref, db1_ref, dln1w_ref, dln1b_ref,
                  dw2_ref, db2_ref, dln2w_ref, dln2b_ref,
                  dw3_ref, db3_ref,
                  mem_ref, dec_ref, *, memory_size):
    E = EMBED_DIM
    x = x_ref[0].astype(jnp.float32)                       # (S, E)
    S = x.shape[0]
    _x = _layernorm(x, ln1_w_ref[...], ln1_b_ref[...])

    # Fused QKV projection for BOTH attention modules: one (S,128)x(128,768) matmul.
    qkv = jnp.dot(_x.astype(jnp.bfloat16), wqkv_ref[...],
                  preferred_element_type=jnp.float32) + bqkv_ref[...]
    qg, kg, vg = qkv[:, 0:E], qkv[:, E:2 * E], qkv[:, 2 * E:3 * E]
    ql, kl, vl = qkv[:, 3 * E:4 * E], qkv[:, 4 * E:5 * E], qkv[:, 5 * E:6 * E]

    # global attention: queries = memory tokens, no mask
    og = _mha(qg[:memory_size], kg, vg, wo_g_ref, bo_g_ref[...], masked=False)
    # local attention: queries = frame tokens, masked (mirrors ~tril(ones(Lf, S)))
    ol = _mha(ql[memory_size:], kl, vl, wo_l_ref, bo_l_ref[...], masked=True)
    g_l = jnp.concatenate([og, ol], axis=0)                # (S, E)

    # FFN: LayerNorm -> Linear(128->512) -> GELU -> Linear(512->128)
    h = _layernorm(g_l, ffn_lnw_ref[...], ffn_lnb_ref[...])
    h = jnp.dot(h.astype(jnp.bfloat16), w1_ref[...],
                preferred_element_type=jnp.float32) + b1_ref[...]
    h = _gelu_exact(h)
    ffn_out = jnp.dot(h.astype(jnp.bfloat16), w2_ref[...],
                      preferred_element_type=jnp.float32) + b2_ref[...]

    # dropout(g_l) + ffn_output with dropout = identity (eval)
    y = g_l + ffn_out                                      # (S, E), f32

    # new_memory_queue = y[:, :memory_size, :]
    mem_ref[0] = y[:memory_size].astype(mem_ref.dtype)

    # ---- fused decoder on the last 15 tokens (per batch element) ----
    # flatten (15, 128) -> (1, 1920) in-VMEM (row-major, matching torch reshape)
    flat = jnp.concatenate(
        [y[S - DEC_TOKENS + t:S - DEC_TOKENS + t + 1, :] for t in range(DEC_TOKENS)],
        axis=1)                                            # (1, 15*E)
    d = jnp.dot(flat.astype(jnp.bfloat16), dw1_ref[...],
                preferred_element_type=jnp.float32) + db1_ref[...]
    d = _gelu_exact(_layernorm(d, dln1w_ref[...], dln1b_ref[...]))
    d = jnp.dot(d.astype(jnp.bfloat16), dw2_ref[...],
                preferred_element_type=jnp.float32) + db2_ref[...]
    d = _gelu_exact(_layernorm(d, dln2w_ref[...], dln2b_ref[...]))
    d = jnp.dot(d.astype(jnp.bfloat16), dw3_ref[...],
                preferred_element_type=jnp.float32) + db3_ref[...]
    dec_ref[0] = jnp.tanh(d).astype(dec_ref.dtype)         # (1, E), cols 0..1 valid


def _fused_block_decoder(x, p, memory_size):
    B, S, E = x.shape

    def const2(shape):
        return pl.BlockSpec(shape, lambda b: (0, 0))       # weight stays VMEM-resident

    kernel = functools.partial(_block_kernel, memory_size=memory_size)
    return pl.pallas_call(
        kernel,
        out_shape=(jax.ShapeDtypeStruct((B, memory_size, E), jnp.float32),
                   jax.ShapeDtypeStruct((B, 1, E), jnp.float32)),
        grid=(B,),
        in_specs=[
            pl.BlockSpec((1, S, E), lambda b: (b, 0, 0)),
            const2((1, E)), const2((1, E)),
            const2((E, 6 * E)), const2((1, 6 * E)),
            const2((E, E)), const2((1, E)),
            const2((E, E)), const2((1, E)),
            const2((1, E)), const2((1, E)),
            const2((E, FF_DIM)), const2((1, FF_DIM)),
            const2((FF_DIM, E)), const2((1, E)),
            const2((DEC_TOKENS * E, 5 * E)), const2((1, 5 * E)),
            const2((1, 5 * E)), const2((1, 5 * E)),
            const2((5 * E, E)), const2((1, E)),
            const2((1, E)), const2((1, E)),
            const2((E, E)), const2((1, E)),
        ],
        out_specs=(pl.BlockSpec((1, memory_size, E), lambda b: (b, 0, 0)),
                   pl.BlockSpec((1, 1, E), lambda b: (b, 0, 0))),
        # grid=(B,) parallel: shards the two sequences across v7x's 2 TCs;
        # on single-TC v5e/v6e it is a 2-step serial loop (~0.35 us overhead).
        compiler_params=pltpu.CompilerParams(dimension_semantics=("parallel",)),
    )(x,
      p["ln1_w"], p["ln1_b"],
      p["w_qkv"], p["b_qkv"],
      p["wo_g"], p["bo_g"], p["wo_l"], p["bo_l"],
      p["ffn_ln_w"], p["ffn_ln_b"],
      p["ffn_w1"], p["ffn_b1"], p["ffn_w2"], p["ffn_b2"],
      p["dec_w1"], p["dec_b1"], p["dec_ln1_w"], p["dec_ln1_b"],
      p["dec_w2"], p["dec_b2"], p["dec_ln2_w"], p["dec_ln2_b"],
      p["dec_w3"], p["dec_b3"])


# ------------------------------ forward glue ----------------------------------
def transformer_block_forward(x, params, memory_size=MEMORY_SIZE):
    # TODO(synk): dropout layers are treated as identity (inference/eval mode).
    new_memory, dec = _fused_block_decoder(x, params, memory_size)  # (B,M,E), (B,1,E)
    steering = dec[:, 0, 0]
    acceleration = dec[:, 0, 1]
    return steering, acceleration, new_memory


# --------------------------- parameter init -----------------------------------
def init_params(key, embed_dim=EMBED_DIM, ff_dim=FF_DIM):
    E = embed_dim
    kit = iter(jax.random.split(key, 64))

    def w(shape, scale=0.02):
        return (scale * jax.random.normal(next(kit), shape)).astype(jnp.float32)

    def mha_raw():
        in_w = w((3 * E, E))      # PyTorch in_proj_weight layout (q|k|v rows)
        in_b = w((3 * E,))
        out_w = w((E, E))
        out_b = w((E,))
        return in_w, in_b, out_w, out_b

    g_in_w, g_in_b, g_out_w, g_out_b = mha_raw()
    l_in_w, l_in_b, l_out_w, l_out_b = mha_raw()

    # fused (in_features, out_features) weight: columns = [qg|kg|vg|ql|kl|vl]
    w_qkv = jnp.concatenate([g_in_w.T, l_in_w.T], axis=1)          # (E, 6E)
    b_qkv = jnp.concatenate([g_in_b, l_in_b], axis=0).reshape(1, 6 * E)

    # Fold the 1/sqrt(head_dim) softmax scale into the two Q column groups
    # (exact: scaling commutes with the linear projection + bias).
    sm_scale = 1.0 / math.sqrt(E // NUM_HEADS)
    col_scale = jnp.ones((1, 6 * E), jnp.float32)
    col_scale = col_scale.at[:, 0:E].set(sm_scale)
    col_scale = col_scale.at[:, 3 * E:4 * E].set(sm_scale)
    w_qkv = w_qkv * col_scale
    b_qkv = b_qkv * col_scale

    dec_w1 = w((5 * E, 15 * E))
    dec_w2 = w((E, 5 * E))
    dec_w3 = w((2, E))
    dec_b3 = w((2,))
    # pad the 2-wide decoder head to 128 lanes; tanh(0)=0 so padding is inert
    dec_w3_pad = jnp.zeros((E, E), jnp.float32).at[:, :2].set(dec_w3.T)
    dec_b3_pad = jnp.zeros((1, E), jnp.float32).at[0, :2].set(dec_b3)

    bf16 = lambda a: a.astype(jnp.bfloat16)

    return dict(
        ln1_w=(1.0 + w((1, E))), ln1_b=w((1, E)),
        w_qkv=bf16(w_qkv), b_qkv=b_qkv,
        wo_g=bf16(g_out_w.T), bo_g=g_out_b.reshape(1, E),
        wo_l=bf16(l_out_w.T), bo_l=l_out_b.reshape(1, E),
        ffn_ln_w=(1.0 + w((1, E))), ffn_ln_b=w((1, E)),
        ffn_w1=bf16(w((ff_dim, E)).T), ffn_b1=w((1, ff_dim)),
        ffn_w2=bf16(w((E, ff_dim)).T), ffn_b2=w((1, E)),
        dec_w1=bf16(dec_w1.T), dec_b1=w((1, 5 * E)),
        dec_ln1_w=(1.0 + w((1, 5 * E))), dec_ln1_b=w((1, 5 * E)),
        dec_w2=bf16(dec_w2.T), dec_b2=w((1, E)),
        dec_ln2_w=(1.0 + w((1, E))), dec_ln2_b=w((1, E)),
        dec_w3=bf16(dec_w3_pad), dec_b3=dec_b3_pad,
    )


if __name__ == "__main__":
    key = jax.random.PRNGKey(0)
    pkey, xkey = jax.random.split(key)
    params = init_params(pkey)
    x = jax.random.normal(xkey, (BATCH, SEQ_LEN, EMBED_DIM), dtype=jnp.float32)

    fwd = jax.jit(functools.partial(transformer_block_forward, memory_size=MEMORY_SIZE))
    steering, acceleration, new_memory = fwd(x, params)
    jax.block_until_ready((steering, acceleration, new_memory))

    assert steering.shape == (BATCH,)
    assert acceleration.shape == (BATCH,)
    assert new_memory.shape == (BATCH, MEMORY_SIZE, EMBED_DIM)
    assert bool(jnp.all(jnp.isfinite(steering)))
    assert bool(jnp.all(jnp.isfinite(acceleration)))
    assert bool(jnp.all(jnp.isfinite(new_memory)))
    print("KERNEL_OK")
</pallas_src>

<mosaic_0001>
module attributes {stable_mosaic.version = 11 : i64} {
  func.func @_block_kernel(%arg0: i32, %arg1: memref<1x32x128xf32, #tpu.memory_space<vmem>>, %arg2: memref<1x128xf32, #tpu.memory_space<vmem>>, %arg3: memref<1x128xf32, #tpu.memory_space<vmem>>, %arg4: memref<128x768xbf16, #tpu.memory_space<vmem>>, %arg5: memref<1x768xf32, #tpu.memory_space<vmem>>, %arg6: memref<128x128xbf16, #tpu.memory_space<vmem>>, %arg7: memref<1x128xf32, #tpu.memory_space<vmem>>, %arg8: memref<128x128xbf16, #tpu.memory_space<vmem>>, %arg9: memref<1x128xf32, #tpu.memory_space<vmem>>, %arg10: memref<1x128xf32, #tpu.memory_space<vmem>>, %arg11: memref<1x128xf32, #tpu.memory_space<vmem>>, %arg12: memref<128x512xbf16, #tpu.memory_space<vmem>>, %arg13: memref<1x512xf32, #tpu.memory_space<vmem>>, %arg14: memref<512x128xbf16, #tpu.memory_space<vmem>>, %arg15: memref<1x128xf32, #tpu.memory_space<vmem>>, %arg16: memref<1920x640xbf16, #tpu.memory_space<vmem>>, %arg17: memref<1x640xf32, #tpu.memory_space<vmem>>, %arg18: memref<1x640xf32, #tpu.memory_space<vmem>>, %arg19: memref<1x640xf32, #tpu.memory_space<vmem>>, %arg20: memref<640x128xbf16, #tpu.memory_space<vmem>>, %arg21: memref<1x128xf32, #tpu.memory_space<vmem>>, %arg22: memref<1x128xf32, #tpu.memory_space<vmem>>, %arg23: memref<1x128xf32, #tpu.memory_space<vmem>>, %arg24: memref<128x128xbf16, #tpu.memory_space<vmem>>, %arg25: memref<1x128xf32, #tpu.memory_space<vmem>>, %arg26: memref<1x16x128xf32, #tpu.memory_space<vmem>>, %arg27: memref<1x1x128xf32, #tpu.memory_space<vmem>>) attributes {dimension_semantics = [#tpu.dimension_semantics<parallel>], iteration_bounds = array<i64: 2>, scalar_prefetch = 0 : i64, scratch_operands = 0 : i64, tpu.core_type = #tpu.core_type<tc>, window_params = [{transform_indices = @transform_0, window_bounds = array<i64: 1, 32, 128>}, {pipeline_mode = #tpu.pipeline_mode<synchronous>, transform_indices = @transform_1, window_bounds = array<i64: 1, 128>}, {pipeline_mode = #tpu.pipeline_mode<synchronous>, transform_indices = @transform_2, window_bounds = array<i64: 1, 128>}, {pipeline_mode = #tpu.pipeline_mode<synchronous>, transform_indices = @transform_3, window_bounds = array<i64: 128, 768>}, {pipeline_mode = #tpu.pipeline_mode<synchronous>, transform_indices = @transform_4, window_bounds = array<i64: 1, 768>}, {pipeline_mode = #tpu.pipeline_mode<synchronous>, transform_indices = @transform_5, window_bounds = array<i64: 128, 128>}, {pipeline_mode = #tpu.pipeline_mode<synchronous>, transform_indices = @transform_6, window_bounds = array<i64: 1, 128>}, {pipeline_mode = #tpu.pipeline_mode<synchronous>, transform_indices = @transform_7, window_bounds = array<i64: 128, 128>}, {pipeline_mode = #tpu.pipeline_mode<synchronous>, transform_indices = @transform_8, window_bounds = array<i64: 1, 128>}, {pipeline_mode = #tpu.pipeline_mode<synchronous>, transform_indices = @transform_9, window_bounds = array<i64: 1, 128>}, {pipeline_mode = #tpu.pipeline_mode<synchronous>, transform_indices = @transform_10, window_bounds = array<i64: 1, 128>}, {pipeline_mode = #tpu.pipeline_mode<synchronous>, transform_indices = @transform_11, window_bounds = array<i64: 128, 512>}, {pipeline_mode = #tpu.pipeline_mode<synchronous>, transform_indices = @transform_12, window_bounds = array<i64: 1, 512>}, {pipeline_mode = #tpu.pipeline_mode<synchronous>, transform_indices = @transform_13, window_bounds = array<i64: 512, 128>}, {pipeline_mode = #tpu.pipeline_mode<synchronous>, transform_indices = @transform_14, window_bounds = array<i64: 1, 128>}, {pipeline_mode = #tpu.pipeline_mode<synchronous>, transform_indices = @transform_15, window_bounds = array<i64: 1920, 640>}, {pipeline_mode = #tpu.pipeline_mode<synchronous>, transform_indices = @transform_16, window_bounds = array<i64: 1, 640>}, {pipeline_mode = #tpu.pipeline_mode<synchronous>, transform_indices = @transform_17, window_bounds = array<i64: 1, 640>}, {pipeline_mode = #tpu.pipeline_mode<synchronous>, transform_indices = @transform_18, window_bounds = array<i64: 1, 640>}, {pipeline_mode = #tpu.pipeline_mode<synchronous>, transform_indices = @transform_19, window_bounds = array<i64: 640, 128>}, {pipeline_mode = #tpu.pipeline_mode<synchronous>, transform_indices = @transform_20, window_bounds = array<i64: 1, 128>}, {pipeline_mode = #tpu.pipeline_mode<synchronous>, transform_indices = @transform_21, window_bounds = array<i64: 1, 128>}, {pipeline_mode = #tpu.pipeline_mode<synchronous>, transform_indices = @transform_22, window_bounds = array<i64: 1, 128>}, {pipeline_mode = #tpu.pipeline_mode<synchronous>, transform_indices = @transform_23, window_bounds = array<i64: 128, 128>}, {pipeline_mode = #tpu.pipeline_mode<synchronous>, transform_indices = @transform_24, window_bounds = array<i64: 1, 128>}, {transform_indices = @transform_25, window_bounds = array<i64: 1, 16, 128>}, {transform_indices = @transform_26, window_bounds = array<i64: 1, 1, 128>}]} {
    %c0 = arith.constant 0 : index
    %c0_0 = arith.constant 0 : index
    %c0_1 = arith.constant 0 : index
    %0 = vector.load %arg1[%c0, %c0_0, %c0_1] : memref<1x32x128xf32, #tpu.memory_space<vmem>>, vector<1x32x128xf32>
    %1 = vector.shape_cast %0 : vector<1x32x128xf32> to vector<32x128xf32>
    %c0_2 = arith.constant 0 : index
    %c0_3 = arith.constant 0 : index
    %2 = vector.load %arg2[%c0_2, %c0_3] : memref<1x128xf32, #tpu.memory_space<vmem>>, vector<1x128xf32>
    %c0_4 = arith.constant 0 : index
    %c0_5 = arith.constant 0 : index
    %3 = vector.load %arg3[%c0_4, %c0_5] : memref<1x128xf32, #tpu.memory_space<vmem>>, vector<1x128xf32>
    %cst = arith.constant dense<0.000000e+00> : vector<32xf32>
    %4 = vector.multi_reduction <add>, %1, %cst [1] : vector<32x128xf32> to vector<32xf32>
    %5 = vector.shape_cast %4 : vector<32xf32> to vector<32x1xf32>
    %cst_6 = arith.constant 1.280000e+02 : f32
    %6 = vector.broadcast %cst_6 : f32 to vector<32x1xf32>
    %7 = arith.divf %5, %6 : vector<32x1xf32>
    %8 = vector.broadcast %7 : vector<32x1xf32> to vector<32x128xf32>
    %9 = arith.subf %1, %8 : vector<32x128xf32>
    %10 = arith.mulf %9, %9 : vector<32x128xf32>
    %cst_7 = arith.constant dense<0.000000e+00> : vector<32xf32>
    %11 = vector.multi_reduction <add>, %10, %cst_7 [1] : vector<32x128xf32> to vector<32xf32>
    %12 = vector.shape_cast %11 : vector<32xf32> to vector<32x1xf32>
    %cst_8 = arith.constant 1.280000e+02 : f32
    %13 = vector.broadcast %cst_8 : f32 to vector<32x1xf32>
    %14 = arith.divf %12, %13 : vector<32x1xf32>
    %cst_9 = arith.constant 9.99999974E-6 : f32
    %15 = vector.broadcast %cst_9 : f32 to vector<32x1xf32>
    %16 = arith.addf %14, %15 : vector<32x1xf32>
    %17 = math.rsqrt %16 : vector<32x1xf32>
    %18 = vector.broadcast %17 : vector<32x1xf32> to vector<32x128xf32>
    %19 = arith.mulf %9, %18 : vector<32x128xf32>
    %20 = vector.broadcast %2 : vector<1x128xf32> to vector<32x128xf32>
    %21 = arith.mulf %19, %20 : vector<32x128xf32>
    %22 = vector.broadcast %3 : vector<1x128xf32> to vector<32x128xf32>
    %23 = arith.addf %21, %22 : vector<32x128xf32>
    %24 = arith.truncf %23 : vector<32x128xf32> to vector<32x128xbf16>
    %c0_10 = arith.constant 0 : index
    %c0_11 = arith.constant 0 : index
    %25 = vector.load %arg4[%c0_10, %c0_11] : memref<128x768xbf16, #tpu.memory_space<vmem>>, vector<128x768xbf16>
    %cst_12 = arith.constant dense<0.000000e+00> : vector<32x768xf32>
    %26 = tpu.matmul %24, %25, %cst_12 {dimension_numbers = #tpu.dot_dimension_numbers<[1], [0], [0], [1], [0, 0, 1, 1], [], []>} : vector<32x128xbf16>, vector<128x768xbf16>, vector<32x768xf32> -> vector<32x768xf32>
    %c0_13 = arith.constant 0 : index
    %c0_14 = arith.constant 0 : index
    %27 = vector.load %arg5[%c0_13, %c0_14] : memref<1x768xf32, #tpu.memory_space<vmem>>, vector<1x768xf32>
    %28 = vector.broadcast %27 : vector<1x768xf32> to vector<32x768xf32>
    %29 = arith.addf %26, %28 : vector<32x768xf32>
    %30 = vector.extract_strided_slice %29 {offsets = [0, 0], sizes = [32, 128], strides = [1, 1]} : vector<32x768xf32> to vector<32x128xf32>
    %31 = vector.extract_strided_slice %29 {offsets = [0, 128], sizes = [32, 128], strides = [1, 1]} : vector<32x768xf32> to vector<32x128xf32>
    %32 = vector.extract_strided_slice %29 {offsets = [0, 256], sizes = [32, 128], strides = [1, 1]} : vector<32x768xf32> to vector<32x128xf32>
    %33 = vector.extract_strided_slice %29 {offsets = [0, 384], sizes = [32, 128], strides = [1, 1]} : vector<32x768xf32> to vector<32x128xf32>
    %34 = vector.extract_strided_slice %29 {offsets = [0, 512], sizes = [32, 128], strides = [1, 1]} : vector<32x768xf32> to vector<32x128xf32>
    %35 = vector.extract_strided_slice %29 {offsets = [0, 640], sizes = [32, 128], strides = [1, 1]} : vector<32x768xf32> to vector<32x128xf32>
    %36 = vector.extract_strided_slice %30 {offsets = [0, 0], sizes = [16, 128], strides = [1, 1]} : vector<32x128xf32> to vector<16x128xf32>
    %c0_15 = arith.constant 0 : index
    %c0_16 = arith.constant 0 : index
    %37 = vector.load %arg7[%c0_15, %c0_16] : memref<1x128xf32, #tpu.memory_space<vmem>>, vector<1x128xf32>
    %38 = arith.truncf %36 : vector<16x128xf32> to vector<16x128xbf16>
    %39 = tpu.transpose %31, [1, 0] : vector<32x128xf32> -> vector<128x32xf32>
    %40 = arith.truncf %39 : vector<128x32xf32> to vector<128x32xbf16>
    %41 = arith.truncf %32 : vector<32x128xf32> to vector<32x128xbf16>
    %42 = vector.extract_strided_slice %38 {offsets = [0, 0], sizes = [16, 16], strides = [1, 1]} : vector<16x128xbf16> to vector<16x16xbf16>
    %43 = vector.extract_strided_slice %40 {offsets = [0, 0], sizes = [16, 32], strides = [1, 1]} : vector<128x32xbf16> to vector<16x32xbf16>
    %cst_17 = arith.constant dense<0.000000e+00> : vector<16x32xf32>
    %44 = tpu.matmul %42, %43, %cst_17 {dimension_numbers = #tpu.dot_dimension_numbers<[1], [0], [0], [1], [0, 0, 1, 1], [], []>} : vector<16x16xbf16>, vector<16x32xbf16>, vector<16x32xf32> -> vector<16x32xf32>
    %cst_18 = arith.constant dense<0xFF800000> : vector<16xf32>
    %45 = vector.multi_reduction <maximumf>, %44, %cst_18 [1] : vector<16x32xf32> to vector<16xf32>
    %46 = vector.shape_cast %45 : vector<16xf32> to vector<16x1xf32>
    %47 = vector.broadcast %46 : vector<16x1xf32> to vector<16x32xf32>
    %48 = arith.subf %44, %47 : vector<16x32xf32>
    %49 = math.exp %48 : vector<16x32xf32>
    %cst_19 = arith.constant dense<0.000000e+00> : vector<16xf32>
    %50 = vector.multi_reduction <add>, %49, %cst_19 [1] : vector<16x32xf32> to vector<16xf32>
    %51 = vector.shape_cast %50 : vector<16xf32> to vector<16x1xf32>
    %52 = tpu.reciprocal %51 {approx = true} : vector<16x1xf32> -> vector<16x1xf32>
    %53 = vector.broadcast %52 : vector<16x1xf32> to vector<16x32xf32>
    %54 = arith.mulf %49, %53 : vector<16x32xf32>
    %55 = arith.truncf %54 : vector<16x32xf32> to vector<16x32xbf16>
    %56 = vector.extract_strided_slice %41 {offsets = [0, 0], sizes = [32, 16], strides = [1, 1]} : vector<32x128xbf16> to vector<32x16xbf16>
    %cst_20 = arith.constant dense<0.000000e+00> : vector<16x16xf32>
    %57 = tpu.matmul %55, %56, %cst_20 {dimension_numbers = #tpu.dot_dimension_numbers<[1], [0], [0], [1], [0, 0, 1, 1], [], []>} : vector<16x32xbf16>, vector<32x16xbf16>, vector<16x16xf32> -> vector<16x16xf32>
    %58 = vector.extract_strided_slice %38 {offsets = [0, 16], sizes = [16, 16], strides = [1, 1]} : vector<16x128xbf16> to vector<16x16xbf16>
    %59 = vector.extract_strided_slice %40 {offsets = [16, 0], sizes = [16, 32], strides = [1, 1]} : vector<128x32xbf16> to vector<16x32xbf16>
    %cst_21 = arith.constant dense<0.000000e+00> : vector<16x32xf32>
    %60 = tpu.matmul %58, %59, %cst_21 {dimension_numbers = #tpu.dot_dimension_numbers<[1], [0], [0], [1], [0, 0, 1, 1], [], []>} : vector<16x16xbf16>, vector<16x32xbf16>, vector<16x32xf32> -> vector<16x32xf32>
    %cst_22 = arith.constant dense<0xFF800000> : vector<16xf32>
    %61 = vector.multi_reduction <maximumf>, %60, %cst_22 [1] : vector<16x32xf32> to vector<16xf32>
    %62 = vector.shape_cast %61 : vector<16xf32> to vector<16x1xf32>
    %63 = vector.broadcast %62 : vector<16x1xf32> to vector<16x32xf32>
    %64 = arith.subf %60, %63 : vector<16x32xf32>
    %65 = math.exp %64 : vector<16x32xf32>
    %cst_23 = arith.constant dense<0.000000e+00> : vector<16xf32>
    %66 = vector.multi_reduction <add>, %65, %cst_23 [1] : vector<16x32xf32> to vector<16xf32>
    %67 = vector.shape_cast %66 : vector<16xf32> to vector<16x1xf32>
    %68 = tpu.reciprocal %67 {approx = true} : vector<16x1xf32> -> vector<16x1xf32>
    %69 = vector.broadcast %68 : vector<16x1xf32> to vector<16x32xf32>
    %70 = arith.mulf %65, %69 : vector<16x32xf32>
    %71 = arith.truncf %70 : vector<16x32xf32> to vector<16x32xbf16>
    %72 = vector.extract_strided_slice %41 {offsets = [0, 16], sizes = [32, 16], strides = [1, 1]} : vector<32x128xbf16> to vector<32x16xbf16>
    %cst_24 = arith.constant dense<0.000000e+00> : vector<16x16xf32>
    %73 = tpu.matmul %71, %72, %cst_24 {dimension_numbers = #tpu.dot_dimension_numbers<[1], [0], [0], [1], [0, 0, 1, 1], [], []>} : vector<16x32xbf16>, vector<32x16xbf16>, vector<16x16xf32> -> vector<16x16xf32>
    %74 = vector.extract_strided_slice %38 {offsets = [0, 32], sizes = [16, 16], strides = [1, 1]} : vector<16x128xbf16> to vector<16x16xbf16>
    %75 = vector.extract_strided_slice %40 {offsets = [32, 0], sizes = [16, 32], strides = [1, 1]} : vector<128x32xbf16> to vector<16x32xbf16>
    %cst_25 = arith.constant dense<0.000000e+00> : vector<16x32xf32>
    %76 = tpu.matmul %74, %75, %cst_25 {dimension_numbers = #tpu.dot_dimension_numbers<[1], [0], [0], [1], [0, 0, 1, 1], [], []>} : vector<16x16xbf16>, vector<16x32xbf16>, vector<16x32xf32> -> vector<16x32xf32>
    %cst_26 = arith.constant dense<0xFF800000> : vector<16xf32>
    %77 = vector.multi_reduction <maximumf>, %76, %cst_26 [1] : vector<16x32xf32> to vector<16xf32>
    %78 = vector.shape_cast %77 : vector<16xf32> to vector<16x1xf32>
    %79 = vector.broadcast %78 : vector<16x1xf32> to vector<16x32xf32>
    %80 = arith.subf %76, %79 : vector<16x32xf32>
    %81 = math.exp %80 : vector<16x32xf32>
    %cst_27 = arith.constant dense<0.000000e+00> : vector<16xf32>
    %82 = vector.multi_reduction <add>, %81, %cst_27 [1] : vector<16x32xf32> to vector<16xf32>
    %83 = vector.shape_cast %82 : vector<16xf32> to vector<16x1xf32>
    %84 = tpu.reciprocal %83 {approx = true} : vector<16x1xf32> -> vector<16x1xf32>
    %85 = vector.broadcast %84 : vector<16x1xf32> to vector<16x32xf32>
    %86 = arith.mulf %81, %85 : vector<16x32xf32>
    %87 = arith.truncf %86 : vector<16x32xf32> to vector<16x32xbf16>
    %88 = vector.extract_strided_slice %41 {offsets = [0, 32], sizes = [32, 16], strides = [1, 1]} : vector<32x128xbf16> to vector<32x16xbf16>
    %cst_28 = arith.constant dense<0.000000e+00> : vector<16x16xf32>
    %89 = tpu.matmul %87, %88, %cst_28 {dimension_numbers = #tpu.dot_dimension_numbers<[1], [0], [0], [1], [0, 0, 1, 1], [], []>} : vector<16x32xbf16>, vector<32x16xbf16>, vector<16x16xf32> -> vector<16x16xf32>
    %90 = vector.extract_strided_slice %38 {offsets = [0, 48], sizes = [16, 16], strides = [1, 1]} : vector<16x128xbf16> to vector<16x16xbf16>
    %91 = vector.extract_strided_slice %40 {offsets = [48, 0], sizes = [16, 32], strides = [1, 1]} : vector<128x32xbf16> to vector<16x32xbf16>
    %cst_29 = arith.constant dense<0.000000e+00> : vector<16x32xf32>
    %92 = tpu.matmul %90, %91, %cst_29 {dimension_numbers = #tpu.dot_dimension_numbers<[1], [0], [0], [1], [0, 0, 1, 1], [], []>} : vector<16x16xbf16>, vector<16x32xbf16>, vector<16x32xf32> -> vector<16x32xf32>
    %cst_30 = arith.constant dense<0xFF800000> : vector<16xf32>
    %93 = vector.multi_reduction <maximumf>, %92, %cst_30 [1] : vector<16x32xf32> to vector<16xf32>
    %94 = vector.shape_cast %93 : vector<16xf32> to vector<16x1xf32>
    %95 = vector.broadcast %94 : vector<16x1xf32> to vector<16x32xf32>
    %96 = arith.subf %92, %95 : vector<16x32xf32>
    %97 = math.exp %96 : vector<16x32xf32>
    %cst_31 = arith.constant dense<0.000000e+00> : vector<16xf32>
    %98 = vector.multi_reduction <add>, %97, %cst_31 [1] : vector<16x32xf32> to vector<16xf32>
    %99 = vector.shape_cast %98 : vector<16xf32> to vector<16x1xf32>
    %100 = tpu.reciprocal %99 {approx = true} : vector<16x1xf32> -> vector<16x1xf32>
    %101 = vector.broadcast %100 : vector<16x1xf32> to vector<16x32xf32>
    %102 = arith.mulf %97, %101 : vector<16x32xf32>
    %103 = arith.truncf %102 : vector<16x32xf32> to vector<16x32xbf16>
    %104 = vector.extract_strided_slice %41 {offsets = [0, 48], sizes = [32, 16], strides = [1, 1]} : vector<32x128xbf16> to vector<32x16xbf16>
    %cst_32 = arith.constant dense<0.000000e+00> : vector<16x16xf32>
    %105 = tpu.matmul %103, %104, %cst_32 {dimension_numbers = #tpu.dot_dimension_numbers<[1], [0], [0], [1], [0, 0, 1, 1], [], []>} : vector<16x32xbf16>, vector<32x16xbf16>, vector<16x16xf32> -> vector<16x16xf32>
    %106 = vector.extract_strided_slice %38 {offsets = [0, 64], sizes = [16, 16], strides = [1, 1]} : vector<16x128xbf16> to vector<16x16xbf16>
    %107 = vector.extract_strided_slice %40 {offsets = [64, 0], sizes = [16, 32], strides = [1, 1]} : vector<128x32xbf16> to vector<16x32xbf16>
    %cst_33 = arith.constant dense<0.000000e+00> : vector<16x32xf32>
    %108 = tpu.matmul %106, %107, %cst_33 {dimension_numbers = #tpu.dot_dimension_numbers<[1], [0], [0], [1], [0, 0, 1, 1], [], []>} : vector<16x16xbf16>, vector<16x32xbf16>, vector<16x32xf32> -> vector<16x32xf32>
    %cst_34 = arith.constant dense<0xFF800000> : vector<16xf32>
    %109 = vector.multi_reduction <maximumf>, %108, %cst_34 [1] : vector<16x32xf32> to vector<16xf32>
    %110 = vector.shape_cast %109 : vector<16xf32> to vector<16x1xf32>
    %111 = vector.broadcast %110 : vector<16x1xf32> to vector<16x32xf32>
    %112 = arith.subf %108, %111 : vector<16x32xf32>
    %113 = math.exp %112 : vector<16x32xf32>
    %cst_35 = arith.constant dense<0.000000e+00> : vector<16xf32>
    %114 = vector.multi_reduction <add>, %113, %cst_35 [1] : vector<16x32xf32> to vector<16xf32>
    %115 = vector.shape_cast %114 : vector<16xf32> to vector<16x1xf32>
    %116 = tpu.reciprocal %115 {approx = true} : vector<16x1xf32> -> vector<16x1xf32>
    %117 = vector.broadcast %116 : vector<16x1xf32> to vector<16x32xf32>
    %118 = arith.mulf %113, %117 : vector<16x32xf32>
    %119 = arith.truncf %118 : vector<16x32xf32> to vector<16x32xbf16>
    %120 = vector.extract_strided_slice %41 {offsets = [0, 64], sizes = [32, 16], strides = [1, 1]} : vector<32x128xbf16> to vector<32x16xbf16>
    %cst_36 = arith.constant dense<0.000000e+00> : vector<16x16xf32>
    %121 = tpu.matmul %119, %120, %cst_36 {dimension_numbers = #tpu.dot_dimension_numbers<[1], [0], [0], [1], [0, 0, 1, 1], [], []>} : vector<16x32xbf16>, vector<32x16xbf16>, vector<16x16xf32> -> vector<16x16xf32>
    %122 = vector.extract_strided_slice %38 {offsets = [0, 80], sizes = [16, 16], strides = [1, 1]} : vector<16x128xbf16> to vector<16x16xbf16>
    %123 = vector.extract_strided_slice %40 {offsets = [80, 0], sizes = [16, 32], strides = [1, 1]} : vector<128x32xbf16> to vector<16x32xbf16>
    %cst_37 = arith.constant dense<0.000000e+00> : vector<16x32xf32>
    %124 = tpu.matmul %122, %123, %cst_37 {dimension_numbers = #tpu.dot_dimension_numbers<[1], [0], [0], [1], [0, 0, 1, 1], [], []>} : vector<16x16xbf16>, vector<16x32xbf16>, vector<16x32xf32> -> vector<16x32xf32>
    %cst_38 = arith.constant dense<0xFF800000> : vector<16xf32>
    %125 = vector.multi_reduction <maximumf>, %124, %cst_38 [1] : vector<16x32xf32> to vector<16xf32>
    %126 = vector.shape_cast %125 : vector<16xf32> to vector<16x1xf32>
    %127 = vector.broadcast %126 : vector<16x1xf32> to vector<16x32xf32>
    %128 = arith.subf %124, %127 : vector<16x32xf32>
    %129 = math.exp %128 : vector<16x32xf32>
    %cst_39 = arith.constant dense<0.000000e+00> : vector<16xf32>
    %130 = vector.multi_reduction <add>, %129, %cst_39 [1] : vector<16x32xf32> to vector<16xf32>
    %131 = vector.shape_cast %130 : vector<16xf32> to vector<16x1xf32>
    %132 = tpu.reciprocal %131 {approx = true} : vector<16x1xf32> -> vector<16x1xf32>
    %133 = vector.broadcast %132 : vector<16x1xf32> to vector<16x32xf32>
    %134 = arith.mulf %129, %133 : vector<16x32xf32>
    %135 = arith.truncf %134 : vector<16x32xf32> to vector<16x32xbf16>
    %136 = vector.extract_strided_slice %41 {offsets = [0, 80], sizes = [32, 16], strides = [1, 1]} : vector<32x128xbf16> to vector<32x16xbf16>
    %cst_40 = arith.constant dense<0.000000e+00> : vector<16x16xf32>
    %137 = tpu.matmul %135, %136, %cst_40 {dimension_numbers = #tpu.dot_dimension_numbers<[1], [0], [0], [1], [0, 0, 1, 1], [], []>} : vector<16x32xbf16>, vector<32x16xbf16>, vector<16x16xf32> -> vector<16x16xf32>
    %138 = vector.extract_strided_slice %38 {offsets = [0, 96], sizes = [16, 16], strides = [1, 1]} : vector<16x128xbf16> to vector<16x16xbf16>
    %139 = vector.extract_strided_slice %40 {offsets = [96, 0], sizes = [16, 32], strides = [1, 1]} : vector<128x32xbf16> to vector<16x32xbf16>
    %cst_41 = arith.constant dense<0.000000e+00> : vector<16x32xf32>
    %140 = tpu.matmul %138, %139, %cst_41 {dimension_numbers = #tpu.dot_dimension_numbers<[1], [0], [0], [1], [0, 0, 1, 1], [], []>} : vector<16x16xbf16>, vector<16x32xbf16>, vector<16x32xf32> -> vector<16x32xf32>
    %cst_42 = arith.constant dense<0xFF800000> : vector<16xf32>
    %141 = vector.multi_reduction <maximumf>, %140, %cst_42 [1] : vector<16x32xf32> to vector<16xf32>
    %142 = vector.shape_cast %141 : vector<16xf32> to vector<16x1xf32>
    %143 = vector.broadcast %142 : vector<16x1xf32> to vector<16x32xf32>
    %144 = arith.subf %140, %143 : vector<16x32xf32>
    %145 = math.exp %144 : vector<16x32xf32>
    %cst_43 = arith.constant dense<0.000000e+00> : vector<16xf32>
    %146 = vector.multi_reduction <add>, %145, %cst_43 [1] : vector<16x32xf32> to vector<16xf32>
    %147 = vector.shape_cast %146 : vector<16xf32> to vector<16x1xf32>
    %148 = tpu.reciprocal %147 {approx = true} : vector<16x1xf32> -> vector<16x1xf32>
    %149 = vector.broadcast %148 : vector<16x1xf32> to vector<16x32xf32>
    %150 = arith.mulf %145, %149 : vector<16x32xf32>
    %151 = arith.truncf %150 : vector<16x32xf32> to vector<16x32xbf16>
    %152 = vector.extract_strided_slice %41 {offsets = [0, 96], sizes = [32, 16], strides = [1, 1]} : vector<32x128xbf16> to vector<32x16xbf16>
    %cst_44 = arith.constant dense<0.000000e+00> : vector<16x16xf32>
    %153 = tpu.matmul %151, %152, %cst_44 {dimension_numbers = #tpu.dot_dimension_numbers<[1], [0], [0], [1], [0, 0, 1, 1], [], []>} : vector<16x32xbf16>, vector<32x16xbf16>, vector<16x16xf32> -> vector<16x16xf32>
    %154 = vector.extract_strided_slice %38 {offsets = [0, 112], sizes = [16, 16], strides = [1, 1]} : vector<16x128xbf16> to vector<16x16xbf16>
    %155 = vector.extract_strided_slice %40 {offsets = [112, 0], sizes = [16, 32], strides = [1, 1]} : vector<128x32xbf16> to vector<16x32xbf16>
    %cst_45 = arith.constant dense<0.000000e+00> : vector<16x32xf32>
    %156 = tpu.matmul %154, %155, %cst_45 {dimension_numbers = #tpu.dot_dimension_numbers<[1], [0], [0], [1], [0, 0, 1, 1], [], []>} : vector<16x16xbf16>, vector<16x32xbf16>, vector<16x32xf32> -> vector<16x32xf32>
    %cst_46 = arith.constant dense<0xFF800000> : vector<16xf32>
    %157 = vector.multi_reduction <maximumf>, %156, %cst_46 [1] : vector<16x32xf32> to vector<16xf32>
    %158 = vector.shape_cast %157 : vector<16xf32> to vector<16x1xf32>
    %159 = vector.broadcast %158 : vector<16x1xf32> to vector<16x32xf32>
    %160 = arith.subf %156, %159 : vector<16x32xf32>
    %161 = math.exp %160 : vector<16x32xf32>
    %cst_47 = arith.constant dense<0.000000e+00> : vector<16xf32>
    %162 = vector.multi_reduction <add>, %161, %cst_47 [1] : vector<16x32xf32> to vector<16xf32>
    %163 = vector.shape_cast %162 : vector<16xf32> to vector<16x1xf32>
    %164 = tpu.reciprocal %163 {approx = true} : vector<16x1xf32> -> vector<16x1xf32>
    %165 = vector.broadcast %164 : vector<16x1xf32> to vector<16x32xf32>
    %166 = arith.mulf %161, %165 : vector<16x32xf32>
    %167 = arith.truncf %166 : vector<16x32xf32> to vector<16x32xbf16>
    %168 = vector.extract_strided_slice %41 {offsets = [0, 112], sizes = [32, 16], strides = [1, 1]} : vector<32x128xbf16> to vector<32x16xbf16>
    %cst_48 = arith.constant dense<0.000000e+00> : vector<16x16xf32>
    %169 = tpu.matmul %167, %168, %cst_48 {dimension_numbers = #tpu.dot_dimension_numbers<[1], [0], [0], [1], [0, 0, 1, 1], [], []>} : vector<16x32xbf16>, vector<32x16xbf16>, vector<16x16xf32> -> vector<16x16xf32>
    %170 = tpu.concatenate %57, %73, %89, %105, %121, %137, %153, %169 in 1 : vector<16x16xf32>, vector<16x16xf32>, vector<16x16xf32>, vector<16x16xf32>, vector<16x16xf32>, vector<16x16xf32>, vector<16x16xf32>, vector<16x16xf32> -> vector<16x128xf32>
    %171 = arith.truncf %170 : vector<16x128xf32> to vector<16x128xbf16>
    %c0_49 = arith.constant 0 : index
    %c0_50 = arith.constant 0 : index
    %172 = vector.load %arg6[%c0_49, %c0_50] : memref<128x128xbf16, #tpu.memory_space<vmem>>, vector<128x128xbf16>
    %cst_51 = arith.constant dense<0.000000e+00> : vector<16x128xf32>
    %173 = tpu.matmul %171, %172, %cst_51 {dimension_numbers = #tpu.dot_dimension_numbers<[1], [0], [0], [1], [0, 0, 1, 1], [], []>} : vector<16x128xbf16>, vector<128x128xbf16>, vector<16x128xf32> -> vector<16x128xf32>
    %174 = vector.broadcast %37 : vector<1x128xf32> to vector<16x128xf32>
    %175 = arith.addf %173, %174 : vector<16x128xf32>
    %176 = vector.extract_strided_slice %33 {offsets = [16, 0], sizes = [16, 128], strides = [1, 1]} : vector<32x128xf32> to vector<16x128xf32>
    %c0_52 = arith.constant 0 : index
    %c0_53 = arith.constant 0 : index
    %177 = vector.load %arg9[%c0_52, %c0_53] : memref<1x128xf32, #tpu.memory_space<vmem>>, vector<1x128xf32>
    %178 = tpu.iota {dimensions = array<i32: 0>} : vector<16x32xi32>
    %179 = tpu.iota {dimensions = array<i32: 1>} : vector<16x32xi32>
    %180 = arith.cmpi sle, %179, %178 : vector<16x32xi32>
    %181 = arith.truncf %176 : vector<16x128xf32> to vector<16x128xbf16>
    %182 = tpu.transpose %34, [1, 0] : vector<32x128xf32> -> vector<128x32xf32>
    %183 = arith.truncf %182 : vector<128x32xf32> to vector<128x32xbf16>
    %184 = arith.truncf %35 : vector<32x128xf32> to vector<32x128xbf16>
    %185 = vector.extract_strided_slice %181 {offsets = [0, 0], sizes = [16, 16], strides = [1, 1]} : vector<16x128xbf16> to vector<16x16xbf16>
    %186 = vector.extract_strided_slice %183 {offsets = [0, 0], sizes = [16, 32], strides = [1, 1]} : vector<128x32xbf16> to vector<16x32xbf16>
    %cst_54 = arith.constant dense<0.000000e+00> : vector<16x32xf32>
    %187 = tpu.matmul %185, %186, %cst_54 {dimension_numbers = #tpu.dot_dimension_numbers<[1], [0], [0], [1], [0, 0, 1, 1], [], []>} : vector<16x16xbf16>, vector<16x32xbf16>, vector<16x32xf32> -> vector<16x32xf32>
    %cst_55 = arith.constant -1.000000e+30 : f32
    %188 = vector.broadcast %cst_55 : f32 to vector<16x32xf32>
    %189 = arith.select %180, %187, %188 : vector<16x32xi1>, vector<16x32xf32>
    %cst_56 = arith.constant dense<0xFF800000> : vector<16xf32>
    %190 = vector.multi_reduction <maximumf>, %189, %cst_56 [1] : vector<16x32xf32> to vector<16xf32>
    %191 = vector.shape_cast %190 : vector<16xf32> to vector<16x1xf32>
    %192 = vector.broadcast %191 : vector<16x1xf32> to vector<16x32xf32>
    %193 = arith.subf %189, %192 : vector<16x32xf32>
    %194 = math.exp %193 : vector<16x32xf32>
    %cst_57 = arith.constant dense<0.000000e+00> : vector<16xf32>
    %195 = vector.multi_reduction <add>, %194, %cst_57 [1] : vector<16x32xf32> to vector<16xf32>
    %196 = vector.shape_cast %195 : vector<16xf32> to vector<16x1xf32>
    %197 = tpu.reciprocal %196 {approx = true} : vector<16x1xf32> -> vector<16x1xf32>
    %198 = vector.broadcast %197 : vector<16x1xf32> to vector<16x32xf32>
    %199 = arith.mulf %194, %198 : vector<16x32xf32>
    %200 = arith.truncf %199 : vector<16x32xf32> to vector<16x32xbf16>
    %201 = vector.extract_strided_slice %184 {offsets = [0, 0], sizes = [32, 16], strides = [1, 1]} : vector<32x128xbf16> to vector<32x16xbf16>
    %cst_58 = arith.constant dense<0.000000e+00> : vector<16x16xf32>
    %202 = tpu.matmul %200, %201, %cst_58 {dimension_numbers = #tpu.dot_dimension_numbers<[1], [0], [0], [1], [0, 0, 1, 1], [], []>} : vector<16x32xbf16>, vector<32x16xbf16>, vector<16x16xf32> -> vector<16x16xf32>
    %203 = vector.extract_strided_slice %181 {offsets = [0, 16], sizes = [16, 16], strides = [1, 1]} : vector<16x128xbf16> to vector<16x16xbf16>
    %204 = vector.extract_strided_slice %183 {offsets = [16, 0], sizes = [16, 32], strides = [1, 1]} : vector<128x32xbf16> to vector<16x32xbf16>
    %cst_59 = arith.constant dense<0.000000e+00> : vector<16x32xf32>
    %205 = tpu.matmul %203, %204, %cst_59 {dimension_numbers = #tpu.dot_dimension_numbers<[1], [0], [0], [1], [0, 0, 1, 1], [], []>} : vector<16x16xbf16>, vector<16x32xbf16>, vector<16x32xf32> -> vector<16x32xf32>
    %cst_60 = arith.constant -1.000000e+30 : f32
    %206 = vector.broadcast %cst_60 : f32 to vector<16x32xf32>
    %207 = arith.select %180, %205, %206 : vector<16x32xi1>, vector<16x32xf32>
    %cst_61 = arith.constant dense<0xFF800000> : vector<16xf32>
    %208 = vector.multi_reduction <maximumf>, %207, %cst_61 [1] : vector<16x32xf32> to vector<16xf32>
    %209 = vector.shape_cast %208 : vector<16xf32> to vector<16x1xf32>
    %210 = vector.broadcast %209 : vector<16x1xf32> to vector<16x32xf32>
    %211 = arith.subf %207, %210 : vector<16x32xf32>
    %212 = math.exp %211 : vector<16x32xf32>
    %cst_62 = arith.constant dense<0.000000e+00> : vector<16xf32>
    %213 = vector.multi_reduction <add>, %212, %cst_62 [1] : vector<16x32xf32> to vector<16xf32>
    %214 = vector.shape_cast %213 : vector<16xf32> to vector<16x1xf32>
    %215 = tpu.reciprocal %214 {approx = true} : vector<16x1xf32> -> vector<16x1xf32>
    %216 = vector.broadcast %215 : vector<16x1xf32> to vector<16x32xf32>
    %217 = arith.mulf %212, %216 : vector<16x32xf32>
    %218 = arith.truncf %217 : vector<16x32xf32> to vector<16x32xbf16>
    %219 = vector.extract_strided_slice %184 {offsets = [0, 16], sizes = [32, 16], strides = [1, 1]} : vector<32x128xbf16> to vector<32x16xbf16>
    %cst_63 = arith.constant dense<0.000000e+00> : vector<16x16xf32>
    %220 = tpu.matmul %218, %219, %cst_63 {dimension_numbers = #tpu.dot_dimension_numbers<[1], [0], [0], [1], [0, 0, 1, 1], [], []>} : vector<16x32xbf16>, vector<32x16xbf16>, vector<16x16xf32> -> vector<16x16xf32>
    %221 = vector.extract_strided_slice %181 {offsets = [0, 32], sizes = [16, 16], strides = [1, 1]} : vector<16x128xbf16> to vector<16x16xbf16>
    %222 = vector.extract_strided_slice %183 {offsets = [32, 0], sizes = [16, 32], strides = [1, 1]} : vector<128x32xbf16> to vector<16x32xbf16>
    %cst_64 = arith.constant dense<0.000000e+00> : vector<16x32xf32>
    %223 = tpu.matmul %221, %222, %cst_64 {dimension_numbers = #tpu.dot_dimension_numbers<[1], [0], [0], [1], [0, 0, 1, 1], [], []>} : vector<16x16xbf16>, vector<16x32xbf16>, vector<16x32xf32> -> vector<16x32xf32>
    %cst_65 = arith.constant -1.000000e+30 : f32
    %224 = vector.broadcast %cst_65 : f32 to vector<16x32xf32>
    %225 = arith.select %180, %223, %224 : vector<16x32xi1>, vector<16x32xf32>
    %cst_66 = arith.constant dense<0xFF800000> : vector<16xf32>
    %226 = vector.multi_reduction <maximumf>, %225, %cst_66 [1] : vector<16x32xf32> to vector<16xf32>
    %227 = vector.shape_cast %226 : vector<16xf32> to vector<16x1xf32>
    %228 = vector.broadcast %227 : vector<16x1xf32> to vector<16x32xf32>
    %229 = arith.subf %225, %228 : vector<16x32xf32>
    %230 = math.exp %229 : vector<16x32xf32>
    %cst_67 = arith.constant dense<0.000000e+00> : vector<16xf32>
    %231 = vector.multi_reduction <add>, %230, %cst_67 [1] : vector<16x32xf32> to vector<16xf32>
    %232 = vector.shape_cast %231 : vector<16xf32> to vector<16x1xf32>
    %233 = tpu.reciprocal %232 {approx = true} : vector<16x1xf32> -> vector<16x1xf32>
    %234 = vector.broadcast %233 : vector<16x1xf32> to vector<16x32xf32>
    %235 = arith.mulf %230, %234 : vector<16x32xf32>
    %236 = arith.truncf %235 : vector<16x32xf32> to vector<16x32xbf16>
    %237 = vector.extract_strided_slice %184 {offsets = [0, 32], sizes = [32, 16], strides = [1, 1]} : vector<32x128xbf16> to vector<32x16xbf16>
    %cst_68 = arith.constant dense<0.000000e+00> : vector<16x16xf32>
    %238 = tpu.matmul %236, %237, %cst_68 {dimension_numbers = #tpu.dot_dimension_numbers<[1], [0], [0], [1], [0, 0, 1, 1], [], []>} : vector<16x32xbf16>, vector<32x16xbf16>, vector<16x16xf32> -> vector<16x16xf32>
    %239 = vector.extract_strided_slice %181 {offsets = [0, 48], sizes = [16, 16], strides = [1, 1]} : vector<16x128xbf16> to vector<16x16xbf16>
    %240 = vector.extract_strided_slice %183 {offsets = [48, 0], sizes = [16, 32], strides = [1, 1]} : vector<128x32xbf16> to vector<16x32xbf16>
    %cst_69 = arith.constant dense<0.000000e+00> : vector<16x32xf32>
    %241 = tpu.matmul %239, %240, %cst_69 {dimension_numbers = #tpu.dot_dimension_numbers<[1], [0], [0], [1], [0, 0, 1, 1], [], []>} : vector<16x16xbf16>, vector<16x32xbf16>, vector<16x32xf32> -> vector<16x32xf32>
    %cst_70 = arith.constant -1.000000e+30 : f32
    %242 = vector.broadcast %cst_70 : f32 to vector<16x32xf32>
    %243 = arith.select %180, %241, %242 : vector<16x32xi1>, vector<16x32xf32>
    %cst_71 = arith.constant dense<0xFF800000> : vector<16xf32>
    %244 = vector.multi_reduction <maximumf>, %243, %cst_71 [1] : vector<16x32xf32> to vector<16xf32>
    %245 = vector.shape_cast %244 : vector<16xf32> to vector<16x1xf32>
    %246 = vector.broadcast %245 : vector<16x1xf32> to vector<16x32xf32>
    %247 = arith.subf %243, %246 : vector<16x32xf32>
    %248 = math.exp %247 : vector<16x32xf32>
    %cst_72 = arith.constant dense<0.000000e+00> : vector<16xf32>
    %249 = vector.multi_reduction <add>, %248, %cst_72 [1] : vector<16x32xf32> to vector<16xf32>
    %250 = vector.shape_cast %249 : vector<16xf32> to vector<16x1xf32>
    %251 = tpu.reciprocal %250 {approx = true} : vector<16x1xf32> -> vector<16x1xf32>
    %252 = vector.broadcast %251 : vector<16x1xf32> to vector<16x32xf32>
    %253 = arith.mulf %248, %252 : vector<16x32xf32>
    %254 = arith.truncf %253 : vector<16x32xf32> to vector<16x32xbf16>
    %255 = vector.extract_strided_slice %184 {offsets = [0, 48], sizes = [32, 16], strides = [1, 1]} : vector<32x128xbf16> to vector<32x16xbf16>
    %cst_73 = arith.constant dense<0.000000e+00> : vector<16x16xf32>
    %256 = tpu.matmul %254, %255, %cst_73 {dimension_numbers = #tpu.dot_dimension_numbers<[1], [0], [0], [1], [0, 0, 1, 1], [], []>} : vector<16x32xbf16>, vector<32x16xbf16>, vector<16x16xf32> -> vector<16x16xf32>
    %257 = vector.extract_strided_slice %181 {offsets = [0, 64], sizes = [16, 16], strides = [1, 1]} : vector<16x128xbf16> to vector<16x16xbf16>
    %258 = vector.extract_strided_slice %183 {offsets = [64, 0], sizes = [16, 32], strides = [1, 1]} : vector<128x32xbf16> to vector<16x32xbf16>
    %cst_74 = arith.constant dense<0.000000e+00> : vector<16x32xf32>
    %259 = tpu.matmul %257, %258, %cst_74 {dimension_numbers = #tpu.dot_dimension_numbers<[1], [0], [0], [1], [0, 0, 1, 1], [], []>} : vector<16x16xbf16>, vector<16x32xbf16>, vector<16x32xf32> -> vector<16x32xf32>
    %cst_75 = arith.constant -1.000000e+30 : f32
    %260 = vector.broadcast %cst_75 : f32 to vector<16x32xf32>
    %261 = arith.select %180, %259, %260 : vector<16x32xi1>, vector<16x32xf32>
    %cst_76 = arith.constant dense<0xFF800000> : vector<16xf32>
    %262 = vector.multi_reduction <maximumf>, %261, %cst_76 [1] : vector<16x32xf32> to vector<16xf32>
    %263 = vector.shape_cast %262 : vector<16xf32> to vector<16x1xf32>
    %264 = vector.broadcast %263 : vector<16x1xf32> to vector<16x32xf32>
    %265 = arith.subf %261, %264 : vector<16x32xf32>
    %266 = math.exp %265 : vector<16x32xf32>
    %cst_77 = arith.constant dense<0.000000e+00> : vector<16xf32>
    %267 = vector.multi_reduction <add>, %266, %cst_77 [1] : vector<16x32xf32> to vector<16xf32>
    %268 = vector.shape_cast %267 : vector<16xf32> to vector<16x1xf32>
    %269 = tpu.reciprocal %268 {approx = true} : vector<16x1xf32> -> vector<16x1xf32>
    %270 = vector.broadcast %269 : vector<16x1xf32> to vector<16x32xf32>
    %271 = arith.mulf %266, %270 : vector<16x32xf32>
    %272 = arith.truncf %271 : vector<16x32xf32> to vector<16x32xbf16>
    %273 = vector.extract_strided_slice %184 {offsets = [0, 64], sizes = [32, 16], strides = [1, 1]} : vector<32x128xbf16> to vector<32x16xbf16>
    %cst_78 = arith.constant dense<0.000000e+00> : vector<16x16xf32>
    %274 = tpu.matmul %272, %273, %cst_78 {dimension_numbers = #tpu.dot_dimension_numbers<[1], [0], [0], [1], [0, 0, 1, 1], [], []>} : vector<16x32xbf16>, vector<32x16xbf16>, vector<16x16xf32> -> vector<16x16xf32>
    %275 = vector.extract_strided_slice %181 {offsets = [0, 80], sizes = [16, 16], strides = [1, 1]} : vector<16x128xbf16> to vector<16x16xbf16>
    %276 = vector.extract_strided_slice %183 {offsets = [80, 0], sizes = [16, 32], strides = [1, 1]} : vector<128x32xbf16> to vector<16x32xbf16>
    %cst_79 = arith.constant dense<0.000000e+00> : vector<16x32xf32>
    %277 = tpu.matmul %275, %276, %cst_79 {dimension_numbers = #tpu.dot_dimension_numbers<[1], [0], [0], [1], [0, 0, 1, 1], [], []>} : vector<16x16xbf16>, vector<16x32xbf16>, vector<16x32xf32> -> vector<16x32xf32>
    %cst_80 = arith.constant -1.000000e+30 : f32
    %278 = vector.broadcast %cst_80 : f32 to vector<16x32xf32>
    %279 = arith.select %180, %277, %278 : vector<16x32xi1>, vector<16x32xf32>
    %cst_81 = arith.constant dense<0xFF800000> : vector<16xf32>
    %280 = vector.multi_reduction <maximumf>, %279, %cst_81 [1] : vector<16x32xf32> to vector<16xf32>
    %281 = vector.shape_cast %280 : vector<16xf32> to vector<16x1xf32>
    %282 = vector.broadcast %281 : vector<16x1xf32> to vector<16x32xf32>
    %283 = arith.subf %279, %282 : vector<16x32xf32>
    %284 = math.exp %283 : vector<16x32xf32>
    %cst_82 = arith.constant dense<0.000000e+00> : vector<16xf32>
    %285 = vector.multi_reduction <add>, %284, %cst_82 [1] : vector<16x32xf32> to vector<16xf32>
    %286 = vector.shape_cast %285 : vector<16xf32> to vector<16x1xf32>
    %287 = tpu.reciprocal %286 {approx = true} : vector<16x1xf32> -> vector<16x1xf32>
    %288 = vector.broadcast %287 : vector<16x1xf32> to vector<16x32xf32>
    %289 = arith.mulf %284, %288 : vector<16x32xf32>
    %290 = arith.truncf %289 : vector<16x32xf32> to vector<16x32xbf16>
    %291 = vector.extract_strided_slice %184 {offsets = [0, 80], sizes = [32, 16], strides = [1, 1]} : vector<32x128xbf16> to vector<32x16xbf16>
    %cst_83 = arith.constant dense<0.000000e+00> : vector<16x16xf32>
    %292 = tpu.matmul %290, %291, %cst_83 {dimension_numbers = #tpu.dot_dimension_numbers<[1], [0], [0], [1], [0, 0, 1, 1], [], []>} : vector<16x32xbf16>, vector<32x16xbf16>, vector<16x16xf32> -> vector<16x16xf32>
    %293 = vector.extract_strided_slice %181 {offsets = [0, 96], sizes = [16, 16], strides = [1, 1]} : vector<16x128xbf16> to vector<16x16xbf16>
    %294 = vector.extract_strided_slice %183 {offsets = [96, 0], sizes = [16, 32], strides = [1, 1]} : vector<128x32xbf16> to vector<16x32xbf16>
    %cst_84 = arith.constant dense<0.000000e+00> : vector<16x32xf32>
    %295 = tpu.matmul %293, %294, %cst_84 {dimension_numbers = #tpu.dot_dimension_numbers<[1], [0], [0], [1], [0, 0, 1, 1], [], []>} : vector<16x16xbf16>, vector<16x32xbf16>, vector<16x32xf32> -> vector<16x32xf32>
    %cst_85 = arith.constant -1.000000e+30 : f32
    %296 = vector.broadcast %cst_85 : f32 to vector<16x32xf32>
    %297 = arith.select %180, %295, %296 : vector<16x32xi1>, vector<16x32xf32>
    %cst_86 = arith.constant dense<0xFF800000> : vector<16xf32>
    %298 = vector.multi_reduction <maximumf>, %297, %cst_86 [1] : vector<16x32xf32> to vector<16xf32>
    %299 = vector.shape_cast %298 : vector<16xf32> to vector<16x1xf32>
    %300 = vector.broadcast %299 : vector<16x1xf32> to vector<16x32xf32>
    %301 = arith.subf %297, %300 : vector<16x32xf32>
    %302 = math.exp %301 : vector<16x32xf32>
    %cst_87 = arith.constant dense<0.000000e+00> : vector<16xf32>
    %303 = vector.multi_reduction <add>, %302, %cst_87 [1] : vector<16x32xf32> to vector<16xf32>
    %304 = vector.shape_cast %303 : vector<16xf32> to vector<16x1xf32>
    %305 = tpu.reciprocal %304 {approx = true} : vector<16x1xf32> -> vector<16x1xf32>
    %306 = vector.broadcast %305 : vector<16x1xf32> to vector<16x32xf32>
    %307 = arith.mulf %302, %306 : vector<16x32xf32>
    %308 = arith.truncf %307 : vector<16x32xf32> to vector<16x32xbf16>
    %309 = vector.extract_strided_slice %184 {offsets = [0, 96], sizes = [32, 16], strides = [1, 1]} : vector<32x128xbf16> to vector<32x16xbf16>
    %cst_88 = arith.constant dense<0.000000e+00> : vector<16x16xf32>
    %310 = tpu.matmul %308, %309, %cst_88 {dimension_numbers = #tpu.dot_dimension_numbers<[1], [0], [0], [1], [0, 0, 1, 1], [], []>} : vector<16x32xbf16>, vector<32x16xbf16>, vector<16x16xf32> -> vector<16x16xf32>
    %311 = vector.extract_strided_slice %181 {offsets = [0, 112], sizes = [16, 16], strides = [1, 1]} : vector<16x128xbf16> to vector<16x16xbf16>
    %312 = vector.extract_strided_slice %183 {offsets = [112, 0], sizes = [16, 32], strides = [1, 1]} : vector<128x32xbf16> to vector<16x32xbf16>
    %cst_89 = arith.constant dense<0.000000e+00> : vector<16x32xf32>
    %313 = tpu.matmul %311, %312, %cst_89 {dimension_numbers = #tpu.dot_dimension_numbers<[1], [0], [0], [1], [0, 0, 1, 1], [], []>} : vector<16x16xbf16>, vector<16x32xbf16>, vector<16x32xf32> -> vector<16x32xf32>
    %cst_90 = arith.constant -1.000000e+30 : f32
    %314 = vector.broadcast %cst_90 : f32 to vector<16x32xf32>
    %315 = arith.select %180, %313, %314 : vector<16x32xi1>, vector<16x32xf32>
    %cst_91 = arith.constant dense<0xFF800000> : vector<16xf32>
    %316 = vector.multi_reduction <maximumf>, %315, %cst_91 [1] : vector<16x32xf32> to vector<16xf32>
    %317 = vector.shape_cast %316 : vector<16xf32> to vector<16x1xf32>
    %318 = vector.broadcast %317 : vector<16x1xf32> to vector<16x32xf32>
    %319 = arith.subf %315, %318 : vector<16x32xf32>
    %320 = math.exp %319 : vector<16x32xf32>
    %cst_92 = arith.constant dense<0.000000e+00> : vector<16xf32>
    %321 = vector.multi_reduction <add>, %320, %cst_92 [1] : vector<16x32xf32> to vector<16xf32>
    %322 = vector.shape_cast %321 : vector<16xf32> to vector<16x1xf32>
    %323 = tpu.reciprocal %322 {approx = true} : vector<16x1xf32> -> vector<16x1xf32>
    %324 = vector.broadcast %323 : vector<16x1xf32> to vector<16x32xf32>
    %325 = arith.mulf %320, %324 : vector<16x32xf32>
    %326 = arith.truncf %325 : vector<16x32xf32> to vector<16x32xbf16>
    %327 = vector.extract_strided_slice %184 {offsets = [0, 112], sizes = [32, 16], strides = [1, 1]} : vector<32x128xbf16> to vector<32x16xbf16>
    %cst_93 = arith.constant dense<0.000000e+00> : vector<16x16xf32>
    %328 = tpu.matmul %326, %327, %cst_93 {dimension_numbers = #tpu.dot_dimension_numbers<[1], [0], [0], [1], [0, 0, 1, 1], [], []>} : vector<16x32xbf16>, vector<32x16xbf16>, vector<16x16xf32> -> vector<16x16xf32>
    %329 = tpu.concatenate %202, %220, %238, %256, %274, %292, %310, %328 in 1 : vector<16x16xf32>, vector<16x16xf32>, vector<16x16xf32>, vector<16x16xf32>, vector<16x16xf32>, vector<16x16xf32>, vector<16x16xf32>, vector<16x16xf32> -> vector<16x128xf32>
    %330 = arith.truncf %329 : vector<16x128xf32> to vector<16x128xbf16>
    %c0_94 = arith.constant 0 : index
    %c0_95 = arith.constant 0 : index
    %331 = vector.load %arg8[%c0_94, %c0_95] : memref<128x128xbf16, #tpu.memory_space<vmem>>, vector<128x128xbf16>
    %cst_96 = arith.constant dense<0.000000e+00> : vector<16x128xf32>
    %332 = tpu.matmul %330, %331, %cst_96 {dimension_numbers = #tpu.dot_dimension_numbers<[1], [0], [0], [1], [0, 0, 1, 1], [], []>} : vector<16x128xbf16>, vector<128x128xbf16>, vector<16x128xf32> -> vector<16x128xf32>
    %333 = vector.broadcast %177 : vector<1x128xf32> to vector<16x128xf32>
    %334 = arith.addf %332, %333 : vector<16x128xf32>
    %335 = tpu.concatenate %175, %334 in 0 : vector<16x128xf32>, vector<16x128xf32> -> vector<32x128xf32>
    %c0_97 = arith.constant 0 : index
    %c0_98 = arith.constant 0 : index
    %336 = vector.load %arg10[%c0_97, %c0_98] : memref<1x128xf32, #tpu.memory_space<vmem>>, vector<1x128xf32>
    %c0_99 = arith.constant 0 : index
    %c0_100 = arith.constant 0 : index
    %337 = vector.load %arg11[%c0_99, %c0_100] : memref<1x128xf32, #tpu.memory_space<vmem>>, vector<1x128xf32>
    %cst_101 = arith.constant dense<0.000000e+00> : vector<32xf32>
    %338 = vector.multi_reduction <add>, %335, %cst_101 [1] : vector<32x128xf32> to vector<32xf32>
    %339 = vector.shape_cast %338 : vector<32xf32> to vector<32x1xf32>
    %cst_102 = arith.constant 1.280000e+02 : f32
    %340 = vector.broadcast %cst_102 : f32 to vector<32x1xf32>
    %341 = arith.divf %339, %340 : vector<32x1xf32>
    %342 = vector.broadcast %341 : vector<32x1xf32> to vector<32x128xf32>
    %343 = arith.subf %335, %342 : vector<32x128xf32>
    %344 = arith.mulf %343, %343 : vector<32x128xf32>
    %cst_103 = arith.constant dense<0.000000e+00> : vector<32xf32>
    %345 = vector.multi_reduction <add>, %344, %cst_103 [1] : vector<32x128xf32> to vector<32xf32>
    %346 = vector.shape_cast %345 : vector<32xf32> to vector<32x1xf32>
    %cst_104 = arith.constant 1.280000e+02 : f32
    %347 = vector.broadcast %cst_104 : f32 to vector<32x1xf32>
    %348 = arith.divf %346, %347 : vector<32x1xf32>
    %cst_105 = arith.constant 9.99999974E-6 : f32
    %349 = vector.broadcast %cst_105 : f32 to vector<32x1xf32>
    %350 = arith.addf %348, %349 : vector<32x1xf32>
    %351 = math.rsqrt %350 : vector<32x1xf32>
    %352 = vector.broadcast %351 : vector<32x1xf32> to vector<32x128xf32>
    %353 = arith.mulf %343, %352 : vector<32x128xf32>
    %354 = vector.broadcast %336 : vector<1x128xf32> to vector<32x128xf32>
    %355 = arith.mulf %353, %354 : vector<32x128xf32>
    %356 = vector.broadcast %337 : vector<1x128xf32> to vector<32x128xf32>
    %357 = arith.addf %355, %356 : vector<32x128xf32>
    %358 = arith.truncf %357 : vector<32x128xf32> to vector<32x128xbf16>
    %c0_106 = arith.constant 0 : index
    %c0_107 = arith.constant 0 : index
    %359 = vector.load %arg12[%c0_106, %c0_107] : memref<128x512xbf16, #tpu.memory_space<vmem>>, vector<128x512xbf16>
    %cst_108 = arith.constant dense<0.000000e+00> : vector<32x512xf32>
    %360 = tpu.matmul %358, %359, %cst_108 {dimension_numbers = #tpu.dot_dimension_numbers<[1], [0], [0], [1], [0, 0, 1, 1], [], []>} : vector<32x128xbf16>, vector<128x512xbf16>, vector<32x512xf32> -> vector<32x512xf32>
    %c0_109 = arith.constant 0 : index
    %c0_110 = arith.constant 0 : index
    %361 = vector.load %arg13[%c0_109, %c0_110] : memref<1x512xf32, #tpu.memory_space<vmem>>, vector<1x512xf32>
    %362 = vector.broadcast %361 : vector<1x512xf32> to vector<32x512xf32>
    %363 = arith.addf %360, %362 : vector<32x512xf32>
    %cst_111 = arith.constant 5.000000e-01 : f32
    %364 = vector.broadcast %cst_111 : f32 to vector<32x512xf32>
    %365 = arith.mulf %364, %363 : vector<32x512xf32>
    %cst_112 = arith.constant 0.707106769 : f32
    %366 = vector.broadcast %cst_112 : f32 to vector<32x512xf32>
    %367 = arith.mulf %363, %366 : vector<32x512xf32>
    %368 = math.erf %367 : vector<32x512xf32>
    %cst_113 = arith.constant 1.000000e+00 : f32
    %369 = vector.broadcast %cst_113 : f32 to vector<32x512xf32>
    %370 = arith.addf %369, %368 : vector<32x512xf32>
    %371 = arith.mulf %365, %370 : vector<32x512xf32>
    %372 = arith.truncf %371 : vector<32x512xf32> to vector<32x512xbf16>
    %c0_114 = arith.constant 0 : index
    %c0_115 = arith.constant 0 : index
    %373 = vector.load %arg14[%c0_114, %c0_115] : memref<512x128xbf16, #tpu.memory_space<vmem>>, vector<512x128xbf16>
    %cst_116 = arith.constant dense<0.000000e+00> : vector<32x128xf32>
    %374 = tpu.matmul %372, %373, %cst_116 {dimension_numbers = #tpu.dot_dimension_numbers<[1], [0], [0], [1], [0, 0, 1, 1], [], []>} : vector<32x512xbf16>, vector<512x128xbf16>, vector<32x128xf32> -> vector<32x128xf32>
    %c0_117 = arith.constant 0 : index
    %c0_118 = arith.constant 0 : index
    %375 = vector.load %arg15[%c0_117, %c0_118] : memref<1x128xf32, #tpu.memory_space<vmem>>, vector<1x128xf32>
    %376 = vector.broadcast %375 : vector<1x128xf32> to vector<32x128xf32>
    %377 = arith.addf %374, %376 : vector<32x128xf32>
    %378 = arith.addf %335, %377 : vector<32x128xf32>
    %379 = vector.extract_strided_slice %378 {offsets = [0, 0], sizes = [16, 128], strides = [1, 1]} : vector<32x128xf32> to vector<16x128xf32>
    %c0_119 = arith.constant 0 : index
    %c0_120 = arith.constant 0 : index
    %c0_121 = arith.constant 0 : index
    %380 = vector.load %arg26[%c0_119, %c0_120, %c0_121] : memref<1x16x128xf32, #tpu.memory_space<vmem>>, vector<1x16x128xf32>
    %381 = vector.shape_cast %380 : vector<1x16x128xf32> to vector<16x128xf32>
    %382 = vector.shape_cast %379 : vector<16x128xf32> to vector<1x16x128xf32>
    tpu.vector_store %arg26[%c0_119, %c0_120, %c0_121], %382 {strides = array<i32>} : memref<1x16x128xf32, #tpu.memory_space<vmem>>, vector<1x16x128xf32>,
    %383 = vector.extract_strided_slice %378 {offsets = [17, 0], sizes = [1, 128], strides = [1, 1]} : vector<32x128xf32> to vector<1x128xf32>
    %384 = vector.extract_strided_slice %378 {offsets = [18, 0], sizes = [1, 128], strides = [1, 1]} : vector<32x128xf32> to vector<1x128xf32>
    %385 = vector.extract_strided_slice %378 {offsets = [19, 0], sizes = [1, 128], strides = [1, 1]} : vector<32x128xf32> to vector<1x128xf32>
    %386 = vector.extract_strided_slice %378 {offsets = [20, 0], sizes = [1, 128], strides = [1, 1]} : vector<32x128xf32> to vector<1x128xf32>
    %387 = vector.extract_strided_slice %378 {offsets = [21, 0], sizes = [1, 128], strides = [1, 1]} : vector<32x128xf32> to vector<1x128xf32>
    %388 = vector.extract_strided_slice %378 {offsets = [22, 0], sizes = [1, 128], strides = [1, 1]} : vector<32x128xf32> to vector<1x128xf32>
    %389 = vector.extract_strided_slice %378 {offsets = [23, 0], sizes = [1, 128], strides = [1, 1]} : vector<32x128xf32> to vector<1x128xf32>
    %390 = vector.extract_strided_slice %378 {offsets = [24, 0], sizes = [1, 128], strides = [1, 1]} : vector<32x128xf32> to vector<1x128xf32>
    %391 = vector.extract_strided_slice %378 {offsets = [25, 0], sizes = [1, 128], strides = [1, 1]} : vector<32x128xf32> to vector<1x128xf32>
    %392 = vector.extract_strided_slice %378 {offsets = [26, 0], sizes = [1, 128], strides = [1, 1]} : vector<32x128xf32> to vector<1x128xf32>
    %393 = vector.extract_strided_slice %378 {offsets = [27, 0], sizes = [1, 128], strides = [1, 1]} : vector<32x128xf32> to vector<1x128xf32>
    %394 = vector.extract_strided_slice %378 {offsets = [28, 0], sizes = [1, 128], strides = [1, 1]} : vector<32x128xf32> to vector<1x128xf32>
    %395 = vector.extract_strided_slice %378 {offsets = [29, 0], sizes = [1, 128], strides = [1, 1]} : vector<32x128xf32> to vector<1x128xf32>
    %396 = vector.extract_strided_slice %378 {offsets = [30, 0], sizes = [1, 128], strides = [1, 1]} : vector<32x128xf32> to vector<1x128xf32>
    %397 = vector.extract_strided_slice %378 {offsets = [31, 0], sizes = [1, 128], strides = [1, 1]} : vector<32x128xf32> to vector<1x128xf32>
    %398 = tpu.concatenate %383, %384, %385, %386, %387, %388, %389, %390, %391, %392, %393, %394, %395, %396, %397 in 1 : vector<1x128xf32>, vector<1x128xf32>, vector<1x128xf32>, vector<1x128xf32>, vector<1x128xf32>, vector<1x128xf32>, vector<1x128xf32>, vector<1x128xf32>, vector<1x128xf32>, vector<1x128xf32>, vector<1x128xf32>, vector<1x128xf32>, vector<1x128xf32>, vector<1x128xf32>, vector<1x128xf32> -> vector<1x1920xf32>
    %399 = arith.truncf %398 : vector<1x1920xf32> to vector<1x1920xbf16>
    %c0_122 = arith.constant 0 : index
    %c0_123 = arith.constant 0 : index
    %400 = vector.load %arg16[%c0_122, %c0_123] : memref<1920x640xbf16, #tpu.memory_space<vmem>>, vector<1920x640xbf16>
    %cst_124 = arith.constant dense<0.000000e+00> : vector<1x640xf32>
    %401 = tpu.matmul %399, %400, %cst_124 {dimension_numbers = #tpu.dot_dimension_numbers<[1], [0], [0], [1], [0, 0, 1, 1], [], []>} : vector<1x1920xbf16>, vector<1920x640xbf16>, vector<1x640xf32> -> vector<1x640xf32>
    %c0_125 = arith.constant 0 : index
    %c0_126 = arith.constant 0 : index
    %402 = vector.load %arg17[%c0_125, %c0_126] : memref<1x640xf32, #tpu.memory_space<vmem>>, vector<1x640xf32>
    %403 = arith.addf %401, %402 : vector<1x640xf32>
    %c0_127 = arith.constant 0 : index
    %c0_128 = arith.constant 0 : index
    %404 = vector.load %arg18[%c0_127, %c0_128] : memref<1x640xf32, #tpu.memory_space<vmem>>, vector<1x640xf32>
    %c0_129 = arith.constant 0 : index
    %c0_130 = arith.constant 0 : index
    %405 = vector.load %arg19[%c0_129, %c0_130] : memref<1x640xf32, #tpu.memory_space<vmem>>, vector<1x640xf32>
    %cst_131 = arith.constant dense<0.000000e+00> : vector<1xf32>
    %406 = vector.multi_reduction <add>, %403, %cst_131 [1] : vector<1x640xf32> to vector<1xf32>
    %407 = vector.shape_cast %406 : vector<1xf32> to vector<1x1xf32>
    %cst_132 = arith.constant 6.400000e+02 : f32
    %408 = vector.broadcast %cst_132 : f32 to vector<1x1xf32>
    %409 = arith.divf %407, %408 : vector<1x1xf32>
    %410 = vector.broadcast %409 : vector<1x1xf32> to vector<1x640xf32>
    %411 = arith.subf %403, %410 : vector<1x640xf32>
    %412 = arith.mulf %411, %411 : vector<1x640xf32>
    %cst_133 = arith.constant dense<0.000000e+00> : vector<1xf32>
    %413 = vector.multi_reduction <add>, %412, %cst_133 [1] : vector<1x640xf32> to vector<1xf32>
    %414 = vector.shape_cast %413 : vector<1xf32> to vector<1x1xf32>
    %cst_134 = arith.constant 6.400000e+02 : f32
    %415 = vector.broadcast %cst_134 : f32 to vector<1x1xf32>
    %416 = arith.divf %414, %415 : vector<1x1xf32>
    %cst_135 = arith.constant 9.99999974E-6 : f32
    %417 = vector.broadcast %cst_135 : f32 to vector<1x1xf32>
    %418 = arith.addf %416, %417 : vector<1x1xf32>
    %419 = math.rsqrt %418 : vector<1x1xf32>
    %420 = vector.broadcast %419 : vector<1x1xf32> to vector<1x640xf32>
    %421 = arith.mulf %411, %420 : vector<1x640xf32>
    %422 = arith.mulf %421, %404 : vector<1x640xf32>
    %423 = arith.addf %422, %405 : vector<1x640xf32>
    %cst_136 = arith.constant 5.000000e-01 : f32
    %424 = vector.broadcast %cst_136 : f32 to vector<1x640xf32>
    %425 = arith.mulf %424, %423 : vector<1x640xf32>
    %cst_137 = arith.constant 0.707106769 : f32
    %426 = vector.broadcast %cst_137 : f32 to vector<1x640xf32>
    %427 = arith.mulf %423, %426 : vector<1x640xf32>
    %428 = math.erf %427 : vector<1x640xf32>
    %cst_138 = arith.constant 1.000000e+00 : f32
    %429 = vector.broadcast %cst_138 : f32 to vector<1x640xf32>
    %430 = arith.addf %429, %428 : vector<1x640xf32>
    %431 = arith.mulf %425, %430 : vector<1x640xf32>
    %432 = arith.truncf %431 : vector<1x640xf32> to vector<1x640xbf16>
    %c0_139 = arith.constant 0 : index
    %c0_140 = arith.constant 0 : index
    %433 = vector.load %arg20[%c0_139, %c0_140] : memref<640x128xbf16, #tpu.memory_space<vmem>>, vector<640x128xbf16>
    %cst_141 = arith.constant dense<0.000000e+00> : vector<1x128xf32>
    %434 = tpu.matmul %432, %433, %cst_141 {dimension_numbers = #tpu.dot_dimension_numbers<[1], [0], [0], [1], [0, 0, 1, 1], [], []>} : vector<1x640xbf16>, vector<640x128xbf16>, vector<1x128xf32> -> vector<1x128xf32>
    %c0_142 = arith.constant 0 : index
    %c0_143 = arith.constant 0 : index
    %435 = vector.load %arg21[%c0_142, %c0_143] : memref<1x128xf32, #tpu.memory_space<vmem>>, vector<1x128xf32>
    %436 = arith.addf %434, %435 : vector<1x128xf32>
    %c0_144 = arith.constant 0 : index
    %c0_145 = arith.constant 0 : index
    %437 = vector.load %arg22[%c0_144, %c0_145] : memref<1x128xf32, #tpu.memory_space<vmem>>, vector<1x128xf32>
    %c0_146 = arith.constant 0 : index
    %c0_147 = arith.constant 0 : index
    %438 = vector.load %arg23[%c0_146, %c0_147] : memref<1x128xf32, #tpu.memory_space<vmem>>, vector<1x128xf32>
    %cst_148 = arith.constant dense<0.000000e+00> : vector<1xf32>
    %439 = vector.multi_reduction <add>, %436, %cst_148 [1] : vector<1x128xf32> to vector<1xf32>
    %440 = vector.shape_cast %439 : vector<1xf32> to vector<1x1xf32>
    %cst_149 = arith.constant 1.280000e+02 : f32
    %441 = vector.broadcast %cst_149 : f32 to vector<1x1xf32>
    %442 = arith.divf %440, %441 : vector<1x1xf32>
    %443 = vector.broadcast %442 : vector<1x1xf32> to vector<1x128xf32>
    %444 = arith.subf %436, %443 : vector<1x128xf32>
    %445 = arith.mulf %444, %444 : vector<1x128xf32>
    %cst_150 = arith.constant dense<0.000000e+00> : vector<1xf32>
    %446 = vector.multi_reduction <add>, %445, %cst_150 [1] : vector<1x128xf32> to vector<1xf32>
    %447 = vector.shape_cast %446 : vector<1xf32> to vector<1x1xf32>
    %cst_151 = arith.constant 1.280000e+02 : f32
    %448 = vector.broadcast %cst_151 : f32 to vector<1x1xf32>
    %449 = arith.divf %447, %448 : vector<1x1xf32>
    %cst_152 = arith.constant 9.99999974E-6 : f32
    %450 = vector.broadcast %cst_152 : f32 to vector<1x1xf32>
    %451 = arith.addf %449, %450 : vector<1x1xf32>
    %452 = math.rsqrt %451 : vector<1x1xf32>
    %453 = vector.broadcast %452 : vector<1x1xf32> to vector<1x128xf32>
    %454 = arith.mulf %444, %453 : vector<1x128xf32>
    %455 = arith.mulf %454, %437 : vector<1x128xf32>
    %456 = arith.addf %455, %438 : vector<1x128xf32>
    %cst_153 = arith.constant 5.000000e-01 : f32
    %457 = vector.broadcast %cst_153 : f32 to vector<1x128xf32>
    %458 = arith.mulf %457, %456 : vector<1x128xf32>
    %cst_154 = arith.constant 0.707106769 : f32
    %459 = vector.broadcast %cst_154 : f32 to vector<1x128xf32>
    %460 = arith.mulf %456, %459 : vector<1x128xf32>
    %461 = math.erf %460 : vector<1x128xf32>
    %cst_155 = arith.constant 1.000000e+00 : f32
    %462 = vector.broadcast %cst_155 : f32 to vector<1x128xf32>
    %463 = arith.addf %462, %461 : vector<1x128xf32>
    %464 = arith.mulf %458, %463 : vector<1x128xf32>
    %465 = arith.truncf %464 : vector<1x128xf32> to vector<1x128xbf16>
    %c0_156 = arith.constant 0 : index
    %c0_157 = arith.constant 0 : index
    %466 = vector.load %arg24[%c0_156, %c0_157] : memref<128x128xbf16, #tpu.memory_space<vmem>>, vector<128x128xbf16>
    %cst_158 = arith.constant dense<0.000000e+00> : vector<1x128xf32>
    %467 = tpu.matmul %465, %466, %cst_158 {dimension_numbers = #tpu.dot_dimension_numbers<[1], [0], [0], [1], [0, 0, 1, 1], [], []>} : vector<1x128xbf16>, vector<128x128xbf16>, vector<1x128xf32> -> vector<1x128xf32>
    %c0_159 = arith.constant 0 : index
    %c0_160 = arith.constant 0 : index
    %468 = vector.load %arg25[%c0_159, %c0_160] : memref<1x128xf32, #tpu.memory_space<vmem>>, vector<1x128xf32>
    %469 = arith.addf %467, %468 : vector<1x128xf32>
    %470 = math.tanh %469 : vector<1x128xf32>
    %c0_161 = arith.constant 0 : index
    %c0_162 = arith.constant 0 : index
    %c0_163 = arith.constant 0 : index
    %471 = vector.load %arg27[%c0_161, %c0_162, %c0_163] : memref<1x1x128xf32, #tpu.memory_space<vmem>>, vector<1x1x128xf32>
    %472 = vector.shape_cast %471 : vector<1x1x128xf32> to vector<1x128xf32>
    %473 = vector.shape_cast %470 : vector<1x128xf32> to vector<1x1x128xf32>
    tpu.vector_store %arg27[%c0_161, %c0_162, %c0_163], %473 {strides = array<i32>} : memref<1x1x128xf32, #tpu.memory_space<vmem>>, vector<1x1x128xf32>,
    return
  }
  func.func @transform_0(%arg0: i32) -> (i32, i32, i32) {
    %c0_i32 = arith.constant 0 : i32
    %c0_i32_0 = arith.constant 0 : i32
    %c0_i32_1 = arith.constant 0 : i32
    return %arg0, %c0_i32, %c0_i32_0 : i32, i32, i32
  }
  func.func @transform_1(%arg0: i32) -> (i32, i32) {
    %c0_i32 = arith.constant 0 : i32
    %c0_i32_0 = arith.constant 0 : i32
    %c0_i32_1 = arith.constant 0 : i32
    return %c0_i32, %c0_i32_0 : i32, i32
  }
  func.func @transform_2(%arg0: i32) -> (i32, i32) {
    %c0_i32 = arith.constant 0 : i32
    %c0_i32_0 = arith.constant 0 : i32
    %c0_i32_1 = arith.constant 0 : i32
    return %c0_i32, %c0_i32_0 : i32, i32
  }
  func.func @transform_3(%arg0: i32) -> (i32, i32) {
    %c0_i32 = arith.constant 0 : i32
    %c0_i32_0 = arith.constant 0 : i32
    %c0_i32_1 = arith.constant 0 : i32
    return %c0_i32, %c0_i32_0 : i32, i32
  }
  func.func @transform_4(%arg0: i32) -> (i32, i32) {
    %c0_i32 = arith.constant 0 : i32
    %c0_i32_0 = arith.constant 0 : i32
    %c0_i32_1 = arith.constant 0 : i32
    return %c0_i32, %c0_i32_0 : i32, i32
  }
  func.func @transform_5(%arg0: i32) -> (i32, i32) {
    %c0_i32 = arith.constant 0 : i32
    %c0_i32_0 = arith.constant 0 : i32
    %c0_i32_1 = arith.constant 0 : i32
    return %c0_i32, %c0_i32_0 : i32, i32
  }
  func.func @transform_6(%arg0: i32) -> (i32, i32) {
    %c0_i32 = arith.constant 0 : i32
    %c0_i32_0 = arith.constant 0 : i32
    %c0_i32_1 = arith.constant 0 : i32
    return %c0_i32, %c0_i32_0 : i32, i32
  }
  func.func @transform_7(%arg0: i32) -> (i32, i32) {
    %c0_i32 = arith.constant 0 : i32
    %c0_i32_0 = arith.constant 0 : i32
    %c0_i32_1 = arith.constant 0 : i32
    return %c0_i32, %c0_i32_0 : i32, i32
  }
  func.func @transform_8(%arg0: i32) -> (i32, i32) {
    %c0_i32 = arith.constant 0 : i32
    %c0_i32_0 = arith.constant 0 : i32
    %c0_i32_1 = arith.constant 0 : i32
    return %c0_i32, %c0_i32_0 : i32, i32
  }
  func.func @transform_9(%arg0: i32) -> (i32, i32) {
    %c0_i32 = arith.constant 0 : i32
    %c0_i32_0 = arith.constant 0 : i32
    %c0_i32_1 = arith.constant 0 : i32
    return %c0_i32, %c0_i32_0 : i32, i32
  }
  func.func @transform_10(%arg0: i32) -> (i32, i32) {
    %c0_i32 = arith.constant 0 : i32
    %c0_i32_0 = arith.constant 0 : i32
    %c0_i32_1 = arith.constant 0 : i32
    return %c0_i32, %c0_i32_0 : i32, i32
  }
  func.func @transform_11(%arg0: i32) -> (i32, i32) {
    %c0_i32 = arith.constant 0 : i32
    %c0_i32_0 = arith.constant 0 : i32
    %c0_i32_1 = arith.constant 0 : i32
    return %c0_i32, %c0_i32_0 : i32, i32
  }
  func.func @transform_12(%arg0: i32) -> (i32, i32) {
    %c0_i32 = arith.constant 0 : i32
    %c0_i32_0 = arith.constant 0 : i32
    %c0_i32_1 = arith.constant 0 : i32
    return %c0_i32, %c0_i32_0 : i32, i32
  }
  func.func @transform_13(%arg0: i32) -> (i32, i32) {
    %c0_i32 = arith.constant 0 : i32
    %c0_i32_0 = arith.constant 0 : i32
    %c0_i32_1 = arith.constant 0 : i32
    return %c0_i32, %c0_i32_0 : i32, i32
  }
  func.func @transform_14(%arg0: i32) -> (i32, i32) {
    %c0_i32 = arith.constant 0 : i32
    %c0_i32_0 = arith.constant 0 : i32
    %c0_i32_1 = arith.constant 0 : i32
    return %c0_i32, %c0_i32_0 : i32, i32
  }
  func.func @transform_15(%arg0: i32) -> (i32, i32) {
    %c0_i32 = arith.constant 0 : i32
    %c0_i32_0 = arith.constant 0 : i32
    %c0_i32_1 = arith.constant 0 : i32
    return %c0_i32, %c0_i32_0 : i32, i32
  }
  func.func @transform_16(%arg0: i32) -> (i32, i32) {
    %c0_i32 = arith.constant 0 : i32
    %c0_i32_0 = arith.constant 0 : i32
    %c0_i32_1 = arith.constant 0 : i32
    return %c0_i32, %c0_i32_0 : i32, i32
  }
  func.func @transform_17(%arg0: i32) -> (i32, i32) {
    %c0_i32 = arith.constant 0 : i32
    %c0_i32_0 = arith.constant 0 : i32
    %c0_i32_1 = arith.constant 0 : i32
    return %c0_i32, %c0_i32_0 : i32, i32
  }
  func.func @transform_18(%arg0: i32) -> (i32, i32) {
    %c0_i32 = arith.constant 0 : i32
    %c0_i32_0 = arith.constant 0 : i32
    %c0_i32_1 = arith.constant 0 : i32
    return %c0_i32, %c0_i32_0 : i32, i32
  }
  func.func @transform_19(%arg0: i32) -> (i32, i32) {
    %c0_i32 = arith.constant 0 : i32
    %c0_i32_0 = arith.constant 0 : i32
    %c0_i32_1 = arith.constant 0 : i32
    return %c0_i32, %c0_i32_0 : i32, i32
  }
  func.func @transform_20(%arg0: i32) -> (i32, i32) {
    %c0_i32 = arith.constant 0 : i32
    %c0_i32_0 = arith.constant 0 : i32
    %c0_i32_1 = arith.constant 0 : i32
    return %c0_i32, %c0_i32_0 : i32, i32
  }
  func.func @transform_21(%arg0: i32) -> (i32, i32) {
    %c0_i32 = arith.constant 0 : i32
    %c0_i32_0 = arith.constant 0 : i32
    %c0_i32_1 = arith.constant 0 : i32
    return %c0_i32, %c0_i32_0 : i32, i32
  }
  func.func @transform_22(%arg0: i32) -> (i32, i32) {
    %c0_i32 = arith.constant 0 : i32
    %c0_i32_0 = arith.constant 0 : i32
    %c0_i32_1 = arith.constant 0 : i32
    return %c0_i32, %c0_i32_0 : i32, i32
  }
  func.func @transform_23(%arg0: i32) -> (i32, i32) {
    %c0_i32 = arith.constant 0 : i32
    %c0_i32_0 = arith.constant 0 : i32
    %c0_i32_1 = arith.constant 0 : i32
    return %c0_i32, %c0_i32_0 : i32, i32
  }
  func.func @transform_24(%arg0: i32) -> (i32, i32) {
    %c0_i32 = arith.constant 0 : i32
    %c0_i32_0 = arith.constant 0 : i32
    %c0_i32_1 = arith.constant 0 : i32
    return %c0_i32, %c0_i32_0 : i32, i32
  }
  func.func @transform_25(%arg0: i32) -> (i32, i32, i32) {
    %c0_i32 = arith.constant 0 : i32
    %c0_i32_0 = arith.constant 0 : i32
    %c0_i32_1 = arith.constant 0 : i32
    return %arg0, %c0_i32, %c0_i32_0 : i32, i32, i32
  }
  func.func @transform_26(%arg0: i32) -> (i32, i32, i32) {
    %c0_i32 = arith.constant 0 : i32
    %c0_i32_0 = arith.constant 0 : i32
    %c0_i32_1 = arith.constant 0 : i32
    return %arg0, %c0_i32, %c0_i32_0 : i32, i32, i32
  }
}

</mosaic_0001>

<bundles_post_ra>
// kernel: transformer_block_forward.1
= control target key start
LH: loop header
LB: loop body
LE: loop exit
PB: predicated region body
PF: predicated region fallthrough
CT: control target
= control target key end

     0   :  { %s18510_s0 = inlined_call_operand.hbm [shape: f32[2,32,128], index: 0, kind: input, shape index: {}]   ;;  %s18511_s1 = inlined_call_operand.hbm [shape: f32[1,128], index: 1, kind: input, shape index: {}]   ;;  %s18512_s2 = inlined_call_operand.hbm [shape: f32[1,128], index: 2, kind: input, shape index: {}]   ;;  %s18513_s3 = inlined_call_operand.hbm [shape: bf16[128,768], index: 3, kind: input, shape index: {}]   ;;  %s18514_s4 = inlined_call_operand.hbm [shape: f32[1,768], index: 4, kind: input, shape index: {}]   ;;  %s18515_s5 = inlined_call_operand.hbm [shape: bf16[128,128], index: 5, kind: input, shape index: {}]   ;;  %s18516_s6 = inlined_call_operand.hbm [shape: f32[1,128], index: 6, kind: input, shape index: {}]   ;;  %s18517_s7 = inlined_call_operand.hbm [shape: bf16[128,128], index: 7, kind: input, shape index: {}]   ;;  %s18518_s8 = inlined_call_operand.hbm [shape: f32[1,128], index: 8, kind: input, shape index: {}]   ;;  %s18519_s9 = inlined_call_operand.hbm [shape: f32[1,128], index: 9, kind: input, shape index: {}]   ;;  %s18520_s10 = inlined_call_operand.hbm [shape: f32[1,128], index: 10, kind: input, shape index: {}]   ;;  %s18521_s11 = inlined_call_operand.hbm [shape: bf16[128,512], index: 11, kind: input, shape index: {}]   ;;  %s18522_s12 = inlined_call_operand.hbm [shape: f32[1,512], index: 12, kind: input, shape index: {}]   ;;  %s18523_s13 = inlined_call_operand.hbm [shape: bf16[512,128], index: 13, kind: input, shape index: {}]   ;;  %s18524_s14 = inlined_call_operand.hbm [shape: f32[1,128], index: 14, kind: input, shape index: {}]   ;;  %s18525_s15 = inlined_call_operand.hbm [shape: bf16[1920,640], index: 15, kind: input, shape index: {}]   ;;  %s18526_s16 = inlined_call_operand.hbm [shape: f32[1,640], index: 16, kind: input, shape index: {}]   ;;  %s18527_s17 = inlined_call_operand.hbm [shape: f32[1,640], index: 17, kind: input, shape index: {}]   ;;  %s18528_s18 = inlined_call_operand.hbm [shape: f32[1,640], index: 18, kind: input, shape index: {}]   ;;  %s18529_s19 = inlined_call_operand.hbm [shape: bf16[640,128], index: 19, kind: input, shape index: {}]   ;;  %s18530_s20 = inlined_call_operand.hbm [shape: f32[1,128], index: 20, kind: input, shape index: {}]   ;;  %s18531_s21 = inlined_call_operand.hbm [shape: f32[1,128], index: 21, kind: input, shape index: {}]   ;;  %s18532_s22 = inlined_call_operand.hbm [shape: f32[1,128], index: 22, kind: input, shape index: {}]   ;;  %s18533_s23 = inlined_call_operand.hbm [shape: bf16[128,128], index: 23, kind: input, shape index: {}]   ;;  %s18534_s24 = inlined_call_operand.hbm [shape: f32[1,128], index: 24, kind: input, shape index: {}]   ;;  %s18535_s25 = inlined_call_operand.hbm [shape: f32[2,16,128], index: 25, kind: output, shape index: {0}]   ;;  %s18536_s26 = inlined_call_operand.vmem [shape: f32[2,1,128], index: 26, kind: output, shape index: {1}]  }
   0x1   :  { %18555 = sst [smem:[#allocation66_spill]] %s18510_s0 }
   0x2   :  { %18556 = sst [smem:[#allocation67_spill]] %s18511_s1 }
   0x3   :  { %18557 = sst [smem:[#allocation68_spill]] %s18512_s2 }
   0x4   :  { %18558 = sst [smem:[#allocation69_spill]] %s18513_s3 }
   0x5   :  { %18559 = sst [smem:[#allocation70_spill]] %s18514_s4 }
   0x6   :  { %18560 = sst [smem:[#allocation71_spill]] %s18515_s5 }
   0x7   :  { %18561 = sst [smem:[#allocation72_spill]] %s18516_s6 }
   0x8   :  { %18562 = sst [smem:[#allocation73_spill]] %s18517_s7 }
   0x9   :  { %18563 = sst [smem:[#allocation74_spill]] %s18518_s8 }
   0xa   :  { %18564 = sst [smem:[#allocation75_spill]] %s18519_s9 }
   0xb   :  { %18565 = sst [smem:[#allocation76_spill]] %s18520_s10 }
   0xc   :  { %18566 = sst [smem:[#allocation77_spill]] %s18521_s11 }
   0xd   :  { %18567 = sst [smem:[#allocation78_spill]] %s18522_s12 }
   0xe   :  { %18568 = sst [smem:[#allocation79_spill]] %s18523_s13 }
   0xf   :  { %18569 = sst [smem:[#allocation80_spill]] %s18524_s14 }
  0x10   :  { %18570 = sst [smem:[#allocation81_spill]] %s18535_s25 }
  0x11   :  { %18571 = sst [smem:[#allocation82_spill]] %s18536_s26 }
  0x12   :  { %32 = vsyncpa [#allocation3], 0 }
  0x13   :  { %34 = vsyncpa [#allocation3 + $0x1], 0 }
  0x14   :  { %35 = vsyncpa [#allocation6], 0 }
  0x15   :  { %36 = vsyncpa [#allocation9], 0 }
  0x16   :  { %37 = vsyncpa [#allocation12], 0 }
  0x17   :  { %38 = vsyncpa [#allocation15], 0 }
  0x18   :  { %39 = vsyncpa [#allocation18], 0 }
  0x19   :  { %40 = vsyncpa [#allocation21], 0 }
  0x1a   :  { %41 = vsyncpa [#allocation24], 0 }
  0x1b   :  { %42 = vsyncpa [#allocation27], 0 }
  0x1c   :  { %43 = vsyncpa [#allocation30], 0 }
  0x1d   :  { %44 = vsyncpa [#allocation33], 0 }
  0x1e   :  { %45 = vsyncpa [#allocation36], 0 }
  0x1f   :  { %46 = vsyncpa [#allocation39], 0 }
  0x20   :  { %47 = vsyncpa [#allocation4], 0 }
  0x21   :  { %49 = vsyncpa [#allocation4 + $0x1], 0  ;;  %s16370_s27 = smov 0   ;;  %s16372_s3 = smov 0  }
  0x22   :  { %s16374_s7 = smov 0   ;;  %s16376_s28 = smov 0  }
  0x23 LB: > { %18572 = sst [smem:[#allocation56_spill]] %s16176_s27  ;;  %s16391_s8 = sadd.s32 4294967295, %s16188_s28   ;;  %s16188_s28 = sphi %s16376_s28, %s18659_s28   ;;  %s16184_s7 = sphi %s16374_s7, %s18662_s7   ;;  %s16180_s3 = sphi %s16372_s3, %s18661_s3   ;;  %s16176_s27 = sphi %s16370_s27, %s18660_s27  }
  0x24   : > { %18573 = sst [smem:[#allocation57_spill]] %s16180_s3  ;;  %s10861_s4 = sadd.s32 4294967294, %s16188_s28  }
  0x25   : > { %18574 = sst [smem:[#allocation58_spill]] %s16184_s7  ;;  %s16395_s29 = sadd.s32 1, %s16188_s28  }
  0x26   : > { %18575 = sst [smem:[#allocation59_spill]] %s16395_s29  ;;  %s62_s0 = sadd.s32 1, %s16184_s7 }
  0x27   : > { %s59_s9 = ssub.s32 %s16188_s28, %s16395_s29  ;;  %p69_p0 = scmp.ne.s32.totalorder %s16184_s7, %s16180_s3 }
  0x28   : > { %p60_p1 = scmp.eq.s32.totalorder %s59_s9, 0  ;;  %p70_p2 = scmp.eq.s32.totalorder %s16188_s28, 0 }
  0x29   : > { %p75_p3 = scmp.ne.s32.totalorder %s16180_s3, %s16176_s27  ;;  %p76_p4 = scmp.eq.s32.totalorder %s16391_s8, 0 }
  0x2a   : > { %s16407_s30 = scalar_select %p60_p1, %s16184_s7, %s62_s0  }
  0x2b   : > { %p16409_p5 = por %p70_p2, %p69_p0  ;;  %p16415_p6 = por %p76_p4, %p75_p3 }
  0x2c   : > { %18576 = sst [smem:[#allocation60_spill]] %s16407_s30  ;;  %p603_p7 = scmp.eq.s32.totalorder %s16391_s8, 1 }
  0x2d   : > { %s18577_s2 = scalar_select %p16409_p5, 1, 0 }
  0x2e   : > { %s18579_s5 = scalar_select %p16415_p6, 1, 0 }
  0x2f   : > { %18578 = sst [smem:[#allocation61_spill]] %s18577_s2  ;;  %p609_p8 = scmp.eq.s32.totalorder %s10861_s4, 1 }
  0x30   : > { %18580 = sst [smem:[#allocation62_spill]] %s18579_s5  ;;  %p10862_p9 = scmp.ge.s32.totalorder %s16188_s28, 1 }
  0x31   : > { %p642_p10 = scmp.lt.s32.totalorder %s16188_s28, 3  ;;  %p16422_p11 = por %p603_p7, %p69_p0 }
  0x32   : > { %p16426_p12 = por %p609_p8, %p75_p3 }
  0x33   : > { %s18581_s10 = scalar_select %p16422_p11, 1, 0 }
  0x34   : > { %s18583_s6 = scalar_select %p16426_p12, 1, 0 }
  0x35   : > { %18582 = sst [smem:[#allocation63_spill]] %s18581_s10  ;;  %p16430_p13 = pnand %p10862_p9, %p642_p10 }
  0x36   : > { %18584 = sst [smem:[#allocation64_spill]] %s18583_s6  ;;  %s16190_s29 = smov (!%p16430_p13), [#allocation5]  }
  0x37   : > { %s18585_s1 = scalar_select %p16430_p13, 1, 0 }
  0x38   : > { %646 = sbr.rel (%p16430_p13) target bundleno = 129 (0x81), region = 12  ;;  %s18587_s4 = sld [smem:[#allocation67_spill]] (!%p16430_p13) }
  0x39   : > { %18586 = sst [smem:[#allocation65_spill]] %s18585_s1  ;;  %s656_s27 = sshll.u32 (!%p16430_p13), %s16190_s29, 4  ;;  %s657_s27 = int_to_ptr.vmem [resolvable:$true] %s656_s27 }
  0x3a   : > { %s18588_s10 = sld [smem:[#allocation69_spill]] (!%p16430_p13)  ;;  %s16191_s5 = smov (!%p16430_p13), [#allocation8]  }
  0x3b   : > { %s679_s3 = sshll.u32 (!%p16430_p13), %s16191_s5, 4  ;;  %s18589_s9 = sld [smem:[#allocation71_spill]] (!%p16430_p13)  ;;  %s680_s3 = int_to_ptr.vmem [resolvable:$true] %s679_s3 }
  0x3c   : > { %s16193_s7 = smov (!%p16430_p13), 24   ;;  %s16194_s25 = smov (!%p16430_p13), [#allocation11]  }
  0x3d   : > { %s705_s26 = sshll.u32 %s16194_s25, 4  ;;  %s18551_s29 = smov 64   ;;  %s706_s26 = int_to_ptr.vmem [resolvable:$true] %s705_s26 }
  0x3e   : > { %s654_s30 = sshll.u32 %s18587_s4, 4  ;;  %s16192_s4 = smov 384   ;;  %s655_s30 = int_to_ptr.hbm [resolvable:$true] %s654_s30 }
  0x3f   : > { %14860 = dma.hbm_to_vmem [thread:$0]  (%p76_p4), %s655_s30, 16, %s657_s27, [#allocation6]  }
  0x40   : > { %s677_s6 = sshll.u32 %s18588_s10, 4  ;;  %s18553_s10 = smov 4   ;;  %s678_s6 = int_to_ptr.hbm [resolvable:$true] %s677_s6 }
  0x41   : > { %s703_s2 = sshll.u32 %s18589_s9, 4  ;;  %s18590_s5 = sld [smem:[#allocation73_spill]]  ;;  %s704_s2 = int_to_ptr.hbm [resolvable:$true] %s703_s2 }
  0x42   : > { %14864 = dma.hbm_to_vmem [thread:$0]  (%p76_p4), %s678_s6, 6144, %s680_s3, [#allocation9], %s16192_s4, %s16192_s4, %s16193_s7  }
  0x43   : > { %14868 = dma.hbm_to_vmem [thread:$0]  (%p76_p4), %s704_s2, 1024, %s706_s26, [#allocation12], %s18551_s29, %s18551_s29, %s18553_s10  }
  0x44   : > { %s16197_s0 = smov [#allocation14]   ;;  %s18591_s6 = sld [smem:[#allocation75_spill]] }
  0x45   : > { %s731_s9 = sshll.u32 %s16197_s0, 4  ;;  %s16198_s2 = smov [#allocation17]   ;;  %s732_s9 = int_to_ptr.vmem [resolvable:$true] %s731_s9 }
  0x46   : > { %s758_s25 = sshll.u32 %s16198_s2, 4  ;;  %s18592_s11 = sld [smem:[#allocation77_spill]]  ;;  %s759_s25 = int_to_ptr.vmem [resolvable:$true] %s758_s25 }
  0x47   : > { %s729_s1 = sshll.u32 %s18590_s5, 4  ;;  %s16199_s5 = smov [#allocation20]   ;;  %s730_s1 = int_to_ptr.hbm [resolvable:$true] %s729_s1 }
  0x48   : > { %14872 = dma.hbm_to_vmem [thread:$0]  (%p76_p4), %s730_s1, 1024, %s732_s9, [#allocation15], %s18551_s29, %s18551_s29, %s18553_s10  }
  0x49   : > { %s781_s0 = sshll.u32 %s16199_s5, 4  ;;  %s18593_s13 = sld [smem:[#allocation79_spill]]  ;;  %s782_s0 = int_to_ptr.vmem [resolvable:$true] %s781_s0 }
  0x4a   : > { %s756_s4 = sshll.u32 %s18591_s6, 4  ;;  %s16200_s1 = smov 256   ;;  %s757_s4 = int_to_ptr.hbm [resolvable:$true] %s756_s4 }
  0x4b   : > { %14876 = dma.hbm_to_vmem [thread:$0]  (%p76_p4), %s757_s4, 16, %s759_s25, [#allocation18]  }
  0x4c   : > { %s779_s30 = sshll.u32 %s18592_s11, 4  ;;  %s16201_s9 = smov 16   ;;  %s780_s30 = int_to_ptr.hbm [resolvable:$true] %s779_s30 }
  0x4d   : > { %14880 = dma.hbm_to_vmem [thread:$0]  (%p76_p4), %s780_s30, 4096, %s782_s0, [#allocation21], %s16200_s1, %s16200_s1, %s16201_s9  }
  0x4e   : > { %s16202_s2 = smov [#allocation23]   ;;  %s831_s10 = sshll.u32 %s18525_s15, 4  ;;  %s832_s10 = int_to_ptr.hbm [resolvable:$true] %s831_s10 }
  0x4f   : > { %s805_s6 = sshll.u32 %s18593_s13, 4  ;;  %s807_s26 = sshll.u32 %s16202_s2, 4  ;;  %s806_s6 = int_to_ptr.hbm [resolvable:$true] %s805_s6  ;;  %s808_s26 = int_to_ptr.vmem [resolvable:$true] %s807_s26 }
  0x50   : > { %s18594_s4 = smov 4   ;;  %s18595_s25 = smov 64  }
  0x51   : > { %14884 = dma.hbm_to_vmem [thread:$0]  (%p76_p4), %s806_s6, 4096, %s808_s26, [#allocation24], %s18595_s25, %s18595_s25, %s18594_s4  }
  0x52   : > { %s16203_s5 = smov [#allocation26]   ;;  %s858_s0 = sshll.u32 %s18527_s17, 4  ;;  %s859_s0 = int_to_ptr.hbm [resolvable:$true] %s858_s0 }
  0x53   : > { %s833_s3 = sshll.u32 %s16203_s5, 4  ;;  %s16204_s1 = smov 320   ;;  %s834_s3 = int_to_ptr.vmem [resolvable:$true] %s833_s3 }
  0x54   : > { %s16205_s9 = smov 20   ;;  %s16206_s29 = smov [#allocation29]  }
  0x55   : > { %14888 = dma.hbm_to_vmem [thread:$0]  (%p76_p4), %s832_s10, 76800, %s834_s3, [#allocation27], %s16204_s1, %s16204_s1, %s16205_s9  }
  0x56   : > { %s860_s2 = sshll.u32 %s16206_s29, 4  ;;  %s881_s6 = sshll.u32 %s18529_s19, 4  ;;  %s861_s2 = int_to_ptr.vmem [resolvable:$true] %s860_s2  ;;  %s882_s6 = int_to_ptr.hbm [resolvable:$true] %s881_s6 }
  0x57   : > { %14892 = dma.hbm_to_vmem [thread:$0]  (%p76_p4), %s859_s0, 80, %s861_s2, [#allocation30]  }
  0x58   : > { %s908_s7 = sshll.u32 %s18531_s21, 4  ;;  %s16207_s30 = smov [#allocation32]   ;;  %s909_s7 = int_to_ptr.hbm [resolvable:$true] %s908_s7 }
  0x59   : > { %s883_s13 = sshll.u32 %s16207_s30, 4  ;;  %s16208_s11 = smov [#allocation35]   ;;  %s884_s13 = int_to_ptr.vmem [resolvable:$true] %s883_s13 }
  0x5a   : > { %14896 = dma.hbm_to_vmem [thread:$0]  (%p76_p4), %s882_s6, 5120, %s884_s13, [#allocation33], %s18595_s25, %s18595_s25, %s18594_s4  }
  0x5b   : > { %s910_s10 = sshll.u32 %s16208_s11, 4  ;;  %s931_s0 = sshll.u32 %s18533_s23, 4  ;;  %s911_s10 = int_to_ptr.vmem [resolvable:$true] %s910_s10  ;;  %s932_s0 = int_to_ptr.hbm [resolvable:$true] %s931_s0 }
  0x5c   : > { %14900 = dma.hbm_to_vmem [thread:$0]  (%p76_p4), %s909_s7, 16, %s911_s10, [#allocation36]  }
  0x5d   : > { %s18596_s2 = sld [smem:[#allocation68_spill]]  ;;  %s16209_s26 = smov [#allocation38]  }
  0x5e   : > { %s933_s5 = sshll.u32 %s16209_s26, 4  ;;  %s16210_s13 = smov [#allocation7]   ;;  %s934_s5 = int_to_ptr.vmem [resolvable:$true] %s933_s5 }
  0x5f   : > { %14904 = dma.hbm_to_vmem [thread:$0]  (%p76_p4), %s932_s0, 1024, %s934_s5, [#allocation39], %s18595_s25, %s18595_s25, %s18594_s4  }
  0x60   : > { %s668_s6 = sshll.u32 %s16210_s13, 4  ;;  %s18597_s3 = sld [smem:[#allocation70_spill]]  ;;  %s669_s6 = int_to_ptr.vmem [resolvable:$true] %s668_s6 }
  0x61   : > { %s18598_s9 = sld [smem:[#allocation72_spill]]  ;;  %s16212_s4 = smov [#allocation13]  }
  0x62   : > { %s720_s25 = sshll.u32 %s16212_s4, 4  ;;  %s18599_s13 = sld [smem:[#allocation74_spill]]  ;;  %s721_s25 = int_to_ptr.vmem [resolvable:$true] %s720_s25 }
  0x63   : > { %s666_s27 = sshll.u32 %s18596_s2, 4  ;;  %s16211_s2 = smov [#allocation10]   ;;  %s667_s27 = int_to_ptr.hbm [resolvable:$true] %s666_s27 }
  0x64   : > { %14862 = dma.hbm_to_vmem [thread:$0]  (%p76_p4), %s667_s27, 16, %s669_s6, [#allocation6]  }
  0x65   : > { %s694_s26 = sshll.u32 %s16211_s2, 4  ;;  %s18600_s11 = sld [smem:[#allocation76_spill]]  ;;  %s695_s26 = int_to_ptr.vmem [resolvable:$true] %s694_s26 }
  0x66   : > { %s692_s7 = sshll.u32 %s18597_s3, 4  ;;  %s16213_s10 = smov [#allocation16]   ;;  %s693_s7 = int_to_ptr.hbm [resolvable:$true] %s692_s7 }
  0x67   : > { %s718_s29 = sshll.u32 %s18598_s9, 4  ;;  %s746_s1 = sshll.u32 %s16213_s10, 4  ;;  %s719_s29 = int_to_ptr.hbm [resolvable:$true] %s718_s29  ;;  %s747_s1 = int_to_ptr.vmem [resolvable:$true] %s746_s1 }
  0x68   : > { %14866 = dma.hbm_to_vmem [thread:$0]  (%p76_p4), %s693_s7, 96, %s695_s26, [#allocation9]  }
  0x69   : > { %s744_s30 = sshll.u32 %s18599_s13, 4  ;;  %s16214_s7 = smov [#allocation19]   ;;  %s745_s30 = int_to_ptr.hbm [resolvable:$true] %s744_s30 }
  0x6a   : > { %14870 = dma.hbm_to_vmem [thread:$0]  (%p76_p4), %s719_s29, 16, %s721_s25, [#allocation12]  }
  0x6b   : > { %s768_s3 = sshll.u32 %s18600_s11, 4  ;;  %s770_s9 = sshll.u32 %s16214_s7, 4  ;;  %s769_s3 = int_to_ptr.hbm [resolvable:$true] %s768_s3  ;;  %s771_s9 = int_to_ptr.vmem [resolvable:$true] %s770_s9 }
  0x6c   : > { %14874 = dma.hbm_to_vmem [thread:$0]  (%p76_p4), %s745_s30, 16, %s747_s1, [#allocation15]  }
  0x6d   : > { %s18601_s12 = sld [smem:[#allocation78_spill]]  ;;  %s16215_s5 = smov [#allocation22]  }
  0x6e   : > { %14878 = dma.hbm_to_vmem [thread:$0]  (%p76_p4), %s769_s3, 16, %s771_s9, [#allocation18]  }
  0x6f   : > { %s18602_s14 = sld [smem:[#allocation80_spill]]  ;;  %s796_s13 = sshll.u32 %s16215_s5, 4  ;;  %s797_s13 = int_to_ptr.vmem [resolvable:$true] %s796_s13 }
  0x70   : > { %s16216_s30 = smov [#allocation25]   ;;  %s846_s10 = sshll.u32 %s18526_s16, 4  ;;  %s847_s10 = int_to_ptr.hbm [resolvable:$true] %s846_s10 }
  0x71   : > { %s822_s27 = sshll.u32 %s16216_s30, 4  ;;  %s870_s7 = sshll.u32 %s18528_s18, 4  ;;  %s823_s27 = int_to_ptr.vmem [resolvable:$true] %s822_s27  ;;  %s871_s7 = int_to_ptr.hbm [resolvable:$true] %s870_s7 }
  0x72   : > { %s16217_s9 = smov [#allocation28]   ;;  %s16218_s26 = smov [#allocation31]  }
  0x73   : > { %s794_s4 = sshll.u32 %s18601_s12, 4  ;;  %s848_s2 = sshll.u32 %s16217_s9, 4  ;;  %s795_s4 = int_to_ptr.hbm [resolvable:$true] %s794_s4  ;;  %s849_s2 = int_to_ptr.vmem [resolvable:$true] %s848_s2 }
  0x74   : > { %14882 = dma.hbm_to_vmem [thread:$0]  (%p76_p4), %s795_s4, 64, %s797_s13, [#allocation21]  }
  0x75   : > { %s820_s0 = sshll.u32 %s18602_s14, 4  ;;  %s872_s4 = sshll.u32 %s16218_s26, 4  ;;  %s821_s0 = int_to_ptr.hbm [resolvable:$true] %s820_s0  ;;  %s873_s4 = int_to_ptr.vmem [resolvable:$true] %s872_s4 }
  0x76   : > { %14886 = dma.hbm_to_vmem [thread:$0]  (%p76_p4), %s821_s0, 16, %s823_s27, [#allocation24]  }
  0x77   : > { %14890 = dma.hbm_to_vmem [thread:$0]  (%p76_p4), %s847_s10, 80, %s849_s2, [#allocation27]  }
  0x78   : > { %s896_s5 = sshll.u32 %s18530_s20, 4  ;;  %s920_s30 = sshll.u32 %s18532_s22, 4  ;;  %s897_s5 = int_to_ptr.hbm [resolvable:$true] %s896_s5  ;;  %s921_s30 = int_to_ptr.hbm [resolvable:$true] %s920_s30 }
  0x79   : > { %14894 = dma.hbm_to_vmem [thread:$0]  (%p76_p4), %s871_s7, 80, %s873_s4, [#allocation30]  }
  0x7a   : > { %s16219_s27 = smov [#allocation34]   ;;  %s16220_s11 = smov [#allocation37]  }
  0x7b   : > { %s898_s6 = sshll.u32 %s16219_s27, 4  ;;  %s922_s10 = sshll.u32 %s16220_s11, 4  ;;  %s899_s6 = int_to_ptr.vmem [resolvable:$true] %s898_s6  ;;  %s923_s10 = int_to_ptr.vmem [resolvable:$true] %s922_s10 }
  0x7c   : > { %14898 = dma.hbm_to_vmem [thread:$0]  (%p76_p4), %s897_s5, 16, %s899_s6, [#allocation33]  }
  0x7d   : > { %s946_s9 = sshll.u32 %s18534_s24, 4  ;;  %s16221_s7 = smov [#allocation40]   ;;  %s947_s9 = int_to_ptr.hbm [resolvable:$true] %s946_s9 }
  0x7e   : > { %14902 = dma.hbm_to_vmem [thread:$0]  (%p76_p4), %s921_s30, 16, %s923_s10, [#allocation36]  }
  0x7f   : > { %s948_s2 = sshll.u32 %s16221_s7, 4  ;;  %s949_s2 = int_to_ptr.vmem [resolvable:$true] %s948_s2 }
  0x80   : > { %14906 = dma.hbm_to_vmem [thread:$0]  (%p76_p4), %s947_s9, 16, %s949_s2, [#allocation39]  }
  0x81 PF: > { %s18603_s26 = sld [smem:[#allocation58_spill]]  ;;  %p14991_p1 = scmp.lt.s32.totalorder %s16188_s28, 2 }
  0x82   : > { %s14081_s25 = sshll.u32 %s16188_s28, 5  ;;  %s18605_s30 = sld [smem:[#allocation66_spill]] }
  0x83   : > { %p16580_p2 = pnand %p14991_p1, %p16409_p5 }
  0x85   : > { %p16048_p7 = pneg %p16580_p2 }
  0x87   : > { %s959_s29 = sand.u32 1, %s18603_s26  }
  0x88   : > { %s10888_s5 = sshll.u32 %s959_s29, 5  ;;  %s968_s27 = scalar_lea.hbm %s18605_s30, %s14081_s25 }
  0x89   : > { %s969_s6 = sshll.u32 %s968_s27, 4  ;;  %s963_s11 = scalar_lea.vmem [#allocation2], %s10888_s5  ;;  %s970_s6 = int_to_ptr.hbm [resolvable:$true] %s969_s6 }
  0x8a   : > { %s971_s10 = sshll.u32 %s963_s11, 4  ;;  %s960_s1 = scalar_lea.sflag [#allocation3], %s959_s29  ;;  %s972_s10 = int_to_ptr.vmem [resolvable:$true] %s971_s10 }
  0x8b   : > { %s16044_s9 = sshra.s32 %s970_s6, 4  ;;  %s16051_s25 = scalar_lea.hbm %s18605_s30, 64  ;;  %s16045_s9 = int_to_ptr.hbm [resolvable:$true] %s16044_s9 }
  0x8c   : > { %s16046_s7 = scalar_lea.hbm %s16045_s9, 32  ;;  %p16052_p5 = scmp.lt.s32.totalorder %s16045_s9, %s18605_s30 }
  0x8d   : > { %p16047_p3 = scmp.ne.s32.totalorder %s16045_s9, %s16046_s7  ;;  %p16053_p10 = scmp.lt.s32.totalorder %s16051_s25, %s16046_s7 }
  0x8f   : > { %p16049_p8 = pnand %p16048_p7, %p16047_p3  ;;  %p16054_p1 = por %p16053_p10, %p16052_p5 }
  0x91   : > { %p16050_p9 = pneg %p16049_p8 }
  0x93   : > { %p16055_p0 = pnand %p16054_p1, %p16050_p9 }
  0x95   : > { %16058 = shalt.err (!%p16055_p0)
}
  0x96   : > { %s16222_s29 = smov 128   ;;  %s16223_s0 = smov 8  }
  0x97   : > { %14962 = dma.hbm_to_vmem [thread:$0]  (!%p16580_p2), %s970_s6, 512, %s972_s10, %s960_s1, %s16222_s29, %s16222_s29, %s16223_s0  }
  0x98   : > { %983 = sbr.rel (%p16430_p13) target bundleno = 5125 (0x1405), region = 120  ;;  %s18608_s27 = sld [smem:[#allocation57_spill]] (!%p16430_p13) }
  0x9e   : > { %s16597_s2 = sand.u32 1, %s18608_s27  }
  0x9f   : > { %s10892_s26 = sshll.u32 %s16597_s2, 5  ;;  %s986_s9 = scalar_lea.sflag [#allocation3], %s16597_s2 }
  0xa0   : > { %s16601_s7 = scalar_lea.vmem [#allocation2], %s10892_s26 }
  0xa1   : > { %16119 = dma.done.wait (%p16415_p6), %s986_s9, 512  }
  0xa2   : > { %16121 = vsyncadd (%p16415_p6), %s986_s9, 4294966784 }
  0xa3   : > { %16123 = dma.done.wait (%p76_p4), [#allocation6], 32  }
  0xa4   : > { %16125 = vsyncadd (%p76_p4), [#allocation6], 4294967264 }
  0xa5   : > { %16127 = dma.done.wait (%p76_p4), [#allocation9], 6240  }
  0xa6   : > { %16129 = vsyncadd (%p76_p4), [#allocation9], 4294961056 }
  0xa7   : > { %16131 = dma.done.wait (%p76_p4), [#allocation12], 1040  }
  0xa8   : > { %16133 = vsyncadd (%p76_p4), [#allocation12], 4294966256 }
  0xa9   : > { %16135 = dma.done.wait (%p76_p4), [#allocation15], 1040  }
  0xaa   : > { %16137 = vsyncadd (%p76_p4), [#allocation15], 4294966256 }
  0xab   : > { %16139 = dma.done.wait (%p76_p4), [#allocation18], 32  }
  0xac   : > { %16141 = vsyncadd (%p76_p4), [#allocation18], 4294967264 }
  0xad   : > { %16143 = dma.done.wait (%p76_p4), [#allocation21], 4160  }
  0xae   : > { %16145 = vsyncadd (%p76_p4), [#allocation21], 4294963136 }
  0xaf   : > { %16147 = dma.done.wait (%p76_p4), [#allocation24], 4112  }
  0xb0   : > { %16149 = vsyncadd (%p76_p4), [#allocation24], 4294963184 }
  0xb1   : > { %16151 = dma.done.wait (%p76_p4), [#allocation27], 76880  }
  0xb2   : > { %16153 = vsyncadd (%p76_p4), [#allocation27], 4294890416 }
  0xb3   : > { %16155 = dma.done.wait (%p76_p4), [#allocation30], 160  }
  0xb4   : > { %16157 = vsyncadd (%p76_p4), [#allocation30], 4294967136 }
  0xb5   : > { %16159 = dma.done.wait (%p76_p4), [#allocation33], 5136  }
  0xb6   : > { %16161 = vsyncadd (%p76_p4), [#allocation33], 4294962160 }
  0xb7   : > { %16163 = dma.done.wait (%p76_p4), [#allocation36], 32  }
  0xb8   : > { %16165 = vsyncadd (%p76_p4), [#allocation36], 4294967264 }
  0xb9   : > { %16167 = dma.done.wait (%p76_p4), [#allocation39], 1040  }
  0xba   : > { %16169 = vsyncadd (%p76_p4), [#allocation39], 4294966256  ;;  %v1188_v0 = vld [vmem:[%s16601_s7 + $0x10] sm:$0xff]  ;;  %v1186_v1 = vld [vmem:[%s16601_s7] sm:$0xff]  ;;  %v16224_v4 = vmov 128.0   ;;  %s16225_s6 = smov 64  }
  0xbb   : > { %1196 = vadd.xlane.f32.xlu1 %v1188_v0  ;;  %1192 = vadd.xlane.f32.xlu0 %v1186_v1  ;;  %v1189_v2 = vld [vmem:[%s16601_s7 + $0x18] sm:$0xff]  ;;  %v1187_v3 = vld [vmem:[%s16601_s7 + $0x8] sm:$0xff]  ;;  %15172 = vrcp.f32 %v16224_v4  ;;  %v11088_v27 = vld [vmem:[#allocation8 + $0x150] sm:$0xf]  ;;  %s16226_s10 = smov 96   ;;  %s16227_s3 = smov 112  }
  0xbc   : > { %v14127_v28 = vld [vmem:[#allocation8 + $0x164] sm:$0xf0]  ;;  %v14124_v29 = vld [vmem:[#allocation8 + $0x154] sm:$0xf]  ;;  %v11090_v31 = vld [vmem:[#allocation8 + $0x168] sm:$0xf0] }
  0xbd   : > { %v11089_v30 = vor.u32 %v14127_v28, %v11088_v27  ;;  %v11096_v32 = vld [vmem:[#allocation8 + $0x158] sm:$0xf]  ;;  %v14128_v33 = vld [vmem:[#allocation8 + $0x16c] sm:$0xf0]  ;;  %v11093_v34 = vor.u32 %v14124_v29, %v11090_v31  ;;  %v14125_v36 = vld [vmem:[#allocation8 + $0x15c] sm:$0xf] }
  0xbe   : > { %v11097_v35 = vor.u32 %v14128_v33, %v11096_v32  ;;  %v11098_v37 = vld [vmem:[#allocation8 + $0x170] sm:$0xf0]  ;;  %v11064_v39 = vld [vmem:[#allocation8 + $0x120] sm:$0xf]  ;;  %v14121_v40 = vld [vmem:[#allocation8 + $0x134] sm:$0xf0] }
  0xbf   : > { %1597 = vmatpush.bf16.msra.mxu0 %v11089_v30  ;;  %v11101_v38 = vor.u32 %v14125_v36, %v11098_v37  ;;  %1614 = vmatpush.bf16.msra.mxu1 %v11093_v34  ;;  %v14118_v41 = vld [vmem:[#allocation8 + $0x124] sm:$0xf]  ;;  %v11065_v42 = vor.u32 %v14121_v40, %v11064_v39  ;;  %v11066_v43 = vld [vmem:[#allocation8 + $0x138] sm:$0xf0]  ;;  %v11072_v44 = vld [vmem:[#allocation8 + $0x128] sm:$0xf] }
  0xc0   : > { %1633 = vmatpush.bf16.msra.mxu2 %v11097_v35  ;;  %v14122_v45 = vld [vmem:[#allocation8 + $0x13c] sm:$0xf0]  ;;  %v11069_v46 = vor.u32 %v14118_v41, %v11066_v43  ;;  %v14119_v48 = vld [vmem:[#allocation8 + $0x12c] sm:$0xf]  ;;  %v11074_v49 = vld [vmem:[#allocation8 + $0x140] sm:$0xf0] }
  0xc1   : > { %v15173_v5 = vpop.eup %15172  ;;  %1652 = vmatpush.bf16.msra.mxu3 %v11101_v38  ;;  %v11073_v47 = vor.u32 %v14122_v45, %v11072_v44  ;;  %v11077_v50 = vor.u32 %v14119_v48, %v11074_v49  ;;  %v11040_v51 = vld [vmem:[#allocation8 + $0xf0] sm:$0xf]  ;;  %v14115_v52 = vld [vmem:[#allocation8 + $0x104] sm:$0xf0]  ;;  %v14112_v53 = vld [vmem:[#allocation8 + $0xf4] sm:$0xf] }
  0xc2   : > { %v1201_v6 = vmul.f32 128.0, %v15173_v5  ;;  %vm1205_vm0 = vweird.f32 %v15173_v5  ;;  %v11041_v54 = vor.u32 %v14115_v52, %v11040_v51  ;;  %v11042_v55 = vld [vmem:[#allocation8 + $0x108] sm:$0xf0]  ;;  %v11048_v56 = vld [vmem:[#allocation8 + $0xf8] sm:$0xf]  ;;  %s16228_s1 = smov 32  }
  0xc3   : > { %1198 = vadd.xlane.f32.xlu1 %v1189_v2  ;;  %1194 = vadd.xlane.f32.xlu0 %v1187_v3  ;;  %v14116_v57 = vld [vmem:[#allocation8 + $0x10c] sm:$0xf0]  ;;  %v11045_v58 = vor.u32 %v14112_v53, %v11042_v55  ;;  %v14113_v60 = vld [vmem:[#allocation8 + $0xfc] sm:$0xf]  ;;  %v11050_v61 = vld [vmem:[#allocation8 + $0x110] sm:$0xf0] }
  0xc4   : > { %v1202_v7 = vsub.f32 1.0, %v1201_v6  ;;  %1598 = vmatpush.bf16.msra.mxu0 %v11065_v42  ;;  %1615 = vmatpush.bf16.msra.mxu1 %v11069_v46  ;;  %v11049_v59 = vor.u32 %v14116_v57, %v11048_v56  ;;  %v11053_v62 = vor.u32 %v14113_v60, %v11050_v61  ;;  %v11016_v63 = vld [vmem:[#allocation8 + $0xc0] sm:$0xf]  ;;  %v11024_v4 = vld [vmem:[#allocation8 + $0xc8] sm:$0xf]  ;;  %s16229_s25 = smov 48  }
  0xc5   : > { %1634 = vmatpush.bf16.msra.mxu2 %v11073_v47  ;;  %1653 = vmatpush.bf16.msra.mxu3 %v11077_v50  ;;  %v10968_v28 = vld [vmem:[#allocation8 + $0x60] sm:$0xf]  ;;  %v14097_v29 = vld [vmem:[#allocation8 + $0x74] sm:$0xf0]  ;;  %v14094_v30 = vld [vmem:[#allocation8 + $0x64] sm:$0xf] }
  0xc6   : > { %v1203_v8 = vmul.f32 %v15173_v5, %v1202_v7  ;;  %v10969_v31 = vor.u32 %v14097_v29, %v10968_v28  ;;  %v10970_v32 = vld [vmem:[#allocation8 + $0x78] sm:$0xf0]  ;;  %v10976_v33 = vld [vmem:[#allocation8 + $0x68] sm:$0xf]  ;;  %v14098_v34 = vld [vmem:[#allocation8 + $0x7c] sm:$0xf0] }
  0xc7   : > { %v10973_v35 = vor.u32 %v14094_v30, %v10970_v32  ;;  %v10977_v36 = vor.u32 %v14098_v34, %v10976_v33  ;;  %v14095_v37 = vld [vmem:[#allocation8 + $0x6c] sm:$0xf]  ;;  %v10978_v38 = vld [vmem:[#allocation8 + $0x80] sm:$0xf0]  ;;  %v10944_v40 = vld [vmem:[#allocation8 + $0x30] sm:$0xf] }
  0xc8   : > { %v1204_v9 = vadd.f32 %v15173_v5, %v1203_v8  ;;  %1599 = vmatpush.bf16.msra.mxu0 %v11041_v54  ;;  %1616 = vmatpush.bf16.msra.mxu1 %v11045_v58  ;;  %v14107_v8 = vld [vmem:[#allocation8 + $0xcc] sm:$0xf]  ;;  %v10981_v39 = vor.u32 %v14095_v37, %v10978_v38  ;;  %v14091_v41 = vld [vmem:[#allocation8 + $0x44] sm:$0xf0]  ;;  %v14088_v42 = vld [vmem:[#allocation8 + $0x34] sm:$0xf] }
  0xc9   : > { %1635 = vmatpush.bf16.msra.mxu2 %v11049_v59  ;;  %1654 = vmatpush.bf16.msra.mxu3 %v11053_v62  ;;  %v10945_v43 = vor.u32 %v14091_v41, %v10944_v40  ;;  %v10946_v44 = vld [vmem:[#allocation8 + $0x48] sm:$0xf0]  ;;  %v10952_v45 = vld [vmem:[#allocation8 + $0x38] sm:$0xf]  ;;  %v14092_v46 = vld [vmem:[#allocation8 + $0x4c] sm:$0xf0] }
  0xca   : > { %v16659_v10 = vsel %vm1205_vm0, %v15173_v5, %v1204_v9  ;;  %v14110_v5 = vld [vmem:[#allocation8 + $0xdc] sm:$0xf0]  ;;  %v11026_v9 = vld [vmem:[#allocation8 + $0xe0] sm:$0xf0]  ;;  %v10949_v48 = vor.u32 %v14088_v42, %v10946_v44  ;;  %v10953_v49 = vor.u32 %v14092_v46, %v10952_v45  ;;  %v14089_v50 = vld [vmem:[#allocation8 + $0x3c] sm:$0xf] }
  0xcb   : > { %v11025_v7 = vor.u32 %v14110_v5, %v11024_v4  ;;  %v10954_v51 = vld [vmem:[#allocation8 + $0x50] sm:$0xf0]  ;;  %v10920_v55 = vld [vmem:[#allocation8] sm:$0xf]  ;;  %v14085_v56 = vld [vmem:[#allocation8 + $0x14] sm:$0xf0] }
  0xcc   : > { %v10957_v54 = vor.u32 %v14089_v50, %v10954_v51  ;;  %v14082_v57 = vld [vmem:[#allocation8 + $0x4] sm:$0xf]  ;;  %v10921_v59 = vor.u32 %v14085_v56, %v10920_v55  ;;  %v10922_v60 = vld [vmem:[#allocation8 + $0x18] sm:$0xf0]  ;;  %v11104_v5 = vld [vmem:[#allocation8 + $0x160] sm:$0xf] }
  0xcd   : > { %1636 = vmatpush.bf16.msra.mxu2 %v11025_v7  ;;  %v10925_v62 = vor.u32 %v14082_v57, %v10922_v60  ;;  %v14126_v7 = vld [vmem:[#allocation8 + $0x164] sm:$0xf]  ;;  %v11058_v34 = vld [vmem:[#allocation8 + $0x118] sm:$0xf0]  ;;  %v11032_v38 = vld [vmem:[#allocation8 + $0xd0] sm:$0xf] }
  0xce   : > { %v14114_v33 = vld [vmem:[#allocation8 + $0x104] sm:$0xf]  ;;  %v14108_v41 = vld [vmem:[#allocation8 + $0xd4] sm:$0xf]  ;;  %v11034_v42 = vld [vmem:[#allocation8 + $0xe8] sm:$0xf0] }
  0xcf   : > { %v11061_v37 = vor.u32 %v14114_v33, %v11058_v34  ;;  %v11008_v55 = vld [vmem:[#allocation8 + $0xa0] sm:$0xf]  ;;  %v14105_v56 = vld [vmem:[#allocation8 + $0xb4] sm:$0xf0]  ;;  %v14102_v57 = vld [vmem:[#allocation8 + $0xa4] sm:$0xf] }
  0xd0   : > { %v11009_v60 = vor.u32 %v14105_v56, %v11008_v55  ;;  %v10938_v34 = vld [vmem:[#allocation8 + $0x28] sm:$0xf0]  ;;  %s16230_s5 = smov 80   ;;  %s16231_s4 = smov 16   ;;  %vm1773_vm13 = vcmask 130048   ;;  %vm1791_vm14 = vcmask 261120  }
  0xd1   : > { %s10917_s29 = sshll.u32 %s16597_s2, 4  ;;  %s14858_s11 = sshll.u32 %s16391_s8, 4 }
  0xd2   : > { %s18075_s0 = scalar_lea.vmem [#allocation41], %s10917_s29  ;;  %s18653_s7 = sld [smem:[#allocation81_spill]] }
  0xd3   : > { %s10535_s27 = sshll.u32 %s18075_s0, 4  ;;  %s10536_s27 = int_to_ptr.vmem [resolvable:$true] %s10535_s27 }
 0x12e   : > { %v1197_v11 = vpop.xlane.xlu1 %1196  ;;  %v1193_v12 = vpop.xlane.xlu0 %1192 }
 0x12f   : > { %v1209_v13 = vmul.f32 %v16659_v10, %v1197_v11  ;;  %v1207_v14 = vmul.f32 %v16659_v10, %v1193_v12  ;;  %v11029_v11 = vor.u32 %v14107_v8, %v11026_v9  ;;  %v10992_v12 = vld [vmem:[#allocation8 + $0x90] sm:$0xf] }
 0x131   : > { %v16663_v15 = vsub.f32 %v1188_v0, %v1209_v13  ;;  %v16665_v16 = vsub.f32 %v1186_v1, %v1207_v14  ;;  %v14109_v0 = vld [vmem:[#allocation8 + $0xd4] sm:$0xf0]  ;;  %v14106_v1 = vld [vmem:[#allocation8 + $0xc4] sm:$0xf]  ;;  %v14103_v13 = vld [vmem:[#allocation8 + $0xa4] sm:$0xf0]  ;;  %1655 = vmatpush.bf16.msra.mxu3 %v11029_v11 }
 0x132   : > { %v14100_v14 = vld [vmem:[#allocation8 + $0x94] sm:$0xf] }
 0x133   : > { %v1217_v17 = vmul.f32 %v16663_v15, %v16663_v15  ;;  %v1215_v18 = vmul.f32 %v16665_v16, %v16665_v16 }
 0x135   : > { %1223 = vadd.xlane.f32.xlu0 %v1217_v17  ;;  %1219 = vadd.xlane.f32.xlu2 %v1215_v18  ;;  %v10993_v17 = vor.u32 %v14103_v13, %v10992_v12  ;;  %v10994_v18 = vld [vmem:[#allocation8 + $0xa8] sm:$0xf0]  ;;  %v11106_v13 = vld [vmem:[#allocation8 + $0x178] sm:$0xf0] }
 0x136   : > { %v1199_v19 = vpop.xlane.xlu1 %1198  ;;  %v1195_v20 = vpop.xlane.xlu0 %1194 }
 0x137   : > { %v1210_v21 = vmul.f32 %v16659_v10, %v1199_v19  ;;  %v1208_v22 = vmul.f32 %v16659_v10, %v1195_v20  ;;  %v11000_v19 = vld [vmem:[#allocation8 + $0x98] sm:$0xf]  ;;  %v14104_v20 = vld [vmem:[#allocation8 + $0xac] sm:$0xf0] }
 0x139   : > { %v16673_v23 = vsub.f32 %v1189_v2, %v1210_v21  ;;  %v16675_v24 = vsub.f32 %v1187_v3, %v1208_v22  ;;  %v11017_v2 = vor.u32 %v14109_v0, %v11016_v63  ;;  %v11018_v3 = vld [vmem:[#allocation8 + $0xd8] sm:$0xf0]  ;;  %v10997_v21 = vor.u32 %v14100_v14, %v10994_v18  ;;  %v10928_v63 = vld [vmem:[#allocation8 + $0x8] sm:$0xf]  ;;  %v14086_v0 = vld [vmem:[#allocation8 + $0x1c] sm:$0xf0] }
 0x13a   : > { %v11021_v6 = vor.u32 %v14106_v1, %v11018_v3  ;;  %v11001_v22 = vor.u32 %v14104_v20, %v11000_v19  ;;  %v14083_v1 = vld [vmem:[#allocation8 + $0xc] sm:$0xf]  ;;  %v10930_v3 = vld [vmem:[#allocation8 + $0x20] sm:$0xf0]  ;;  %v11109_v18 = vor.u32 %v14126_v7, %v11106_v13  ;;  %v11080_v19 = vld [vmem:[#allocation8 + $0x130] sm:$0xf] }
 0x13b   : > { %v1218_v25 = vmul.f32 %v16673_v23, %v16673_v23  ;;  %v1216_v26 = vmul.f32 %v16675_v24, %v16675_v24  ;;  %1600 = vmatpush.bf16.msra.mxu0 %v11017_v2  ;;  %v10929_v2 = vor.u32 %v14086_v0, %v10928_v63  ;;  %v10933_v4 = vor.u32 %v14083_v1, %v10930_v3  ;;  %v14123_v20 = vld [vmem:[#allocation8 + $0x144] sm:$0xf0]  ;;  %v10984_v1 = vld [vmem:[#allocation8 + $0x70] sm:$0xf]  ;;  %v15165_v13 = vld [vmem:[#allocation5] ss:$0 sm:$0xff] }
 0x13c   : > { %1617 = vmatpush.bf16.msra.mxu1 %v11021_v6  ;;  %1637 = vmatpush.bf16.msra.mxu2 %v11001_v22  ;;  %v14129_v6 = vld [vmem:[#allocation8 + $0x174] sm:$0xf0]  ;;  %v11081_v22 = vor.u32 %v14123_v20, %v11080_v19 }
 0x13d   : > { %1225 = vadd.xlane.f32.xlu1 %v1218_v25  ;;  %1221 = vadd.xlane.f32.xlu2 %v1216_v26  ;;  %v14101_v25 = vld [vmem:[#allocation8 + $0x9c] sm:$0xf]  ;;  %v11002_v26 = vld [vmem:[#allocation8 + $0xb0] sm:$0xf0]  ;;  %v11105_v12 = vor.u32 %v14129_v6, %v11104_v5  ;;  %v10986_v5 = vld [vmem:[#allocation8 + $0x88] sm:$0xf0] }
 0x13e   : > { %v11005_v27 = vor.u32 %v14101_v25, %v11002_v26  ;;  %v11082_v25 = vld [vmem:[#allocation8 + $0x148] sm:$0xf0]  ;;  %v11056_v26 = vld [vmem:[#allocation8 + $0x100] sm:$0xf] }
 0x13f   : > { %1601 = vmatpush.bf16.msra.mxu0 %v10993_v17 }
 0x140   : > { %1618 = vmatpush.bf16.msra.mxu1 %v10997_v21  ;;  %1656 = vmatpush.bf16.msra.mxu3 %v11005_v27  ;;  %v14120_v21 = vld [vmem:[#allocation8 + $0x134] sm:$0xf] }
 0x141   : > { %1638 = vmatpush.bf16.msra.mxu2 %v10977_v36  ;;  %v11085_v30 = vor.u32 %v14120_v21, %v11082_v25 }
 0x143   : > { %1602 = vmatpush.bf16.msra.mxu0 %v10969_v31  ;;  %v14117_v31 = vld [vmem:[#allocation8 + $0x114] sm:$0xf0] }
 0x144   : > { %1619 = vmatpush.bf16.msra.mxu1 %v10973_v35  ;;  %1657 = vmatpush.bf16.msra.mxu3 %v10981_v39  ;;  %v11057_v36 = vor.u32 %v14117_v31, %v11056_v26  ;;  %v14111_v39 = vld [vmem:[#allocation8 + $0xe4] sm:$0xf0]  ;;  %v15166_v31 = vld [vmem:[#allocation7] ss:$0 sm:$0xff] }
 0x145   : > { %1639 = vmatpush.bf16.msra.mxu2 %v10953_v49  ;;  %v11033_v45 = vor.u32 %v14111_v39, %v11032_v38 }
 0x147   : > { %1603 = vmatpush.bf16.msra.mxu0 %v10945_v43 }
 0x148   : > { %1620 = vmatpush.bf16.msra.mxu1 %v10949_v48  ;;  %1658 = vmatpush.bf16.msra.mxu3 %v10957_v54 }
 0x149   : > { %1640 = vmatpush.bf16.msra.mxu2 %v10929_v2  ;;  %v14099_v2 = vld [vmem:[#allocation8 + $0x84] sm:$0xf0] }
 0x14a   : > { %v10985_v3 = vor.u32 %v14099_v2, %v10984_v1 }
 0x14b   : > { %1604 = vmatpush.bf16.msra.mxu0 %v10921_v59 }
 0x14c   : > { %1621 = vmatpush.bf16.msra.mxu1 %v10925_v62  ;;  %1659 = vmatpush.bf16.msra.mxu3 %v10933_v4  ;;  %v14096_v4 = vld [vmem:[#allocation8 + $0x74] sm:$0xf] }
 0x14f   : > { %1669 = vmatpush.bf16.msrb.mxu0 %v11105_v12  ;;  %v14093_v12 = vld [vmem:[#allocation8 + $0x54] sm:$0xf0] }
 0x150   : > { %1688 = vmatpush.bf16.msrb.mxu1 %v11109_v18  ;;  %v10962_v18 = vld [vmem:[#allocation8 + $0x58] sm:$0xf0] }
 0x153   : > { %1670 = vmatpush.bf16.msrb.mxu0 %v11081_v22 }
 0x154   : > { %1689 = vmatpush.bf16.msrb.mxu1 %v11085_v30  ;;  %v14087_v30 = vld [vmem:[#allocation8 + $0x24] sm:$0xf0] }
 0x157   : > { %1671 = vmatpush.bf16.msrb.mxu0 %v11057_v36 }
 0x158   : > { %1690 = vmatpush.bf16.msrb.mxu1 %v11061_v37 }
 0x15b   : > { %1672 = vmatpush.bf16.msrb.mxu0 %v11033_v45 }
 0x15f   : > { %1673 = vmatpush.bf16.msrb.mxu0 %v11009_v60 }
 0x163   : > { %1674 = vmatpush.bf16.msrb.mxu0 %v10985_v3 }
 0x1a8   : > { %v1220_v47 = vpop.xlane.xlu2 %1219  ;;  %v1224_v53 = vpop.xlane.xlu0 %1223 }
 0x1a9   : > { %v1227_v52 = vmul.f32 %v1220_v47, %v16659_v10  ;;  %v1229_v61 = vmul.f32 %v1224_v53, %v16659_v10  ;;  %v11037_v47 = vor.u32 %v14108_v41, %v11034_v42 }
 0x1ab   : > { %v16682_v58 = vadd.f32 1e-05, %v1227_v52  ;;  %v16686_v8 = vadd.f32 1e-05, %v1229_v61  ;;  %1691 = vmatpush.bf16.msrb.mxu1 %v11037_v47  ;;  %v11010_v61 = vld [vmem:[#allocation8 + $0xb8] sm:$0xf0] }
 0x1ac   : > { %v11013_v0 = vor.u32 %v14102_v57, %v11010_v61 }
 0x1ad   : > { %15174 = vrsqrt.f32 %v16682_v58  ;;  %vm1241_vm2 = vweird.f32 %v16682_v58  ;;  %vm1261_vm9 = vweird.f32 %v16686_v8 }
 0x1ae   : > { %15176 = vrsqrt.f32 %v16686_v8 }
 0x1af   : > { %1692 = vmatpush.bf16.msrb.mxu1 %v11013_v0 }
 0x1b0   : > { %v1226_v9 = vpop.xlane.xlu1 %1225  ;;  %v1222_v11 = vpop.xlane.xlu2 %1221 }
 0x1b1   : > { %v1230_v14 = vmul.f32 %v1226_v9, %v16659_v10  ;;  %v1228_v17 = vmul.f32 %v1222_v11, %v16659_v10  ;;  %v10989_v9 = vor.u32 %v14096_v4, %v10986_v5  ;;  %v10960_v11 = vld [vmem:[#allocation8 + $0x40] sm:$0xf] }
 0x1b2   : > { %v10961_v21 = vor.u32 %v14093_v12, %v10960_v11 }
 0x1b3   : > { %v16690_v27 = vpop.eup %15174  ;;  %v16692_v28 = vadd.f32 1e-05, %v1230_v14  ;;  %v16694_v29 = vadd.f32 1e-05, %v1228_v17  ;;  %v14090_v17 = vld [vmem:[#allocation8 + $0x44] sm:$0xf]  ;;  %1693 = vmatpush.bf16.msrb.mxu1 %v10989_v9 }
 0x1b4   : > { %v1236_v32 = vmul.f32 %v16690_v27, %v16682_v58  ;;  %v16702_v43 = vpop.eup %15176  ;;  %vm1242_vm1 = vweird.f32 %v16690_v27  ;;  %v10965_v26 = vor.u32 %v14090_v17, %v10962_v18  ;;  %1675 = vmatpush.bf16.msrb.mxu0 %v10961_v21 }
 0x1b5   : > { %15178 = vrsqrt.f32 %v16692_v28  ;;  %v1256_v51 = vmul.f32 %v16702_v43, %v16686_v8  ;;  %vm16715_vm3 = vmor %vm1241_vm2, %vm1242_vm1  ;;  %vm1251_vm5 = vweird.f32 %v16694_v29  ;;  %vm1271_vm7 = vweird.f32 %v16692_v28 }
 0x1b6   : > { %v1237_v35 = vmul.f32 %v16690_v27, %v1236_v32  ;;  %15180 = vrsqrt.f32 %v16694_v29  ;;  %vm1262_vm10 = vweird.f32 %v16702_v43  ;;  %vm2401_vm1 = vcmask 392192  }
 0x1b7   : > { %v1257_v63 = vmul.f32 %v16702_v43, %v1256_v51  ;;  %1694 = vmatpush.bf16.msrb.mxu1 %v10965_v26  ;;  %vm1263_vm12 = vmor %vm1261_vm9, %vm1262_vm10  ;;  %vm2404_vm2 = vcmask 523264  }
 0x1b8   : > { %v1238_v40 = vmul.f32 0.5, %v1237_v35 }
 0x1b9   : > { %v1258_v19 = vmul.f32 0.5, %v1257_v63 }
 0x1ba   : > { %v1239_v44 = vsub.f32 1.5, %v1238_v40 }
 0x1bb   : > { %v16704_v46 = vpop.eup %15178  ;;  %v1259_v35 = vsub.f32 1.5, %v1258_v19 }
 0x1bc   : > { %v15181_v48 = vpop.eup %15180  ;;  %v1266_v49 = vmul.f32 %v16704_v46, %v16692_v28  ;;  %v1240_v50 = vmul.f32 %v16690_v27, %v1239_v44  ;;  %vm1272_vm8 = vweird.f32 %v16704_v46 }
 0x1bd   : > { %v1246_v52 = vmul.f32 %v15181_v48, %v16694_v29  ;;  %vm1252_vm4 = vweird.f32 %v15181_v48  ;;  %vm1273_vm11 = vmor %vm1271_vm7, %vm1272_vm8  ;;  %v1260_v40 = vmul.f32 %v16702_v43, %v1259_v35 }
 0x1be   : > { %v1267_v53 = vmul.f32 %v16704_v46, %v1266_v49  ;;  %v1244_v62 = vsel %vm16715_vm3, %v16690_v27, %v1240_v50  ;;  %vm1253_vm6 = vmor %vm1251_vm5, %vm1252_vm4  ;;  %v10936_v27 = vld [vmem:[#allocation8 + $0x10] sm:$0xf]  ;;  %vm2407_vm3 = vcmask 654336   ;;  %vm2410_vm4 = vcmask 785408  }
 0x1bf   : > { %v1247_v54 = vmul.f32 %v15181_v48, %v1246_v52  ;;  %v1275_v14 = vmul.f32 %v1244_v62, %v16665_v16  ;;  %v14084_v16 = vld [vmem:[#allocation8 + $0x14] sm:$0xf]  ;;  %v10937_v36 = vor.u32 %v14087_v30, %v10936_v27  ;;  %v1264_v8 = vsel %vm1263_vm12, %v16702_v43, %v1260_v40  ;;  %v16736_v43 = vld [vmem:[#allocation10] sm:$0x3f] }
 0x1c0   : > { %v1268_v6 = vmul.f32 0.5, %v1267_v53  ;;  %v10941_v38 = vor.u32 %v14084_v16, %v10938_v34  ;;  %v1277_v44 = vmul.f32 %v1264_v8, %v16663_v15  ;;  %v1345_v15 = vperm.slane %v16736_v43, 0 }
 0x1c1   : > { %v1248_v58 = vmul.f32 0.5, %v1247_v54  ;;  %v1282_v32 = vmul.f32 %v15165_v13, %v1275_v14  ;;  %1676 = vmatpush.bf16.msrb.mxu0 %v10937_v36  ;;  %v1347_v11 = vperm.slane %v16736_v43, 2  ;;  %vm2413_vm5 = vcmask 916480  }
 0x1c2   : > { %v1269_v22 = vsub.f32 1.5, %v1268_v6  ;;  %1695 = vmatpush.bf16.msrb.mxu1 %v10941_v38  ;;  %v1284_v47 = vmul.f32 %v15165_v13, %v1277_v44 }
 0x1c3   : > { %v1249_v7 = vsub.f32 1.5, %v1248_v58  ;;  %v1289_v39 = vadd.f32 %v15166_v31, %v1282_v32 }
 0x1c4   : > { %v1270_v37 = vmul.f32 %v16704_v46, %v1269_v22  ;;  %v1291_v49 = vadd.f32 %v15166_v31, %v1284_v47 }
 0x1c5   : > { %v1250_v20 = vmul.f32 %v15181_v48, %v1249_v7 }
 0x1c6   : > { %v1274_v41 = vsel %vm1273_vm11, %v16704_v46, %v1270_v37  ;;  %v1346_v46 = vperm.slane %v16736_v43, 1 }
 0x1c7   : > { %v1254_v25 = vsel %vm1253_vm6, %v15181_v48, %v1250_v20  ;;  %v1278_v42 = vmul.f32 %v1274_v41, %v16673_v23 }
 0x1c8   : > { %v1276_v33 = vmul.f32 %v1254_v25, %v16675_v24 }
 0x1c9   : > { %v1285_v45 = vmul.f32 %v15165_v13, %v1278_v42 }
 0x1ca   : > { %v1283_v29 = vmul.f32 %v15165_v13, %v1276_v33 }
 0x1cb   : > { %v1292_v48 = vadd.f32 %v15166_v31, %v1285_v45 }
 0x1cc   : > { %v1290_v24 = vadd.f32 %v15166_v31, %v1283_v29 }
 0x1cd   : > { %v1294_v50 = vpack.c.bf16 %v1292_v48, %v1291_v49 }
 0x1ce   : > { %v1293_v28 = vpack.c.bf16 %v1290_v24, %v1289_v39 }
 0x1d0   : > { %1605 = vmatmul.bf16.vlgmr.msra.gmra.mxu0 %v1293_v28  ;;  %1622 = vmatmul.bf16.vlgmr.msra.gmra.mxu1 %v1293_v28 }
 0x1d1   : > { %1641 = vmatmul.bf16.vlgmr.msra.gmra.mxu2 %v1293_v28  ;;  %1660 = vmatmul.bf16.vlgmr.msra.gmra.mxu3 %v1293_v28 }
 0x1e0   : > { %1610 = vmatmul.bf16.gmra.mxu0 %v1294_v50  ;;  %1627 = vmatmul.bf16.gmra.mxu1 %v1294_v50 }
 0x1e1   : > { %1646 = vmatmul.bf16.gmra.mxu2 %v1294_v50  ;;  %1663 = vmatmul.bf16.gmra.mxu3 %v1294_v50 }
 0x1f0   : > { %1677 = vmatmul.bf16.vlgmr.msrb.gmra.mxu0 %v1293_v28  ;;  %1696 = vmatmul.bf16.vlgmr.msrb.gmra.mxu1 %v1293_v28 }
 0x200   : > { %1682 = vmatmul.bf16.gmra.mxu0 %v1294_v50  ;;  %1701 = vmatmul.bf16.gmra.mxu1 %v1294_v50 }
 0x24d   : > { %v1606_v23 = vpop.f32.mrf.mxu0  ;;  %v1623_v51 = vpop.f32.mrf.mxu1 }
 0x24e   : > { %v1624_v52 = vadd.f32 %v1623_v51, %v1346_v46  ;;  %v1607_v53 = vadd.f32 %v1606_v23, %v1345_v15 }
 0x250   : > { %1710 = vxpose.xlu2.b32.start [1/4] (short) %v1624_v52, 128  ;;  %v1708_v59 = vpack.c.bf16 %v1607_v53, %v1607_v53 }
 0x252   : > { %v1764_v63 = vunpack.c.l.b16 %v1708_v59 }
 0x254   : > { %v1642_v54 = vpop.f32.mrf.mxu2  ;;  %v1661_v55 = vpop.f32.mrf.mxu3 }
 0x255   : > { %v1608_v56 = vpop.f32.mrf.mxu0  ;;  %v1625_v57 = vpop.f32.mrf.mxu1  ;;  %v1643_v17 = vadd.f32 %v1642_v54, %v1347_v11 }
 0x256   : > { %v1609_v60 = vadd.f32 %v1608_v56, %v1345_v15  ;;  %v1626_v61 = vadd.f32 %v1625_v57, %v1346_v46 }
 0x257   : > { %v1758_v22 = vpack.c.bf16 %v1643_v17, %v1643_v17 }
 0x258   : > { %v1709_v62 = vpack.c.bf16 %v1609_v60, %v1609_v60  ;;  %1711 = vxpose.xlu2.b32.cont [2/4] (short) %v1626_v61, 128 }
 0x259   : > { %v1819_v31 = vunpack.c.l.b16 %v1758_v22 }
 0x25a   : > { %v1765_v58 = vunpack.c.l.b16 %v1709_v62 }
 0x25c   : > { %v16740_v0 = vpack.c.b16 %v1765_v58, %v1764_v63  ;;  %v1644_v1 = vpop.f32.mrf.mxu2  ;;  %v1662_v2 = vpop.f32.mrf.mxu3 }
 0x25d   : > { %v1611_v3 = vpop.f32.mrf.mxu0  ;;  %v1628_v4 = vpop.f32.mrf.mxu1  ;;  %v1645_v13 = vadd.f32 %v1644_v1, %v1347_v11 }
 0x25e   : > { %v1629_v5 = vadd.f32 %v1628_v4, %v1346_v46  ;;  %2057 = vrot.lane.b32.xlu1 %v16740_v0, %s16225_s6  ;;  %1915 = vrot.lane.b32.xlu0 %v16740_v0, %s16226_s10 }
 0x25f   : > { %v1759_v18 = vpack.c.bf16 %v1645_v13, %v1645_v13 }
 0x260   : > { %1712 = vxpose.xlu2.b32.cont [3/4] (short) %v1629_v5, 128 }
 0x261   : > { %v1820_v26 = vunpack.c.l.b16 %v1759_v18 }
 0x263   : > { %v16757_v33 = vpack.c.b16 %v1820_v26, %v1819_v31 }
 0x264   : > { %v1647_v6 = vpop.f32.mrf.mxu2 }
 0x265   : > { %v1612_v7 = vpop.f32.mrf.mxu0  ;;  %v1630_v9 = vpop.f32.mrf.mxu1  ;;  %v1648_v14 = vadd.f32 %v1647_v6, %v1347_v11 }
 0x266   : > { %v1631_v12 = vadd.f32 %v1630_v9, %v1346_v46  ;;  %1844 = vrot.lane.b32.xlu1 %v16740_v0, %s16227_s3  ;;  %2199 = vrot.lane.b32.xlu0 %v16740_v0, %s16228_s1 }
 0x267   : > { %v1760_v20 = vpack.c.bf16 %v1648_v14, %v1648_v14 }
 0x268   : > { %1713 = vxpose.xlu2.b32.end [4/4] (short) %v1631_v12, 128 }
 0x269   : > { %v1821_v27 = vunpack.c.l.b16 %v1760_v20 }
 0x26c   : > { %v1649_v19 = vpop.f32.mrf.mxu2 }
 0x26d   : > { %v1650_v21 = vadd.f32 %v1649_v19, %v1347_v11  ;;  %v1697_v14 = vpop.f32.mrf.mxu1 }
 0x26e   : > { %2128 = vrot.lane.b32.xlu1 %v16740_v0, %s16229_s25  ;;  %1986 = vrot.lane.b32.xlu0 %v16740_v0, %s16230_s5 }
 0x26f   : > { %v1761_v25 = vpack.c.bf16 %v1650_v21, %v1650_v21 }
 0x271   : > { %v1822_v30 = vunpack.c.l.b16 %v1761_v25 }
 0x273   : > { %v16755_v32 = vpack.c.b16 %v1822_v30, %v1821_v27 }
 0x275   : > { %1836 = vmatpush.bf16.msrb.mxu3 %v16755_v32  ;;  %v1699_v21 = vpop.f32.mrf.mxu1 }
 0x276   : > { %1963 = vrot.lane.b32.xlu1 %v16757_v33, %s16226_s10  ;;  %2270 = vrot.lane.b32.xlu0 %v16740_v0, %s16231_s4 }
 0x279   : > { %1837 = vmatpush.bf16.msrb.mxu3 %v16757_v33 }
 0x27d   : > { %v1702_v27 = vpop.f32.mrf.mxu1 }
 0x27e   : > { %2105 = vrot.lane.b32.xlu0 %v16757_v33, %s16225_s6  ;;  %2107 = vrot.lane.b32.xlu1 %v16755_v32, %s16225_s6 }
 0x286   : > { %2247 = vrot.lane.b32.xlu0 %v16757_v33, %s16228_s1  ;;  %2249 = vrot.lane.b32.xlu1 %v16755_v32, %s16228_s1 }
 0x28e   : > { %1965 = vrot.lane.b32.xlu0 %v16755_v32, %s16226_s10 }
 0x2d0   : > { %v1916_v16 = vpop.permute.xlu0 %1915  ;;  %v2058_v35 = vpop.permute.xlu1 %2057 }
 0x2d8   : > { %v16775_v34 = vpop.permute.xlu0 %2199  ;;  %v1845_v36 = vpop.permute.xlu1 %1844 }
 0x2e0   : > { %v1987_v29 = vpop.permute.xlu0 %1986  ;;  %v16779_v40 = vpop.permute.xlu1 %2128 }
 0x2e8   : > { %v16777_v37 = vpop.permute.xlu0 %2270  ;;  %v1964_v48 = vpop.permute.xlu1 %1963 }
 0x2e9   : > { %v1726_v38 = vpop.trf.xlu2 }
 0x2ea   : > { %v1742_v39 = vpack.c.bf16 %v1726_v38, %v1726_v38 }
 0x2ec   : > { %v1769_v8 = vunpack.c.l.b16 %v1742_v39  ;;  %v1350_v39 = vperm.slane %v16736_v43, 5 }
 0x2f0   : > { %v2106_v24 = vpop.permute.xlu0 %2105  ;;  %v2108_v52 = vpop.permute.xlu1 %2107 }
 0x2f1   : > { %v1727_v28 = vpop.trf.xlu2 }
 0x2f2   : > { %v1743_v41 = vpack.c.bf16 %v1727_v28, %v1727_v28 }
 0x2f4   : > { %v1770_v42 = vunpack.c.l.b16 %v1743_v41  ;;  %v1703_v41 = vadd.f32 %v1702_v27, %v1350_v39 }
 0x2f6   : > { %v1771_v44 = vpack.c.b16 %v1770_v42, %v1769_v8  ;;  %v1700_v42 = vadd.f32 %v1699_v21, %v1350_v39 }
 0x2f8   : > { %1784 = vmatpush.bf16.msrb.mxu2 %v1771_v44  ;;  %v16781_v45 = vpop.permute.xlu0 %2247  ;;  %v1698_v44 = vadd.f32 %v1697_v14, %v1350_v39 }
 0x2f9   : > { %v1728_v47 = vpop.trf.xlu2 }
 0x2fa   : > { %v1744_v49 = vpack.c.bf16 %v1728_v47, %v1728_v47  ;;  %v2558_v47 = vpack.c.bf16 %v1703_v41, %v1703_v41 }
 0x2fb   : > { %11110 = vmatmul.msk.bf16.vlgmr.msrb.gmra.mxu2 %vm1773_vm13, %v16740_v0 }
 0x2fc   : > { %v1848_v51 = vunpack.c.l.b16 %v1744_v49 }
 0x300   : > { %v1966_v50 = vpop.permute.xlu0 %1965 }
 0x301   : > { %v1729_v46 = vpop.trf.xlu2  ;;  %1978 = vmatpush.bf16.msra.mxu1 %v1966_v50 }
 0x302   : > { %v1745_v23 = vpack.c.bf16 %v1729_v46, %v1729_v46  ;;  %v2557_v46 = vpack.c.bf16 %v1700_v42, %v1700_v42 }
 0x304   : > { %v1849_v15 = vunpack.c.l.b16 %v1745_v23 }
 0x305   : > { %1979 = vmatpush.bf16.msra.mxu1 %v1964_v48 }
 0x306   : > { %v1850_v53 = vpack.c.b16 %v1849_v15, %v1848_v51  ;;  %v2556_v15 = vpack.c.bf16 %v1698_v44, %v1698_v44 }
 0x308   : > { %1862 = vmatpush.bf16.msra.mxu2 %v1850_v53 }
 0x309   : > { %2120 = vmatpush.bf16.msrb.mxu1 %v2108_v52  ;;  %v1730_v54 = vpop.trf.xlu2  ;;  %v2619_v52 = vunpack.c.l.b16 %v2558_v47 }
 0x30a   : > { %v1746_v55 = vpack.c.bf16 %v1730_v54, %v1730_v54  ;;  %v2618_v54 = vunpack.c.l.b16 %v2557_v46 }
 0x30b   : > { %11112 = vmatmul.msk.bf16.vlgmr.msra.gmra.mxu2 %vm1773_vm13, %v1845_v36 }
 0x30c   : > { %v1919_v59 = vunpack.c.l.b16 %v1746_v55 }
 0x30d   : > { %2121 = vmatpush.bf16.msrb.mxu1 %v2106_v24 }
 0x311   : > { %v1731_v56 = vpop.trf.xlu2 }
 0x312   : > { %v1747_v57 = vpack.c.bf16 %v1731_v56, %v1731_v56 }
 0x314   : > { %v1920_v60 = vunpack.c.l.b16 %v1747_v57  ;;  %v1678_v57 = vpop.f32.mrf.mxu0 }
 0x316   : > { %v1921_v61 = vpack.c.b16 %v1920_v60, %v1919_v59 }
 0x318   : > { %1933 = vmatpush.bf16.msra.mxu0 %v1921_v61 }
 0x319   : > { %v1732_v62 = vpop.trf.xlu2 }
 0x31a   : > { %v1748_v63 = vpack.c.bf16 %v1732_v62, %v1732_v62 }
 0x31b   : > { %11114 = vmatmul.msk.bf16.vlgmr.msra.gmra.mxu0 %vm1773_vm13, %v1916_v16 }
 0x31c   : > { %v1990_v1 = vunpack.c.l.b16 %v1748_v63  ;;  %v1680_v59 = vpop.f32.mrf.mxu0 }
 0x321   : > { %v1733_v58 = vpop.trf.xlu2 }
 0x322   : > { %v1749_v0 = vpack.c.bf16 %v1733_v58, %v1733_v58 }
 0x324   : > { %v1991_v2 = vunpack.c.l.b16 %v1749_v0  ;;  %v1683_v62 = vpop.f32.mrf.mxu0 }
 0x326   : > { %v1992_v3 = vpack.c.b16 %v1991_v2, %v1990_v1 }
 0x328   : > { %2004 = vmatpush.bf16.msrb.mxu2 %v1992_v3 }
 0x329   : > { %v1734_v4 = vpop.trf.xlu2 }
 0x32a   : > { %v1750_v5 = vpack.c.bf16 %v1734_v4, %v1734_v4 }
 0x32b   : > { %11116 = vmatmul.msk.bf16.vlgmr.msrb.gmra.mxu2 %vm1773_vm13, %v1987_v29 }
 0x32c   : > { %v2061_v9 = vunpack.c.l.b16 %v1750_v5 }
 0x331   : > { %v1735_v6 = vpop.trf.xlu2 }
 0x332   : > { %v1751_v7 = vpack.c.bf16 %v1735_v6, %v1735_v6 }
 0x334   : > { %v2062_v11 = vunpack.c.l.b16 %v1751_v7 }
 0x336   : > { %v2063_v12 = vpack.c.b16 %v2062_v11, %v2061_v9 }
 0x338   : > { %2075 = vmatpush.bf16.msrb.mxu0 %v2063_v12 }
 0x339   : > { %v1736_v13 = vpop.trf.xlu2 }
 0x33a   : > { %v1752_v17 = vpack.c.bf16 %v1736_v13, %v1736_v13 }
 0x33b   : > { %11118 = vmatmul.msk.bf16.vlgmr.msrb.gmra.mxu0 %vm1773_vm13, %v2058_v35  ;;  %v1704_v35 = vpop.f32.mrf.mxu1 }
 0x33c   : > { %v2132_v19 = vunpack.c.l.b16 %v1752_v17  ;;  %v1705_v28 = vadd.f32 %v1704_v35, %v1350_v39 }
 0x341   : > { %v1737_v18 = vpop.trf.xlu2 }
 0x342   : > { %v1753_v20 = vpack.c.bf16 %v1737_v18, %v1737_v18 }
 0x344   : > { %v2133_v22 = vunpack.c.l.b16 %v1753_v20 }
 0x346   : > { %v2134_v25 = vpack.c.b16 %v2133_v22, %v2132_v19  ;;  %v1349_v19 = vperm.slane %v16736_v43, 4 }
 0x348   : > { %2146 = vmatpush.bf16.msra.mxu2 %v2134_v25  ;;  %v1679_v21 = vadd.f32 %v1678_v57, %v1349_v19  ;;  %v1681_v27 = vadd.f32 %v1680_v59, %v1349_v19 }
 0x349   : > { %v1738_v26 = vpop.trf.xlu2 }
 0x34a   : > { %v1754_v30 = vpack.c.bf16 %v1738_v26, %v1738_v26 }
 0x34b   : > { %11120 = vmatmul.msk.bf16.vlgmr.msra.gmra.mxu2 %vm1773_vm13, %v16779_v40  ;;  %v2559_v40 = vpack.c.bf16 %v1705_v28, %v1705_v28 }
 0x34c   : > { %v2203_v16 = vunpack.c.l.b16 %v1754_v30 }
 0x34d   : > { %v2620_v23 = vunpack.c.l.b16 %v2559_v40 }
 0x34f   : > { %v16794_v55 = vpack.c.b16 %v2620_v23, %v2619_v52 }
 0x351   : > { %v1739_v31 = vpop.trf.xlu2 }
 0x352   : > { %v1755_v29 = vpack.c.bf16 %v1739_v31, %v1739_v31  ;;  %v1684_v31 = vadd.f32 %v1683_v62, %v1349_v19 }
 0x354   : > { %v2204_v36 = vunpack.c.l.b16 %v1755_v29 }
 0x356   : > { %v2205_v38 = vpack.c.b16 %v2204_v36, %v2203_v16  ;;  %v16838_v16 = vpop.permute.xlu1 %2249 }
 0x358   : > { %2217 = vmatpush.bf16.msra.mxu0 %v2205_v38 }
 0x359   : > { %v1740_v24 = vpop.trf.xlu2 }
 0x35a   : > { %v1756_v8 = vpack.c.bf16 %v1740_v24, %v1740_v24 }
 0x35b   : > { %11122 = vmatmul.msk.bf16.vlgmr.msra.gmra.mxu0 %vm1773_vm13, %v16775_v34  ;;  %v2617_v34 = vunpack.c.l.b16 %v2556_v15 }
 0x35c   : > { %v2274_v49 = vunpack.c.l.b16 %v1756_v8 }
 0x35d   : > { %v16797_v56 = vpack.c.b16 %v2618_v54, %v2617_v34 }
 0x361   : > { %v1741_v48 = vpop.trf.xlu2 }
 0x362   : > { %v1757_v50 = vpack.c.bf16 %v1741_v48, %v1741_v48 }
 0x364   : > { %v2275_v51 = vunpack.c.l.b16 %v1757_v50 }
 0x366   : > { %v2276_v53 = vpack.c.b16 %v2275_v51, %v2274_v49 }
 0x368   : > { %2288 = vmatpush.bf16.msrb.mxu2 %v2276_v53 }
 0x36b   : > { %11124 = vmatmul.msk.bf16.vlgmr.msrb.gmra.mxu2 %vm1773_vm13, %v16777_v37  ;;  %v1685_v37 = vpop.f32.mrf.mxu0 }
 0x36c   : > { %2634 = vmatpush.bf16.msra.mxu2 %v16794_v55  ;;  %v1686_v35 = vadd.f32 %v1685_v37, %v1349_v19 }
 0x370   : > { %2635 = vmatpush.bf16.msra.mxu2 %v16797_v56 }
 0x37e   : > { %v1786_v60 = vpop.f32.mrf.mxu2 }
 0x37f   : > { %v1792_v61 = vsel %vm1791_vm14, %v1786_v60, -inf }
 0x380   : > { %1793 = vmax.xlane.f32.xlu0 %v1792_v61 }
 0x386   : > { %v1788_v63 = vpop.f32.mrf.mxu2 }
 0x387   : > { %v1795_v58 = vsel %vm1791_vm14, %v1788_v63, -inf }
 0x388   : > { %1796 = vmax.xlane.f32.xlu1 %v1795_v58 }
 0x38e   : > { %v16804_v0 = vpop.f32.mrf.mxu2 }
 0x38f   : > { %v1869_v1 = vsel %vm1791_vm14, %v16804_v0, -inf }
 0x390   : > { %1870 = vmax.xlane.f32.xlu0 %v1869_v1 }
 0x396   : > { %v16810_v6 = vpop.f32.mrf.mxu2 }
 0x397   : > { %v1872_v7 = vsel %vm1791_vm14, %v16810_v6, -inf }
 0x398   : > { %v1935_v2 = vpop.f32.mrf.mxu0 }
 0x399   : > { %v1940_v3 = vsel %vm1791_vm14, %v1935_v2, -inf }
 0x39a   : > { %1941 = vmax.xlane.f32.xlu1 %v1940_v3 }
 0x3a0   : > { %v1937_v4 = vpop.f32.mrf.mxu0 }
 0x3a1   : > { %v1943_v5 = vsel %vm1791_vm14, %v1937_v4, -inf }
 0x3a2   : > { %1944 = vmax.xlane.f32.xlu0 %v1943_v5 }
 0x3aa   : > { %1873 = vmax.xlane.f32.xlu0 %v1872_v7 }
 0x3ae   : > { %v16814_v9 = vpop.f32.mrf.mxu2 }
 0x3af   : > { %v2011_v11 = vsel %vm1791_vm14, %v16814_v9, -inf }
 0x3b0   : > { %2012 = vmax.xlane.f32.xlu1 %v2011_v11 }
 0x3b6   : > { %v16832_v25 = vpop.f32.mrf.mxu2 }
 0x3b7   : > { %v2014_v26 = vsel %vm1791_vm14, %v16832_v25, -inf }
 0x3b8   : > { %v2077_v12 = vpop.f32.mrf.mxu0 }
 0x3b9   : > { %v2082_v13 = vsel %vm1791_vm14, %v2077_v12, -inf }
 0x3ba   : > { %2083 = vmax.xlane.f32.xlu2 %v2082_v13 }
 0x3be   : > { %1894 = vrot.lane.b32.xlu0 %v16755_v32, %s16227_s3 }
 0x3c0   : > { %v16821_v14 = vpop.f32.mrf.mxu0 }
 0x3c1   : > { %v2085_v17 = vsel %vm1791_vm14, %v16821_v14, -inf }
 0x3c2   : > { %2086 = vmax.xlane.f32.xlu1 %v2085_v17 }
 0x3d8   : > { %v16825_v18 = vpop.f32.mrf.mxu0 }
 0x3d9   : > { %v2224_v30 = vsel %vm1791_vm14, %v16825_v18, -inf }
 0x3e0   : > { %v16828_v20 = vpop.f32.mrf.mxu0 }
 0x3e1   : > { %v2227_v22 = vsel %vm1791_vm14, %v16828_v20, -inf }
 0x3e2   : > { %2228 = vmax.xlane.f32.xlu1 %v2227_v22 }
 0x3e3   : > { %2508 = vxpose.xlu2.b32.start [1/4] (short) %v1679_v21, 128 }
 0x3e8   : > { %2015 = vmax.xlane.f32.xlu0 %v2014_v26 }
 0x3eb   : > { %2509 = vxpose.xlu2.b32.cont [2/4] (short) %v1681_v27, 128 }
 0x3f0   : > { %2225 = vmax.xlane.f32.xlu0 %v2224_v30 }
 0x3f3   : > { %2510 = vxpose.xlu2.b32.cont [3/4] (short) %v1684_v31, 128  ;;  %v1794_v29 = vpop.xlane.xlu0 %1793 }
 0x3f4   : > { %v1798_v36 = vsub.f32 %v1786_v60, %v1794_v29 }
 0x3f6   : > { %v1800_v38 = vmul.f32 1.442695, %v1798_v36 }
 0x3f8   : > { %15182 = vpow2.f32 %v1800_v38 }
 0x3fb   : > { %v1797_v39 = vpop.xlane.xlu1 %1796  ;;  %2511 = vxpose.xlu2.b32.end [4/4] (short) %v1686_v35, 128 }
 0x3fc   : > { %v1799_v24 = vsub.f32 %v1788_v63, %v1797_v39 }
 0x3fe   : > { %v16840_v28 = vpop.eup %15182  ;;  %v1802_v41 = vmul.f32 1.442695, %v1799_v24 }
 0x3ff   : > { %v1804_v8 = vsel %vm1791_vm14, %v16840_v28, 0.0 }
 0x400   : > { %15184 = vpow2.f32 %v1802_v41  ;;  %1805 = vadd.xlane.f32.xlu0 %v1804_v8 }
 0x403   : > { %v16848_v44 = vpop.xlane.xlu0 %1870 }
 0x406   : > { %v16844_v42 = vpop.eup %15184 }
 0x407   : > { %v1807_v40 = vsel %vm1791_vm14, %v16844_v42, 0.0 }
 0x408   : > { %1808 = vadd.xlane.f32.xlu1 %v1807_v40 }
 0x40d   : > { %v1942_v47 = vpop.xlane.xlu1 %1941 }
 0x40e   : > { %v1946_v48 = vsub.f32 %v1935_v2, %v1942_v47 }
 0x410   : > { %v1948_v49 = vmul.f32 1.442695, %v1946_v48 }
 0x412   : > { %15186 = vpow2.f32 %v1948_v49 }
 0x415   : > { %v1945_v50 = vpop.xlane.xlu0 %1944 }
 0x416   : > { %v1947_v46 = vsub.f32 %v1937_v4, %v1945_v50 }
 0x418   : > { %v16850_v23 = vpop.eup %15186  ;;  %v1950_v51 = vmul.f32 1.442695, %v1947_v46 }
 0x419   : > { %v1952_v15 = vsel %vm1791_vm14, %v16850_v23, 0.0 }
 0x41a   : > { %15188 = vpow2.f32 %v1950_v51  ;;  %1953 = vadd.xlane.f32.xlu0 %v1952_v15 }
 0x41d   : > { %v16858_v54 = vpop.xlane.xlu0 %1873 }
 0x420   : > { %v16854_v52 = vpop.eup %15188 }
 0x421   : > { %v1955_v53 = vsel %vm1791_vm14, %v16854_v52, 0.0 }
 0x422   : > { %1956 = vadd.xlane.f32.xlu1 %v1955_v53 }
 0x423   : > { %v2013_v34 = vpop.xlane.xlu1 %2012 }
 0x424   : > { %v2017_v60 = vsub.f32 %v16814_v9, %v2013_v34 }
 0x426   : > { %v2019_v63 = vmul.f32 1.442695, %v2017_v60 }
 0x42d   : > { %v2084_v57 = vpop.xlane.xlu2 %2083 }
 0x42e   : > { %v2088_v59 = vsub.f32 %v2077_v12, %v2084_v57 }
 0x430   : > { %v2090_v61 = vmul.f32 1.442695, %v2088_v59  ;;  %v1895_v62 = vpop.permute.xlu0 %1894 }
 0x431   : > { %1907 = vmatpush.bf16.msra.mxu3 %v1895_v62 }
 0x432   : > { %15190 = vpow2.f32 %v2090_v61 }
 0x433   : > { %15192 = vpow2.f32 %v2019_v63 }
 0x435   : > { %v2087_v58 = vpop.xlane.xlu1 %2086 }
 0x436   : > { %v2089_v1 = vsub.f32 %v16821_v14, %v2087_v58 }
 0x438   : > { %v16862_v37 = vpop.eup %15190  ;;  %v2092_v2 = vmul.f32 1.442695, %v2089_v1 }
 0x439   : > { %v2094_v3 = vsel %vm1791_vm14, %v16862_v37, 0.0  ;;  %v16866_v4 = vpop.eup %15192 }
 0x43a   : > { %15194 = vpow2.f32 %v2092_v2  ;;  %2095 = vadd.xlane.f32.xlu0 %v2094_v3  ;;  %v2023_v7 = vsel %vm1791_vm14, %v16866_v4, 0.0  ;;  %v14136_v3 = vld [vmem:[#allocation11 + $0x30] sm:$0xff] }
 0x440   : > { %v16868_v5 = vpop.eup %15194 }
 0x441   : > { %v2097_v9 = vsel %vm1791_vm14, %v16868_v5, 0.0 }
 0x442   : > { %2024 = vadd.xlane.f32.xlu0 %v2023_v7  ;;  %2098 = vadd.xlane.f32.xlu1 %v2097_v9 }
 0x455   : > { %v2229_v12 = vpop.xlane.xlu1 %2228 }
 0x456   : > { %2034 = vrot.lane.b32.xlu0 %v16757_v33, %s16230_s5  ;;  %v2231_v13 = vsub.f32 %v16828_v20, %v2229_v12 }
 0x458   : > { %v2234_v17 = vmul.f32 1.442695, %v2231_v13  ;;  %v14135_v13 = vld [vmem:[#allocation11 + $0x28] sm:$0xff] }
 0x45a   : > { %15196 = vpow2.f32 %v2234_v17 }
 0x45b   : > { %1892 = vrot.lane.b32.xlu1 %v16757_v33, %s16227_s3  ;;  %v2016_v11 = vpop.xlane.xlu0 %2015 }
 0x45c   : > { %v2018_v26 = vsub.f32 %v16832_v25, %v2016_v11 }
 0x45e   : > { %v2021_v31 = vmul.f32 1.442695, %v2018_v26  ;;  %v16912_v26 = vpop.f32.mrf.mxu2 }
 0x460   : > { %v16881_v30 = vpop.eup %15196 }
 0x461   : > { %v2239_v29 = vsel %vm1791_vm14, %v16881_v30, 0.0 }
 0x463   : > { %v2226_v14 = vpop.xlane.xlu0 %2225 }
 0x464   : > { %v2230_v19 = vsub.f32 %v16825_v18, %v2226_v14 }
 0x466   : > { %v2232_v21 = vmul.f32 1.442695, %v2230_v19 }
 0x473   : > { %v1806_v22 = vpop.xlane.xlu0 %1805 }
 0x474   : > { %15198 = vrcp.f32 %v1806_v22 }
 0x475   : > { %15200 = vpow2.f32 %v2232_v21 }
 0x47a   : > { %v15199_v20 = vpop.eup %15198 }
 0x47b   : > { %v1809_v27 = vpop.xlane.xlu1 %1808  ;;  %v16885_v36 = vpop.eup %15200  ;;  %v1812_v38 = vmul.f32 %v15199_v20, %v16840_v28  ;;  %v14132_v20 = vld [vmem:[#allocation11 + $0x10] sm:$0xff] }
 0x47c   : > { %15202 = vrcp.f32 %v1809_v27  ;;  %v2236_v25 = vsel %vm1791_vm14, %v16885_v36, 0.0  ;;  %v14134_v27 = vld [vmem:[#allocation11 + $0x20] sm:$0xff] }
 0x47d   : > { %15204 = vpow2.f32 %v2021_v31 }
 0x480   : > { %2240 = vadd.xlane.f32.xlu0 %v2239_v29  ;;  %v2153_v29 = vsel %vm1791_vm14, %v16912_v26, -inf }
 0x482   : > { %v15203_v18 = vpop.eup %15202 }
 0x483   : > { %v1813_v35 = vmul.f32 %v15203_v18, %v16844_v42  ;;  %v16892_v24 = vpop.eup %15204  ;;  %v2524_v42 = vpop.trf.xlu2 }
 0x484   : > { %v2026_v41 = vsel %vm1791_vm14, %v16892_v24, 0.0  ;;  %v2540_v62 = vpack.c.bf16 %v2524_v42, %v2524_v42 }
 0x485   : > { %2237 = vadd.xlane.f32.xlu1 %v2236_v25  ;;  %v1814_v39 = vpack.c.bf16 %v1813_v35, %v1812_v38  ;;  %v16916_v35 = vpop.f32.mrf.mxu2  ;;  %v14131_v25 = vld [vmem:[#allocation11 + $0x8] sm:$0xff] }
 0x486   : > { %v2567_v58 = vunpack.c.l.b16 %v2540_v62 }
 0x487   : > { %11111 = vmatmul.msk.bf16.vlgmr.msrb.gmra.mxu3 %vm1791_vm14, %v1814_v39 }
 0x48b   : > { %v2525_v46 = vpop.trf.xlu2 }
 0x48d   : > { %2027 = vadd.xlane.f32.xlu1 %v2026_v41  ;;  %v1954_v8 = vpop.xlane.xlu0 %1953 }
 0x48e   : > { %15206 = vrcp.f32 %v1954_v8 }
 0x493   : > { %v2526_v51 = vpop.trf.xlu2 }
 0x494   : > { %2178 = vrot.lane.b32.xlu0 %v16755_v32, %s16229_s25  ;;  %v15207_v40 = vpop.eup %15206  ;;  %v2542_v15 = vpack.c.bf16 %v2526_v51, %v2526_v51 }
 0x495   : > { %v1957_v28 = vpop.xlane.xlu1 %1956  ;;  %v1960_v48 = vmul.f32 %v15207_v40, %v16850_v23  ;;  %v14137_v23 = vld [vmem:[#allocation11 + $0x38] sm:$0xff]  ;;  %v14130_v40 = vld [vmem:[#allocation11] sm:$0xff] }
 0x496   : > { %15208 = vrcp.f32 %v1957_v28  ;;  %v16903_v57 = vunpack.c.l.b16 %v2542_v15  ;;  %2484 = vmatpush.bf16.msrb.mxu0 %v14137_v23  ;;  %v2156_v28 = vsel %vm1791_vm14, %v16916_v35, -inf }
 0x49a   : > { %2485 = vmatpush.bf16.msrb.mxu0 %v14136_v3 }
 0x49b   : > { %v2527_v53 = vpop.trf.xlu2 }
 0x49c   : > { %v15209_v47 = vpop.eup %15208  ;;  %v2543_v59 = vpack.c.bf16 %v2527_v53, %v2527_v53 }
 0x49d   : > { %v1961_v49 = vmul.f32 %v15209_v47, %v16854_v52 }
 0x49e   : > { %v16905_v60 = vunpack.c.l.b16 %v2543_v59  ;;  %2486 = vmatpush.bf16.msrb.mxu0 %v14135_v13 }
 0x49f   : > { %v1962_v50 = vpack.c.bf16 %v1961_v49, %v1960_v48  ;;  %v16920_v48 = vpop.f32.mrf.mxu2 }
 0x4a0   : > { %v2648_v61 = vpack.c.b16 %v16905_v60, %v16903_v57 }
 0x4a1   : > { %11115 = vmatmul.msk.bf16.vlgmr.msra.gmra.mxu1 %vm1791_vm14, %v1962_v50  ;;  %v1875_v50 = vsub.f32 %v16804_v0, %v16848_v44 }
 0x4a2   : > { %2262 = vmatpush.bf16.msra.mxu1 %v16838_v16  ;;  %v2541_v16 = vpack.c.bf16 %v2525_v46, %v2525_v46  ;;  %2487 = vmatpush.bf16.msrb.mxu0 %v14134_v27  ;;  %v2295_v46 = vsel %vm1791_vm14, %v16920_v48, -inf }
 0x4a3   : > { %v1877_v15 = vmul.f32 1.442695, %v1875_v50 }
 0x4a4   : > { %v2568_v1 = vunpack.c.l.b16 %v2541_v16 }
 0x4a6   : > { %2263 = vmatpush.bf16.msra.mxu1 %v16781_v45  ;;  %v2528_v45 = vpop.trf.xlu2  ;;  %v2569_v12 = vpack.c.b16 %v2568_v1, %v2567_v58 }
 0x4a7   : > { %v2544_v11 = vpack.c.bf16 %v2528_v45, %v2528_v45  ;;  %v16926_v53 = vpop.f32.mrf.mxu2 }
 0x4a8   : > { %v2298_v62 = vsel %vm1791_vm14, %v16926_v53, -inf }
 0x4a9   : > { %v2719_v19 = vunpack.c.l.b16 %v2544_v11 }
 0x4ad   : > { %v2096_v34 = vpop.xlane.xlu0 %2095 }
 0x4ae   : > { %15210 = vrcp.f32 %v2096_v34  ;;  %v2529_v17 = vpop.trf.xlu2 }
 0x4af   : > { %v2545_v21 = vpack.c.bf16 %v2529_v17, %v2529_v17 }
 0x4b1   : > { %v2720_v22 = vunpack.c.l.b16 %v2545_v21  ;;  %v1664_v21 = vpop.f32.mrf.mxu3 }
 0x4b3   : > { %v2721_v31 = vpack.c.b16 %v2720_v22, %v2719_v19 }
 0x4b4   : > { %v15211_v63 = vpop.eup %15210 }
 0x4b5   : > { %v2099_v52 = vpop.xlane.xlu1 %2098  ;;  %v2102_v7 = vmul.f32 %v15211_v63, %v16862_v37  ;;  %v14133_v37 = vld [vmem:[#allocation11 + $0x18] sm:$0xff]  ;;  %2733 = vmatpush.bf16.msrb.mxu2 %v2721_v31  ;;  %v16936_v44 = vpop.xlane.xlu0 %2024 }
 0x4b6   : > { %15212 = vrcp.f32 %v2099_v52  ;;  %2488 = vmatpush.bf16.msrb.mxu0 %v14133_v37  ;;  %v1876_v52 = vsub.f32 %v16810_v6, %v16858_v54 }
 0x4b7   : > { %15214 = vpow2.f32 %v1877_v15 }
 0x4b8   : > { %v1879_v45 = vmul.f32 1.442695, %v1876_v52 }
 0x4ba   : > { %2489 = vmatpush.bf16.msrb.mxu0 %v14132_v20  ;;  %15216 = vpow2.f32 %v1879_v45 }
 0x4bc   : > { %v15213_v2 = vpop.eup %15212 }
 0x4bd   : > { %v2103_v9 = vmul.f32 %v15213_v2, %v16868_v5  ;;  %v2530_v5 = vpop.trf.xlu2  ;;  %v16940_v63 = vpop.eup %15214 }
 0x4be   : > { %v2546_v38 = vpack.c.bf16 %v2530_v5, %v2530_v5  ;;  %2490 = vmatpush.bf16.msrb.mxu0 %v14131_v25  ;;  %v1881_v1 = vsel %vm1791_vm14, %v16940_v63, 0.0  ;;  %v1666_v25 = vpop.f32.mrf.mxu3 }
 0x4bf   : > { %v2104_v14 = vpack.c.bf16 %v2103_v9, %v2102_v7 }
 0x4c0   : > { %v2792_v41 = vunpack.c.l.b16 %v2546_v38  ;;  %v16946_v2 = vpop.eup %15216 }
 0x4c1   : > { %11119 = vmatmul.msk.bf16.vlgmr.msrb.gmra.mxu1 %vm1791_vm14, %v2104_v14  ;;  %v1884_v11 = vsel %vm1791_vm14, %v16946_v2, 0.0 }
 0x4c2   : > { %2581 = vmatpush.bf16.msrb.mxu1 %v2569_v12  ;;  %2491 = vmatpush.bf16.msrb.mxu0 %v14130_v40 }
 0x4c5   : > { %v2531_v39 = vpop.trf.xlu2 }
 0x4c6   : > { %v2547_v8 = vpack.c.bf16 %v2531_v39, %v2531_v39 }
 0x4c8   : > { %v2793_v42 = vunpack.c.l.b16 %v2547_v8  ;;  %v16944_v6 = vpop.permute.xlu0 %2034 }
 0x4ca   : > { %v2794_v47 = vpack.c.b16 %v2793_v42, %v2792_v41  ;;  %v1348_v41 = vperm.slane %v16736_v43, 3 }
 0x4cc   : > { %2154 = vmax.xlane.f32.xlu2 %v2153_v29  ;;  %2806 = vmatpush.bf16.msra.mxu0 %v2794_v47  ;;  %v1665_v42 = vadd.f32 %v1664_v21, %v1348_v41 }
 0x4cd   : > { %v1893_v18 = vpop.permute.xlu1 %1892  ;;  %v2532_v49 = vpop.trf.xlu2 }
 0x4ce   : > { %1908 = vmatpush.bf16.msra.mxu3 %v1893_v18  ;;  %v2548_v51 = vpack.c.bf16 %v2532_v49, %v2532_v49 }
 0x4d0   : > { %v16928_v59 = vunpack.c.l.b16 %v2548_v51 }
 0x4d4   : > { %2157 = vmax.xlane.f32.xlu2 %v2156_v28  ;;  %v1667_v28 = vadd.f32 %v1666_v25, %v1348_v41 }
 0x4d5   : > { %v2533_v34 = vpop.trf.xlu2 }
 0x4d6   : > { %v2549_v23 = vpack.c.bf16 %v2533_v34, %v2533_v34  ;;  %v2507_v40 = vpack.c.bf16 %v1667_v28, %v1667_v28 }
 0x4d8   : > { %v16934_v0 = vunpack.c.l.b16 %v2549_v23  ;;  %v2563_v49 = vunpack.c.l.b16 %v2507_v40 }
 0x4da   : > { %v2867_v16 = vpack.c.b16 %v16934_v0, %v16928_v59 }
 0x4dc   : > { %2296 = vmax.xlane.f32.xlu2 %v2295_v46 }
 0x4dd   : > { %v2534_v58 = vpop.trf.xlu2 }
 0x4de   : > { %v2550_v54 = vpack.c.bf16 %v2534_v58, %v2534_v58 }
 0x4e0   : > { %v16948_v7 = vunpack.c.l.b16 %v2550_v54 }
 0x4e4   : > { %2299 = vmax.xlane.f32.xlu2 %v2298_v62 }
 0x4e5   : > { %v2535_v3 = vpop.trf.xlu2 }
 0x4e6   : > { %v2551_v9 = vpack.c.bf16 %v2535_v3, %v2535_v3 }
 0x4e8   : > { %v16952_v12 = vunpack.c.l.b16 %v2551_v9 }
 0x4ea   : > { %v2940_v14 = vpack.c.b16 %v16952_v12, %v16948_v7 }
 0x4ec   : > { %1882 = vadd.xlane.f32.xlu2 %v1881_v1 }
 0x4ed   : > { %v2536_v19 = vpop.trf.xlu2 }
 0x4ee   : > { %v2552_v27 = vpack.c.bf16 %v2536_v19, %v2536_v19 }
 0x4f0   : > { %v16958_v20 = vunpack.c.l.b16 %v2552_v27 }
 0x4f3   : > { %v2241_v13 = vpop.xlane.xlu0 %2240 }
 0x4f4   : > { %1885 = vadd.xlane.f32.xlu2 %v1884_v11  ;;  %15218 = vrcp.f32 %v2241_v13 }
 0x4f5   : > { %v2537_v29 = vpop.trf.xlu2 }
 0x4f6   : > { %v2553_v18 = vpack.c.bf16 %v2537_v29, %v2537_v29 }
 0x4f8   : > { %v2238_v17 = vpop.xlane.xlu1 %2237  ;;  %v16960_v39 = vunpack.c.l.b16 %v2553_v18 }
 0x4f9   : > { %15220 = vrcp.f32 %v2238_v17 }
 0x4fa   : > { %v15219_v22 = vpop.eup %15218  ;;  %v3013_v8 = vpack.c.b16 %v16960_v39, %v16958_v20 }
 0x4fb   : > { %v2245_v37 = vmul.f32 %v15219_v22, %v16881_v30 }
 0x4fd   : > { %v2538_v30 = vpop.trf.xlu2 }
 0x4fe   : > { %v2554_v47 = vpack.c.bf16 %v2538_v30, %v2538_v30 }
 0x4ff   : > { %v15221_v31 = vpop.eup %15220 }
 0x500   : > { %v2244_v5 = vmul.f32 %v15221_v31, %v16885_v36  ;;  %v2506_v36 = vpack.c.bf16 %v1665_v42, %v1665_v42  ;;  %v16968_v51 = vunpack.c.l.b16 %v2554_v47  ;;  %v2028_v28 = vpop.xlane.xlu1 %2027 }
 0x502   : > { %v2246_v38 = vpack.c.bf16 %v2245_v37, %v2244_v5  ;;  %v2562_v50 = vunpack.c.l.b16 %v2506_v36 }
 0x504   : > { %11123 = vmatmul.msk.bf16.vlgmr.msra.gmra.mxu1 %vm1791_vm14, %v2246_v38  ;;  %v16970_v15 = vpack.c.b16 %v2563_v49, %v2562_v50 }
 0x505   : > { %v2539_v46 = vpop.trf.xlu2 }
 0x506   : > { %v2555_v43 = vpack.c.bf16 %v2539_v46, %v2539_v46  ;;  %v2179_v30 = vpop.permute.xlu0 %2178  ;;  %v2499_v46 = vlaneseq }
 0x508   : > { %v16972_v34 = vunpack.c.l.b16 %v2555_v43 }
 0x50a   : > { %v3086_v23 = vpack.c.b16 %v16972_v34, %v16968_v51 }
 0x50c   : > { %2036 = vrot.lane.b32.xlu2 %v16755_v32, %s16230_s5 }
 0x514   : > { %11158 = vmatmul.msk.bf16.vlgmr.msrb.gmra.mxu1 %vm1773_vm13, %v16970_v15 }
 0x51e   : > { %v1981_v27 = vpop.f32.mrf.mxu1 }
 0x526   : > { %v1983_v37 = vpop.f32.mrf.mxu1 }
 0x53e   : > { %v16995_v18 = vpop.f32.mrf.mxu1 }
 0x53f   : > { %v2155_v52 = vpop.xlane.xlu2 %2154 }
 0x540   : > { %v2159_v62 = vsub.f32 %v16912_v26, %v2155_v52  ;;  %v2500_v52 = vshrl.u32 %v2499_v46, 7 }
 0x542   : > { %v2161_v45 = vmul.f32 1.442695, %v2159_v62  ;;  %v2503_v62 = vand.u32 127, %v2499_v46 }
 0x544   : > { %15222 = vpow2.f32 %v2161_v45  ;;  %vm17015_vm15 = vcmp.le.s32.totalorder %v2503_v62, %v2500_v52 }
 0x547   : > { %v2158_v58 = vpop.xlane.xlu2 %2157 }
 0x548   : > { %v2160_v1 = vsub.f32 %v16916_v35, %v2158_v58 }
 0x54a   : > { %v16980_v54 = vpop.eup %15222  ;;  %v2163_v3 = vmul.f32 1.442695, %v2160_v1 }
 0x54b   : > { %v2165_v9 = vsel %vm1791_vm14, %v16980_v54, 0.0 }
 0x54c   : > { %15224 = vpow2.f32 %v2163_v3  ;;  %2166 = vadd.xlane.f32.xlu1 %v2165_v9 }
 0x54f   : > { %v2297_v11 = vpop.xlane.xlu2 %2296 }
 0x550   : > { %v2301_v13 = vsub.f32 %v16920_v48, %v2297_v11 }
 0x552   : > { %v16985_v17 = vpop.eup %15224  ;;  %v2303_v19 = vmul.f32 1.442695, %v2301_v13  ;;  %v15100_v13 = vpack.i.bf16 %v1983_v37, %v1981_v27  ;;  %v1839_v27 = vpop.f32.mrf.mxu3 }
 0x553   : > { %v2168_v26 = vsel %vm1791_vm14, %v16985_v17, 0.0 }
 0x554   : > { %15226 = vpow2.f32 %v2303_v19  ;;  %2169 = vadd.xlane.f32.xlu1 %v2168_v26 }
 0x557   : > { %v2300_v35 = vpop.xlane.xlu2 %2299 }
 0x55a   : > { %v16989_v21 = vpop.eup %15226 }
 0x55b   : > { %v2307_v22 = vsel %vm1791_vm14, %v16989_v21, 0.0 }
 0x55c   : > { %2308 = vadd.xlane.f32.xlu0 %v2307_v22 }
 0x55f   : > { %v1883_v31 = vpop.xlane.xlu2 %1882 }
 0x560   : > { %15228 = vrcp.f32 %v1883_v31 }
 0x566   : > { %v15229_v5 = vpop.eup %15228 }
 0x567   : > { %v1886_v48 = vpop.xlane.xlu2 %1885  ;;  %v1889_v38 = vmul.f32 %v15229_v5, %v16940_v63  ;;  %v17006_v63 = vpop.f32.mrf.mxu1 }
 0x568   : > { %15230 = vrcp.f32 %v1886_v48 }
 0x569   : > { %15232 = vrcp.f32 %v2028_v28 }
 0x56a   : > { %15234 = vrcp.f32 %v16936_v44 }
 0x56d   : > { %2176 = vrot.lane.b32.xlu1 %v16757_v33, %s16229_s25 }
 0x56e   : > { %v15231_v29 = vpop.eup %15230 }
 0x56f   : > { %v1890_v25 = vmul.f32 %v15231_v29, %v16946_v2  ;;  %v2037_v41 = vpop.permute.xlu2 %2036  ;;  %v15233_v2 = vpop.eup %15232 }
 0x570   : > { %2320 = vrot.lane.b32.xlu0 %v16755_v32, %s16231_s4  ;;  %2049 = vmatpush.bf16.msrb.mxu3 %v2037_v41  ;;  %v15235_v40 = vpop.eup %15234  ;;  %v2032_v32 = vmul.f32 %v15233_v2, %v16892_v24  ;;  %v2501_v24 = vadd.s32 8, %v2500_v52  ;;  %v1841_v41 = vpop.f32.mrf.mxu3 }
 0x571   : > { %v1891_v42 = vpack.c.bf16 %v1890_v25, %v1889_v38  ;;  %v2031_v36 = vmul.f32 %v15235_v40, %v16866_v4 }
 0x572   : > { %vm17021_vm0 = vcmp.le.s32.totalorder %v2503_v62, %v2501_v24 }
 0x573   : > { %11113 = vmatmul.msk.bf16.vlgmr.msra.gmra.mxu3 %vm1791_vm14, %v1891_v42  ;;  %v2033_v47 = vpack.c.bf16 %v2032_v32, %v2031_v36 }
 0x574   : > { %2050 = vmatpush.bf16.msrb.mxu3 %v16944_v6  ;;  %v2302_v6 = vsub.f32 %v16926_v53, %v2300_v35 }
 0x576   : > { %v2305_v50 = vmul.f32 1.442695, %v2302_v6 }
 0x578   : > { %2191 = vmatpush.bf16.msra.mxu3 %v2179_v30  ;;  %2318 = vrot.lane.b32.xlu0 %v16757_v33, %s16231_s4  ;;  %15236 = vpow2.f32 %v2305_v50 }
 0x57e   : > { %v15237_v43 = vpop.eup %15236 }
 0x57f   : > { %v2310_v45 = vsel %vm1791_vm14, %v15237_v43, 0.0 }
 0x581   : > { %v17010_v49 = vpop.f32.mrf.mxu1 }
 0x583   : > { %11117 = vmatmul.msk.bf16.vlgmr.msrb.gmra.mxu3 %vm1791_vm14, %v2033_v47 }
 0x589   : > { %v2267_v44 = vpop.f32.mrf.mxu1 }
 0x58a   : > { %v15120_v6 = vpack.i.bf16 %v2267_v44, %v17010_v49 }
 0x591   : > { %v2583_v33 = vpop.f32.mrf.mxu1 }
 0x592   : > { %v2588_v58 = vsel %vm17015_vm15, %v2583_v33, -1e+30 }
 0x593   : > { %v2590_v3 = vsel %vm1791_vm14, %v2588_v58, -inf }
 0x597   : > { %2311 = vadd.xlane.f32.xlu1 %v2310_v45 }
 0x599   : > { %v2585_v53 = vpop.f32.mrf.mxu1 }
 0x59a   : > { %v2589_v9 = vsel %vm17021_vm0, %v2585_v53, -1e+30 }
 0x59b   : > { %v2593_v11 = vsel %vm1791_vm14, %v2589_v9, -inf }
 0x59f   : > { %2591 = vmax.xlane.f32.xlu1 %v2590_v3 }
 0x5a2   : > { %2594 = vmax.xlane.f32.xlu0 %v2593_v11 }
 0x5b6   : > { %15101 = vrot.lane.b32.xlu0 %v15100_v13, %s16228_s1 }
 0x5bf   : > { %v2167_v19 = vpop.xlane.xlu1 %2166 }
 0x5c7   : > { %v2170_v26 = vpop.xlane.xlu1 %2169 }
 0x5c8   : > { %15238 = vrcp.f32 %v2170_v26 }
 0x5c9   : > { %15240 = vrcp.f32 %v2167_v19 }
 0x5ce   : > { %v15239_v35 = vpop.eup %15238 }
 0x5cf   : > { %v2309_v22 = vpop.xlane.xlu0 %2308  ;;  %v15241_v31 = vpop.eup %15240  ;;  %v2174_v48 = vmul.f32 %v15239_v35, %v16985_v17 }
 0x5d0   : > { %v2173_v5 = vmul.f32 %v15241_v31, %v16980_v54  ;;  %15242 = vrcp.f32 %v2309_v22 }
 0x5d2   : > { %v2175_v38 = vpack.c.bf16 %v2174_v48, %v2173_v5 }
 0x5d6   : > { %v15243_v40 = vpop.eup %15242 }
 0x5d7   : > { %v2315_v47 = vmul.f32 %v15243_v40, %v16989_v21 }
 0x5df   : > { %v2177_v29 = vpop.permute.xlu1 %2176 }
 0x5e0   : > { %2192 = vmatpush.bf16.msra.mxu3 %v2177_v29 }
 0x5e2   : > { %v2321_v25 = vpop.permute.xlu0 %2320 }
 0x5e3   : > { %11121 = vmatmul.msk.bf16.vlgmr.msra.gmra.mxu3 %vm1791_vm14, %v2175_v38 }
 0x5e4   : > { %2333 = vmatpush.bf16.msrb.mxu3 %v2321_v25 }
 0x5ea   : > { %v2319_v37 = vpop.permute.xlu0 %2318 }
 0x5eb   : > { %2334 = vmatpush.bf16.msrb.mxu3 %v2319_v37 }
 0x5ef   : > { %2660 = vmatpush.bf16.msra.mxu3 %v2648_v61  ;;  %v15110_v61 = vpack.i.bf16 %v17006_v63, %v16995_v18 }
 0x5f6   : > { %v1910_v28 = vpop.f32.mrf.mxu3 }
 0x5fe   : > { %v1912_v42 = vpop.f32.mrf.mxu3 }
 0x5ff   : > { %v15095_v17 = vpack.i.bf16 %v1912_v42, %v1910_v28 }
 0x601   : > { %15096 = vrot.lane.b32.xlu1 %v15095_v17, %s16231_s4 }
 0x606   : > { %v2052_v54 = vpop.f32.mrf.mxu3 }
 0x60a   : > { %v2312_v30 = vpop.xlane.xlu1 %2311 }
 0x60b   : > { %15244 = vrcp.f32 %v2312_v30 }
 0x60e   : > { %v2054_v2 = vpop.f32.mrf.mxu3 }
 0x60f   : > { %v15105_v32 = vpack.i.bf16 %v2054_v2, %v2052_v54 }
 0x611   : > { %v15245_v36 = vpop.eup %15244  ;;  %15106 = vrot.lane.b32.xlu1 %v15105_v32, %s16229_s25 }
 0x612   : > { %v2316_v57 = vmul.f32 %v15245_v36, %v15237_v43  ;;  %v2592_v21 = vpop.xlane.xlu1 %2591 }
 0x613   : > { %v2596_v50 = vsub.f32 %v2588_v58, %v2592_v21 }
 0x614   : > { %v2317_v60 = vpack.c.bf16 %v2316_v57, %v2315_v47 }
 0x615   : > { %v2598_v46 = vmul.f32 1.442695, %v2596_v50  ;;  %v2595_v33 = vpop.xlane.xlu0 %2594 }
 0x616   : > { %11125 = vmatmul.msk.bf16.vlgmr.msrb.gmra.mxu3 %vm1791_vm14, %v2317_v60  ;;  %v2597_v18 = vsub.f32 %v2589_v9, %v2595_v33 }
 0x617   : > { %15246 = vpow2.f32 %v2598_v46 }
 0x618   : > { %v2600_v63 = vmul.f32 1.442695, %v2597_v18 }
 0x619   : > { %15111 = vrot.lane.b32.xlu1 %v15110_v61, %s16225_s6 }
 0x61a   : > { %15248 = vpow2.f32 %v2600_v63 }
 0x61d   : > { %v17051_v43 = vpop.eup %15246 }
 0x61e   : > { %v2602_v49 = vsel %vm1791_vm14, %v17051_v43, 0.0 }
 0x620   : > { %v15249_v52 = vpop.eup %15248 }
 0x621   : > { %2642 = vrot.lane.b32.xlu1 %v16970_v15, %s16227_s3  ;;  %v2605_v62 = vsel %vm1791_vm14, %v15249_v52, 0.0 }
 0x628   : > { %v15102_v9 = vpop.permute.xlu0 %15101 }
 0x629   : > { %15121 = vrot.lane.b32.xlu1 %v15120_v6, %s16226_s10  ;;  %v15104_v19 = vunpack.i.h.bf16 %v15102_v9  ;;  %v15103_v26 = vunpack.i.l.bf16 %v15102_v9 }
 0x631   : > { %2715 = vrot.lane.b32.xlu1 %v16970_v15, %s16226_s10 }
 0x639   : > { %2861 = vrot.lane.b32.xlu1 %v16970_v15, %s16225_s6 }
 0x663   : > { %2603 = vadd.xlane.f32.xlu1 %v2602_v49 }
 0x666   : > { %v2194_v44 = vpop.f32.mrf.mxu3 }
 0x66b   : > { %2606 = vadd.xlane.f32.xlu1 %v2605_v62 }
 0x66e   : > { %v2196_v45 = vpop.f32.mrf.mxu3 }
 0x66f   : > { %v15115_v24 = vpack.i.bf16 %v2196_v45, %v2194_v44 }
 0x671   : > { %15116 = vrot.lane.b32.xlu0 %v15115_v24, %s16230_s5 }
 0x673   : > { %v15097_v58 = vpop.permute.xlu1 %15096 }
 0x674   : > { %v15099_v53 = vunpack.i.h.bf16 %v15097_v58  ;;  %v15098_v3 = vunpack.i.l.bf16 %v15097_v58 }
 0x676   : > { %v2398_v11 = vsel %vm1773_vm13, %v1841_v41, %v15099_v53  ;;  %v2397_v13 = vsel %vm1773_vm13, %v1839_v27, %v15098_v3 }
 0x677   : > { %v2399_v48 = vsel %vm1791_vm14, %v2397_v13, %v15103_v26  ;;  %v2400_v5 = vsel %vm1791_vm14, %v2398_v11, %v15104_v19 }
 0x683   : > { %v15107_v35 = vpop.permute.xlu1 %15106 }
 0x684   : > { %v15109_v22 = vunpack.i.h.bf16 %v15107_v35  ;;  %v15108_v31 = vunpack.i.l.bf16 %v15107_v35  ;;  %3007 = vrot.lane.b32.xlu1 %v16970_v15, %s16228_s1  ;;  %v17121_v35 = vld [vmem:[#allocation13] ss:$0 sm:$0xff] }
 0x686   : > { %v2402_v29 = vsel %vm2401_vm1, %v2399_v48, %v15108_v31  ;;  %v2403_v38 = vsel %vm2401_vm1, %v2400_v5, %v15109_v22 }
 0x68b   : > { %v15112_v25 = vpop.permute.xlu1 %15111 }
 0x68c   : > { %v15114_v27 = vunpack.i.h.bf16 %v15112_v25  ;;  %v15113_v37 = vunpack.i.l.bf16 %v15112_v25 }
 0x68e   : > { %v2405_v41 = vsel %vm2404_vm2, %v2402_v29, %v15113_v37  ;;  %v2406_v28 = vsel %vm2404_vm2, %v2403_v38, %v15114_v27 }
 0x693   : > { %v2643_v42 = vpop.permute.xlu1 %2642 }
 0x694   : > { %11160 = vmatmul.msk.bf16.vlgmr.msra.gmra.mxu3 %vm1773_vm13, %v2643_v42 }
 0x699   : > { %v2336_v17 = vpop.f32.mrf.mxu3 }
 0x69b   : > { %v15122_v2 = vpop.permute.xlu1 %15121 }
 0x69c   : > { %v15124_v21 = vunpack.i.h.bf16 %v15122_v2  ;;  %v15123_v50 = vunpack.i.l.bf16 %v15122_v2 }
 0x6a1   : > { %v2338_v54 = vpop.f32.mrf.mxu3 }
 0x6a2   : > { %v15125_v30 = vpack.i.bf16 %v2338_v54, %v2336_v17 }
 0x6a3   : > { %v2716_v40 = vpop.permute.xlu1 %2715 }
 0x6a4   : > { %15126 = vrot.lane.b32.xlu0 %v15125_v30, %s16227_s3 }
 0x6ab   : > { %v2862_v32 = vpop.permute.xlu1 %2861 }
 0x6ac   : > { %2788 = vrot.lane.b32.xlu0 %v16970_v15, %s16230_s5 }
 0x6b4   : > { %2934 = vrot.lane.b32.xlu0 %v16970_v15, %s16229_s25 }
 0x6bc   : > { %3080 = vrot.lane.b32.xlu0 %v16970_v15, %s16231_s4 }
 0x6c4   : > { %2692 = vrot.lane.b32.xlu0 %v16797_v56, %s16227_s3 }
 0x6cc   : > { %2767 = vrot.lane.b32.xlu0 %v16794_v55, %s16226_s10 }
 0x6d4   : > { %2765 = vrot.lane.b32.xlu0 %v16797_v56, %s16226_s10 }
 0x6d6   : > { %v2604_v36 = vpop.xlane.xlu1 %2603 }
 0x6d7   : > { %15250 = vrcp.f32 %v2604_v36 }
 0x6dc   : > { %2838 = vrot.lane.b32.xlu0 %v16797_v56, %s16230_s5 }
 0x6dd   : > { %v15251_v57 = vpop.eup %15250 }
 0x6de   : > { %v2607_v47 = vpop.xlane.xlu1 %2606  ;;  %v2610_v46 = vmul.f32 %v15251_v57, %v17051_v43 }
 0x6df   : > { %15252 = vrcp.f32 %v2607_v47 }
 0x6e3   : > { %v15117_v15 = vpop.permute.xlu0 %15116 }
 0x6e4   : > { %v15119_v60 = vunpack.i.h.bf16 %v15117_v15  ;;  %v15118_v61 = vunpack.i.l.bf16 %v15117_v15 }
 0x6e5   : > { %v15253_v6 = vpop.eup %15252 }
 0x6e6   : > { %v2611_v33 = vmul.f32 %v15253_v6, %v15249_v52  ;;  %v2408_v18 = vsel %vm2407_vm3, %v2405_v41, %v15118_v61  ;;  %v2409_v63 = vsel %vm2407_vm3, %v2406_v28, %v15119_v60 }
 0x6e7   : > { %v2411_v49 = vsel %vm2410_vm4, %v2408_v18, %v15123_v50  ;;  %v2412_v44 = vsel %vm2410_vm4, %v2409_v63, %v15124_v21 }
 0x6e8   : > { %v2612_v62 = vpack.c.bf16 %v2611_v33, %v2610_v46 }
 0x6ea   : > { %11159 = vmatmul.msk.bf16.vlgmr.msra.gmra.mxu2 %vm1791_vm14, %v2612_v62 }
 0x6eb   : > { %2879 = vmatpush.bf16.msra.mxu2 %v2867_v16 }
 0x6f6   : > { %v3008_v53 = vpop.permute.xlu1 %3007 }
 0x6fa   : > { %11162 = vmatmul.msk.bf16.vlgmr.msrb.gmra.mxu2 %vm1773_vm13, %v2716_v40 }
 0x6fb   : > { %3025 = vmatpush.bf16.msrb.mxu2 %v3013_v8 }
 0x70a   : > { %11166 = vmatmul.msk.bf16.vlgmr.msra.gmra.mxu2 %vm1773_vm13, %v2862_v32 }
 0x716   : > { %v15127_v43 = vpop.permute.xlu0 %15126 }
 0x717   : > { %v15129_v52 = vunpack.i.h.bf16 %v15127_v43  ;;  %v15128_v45 = vunpack.i.l.bf16 %v15127_v43  ;;  %v2662_v24 = vpop.f32.mrf.mxu3 }
 0x718   : > { %v2667_v58 = vsel %vm17015_vm15, %v2662_v24, -1e+30 }
 0x719   : > { %v2414_v59 = vsel %vm2413_vm5, %v2411_v49, %v15128_v45  ;;  %v2415_v0 = vsel %vm2413_vm5, %v2412_v44, %v15129_v52  ;;  %v2669_v16 = vsel %vm1791_vm14, %v2667_v58, -inf }
 0x71a   : > { %v2416_v3 = vpack.c.bf16 %v2415_v0, %v2414_v59  ;;  %2670 = vmax.xlane.f32.xlu1 %v2669_v16  ;;  %11170 = vmatmul.msk.bf16.vlgmr.msrb.gmra.mxu2 %vm1773_vm13, %v3008_v53 }
 0x71c   : > { %2492 = vmatmul.bf16.vlgmr.msrb.gmra.mxu0 %v2416_v3 }
 0x71d   : > { %2952 = vmatpush.bf16.msrb.mxu0 %v2940_v14 }
 0x71e   : > { %v2789_v20 = vpop.permute.xlu0 %2788 }
 0x71f   : > { %v2664_v39 = vpop.f32.mrf.mxu3 }
 0x720   : > { %v2668_v8 = vsel %vm17021_vm0, %v2664_v39, -1e+30 }
 0x721   : > { %v2672_v9 = vsel %vm1791_vm14, %v2668_v8, -inf }
 0x722   : > { %2673 = vmax.xlane.f32.xlu2 %v2672_v9 }
 0x726   : > { %v2935_v11 = vpop.permute.xlu0 %2934 }
 0x72c   : > { %11164 = vmatmul.msk.bf16.vlgmr.msra.gmra.mxu0 %vm1773_vm13, %v2789_v20 }
 0x72d   : > { %3098 = vmatpush.bf16.msra.mxu0 %v3086_v23 }
 0x72e   : > { %v3081_v13 = vpop.permute.xlu0 %3080 }
 0x733   : > { %2840 = vrot.lane.b32.xlu1 %v16794_v55, %s16230_s5 }
 0x736   : > { %v2693_v7 = vpop.permute.xlu0 %2692 }
 0x73a   : > { %2694 = vrot.lane.b32.xlu2 %v16794_v55, %s16227_s3 }
 0x73c   : > { %11168 = vmatmul.msk.bf16.vlgmr.msrb.gmra.mxu0 %vm1773_vm13, %v2935_v11 }
 0x73e   : > { %v2768_v12 = vpop.permute.xlu0 %2767 }
 0x73f   : > { %2780 = vmatpush.bf16.msrb.mxu3 %v2768_v12 }
 0x742   : > { %2913 = vrot.lane.b32.xlu2 %v16794_v55, %s16225_s6 }
 0x746   : > { %v2766_v14 = vpop.permute.xlu0 %2765 }
 0x747   : > { %2781 = vmatpush.bf16.msrb.mxu3 %v2766_v14 }
 0x74c   : > { %11172 = vmatmul.msk.bf16.vlgmr.msra.gmra.mxu0 %vm1773_vm13, %v3081_v13 }
 0x74e   : > { %v2839_v54 = vpop.permute.xlu0 %2838 }
 0x76d   : > { %v17130_v42 = vpop.f32.mrf.mxu2 }
 0x775   : > { %v17137_v36 = vpop.f32.mrf.mxu2 }
 0x77d   : > { %v2735_v61 = vpop.f32.mrf.mxu2 }
 0x77e   : > { %v17145_v6 = vsel %vm17015_vm15, %v2735_v61, -1e+30 }
 0x77f   : > { %v2742_v33 = vsel %vm1791_vm14, %v17145_v6, -inf }
 0x785   : > { %v2737_v20 = vpop.f32.mrf.mxu2 }
 0x78d   : > { %v2671_v51 = vpop.xlane.xlu1 %2670 }
 0x78e   : > { %v2675_v34 = vsub.f32 %v2667_v58, %v2671_v51 }
 0x790   : > { %v2677_v23 = vmul.f32 1.442695, %v2675_v34  ;;  %v17171_v34 = vsel %vm17021_vm0, %v2737_v20, -1e+30 }
 0x792   : > { %15254 = vpow2.f32 %v2677_v23 }
 0x795   : > { %v2674_v19 = vpop.xlane.xlu2 %2673 }
 0x796   : > { %v2676_v26 = vsub.f32 %v2668_v8, %v2674_v19 }
 0x798   : > { %v15255_v22 = vpop.eup %15254  ;;  %v2679_v31 = vmul.f32 1.442695, %v2676_v26  ;;  %v2745_v26 = vsel %vm1791_vm14, %v17171_v34, -inf }
 0x799   : > { %v2493_v48 = vpop.f32.mrf.mxu0  ;;  %v2681_v5 = vsel %vm1791_vm14, %v15255_v22, 0.0 }
 0x79a   : > { %15256 = vpow2.f32 %v2679_v31  ;;  %v17125_v29 = vadd.f32 %v17121_v35, %v2493_v48  ;;  %2682 = vadd.xlane.f32.xlu0 %v2681_v5 }
 0x79d   : > { %v2695_v38 = vpop.permute.xlu2 %2694 }
 0x79e   : > { %2707 = vmatpush.bf16.msra.mxu1 %v2695_v38 }
 0x7a0   : > { %v15257_v25 = vpop.eup %15256 }
 0x7a1   : > { %v17127_v27 = vpop.f32.mrf.mxu0  ;;  %v2684_v37 = vsel %vm1791_vm14, %v15257_v25, 0.0 }
 0x7a2   : > { %2685 = vadd.xlane.f32.xlu1 %v2684_v37  ;;  %2708 = vmatpush.bf16.msra.mxu1 %v2693_v7  ;;  %v2881_v7 = vpop.f32.mrf.mxu2 }
 0x7a3   : > { %v17181_v5 = vsel %vm17015_vm15, %v2881_v7, -1e+30 }
 0x7a5   : > { %v2914_v41 = vpop.permute.xlu2 %2913  ;;  %v2841_v28 = vpop.permute.xlu1 %2840 }
 0x7a6   : > { %2926 = vmatpush.bf16.msra.mxu3 %v2914_v41  ;;  %2853 = vmatpush.bf16.msrb.mxu1 %v2841_v28  ;;  %v2888_v28 = vsel %vm1791_vm14, %v17181_v5, -inf }
 0x7a9   : > { %v2808_v17 = vpop.f32.mrf.mxu0 }
 0x7aa   : > { %v2813_v30 = vsel %vm17015_vm15, %v2808_v17, -1e+30  ;;  %2854 = vmatpush.bf16.msrb.mxu1 %v2839_v54  ;;  %v2883_v31 = vpop.f32.mrf.mxu2 }
 0x7ab   : > { %v2815_v2 = vsel %vm1791_vm14, %v2813_v30, -inf }
 0x7ac   : > { %2816 = vmax.xlane.f32.xlu2 %v2815_v2 }
 0x7b1   : > { %v2810_v40 = vpop.f32.mrf.mxu0 }
 0x7b2   : > { %v2814_v32 = vsel %vm17021_vm0, %v2810_v40, -1e+30  ;;  %v3027_v40 = vpop.f32.mrf.mxu2 }
 0x7b3   : > { %v2818_v47 = vsel %vm1791_vm14, %v2814_v32, -inf }
 0x7b4   : > { %2819 = vmax.xlane.f32.xlu0 %v2818_v47 }
 0x7b9   : > { %v2954_v57 = vpop.f32.mrf.mxu0 }
 0x7ba   : > { %v2959_v15 = vsel %vm17015_vm15, %v2954_v57, -1e+30 }
 0x7bb   : > { %v2961_v60 = vsel %vm1791_vm14, %v2959_v15, -inf }
 0x7bc   : > { %2962 = vmax.xlane.f32.xlu0 %v2961_v60 }
 0x7c1   : > { %v2956_v21 = vpop.f32.mrf.mxu0 }
 0x7c2   : > { %v2960_v50 = vsel %vm17021_vm0, %v2956_v21, -1e+30 }
 0x7c3   : > { %v2964_v46 = vsel %vm1791_vm14, %v2960_v50, -inf }
 0x7c4   : > { %2965 = vmax.xlane.f32.xlu1 %v2964_v46  ;;  %2743 = vmax.xlane.f32.xlu0 %v2742_v33 }
 0x7c9   : > { %v3100_v18 = vpop.f32.mrf.mxu0 }
 0x7ca   : > { %v17154_v63 = vsel %vm17015_vm15, %v3100_v18, -1e+30  ;;  %v3029_v18 = vpop.f32.mrf.mxu2 }
 0x7cb   : > { %v3107_v49 = vsel %vm1791_vm14, %v17154_v63, -inf }
 0x7cc   : > { %3108 = vmax.xlane.f32.xlu1 %v3107_v49 }
 0x7d1   : > { %v3102_v44 = vpop.f32.mrf.mxu0 }
 0x7d2   : > { %v17160_v62 = vsel %vm17021_vm0, %v3102_v44, -1e+30 }
 0x7d3   : > { %v3110_v43 = vsel %vm1791_vm14, %v17160_v62, -inf }
 0x7d4   : > { %3111 = vmax.xlane.f32.xlu2 %v3110_v43 }
 0x80d   : > { %v2683_v52 = vpop.xlane.xlu0 %2682 }
 0x80e   : > { %15258 = vrcp.f32 %v2683_v52 }
 0x814   : > { %v15259_v24 = vpop.eup %15258 }
 0x815   : > { %v2686_v45 = vpop.xlane.xlu1 %2685  ;;  %v2689_v53 = vmul.f32 %v15259_v24, %v15255_v22 }
 0x816   : > { %15260 = vrcp.f32 %v2686_v45 }
 0x81c   : > { %v15261_v58 = vpop.eup %15260 }
 0x81d   : > { %v2690_v59 = vmul.f32 %v15261_v58, %v15257_v25  ;;  %v17185_v25 = vsel %vm17021_vm0, %v2883_v31, -1e+30 }
 0x81e   : > { %v2891_v17 = vsel %vm1791_vm14, %v17185_v25, -inf }
 0x81f   : > { %v2691_v0 = vpack.c.bf16 %v2690_v59, %v2689_v53  ;;  %v2817_v16 = vpop.xlane.xlu2 %2816 }
 0x820   : > { %v2821_v3 = vsub.f32 %v2813_v30, %v2817_v16 }
 0x821   : > { %11161 = vmatmul.msk.bf16.vlgmr.msra.gmra.mxu1 %vm1791_vm14, %v2691_v0 }
 0x822   : > { %v2823_v39 = vmul.f32 1.442695, %v2821_v3 }
 0x824   : > { %15262 = vpow2.f32 %v2823_v39 }
 0x827   : > { %v2820_v8 = vpop.xlane.xlu0 %2819 }
 0x828   : > { %v2822_v9 = vsub.f32 %v2814_v32, %v2820_v8  ;;  %v17201_v32 = vsel %vm17015_vm15, %v3027_v40, -1e+30 }
 0x829   : > { %v3034_v47 = vsel %vm1791_vm14, %v17201_v32, -inf }
 0x82a   : > { %v17165_v11 = vpop.eup %15262  ;;  %v2825_v13 = vmul.f32 1.442695, %v2822_v9 }
 0x82b   : > { %v2827_v12 = vsel %vm1791_vm14, %v17165_v11, 0.0 }
 0x82c   : > { %15264 = vpow2.f32 %v2825_v13  ;;  %2828 = vadd.xlane.f32.xlu1 %v2827_v12 }
 0x82f   : > { %v2963_v14 = vpop.xlane.xlu0 %2962 }
 0x830   : > { %v2967_v51 = vsub.f32 %v2959_v15, %v2963_v14 }
 0x832   : > { %v17173_v23 = vpop.eup %15264  ;;  %v2969_v19 = vmul.f32 1.442695, %v2967_v51 }
 0x833   : > { %v2830_v22 = vsel %vm1791_vm14, %v17173_v23, 0.0 }
 0x834   : > { %15266 = vpow2.f32 %v2969_v19  ;;  %2746 = vmax.xlane.f32.xlu1 %v2745_v26  ;;  %2831 = vadd.xlane.f32.xlu2 %v2830_v22 }
 0x837   : > { %v2966_v48 = vpop.xlane.xlu1 %2965  ;;  %v2744_v60 = vpop.xlane.xlu0 %2743 }
 0x838   : > { %v2968_v38 = vsub.f32 %v2960_v50, %v2966_v48  ;;  %v2748_v61 = vsub.f32 %v17145_v6, %v2744_v60 }
 0x83a   : > { %v17187_v37 = vpop.eup %15266  ;;  %v2971_v41 = vmul.f32 1.442695, %v2968_v38  ;;  %v2750_v50 = vmul.f32 1.442695, %v2748_v61 }
 0x83b   : > { %v2973_v54 = vsel %vm1791_vm14, %v17187_v37, 0.0 }
 0x83c   : > { %15268 = vpow2.f32 %v2971_v41  ;;  %2889 = vmax.xlane.f32.xlu1 %v2888_v28  ;;  %2892 = vmax.xlane.f32.xlu2 %v2891_v17 }
 0x83d   : > { %2974 = vadd.xlane.f32.xlu0 %v2973_v54 }
 0x83f   : > { %v3109_v21 = vpop.xlane.xlu1 %3108 }
 0x840   : > { %v3113_v33 = vsub.f32 %v17154_v63, %v3109_v21 }
 0x842   : > { %v17195_v30 = vpop.eup %15268  ;;  %v3115_v44 = vmul.f32 1.442695, %v3113_v33 }
 0x843   : > { %v2976_v2 = vsel %vm1791_vm14, %v17195_v30, 0.0 }
 0x844   : > { %2977 = vadd.xlane.f32.xlu2 %v2976_v2 }
 0x847   : > { %v3112_v57 = vpop.xlane.xlu2 %3111 }
 0x848   : > { %v3114_v4 = vsub.f32 %v17160_v62, %v3112_v57  ;;  %v17222_v62 = vsel %vm17021_vm0, %v3029_v18, -1e+30 }
 0x849   : > { %v3037_v6 = vsel %vm1791_vm14, %v17222_v62, -inf }
 0x84a   : > { %v3117_v15 = vmul.f32 1.442695, %v3114_v4 }
 0x84c   : > { %3035 = vmax.xlane.f32.xlu2 %v3034_v47  ;;  %15270 = vpow2.f32 %v3117_v15 }
 0x84d   : > { %15272 = vpow2.f32 %v2750_v50 }
 0x84e   : > { %15274 = vpow2.f32 %v3115_v44 }
 0x851   : > { %2911 = vrot.lane.b32.xlu0 %v16797_v56, %s16225_s6 }
 0x852   : > { %v17215_v46 = vpop.eup %15270 }
 0x853   : > { %v3122_v49 = vsel %vm1791_vm14, %v17215_v46, 0.0  ;;  %v17226_v43 = vpop.eup %15272 }
 0x854   : > { %v2754_v63 = vsel %vm1791_vm14, %v17226_v43, 0.0  ;;  %v17230_v52 = vpop.eup %15274 }
 0x855   : > { %2986 = vrot.lane.b32.xlu1 %v16794_v55, %s16229_s25  ;;  %v3119_v45 = vsel %vm1791_vm14, %v17230_v52, 0.0 }
 0x859   : > { %2984 = vrot.lane.b32.xlu0 %v16797_v56, %s16229_s25 }
 0x864   : > { %3059 = vrot.lane.b32.xlu2 %v16794_v55, %s16228_s1 }
 0x87f   : > { %3123 = vadd.xlane.f32.xlu1 %v3122_v49 }
 0x883   : > { %3038 = vmax.xlane.f32.xlu0 %v3037_v6 }
 0x887   : > { %2755 = vadd.xlane.f32.xlu1 %v2754_v63 }
 0x88d   : > { %3120 = vadd.xlane.f32.xlu2 %v3119_v45 }
 0x897   : > { %3057 = vrot.lane.b32.xlu0 %v16797_v56, %s16228_s1 }
 0x89e   : > { %v2710_v61 = vpop.f32.mrf.mxu1 }
 0x89f   : > { %v2829_v1 = vpop.xlane.xlu1 %2828 }
 0x8a0   : > { %15276 = vrcp.f32 %v2829_v1 }
 0x8a6   : > { %v15277_v0 = vpop.eup %15276  ;;  %v2712_v50 = vpop.f32.mrf.mxu1 }
 0x8a7   : > { %v2747_v24 = vpop.xlane.xlu1 %2746  ;;  %v2832_v58 = vpop.xlane.xlu2 %2831  ;;  %v2835_v3 = vmul.f32 %v15277_v0, %v17165_v11  ;;  %v15130_v33 = vpack.i.bf16 %v2712_v50, %v2710_v61  ;;  %v14139_v61 = vld [vmem:[#allocation14 + $0x8] sm:$0xff] }
 0x8a8   : > { %v2749_v53 = vsub.f32 %v17171_v34, %v2747_v24  ;;  %15278 = vrcp.f32 %v2832_v58 }
 0x8aa   : > { %v2752_v59 = vmul.f32 1.442695, %v2749_v53 }
 0x8ac   : > { %15280 = vpow2.f32 %v2752_v59 }
 0x8ae   : > { %v15279_v16 = vpop.eup %15278 }
 0x8af   : > { %v2836_v20 = vmul.f32 %v15279_v16, %v17173_v23  ;;  %v2890_v39 = vpop.xlane.xlu1 %2889  ;;  %v2893_v8 = vpop.xlane.xlu2 %2892 }
 0x8b0   : > { %v2894_v9 = vsub.f32 %v17181_v5, %v2890_v39  ;;  %v2895_v13 = vsub.f32 %v17185_v25, %v2893_v8  ;;  %v2975_v23 = vpop.xlane.xlu0 %2974 }
 0x8b1   : > { %v2837_v7 = vpack.c.bf16 %v2836_v20, %v2835_v3 }
 0x8b2   : > { %v15281_v12 = vpop.eup %15280  ;;  %v2898_v14 = vmul.f32 1.442695, %v2895_v13  ;;  %v2896_v51 = vmul.f32 1.442695, %v2894_v9 }
 0x8b3   : > { %11165 = vmatmul.msk.bf16.vlgmr.msrb.gmra.mxu1 %vm1791_vm14, %v2837_v7  ;;  %v2757_v34 = vsel %vm1791_vm14, %v15281_v12, 0.0 }
 0x8b4   : > { %2758 = vadd.xlane.f32.xlu1 %v2757_v34  ;;  %15282 = vpow2.f32 %v2898_v14 }
 0x8b5   : > { %15284 = vpow2.f32 %v2896_v51 }
 0x8b7   : > { %v2978_v11 = vpop.xlane.xlu2 %2977 }
 0x8b8   : > { %15286 = vrcp.f32 %v2978_v11 }
 0x8b9   : > { %15288 = vrcp.f32 %v2975_v23 }
 0x8ba   : > { %v17243_v19 = vpop.eup %15282 }
 0x8bb   : > { %v2903_v26 = vsel %vm1791_vm14, %v17243_v19, 0.0  ;;  %v17247_v22 = vpop.eup %15284 }
 0x8bc   : > { %2904 = vadd.xlane.f32.xlu1 %v2903_v26  ;;  %v2900_v5 = vsel %vm1791_vm14, %v17247_v22, 0.0 }
 0x8be   : > { %v15287_v41 = vpop.eup %15286 }
 0x8bf   : > { %v3036_v31 = vpop.xlane.xlu2 %3035  ;;  %v15289_v17 = vpop.eup %15288  ;;  %v2982_v54 = vmul.f32 %v15287_v41, %v17195_v30 }
 0x8c0   : > { %v3040_v48 = vsub.f32 %v17201_v32, %v3036_v31  ;;  %v2981_v40 = vmul.f32 %v15289_v17, %v17187_v37 }
 0x8c1   : > { %2901 = vadd.xlane.f32.xlu0 %v2900_v5 }
 0x8c2   : > { %v3042_v38 = vmul.f32 1.442695, %v3040_v48  ;;  %v2983_v57 = vpack.c.bf16 %v2982_v54, %v2981_v40 }
 0x8c3   : > { %v2912_v25 = vpop.permute.xlu0 %2911 }
 0x8c4   : > { %15290 = vpow2.f32 %v3042_v38  ;;  %2927 = vmatpush.bf16.msra.mxu3 %v2912_v25 }
 0x8c7   : > { %v2987_v28 = vpop.permute.xlu1 %2986  ;;  %v3060_v24 = vpop.permute.xlu2 %3059 }
 0x8c8   : > { %2999 = vmatpush.bf16.msra.mxu1 %v2987_v28 }
 0x8ca   : > { %v17253_v2 = vpop.eup %15290 }
 0x8cb   : > { %v2985_v32 = vpop.permute.xlu0 %2984  ;;  %v3046_v47 = vsel %vm1791_vm14, %v17253_v2, 0.0 }
 0x8cc   : > { %3047 = vadd.xlane.f32.xlu1 %v3046_v47  ;;  %3000 = vmatpush.bf16.msra.mxu1 %v2985_v32 }
 0x8cf   : > { %11169 = vmatmul.msk.bf16.vlgmr.msra.gmra.mxu1 %vm1791_vm14, %v2983_v57 }
 0x8e5   : > { %3132 = vrot.lane.b32.xlu1 %v16794_v55, %s16231_s4 }
 0x8f2   : > { %v3124_v21 = vpop.xlane.xlu1 %3123 }
 0x8f6   : > { %v3039_v4 = vpop.xlane.xlu0 %3038 }
 0x8f7   : > { %v3041_v15 = vsub.f32 %v17222_v62, %v3039_v4 }
 0x8f9   : > { %v3044_v30 = vmul.f32 1.442695, %v3041_v15  ;;  %v14145_v15 = vld [vmem:[#allocation14 + $0x38] sm:$0xff] }
 0x8fa   : > { %v2756_v18 = vpop.xlane.xlu1 %2755  ;;  %3291 = vmatpush.bf16.msra.mxu2 %v14145_v15  ;;  %v11322_v15 = vld [vmem:[#allocation20 + $0xf0] sm:$0xf0] }
 0x8fb   : > { %15292 = vpow2.f32 %v3044_v30  ;;  %v14144_v30 = vld [vmem:[#allocation14 + $0x30] sm:$0xff] }
 0x8fc   : > { %15294 = vrcp.f32 %v2756_v18 }
 0x8fe   : > { %3292 = vmatpush.bf16.msra.mxu2 %v14144_v30  ;;  %v11328_v30 = vld [vmem:[#allocation20 + $0xe8] sm:$0xf] }
 0x900   : > { %v3121_v51 = vpop.xlane.xlu2 %3120 }
 0x901   : > { %v15293_v60 = vpop.eup %15292 }
 0x902   : > { %v3049_v37 = vsel %vm1791_vm14, %v15293_v60, 0.0  ;;  %v15295_v49 = vpop.eup %15294 }
 0x903   : > { %3050 = vadd.xlane.f32.xlu0 %v3049_v37  ;;  %v2762_v6 = vmul.f32 %v15295_v49, %v17226_v43  ;;  %v14140_v37 = vld [vmem:[#allocation14 + $0x10] sm:$0xff] }
 0x909   : > { %v3058_v44 = vpop.permute.xlu0 %3057 }
 0x917   : > { %3130 = vrot.lane.b32.xlu0 %v16797_v56, %s16231_s4 }
 0x91f   : > { %15131 = vrot.lane.b32.xlu0 %v15130_v33, %s16231_s4 }
 0x927   : > { %v2759_v55 = vpop.xlane.xlu1 %2758 }
 0x928   : > { %15296 = vrcp.f32 %v2759_v55 }
 0x92e   : > { %v15297_v62 = vpop.eup %15296 }
 0x92f   : > { %v2763_v63 = vmul.f32 %v15297_v62, %v15281_v12  ;;  %v2905_v58 = vpop.xlane.xlu1 %2904 }
 0x930   : > { %v2856_v45 = vpop.f32.mrf.mxu1 }
 0x931   : > { %v2764_v1 = vpack.c.bf16 %v2763_v63, %v2762_v6 }
 0x933   : > { %11163 = vmatmul.msk.bf16.vlgmr.msrb.gmra.mxu3 %vm1791_vm14, %v2764_v1 }
 0x934   : > { %3072 = vmatpush.bf16.msrb.mxu3 %v3060_v24  ;;  %v2902_v56 = vpop.xlane.xlu0 %2901 }
 0x935   : > { %15298 = vrcp.f32 %v2902_v56 }
 0x936   : > { %15300 = vrcp.f32 %v2905_v58 }
 0x938   : > { %3073 = vmatpush.bf16.msrb.mxu3 %v3058_v44  ;;  %v2858_v53 = vpop.f32.mrf.mxu1 }
 0x939   : > { %v15140_v59 = vpack.i.bf16 %v2858_v53, %v2856_v45 }
 0x93b   : > { %v15299_v0 = vpop.eup %15298  ;;  %15141 = vrot.lane.b32.xlu1 %v15140_v59, %s16229_s25 }
 0x93c   : > { %v15301_v16 = vpop.eup %15300  ;;  %v2908_v43 = vmul.f32 %v15299_v0, %v17247_v22 }
 0x93d   : > { %v2909_v3 = vmul.f32 %v15301_v16, %v17243_v19 }
 0x93f   : > { %v2910_v20 = vpack.c.bf16 %v2909_v3, %v2908_v43  ;;  %v3048_v8 = vpop.xlane.xlu1 %3047 }
 0x940   : > { %15302 = vrcp.f32 %v3048_v8 }
 0x943   : > { %11167 = vmatmul.msk.bf16.vlgmr.msra.gmra.mxu3 %vm1791_vm14, %v2910_v20 }
 0x946   : > { %v15303_v14 = vpop.eup %15302 }
 0x947   : > { %v3054_v11 = vmul.f32 %v15303_v14, %v17253_v2 }
 0x94c   : > { %v3002_v39 = vpop.f32.mrf.mxu1 }
 0x954   : > { %v3004_v9 = vpop.f32.mrf.mxu1 }
 0x955   : > { %v15145_v13 = vpack.i.bf16 %v3004_v9, %v3002_v39 }
 0x957   : > { %v3133_v7 = vpop.permute.xlu1 %3132  ;;  %15146 = vrot.lane.b32.xlu1 %v15145_v13, %s16230_s5 }
 0x958   : > { %3145 = vmatpush.bf16.msrb.mxu1 %v3133_v7 }
 0x976   : > { %v3051_v12 = vpop.xlane.xlu0 %3050 }
 0x977   : > { %15304 = vrcp.f32 %v3051_v12 }
 0x978   : > { %15306 = vrcp.f32 %v3121_v51 }
 0x979   : > { %15308 = vrcp.f32 %v3124_v21  ;;  %v14138_v21 = vld [vmem:[#allocation14] sm:$0xff] }
 0x97d   : > { %v15305_v34 = vpop.eup %15304 }
 0x97e   : > { %v3055_v19 = vmul.f32 %v15305_v34, %v15293_v60  ;;  %v15307_v26 = vpop.eup %15306  ;;  %v14141_v60 = vld [vmem:[#allocation14 + $0x18] sm:$0xff] }
 0x97f   : > { %v15309_v22 = vpop.eup %15308  ;;  %v3127_v31 = vmul.f32 %v15307_v26, %v17230_v52  ;;  %v17282_v52 = vadd.f32 %v17121_v35, %v17127_v27  ;;  %v14143_v35 = vld [vmem:[#allocation14 + $0x28] sm:$0xff]  ;;  %v14142_v27 = vld [vmem:[#allocation14 + $0x20] sm:$0xff] }
 0x980   : > { %v3056_v23 = vpack.c.bf16 %v3055_v19, %v3054_v11  ;;  %v3128_v48 = vmul.f32 %v15309_v22, %v17215_v46  ;;  %3293 = vmatpush.bf16.msra.mxu2 %v14143_v35  ;;  %v14177_v35 = vld [vmem:[#allocation20 + $0xf4] sm:$0xf0] }
 0x982   : > { %11171 = vmatmul.msk.bf16.vlgmr.msrb.gmra.mxu3 %vm1791_vm14, %v3056_v23  ;;  %v3129_v38 = vpack.c.bf16 %v3128_v48, %v3127_v31 }
 0x984   : > { %3294 = vmatpush.bf16.msra.mxu2 %v14142_v27 }
 0x988   : > { %3295 = vmatpush.bf16.msra.mxu2 %v14141_v60  ;;  %v11329_v60 = vor.u32 %v14177_v35, %v11328_v30  ;;  %v11240_v35 = vld [vmem:[#allocation20 + $0x40] sm:$0xf] }
 0x989   : > { %v3131_v5 = vpop.permute.xlu0 %3130 }
 0x98a   : > { %3146 = vmatpush.bf16.msrb.mxu1 %v3131_v5 }
 0x98c   : > { %3296 = vmatpush.bf16.msra.mxu2 %v14140_v37  ;;  %v14175_v37 = vld [vmem:[#allocation20 + $0xec] sm:$0xf] }
 0x98d   : > { %11173 = vmatmul.msk.bf16.vlgmr.msrb.gmra.mxu1 %vm1791_vm14, %v3129_v38  ;;  %v15168_v38 = vld [vmem:[#allocation16] ss:$0 sm:$0xff] }
 0x98e   : > { %3643 = vmatpush.bf16.msra.mxu1 %v11329_v60  ;;  %v14154_v60 = vld [vmem:[#allocation20 + $0x44] sm:$0xf] }
 0x990   : > { %3297 = vmatpush.bf16.msra.mxu2 %v14139_v61  ;;  %v11330_v61 = vld [vmem:[#allocation20 + $0xf8] sm:$0xf0] }
 0x991   : > { %v15132_v50 = vpop.permute.xlu0 %15131 }
 0x992   : > { %v15134_v49 = vunpack.i.h.bf16 %v15132_v50  ;;  %v15133_v44 = vunpack.i.l.bf16 %v15132_v50  ;;  %v11304_v50 = vld [vmem:[#allocation20 + $0xc0] sm:$0xf] }
 0x994   : > { %3298 = vmatpush.bf16.msra.mxu2 %v14138_v21  ;;  %v3210_v45 = vsel %vm1773_vm13, %v17137_v36, %v15134_v49  ;;  %v3209_v1 = vsel %vm1773_vm13, %v17130_v42, %v15133_v44  ;;  %v11333_v21 = vor.u32 %v14175_v37, %v11330_v61  ;;  %v11306_v49 = vld [vmem:[#allocation20 + $0xd0] sm:$0xf0]  ;;  %v11312_v44 = vld [vmem:[#allocation20 + $0xc8] sm:$0xf] }
 0x995   : > { %v11242_v61 = vld [vmem:[#allocation20 + $0x50] sm:$0xf0] }
 0x998   : > { %3662 = vmatpush.bf16.msrb.mxu2 %v11333_v21  ;;  %v11248_v21 = vld [vmem:[#allocation20 + $0x48] sm:$0xf] }
 0x9ad   : > { %v15142_v33 = vpop.permute.xlu1 %15141 }
 0x9ae   : > { %v15144_v59 = vunpack.i.h.bf16 %v15142_v33  ;;  %v15143_v0 = vunpack.i.l.bf16 %v15142_v33  ;;  %v14172_v33 = vld [vmem:[#allocation20 + $0xcc] sm:$0xf0] }
 0x9b6   : > { %v2783_v25 = vpop.f32.mrf.mxu3 }
 0x9be   : > { %v2785_v41 = vpop.f32.mrf.mxu3 }
 0x9bf   : > { %v15135_v28 = vpack.i.bf16 %v2785_v41, %v2783_v25 }
 0x9c1   : > { %15136 = vrot.lane.b32.xlu2 %v15135_v28, %s16228_s1  ;;  %s10520_s1 = scalar_lea.sflag [#allocation4], %s16597_s2 }
 0x9c6   : > { %v2929_v17 = vpop.f32.mrf.mxu3 }
 0x9c9   : > { %v15147_v63 = vpop.permute.xlu1 %15146 }
 0x9ca   : > { %v15149_v42 = vunpack.i.h.bf16 %v15147_v63  ;;  %v15148_v9 = vunpack.i.l.bf16 %v15147_v63 }
 0x9ce   : > { %v2931_v54 = vpop.f32.mrf.mxu3 }
 0x9cf   : > { %v15150_v2 = vpack.i.bf16 %v2931_v54, %v2929_v17 }
 0x9d1   : > { %15151 = vrot.lane.b32.xlu0 %v15150_v2, %s16225_s6  ;;  %s18654_s6 = smov %s18653_s7 }
 0x9ea   : > { %3309 = vadd.xlane.f32.xlu2 %v17282_v52 }
 0xa05   : > { %v3075_v46 = vpop.f32.mrf.mxu3 }
 0xa0a   : > { %v3148_v40 = vpop.f32.mrf.mxu1 }
 0xa0d   : > { %v3077_v32 = vpop.f32.mrf.mxu3 }
 0xa0e   : > { %v15155_v47 = vpack.i.bf16 %v3077_v32, %v3075_v46  ;;  %v11320_v32 = vld [vmem:[#allocation20 + $0xe0] sm:$0xf] }
 0xa10   : > { %15156 = vrot.lane.b32.xlu0 %v15155_v47, %s16226_s10  ;;  %v14176_v47 = vld [vmem:[#allocation20 + $0xec] sm:$0xf0]  ;;  %s10534_s10 = scalar_lea.hbm %s18653_s7, %s14858_s11 }
 0xa12   : > { %v3150_v57 = vpop.f32.mrf.mxu1 }
 0xa13   : > { %v15160_v4 = vpack.i.bf16 %v3150_v57, %v3148_v40  ;;  %v14174_v57 = vld [vmem:[#allocation20 + $0xe4] sm:$0xf] }
 0xa14   : > { %v11325_v27 = vor.u32 %v14174_v57, %v11322_v15  ;;  %v11266_v15 = vld [vmem:[#allocation20 + $0x78] sm:$0xf0] }
 0xa15   : > { %15161 = vrot.lane.b32.xlu1 %v15160_v4, %s16227_s3  ;;  %v11321_v4 = vor.u32 %v14176_v47, %v11320_v32  ;;  %s10537_s3 = sshll.u32 %s10534_s10, 4  ;;  %s10538_s3 = int_to_ptr.hbm [resolvable:$true] %s10537_s3 }
 0xa16   : > { %3624 = vmatpush.bf16.msrb.mxu0 %v11325_v27  ;;  %v14156_v27 = vld [vmem:[#allocation20 + $0x4c] sm:$0xf0]  ;;  %s16088_s25 = sshra.s32 %s10538_s3, 4  ;;  %s16089_s25 = int_to_ptr.hbm [resolvable:$true] %s16088_s25 }
 0xa17   : > { %3605 = vmatpush.bf16.msra.mxu3 %v11321_v4  ;;  %v14159_v4 = vld [vmem:[#allocation20 + $0x6c] sm:$0xf]  ;;  %v11241_v37 = vor.u32 %v14156_v27, %v11240_v35  ;;  %s16090_s5 = scalar_lea.hbm %s16089_s25, 16  ;;  %p16095_p0 = scmp.lt.s32.totalorder %s16089_s25, %s18654_s6 }
 0xa18   : > { %v11269_v30 = vor.u32 %v14159_v4, %v11266_v15  ;;  %p16091_p4 = scmp.ne.s32.totalorder %s16089_s25, %s16090_s5 }
 0xa1a   : > { %p16092_p6 = pnand %p16091_p4, %p16422_p11 }
 0xa1b   : > { %v15137_v18 = vpop.permute.xlu2 %15136 }
 0xa1c   : > { %v15139_v62 = vunpack.i.h.bf16 %v15137_v18  ;;  %v15138_v6 = vunpack.i.l.bf16 %v15137_v18  ;;  %v14170_v18 = vld [vmem:[#allocation20 + $0xc4] sm:$0xf]  ;;  %p16093_p13 = pneg %p16092_p6 }
 0xa1e   : > { %v3211_v24 = vsel %vm1791_vm14, %v3209_v1, %v15138_v6  ;;  %v3212_v58 = vsel %vm1791_vm14, %v3210_v45, %v15139_v62  ;;  %v14173_v62 = vld [vmem:[#allocation20 + $0xd4] sm:$0xf0]  ;;  %v11309_v6 = vor.u32 %v14170_v18, %v11306_v49  ;;  %v14171_v45 = vld [vmem:[#allocation20 + $0xcc] sm:$0xf]  ;;  %v11314_v1 = vld [vmem:[#allocation20 + $0xd8] sm:$0xf0] }
 0xa1f   : > { %v3213_v43 = vsel %vm2401_vm1, %v3211_v24, %v15143_v0  ;;  %v3214_v3 = vsel %vm2401_vm1, %v3212_v58, %v15144_v59  ;;  %v11313_v63 = vor.u32 %v14173_v62, %v11312_v44  ;;  %v11317_v24 = vor.u32 %v14171_v45, %v11314_v1  ;;  %v11288_v58 = vld [vmem:[#allocation20 + $0xa0] sm:$0xf]  ;;  %v11290_v0 = vld [vmem:[#allocation20 + $0xb0] sm:$0xf0]  ;;  %v11250_v49 = vld [vmem:[#allocation20 + $0x58] sm:$0xf0] }
 0xa20   : > { %3625 = vmatpush.bf16.msrb.mxu0 %v11309_v6  ;;  %v11224_v62 = vld [vmem:[#allocation20 + $0x20] sm:$0xf]  ;;  %v14152_v6 = vld [vmem:[#allocation20 + $0x2c] sm:$0xf0]  ;;  %v11226_v1 = vld [vmem:[#allocation20 + $0x30] sm:$0xf0] }
 0xa21   : > { %3644 = vmatpush.bf16.msra.mxu1 %v11313_v63  ;;  %3663 = vmatpush.bf16.msrb.mxu2 %v11317_v24  ;;  %v14150_v63 = vld [vmem:[#allocation20 + $0x24] sm:$0xf]  ;;  %v11225_v45 = vor.u32 %v14152_v6, %v11224_v62  ;;  %v11232_v24 = vld [vmem:[#allocation20 + $0x28] sm:$0xf] }
 0xa3a   : > { %3307 = vadd.xlane.f32.xlu0 %v17125_v29 }
 0xa43   : > { %v15152_v55 = vpop.permute.xlu0 %15151 }
 0xa44   : > { %v15154_v56 = vunpack.i.h.bf16 %v15152_v55  ;;  %v15153_v53 = vunpack.i.l.bf16 %v15152_v55  ;;  %v11305_v55 = vor.u32 %v14172_v33, %v11304_v50  ;;  %v14157_v50 = vld [vmem:[#allocation20 + $0x54] sm:$0xf0]  ;;  %v11245_v33 = vor.u32 %v14154_v60, %v11242_v61  ;;  %v15169_v61 = vld [vmem:[#allocation17] ss:$0 sm:$0xff] }
 0xa45   : > { %v11249_v18 = vor.u32 %v14157_v50, %v11248_v21 }
 0xa46   : > { %v3215_v20 = vsel %vm2404_vm2, %v3213_v43, %v15153_v53  ;;  %v3216_v36 = vsel %vm2404_vm2, %v3214_v3, %v15154_v56  ;;  %3606 = vmatpush.bf16.msra.mxu3 %v11305_v55  ;;  %v14168_v56 = vld [vmem:[#allocation20 + $0xac] sm:$0xf0]  ;;  %v14166_v53 = vld [vmem:[#allocation20 + $0xa4] sm:$0xf]  ;;  %v14169_v43 = vld [vmem:[#allocation20 + $0xb4] sm:$0xf0] }
 0xa47   : > { %v3217_v7 = vsel %vm2407_vm3, %v3215_v20, %v15148_v9  ;;  %v3218_v12 = vsel %vm2407_vm3, %v3216_v36, %v15149_v42  ;;  %v11289_v59 = vor.u32 %v14168_v56, %v11288_v58  ;;  %v11293_v3 = vor.u32 %v14166_v53, %v11290_v0  ;;  %v14167_v36 = vld [vmem:[#allocation20 + $0xac] sm:$0xf]  ;;  %v11272_v9 = vld [vmem:[#allocation20 + $0x80] sm:$0xf]  ;;  %v14153_v58 = vld [vmem:[#allocation20 + $0x34] sm:$0xf0] }
 0xa48   : > { %v14155_v55 = vld [vmem:[#allocation20 + $0x4c] sm:$0xf]  ;;  %v11229_v56 = vor.u32 %v14150_v63, %v11226_v1  ;;  %v11233_v53 = vor.u32 %v14153_v58, %v11232_v24  ;;  %v11234_v0 = vld [vmem:[#allocation20 + $0x38] sm:$0xf0] }
 0xa49   : > { %3626 = vmatpush.bf16.msrb.mxu0 %v11293_v3  ;;  %v11253_v44 = vor.u32 %v14155_v55, %v11250_v49  ;;  %v15170_v55 = vld [vmem:[#allocation19] ss:$0 sm:$0xff] }
 0xa4a   : > { %3607 = vmatpush.bf16.msra.mxu3 %v11289_v59  ;;  %v14151_v59 = vld [vmem:[#allocation20 + $0x2c] sm:$0xf] }
 0xa4b   : > { %v11237_v3 = vor.u32 %v14151_v59, %v11234_v0 }
 0xa5d   : > { %v3310_v25 = vpop.xlane.xlu2 %3309 }
 0xa5e   : > { %v3316_v28 = vmul.f32 %v3310_v25, %v16659_v10  ;;  %v14158_v25 = vld [vmem:[#allocation20 + $0x64] sm:$0xf] }
 0xa60   : > { %v17315_v54 = vsub.f32 %v17282_v52, %v3316_v28  ;;  %v11258_v28 = vld [vmem:[#allocation20 + $0x70] sm:$0xf0] }
 0xa61   : > { %v11261_v47 = vor.u32 %v14158_v25, %v11258_v28 }
 0xa62   : > { %v3324_v40 = vmul.f32 %v17315_v54, %v17315_v54 }
 0xa82   : > { %v15157_v16 = vpop.permute.xlu0 %15156 }
 0xa83   : > { %v15159_v39 = vunpack.i.h.bf16 %v15157_v16  ;;  %v15158_v8 = vunpack.i.l.bf16 %v15157_v16  ;;  %v11296_v16 = vld [vmem:[#allocation20 + $0xa8] sm:$0xf] }
 0xa84   : > { %v11297_v20 = vor.u32 %v14169_v43, %v11296_v16  ;;  %v11208_v16 = vld [vmem:[#allocation20] sm:$0xf] }
 0xa85   : > { %v3219_v34 = vsel %vm2410_vm4, %v3217_v7, %v15158_v8  ;;  %v3220_v11 = vsel %vm2410_vm4, %v3218_v12, %v15159_v39  ;;  %v11298_v39 = vld [vmem:[#allocation20 + $0xb8] sm:$0xf0]  ;;  %v14162_v7 = vld [vmem:[#allocation20 + $0x84] sm:$0xf] }
 0xa86   : > { %v11301_v42 = vor.u32 %v14167_v36, %v11298_v39  ;;  %3645 = vmatpush.bf16.msra.mxu1 %v11297_v20  ;;  %v14148_v20 = vld [vmem:[#allocation20 + $0xc] sm:$0xf0]  ;;  %v14146_v36 = vld [vmem:[#allocation20 + $0x4] sm:$0xf]  ;;  %v11210_v39 = vld [vmem:[#allocation20 + $0x10] sm:$0xf0] }
 0xa87   : > { %v15162_v13 = vpop.permute.xlu1 %15161 }
 0xa88   : > { %v15164_v14 = vunpack.i.h.bf16 %v15162_v13  ;;  %v15163_v51 = vunpack.i.l.bf16 %v15162_v13  ;;  %v14164_v13 = vld [vmem:[#allocation20 + $0x8c] sm:$0xf0]  ;;  %3664 = vmatpush.bf16.msrb.mxu2 %v11301_v42 }
 0xa89   : > { %v11273_v12 = vor.u32 %v14164_v13, %v11272_v9  ;;  %v11209_v9 = vor.u32 %v14148_v20, %v11208_v16  ;;  %v11213_v13 = vor.u32 %v14146_v36, %v11210_v39 }
 0xa8a   : > { %v3221_v19 = vsel %vm2413_vm5, %v3219_v34, %v15163_v51  ;;  %v3222_v23 = vsel %vm2413_vm5, %v3220_v11, %v15164_v14  ;;  %v11274_v14 = vld [vmem:[#allocation20 + $0x90] sm:$0xf0]  ;;  %v11280_v51 = vld [vmem:[#allocation20 + $0x88] sm:$0xf]  ;;  %v14165_v34 = vld [vmem:[#allocation20 + $0x94] sm:$0xf0] }
 0xa8b   : > { %v3223_v26 = vpack.c.bf16 %v3222_v23, %v3221_v19  ;;  %v11277_v19 = vor.u32 %v14162_v7, %v11274_v14  ;;  %v11281_v23 = vor.u32 %v14165_v34, %v11280_v51  ;;  %3608 = vmatpush.bf16.msra.mxu3 %v11273_v12  ;;  %v11216_v7 = vld [vmem:[#allocation20 + $0x8] sm:$0xf]  ;;  %v14149_v12 = vld [vmem:[#allocation20 + $0x14] sm:$0xf0]  ;;  %v14147_v14 = vld [vmem:[#allocation20 + $0xc] sm:$0xf] }
 0xa8c   : > { %v11217_v51 = vor.u32 %v14149_v12, %v11216_v7  ;;  %v11218_v34 = vld [vmem:[#allocation20 + $0x18] sm:$0xf0] }
 0xa8d   : > { %3299 = vmatmul.bf16.vlgmr.msra.gmra.mxu2 %v3223_v26  ;;  %v14163_v26 = vld [vmem:[#allocation20 + $0x8c] sm:$0xf]  ;;  %3627 = vmatpush.bf16.msrb.mxu0 %v11277_v19  ;;  %v11221_v19 = vor.u32 %v14147_v14, %v11218_v34  ;;  %v3435_v34 = vld [vmem:[#allocation22] sm:$0xf] }
 0xa8e   : > { %3646 = vmatpush.bf16.msra.mxu1 %v11281_v23 }
 0xa91   : > { %3628 = vmatpush.bf16.msrb.mxu0 %v11261_v47 }
 0xa95   : > { %3629 = vmatpush.bf16.msrb.mxu0 %v11245_v33 }
 0xa99   : > { %3630 = vmatpush.bf16.msrb.mxu0 %v11229_v56 }
 0xa9d   : > { %3631 = vmatpush.bf16.msrb.mxu0 %v11213_v13 }
 0xaad   : > { %v3308_v22 = vpop.xlane.xlu0 %3307 }
 0xaae   : > { %v3315_v31 = vmul.f32 %v3308_v22, %v16659_v10  ;;  %v11282_v22 = vld [vmem:[#allocation20 + $0x98] sm:$0xf0] }
 0xab0   : > { %v17306_v48 = vsub.f32 %v17125_v29, %v3315_v31  ;;  %v11285_v31 = vor.u32 %v14163_v26, %v11282_v22 }
 0xab2   : > { %v3323_v5 = vmul.f32 %v17306_v48, %v17306_v48  ;;  %3665 = vmatpush.bf16.msrb.mxu2 %v11285_v31 }
 0xab4   : > { %3327 = vadd.xlane.f32.xlu0 %v3323_v5  ;;  %v11256_v5 = vld [vmem:[#allocation20 + $0x60] sm:$0xf] }
 0xab6   : > { %3666 = vmatpush.bf16.msrb.mxu2 %v11269_v30 }
 0xaba   : > { %3667 = vmatpush.bf16.msrb.mxu2 %v11253_v44 }
 0xabe   : > { %3668 = vmatpush.bf16.msrb.mxu2 %v11237_v3 }
 0xac2   : > { %3669 = vmatpush.bf16.msrb.mxu2 %v11221_v19 }
 0xb10   : > { %v3300_v41 = vpop.f32.mrf.mxu2 }
 0xb11   : > { %v17311_v17 = vadd.f32 %v15168_v38, %v3300_v41 }
 0xb13   : > { %3311 = vadd.xlane.f32.xlu1 %v17311_v17 }
 0xb18   : > { %v3302_v2 = vpop.f32.mrf.mxu2 }
 0xb19   : > { %v17317_v46 = vadd.f32 %v15168_v38, %v3302_v2  ;;  %v14160_v38 = vld [vmem:[#allocation20 + $0x6c] sm:$0xf0]  ;;  %v11264_v2 = vld [vmem:[#allocation20 + $0x68] sm:$0xf] }
 0xb1a   : > { %v11257_v41 = vor.u32 %v14160_v38, %v11256_v5 }
 0xb1b   : > { %3313 = vadd.xlane.f32.xlu2 %v17317_v46  ;;  %3329 = vadd.xlane.f32.xlu1 %v3324_v40  ;;  %v14161_v40 = vld [vmem:[#allocation20 + $0x74] sm:$0xf0] }
 0xb1c   : > { %v11265_v57 = vor.u32 %v14161_v40, %v11264_v2  ;;  %3609 = vmatpush.bf16.msra.mxu3 %v11257_v41 }
 0xb1e   : > { %3647 = vmatpush.bf16.msra.mxu1 %v11265_v57 }
 0xb20   : > { %3610 = vmatpush.bf16.msra.mxu3 %v11241_v37 }
 0xb22   : > { %3648 = vmatpush.bf16.msra.mxu1 %v11249_v18 }
 0xb24   : > { %3611 = vmatpush.bf16.msra.mxu3 %v11225_v45 }
 0xb26   : > { %3649 = vmatpush.bf16.msra.mxu1 %v11233_v53 }
 0xb27   : > { %v3328_v8 = vpop.xlane.xlu0 %3327 }
 0xb28   : > { %v3335_v11 = vmul.f32 %v3328_v8, %v16659_v10  ;;  %3612 = vmatpush.bf16.msra.mxu3 %v11209_v9 }
 0xb2a   : > { %v17323_v32 = vadd.f32 1e-05, %v3335_v11  ;;  %3650 = vmatpush.bf16.msra.mxu1 %v11217_v51 }
 0xb2c   : > { %15310 = vrsqrt.f32 %v17323_v32  ;;  %vm3349_vm7 = vweird.f32 %v17323_v32 }
 0xb32   : > { %v15311_v8 = vpop.eup %15310 }
 0xb33   : > { %v3344_v23 = vmul.f32 %v15311_v8, %v17323_v32  ;;  %vm3350_vm6 = vweird.f32 %v15311_v8 }
 0xb34   : > { %vm3351_vm8 = vmor %vm3349_vm7, %vm3350_vm6 }
 0xb35   : > { %v3345_v22 = vmul.f32 %v15311_v8, %v3344_v23  ;;  %v17347_v23 = vperm.slane %v3435_v34, 1 }
 0xb37   : > { %v3346_v2 = vmul.f32 0.5, %v3345_v22 }
 0xb39   : > { %v3347_v47 = vsub.f32 1.5, %v3346_v2 }
 0xb3b   : > { %v3348_v4 = vmul.f32 %v15311_v8, %v3347_v47 }
 0xb3d   : > { %v3352_v35 = vsel %vm3351_vm8, %v15311_v8, %v3348_v4 }
 0xb3e   : > { %v3383_v37 = vmul.f32 %v3352_v35, %v17306_v48 }
 0xb40   : > { %v3390_v18 = vmul.f32 %v15169_v61, %v3383_v37 }
 0xb42   : > { %v3397_v44 = vadd.f32 %v15170_v55, %v3390_v18 }
 0xb86   : > { %v3312_v43 = vpop.xlane.xlu1 %3311 }
 0xb87   : > { %v3317_v42 = vmul.f32 %v3312_v43, %v16659_v10 }
 0xb89   : > { %v17328_v11 = vsub.f32 %v17311_v17, %v3317_v42 }
 0xb8b   : > { %v3325_v26 = vmul.f32 %v17328_v11, %v17328_v11 }
 0xb8d   : > { %3331 = vadd.xlane.f32.xlu2 %v3325_v26  ;;  %v17349_v26 = vperm.slane %v3435_v34, 2 }
 0xb8e   : > { %v3330_v31 = vpop.xlane.xlu1 %3329  ;;  %v3314_v5 = vpop.xlane.xlu2 %3313 }
 0xb8f   : > { %v3336_v38 = vmul.f32 %v3330_v31, %v16659_v10  ;;  %v3318_v25 = vmul.f32 %v3314_v5, %v16659_v10 }
 0xb91   : > { %v3340_v41 = vadd.f32 1e-05, %v3336_v38  ;;  %v17336_v28 = vsub.f32 %v17317_v46, %v3318_v25  ;;  %v17360_v25 = vperm.slane %v3435_v34, 0 }
 0xb93   : > { %15312 = vrsqrt.f32 %v3340_v41  ;;  %v3326_v40 = vmul.f32 %v17336_v28, %v17336_v28  ;;  %vm3359_vm10 = vweird.f32 %v3340_v41 }
 0xb95   : > { %3333 = vadd.xlane.f32.xlu0 %v3326_v40 }
 0xb99   : > { %v15313_v57 = vpop.eup %15312 }
 0xb9a   : > { %v3354_v15 = vmul.f32 %v15313_v57, %v3340_v41  ;;  %vm3360_vm9 = vweird.f32 %v15313_v57 }
 0xb9b   : > { %vm3361_vm11 = vmor %vm3359_vm10, %vm3360_vm9 }
 0xb9c   : > { %v3355_v30 = vmul.f32 %v15313_v57, %v3354_v15 }
 0xb9e   : > { %v3356_v27 = vmul.f32 0.5, %v3355_v30 }
 0xba0   : > { %v3357_v60 = vsub.f32 1.5, %v3356_v27 }
 0xba2   : > { %v3358_v21 = vmul.f32 %v15313_v57, %v3357_v60  ;;  %v17382_v60 = vperm.slane %v3435_v34, 3 }
 0xba4   : > { %v3362_v50 = vsel %vm3361_vm11, %v15313_v57, %v3358_v21 }
 0xba5   : > { %v3384_v33 = vmul.f32 %v3362_v50, %v17315_v54 }
 0xba7   : > { %v3391_v49 = vmul.f32 %v15169_v61, %v3384_v33 }
 0xba9   : > { %v3398_v32 = vadd.f32 %v15170_v55, %v3391_v49 }
 0xbab   : > { %v3401_v62 = vpack.c.bf16 %v3398_v32, %v3397_v44 }
 0xbad   : > { %3613 = vmatmul.bf16.vlgmr.msra.gmra.mxu3 %v3401_v62  ;;  %3632 = vmatmul.bf16.vlgmr.msrb.gmra.mxu0 %v3401_v62 }
 0xbae   : > { %3651 = vmatmul.bf16.vlgmr.msra.gmra.mxu1 %v3401_v62  ;;  %3670 = vmatmul.bf16.vlgmr.msrb.gmra.mxu2 %v3401_v62 }
 0xc00   : > { %v3332_v6 = vpop.xlane.xlu2 %3331 }
 0xc01   : > { %v3337_v48 = vmul.f32 %v3332_v6, %v16659_v10 }
 0xc03   : > { %v3341_v63 = vadd.f32 1e-05, %v3337_v48 }
 0xc05   : > { %15314 = vrsqrt.f32 %v3341_v63  ;;  %vm3369_vm13 = vweird.f32 %v3341_v63 }
 0xc08   : > { %v3334_v45 = vpop.xlane.xlu0 %3333 }
 0xc09   : > { %v3338_v1 = vmul.f32 %v3334_v45, %v16659_v10 }
 0xc0b   : > { %v15315_v24 = vpop.eup %15314  ;;  %v3342_v54 = vadd.f32 1e-05, %v3338_v1 }
 0xc0c   : > { %v3364_v58 = vmul.f32 %v15315_v24, %v3341_v63  ;;  %vm3370_vm12 = vweird.f32 %v15315_v24 }
 0xc0d   : > { %15316 = vrsqrt.f32 %v3342_v54  ;;  %vm3371_vm14 = vmor %vm3369_vm13, %vm3370_vm12  ;;  %vm3379_vm0 = vweird.f32 %v3342_v54 }
 0xc0e   : > { %v3365_v56 = vmul.f32 %v15315_v24, %v3364_v58 }
 0xc10   : > { %v3366_v53 = vmul.f32 0.5, %v3365_v56 }
 0xc12   : > { %v3367_v59 = vsub.f32 1.5, %v3366_v53 }
 0xc13   : > { %v15317_v0 = vpop.eup %15316 }
 0xc14   : > { %v3368_v16 = vmul.f32 %v15315_v24, %v3367_v59  ;;  %v3374_v43 = vmul.f32 %v15317_v0, %v3342_v54  ;;  %vm3380_vm15 = vweird.f32 %v15317_v0 }
 0xc15   : > { %vm3381_vm1 = vmor %vm3379_vm0, %vm3380_vm15 }
 0xc16   : > { %v3375_v3 = vmul.f32 %v15317_v0, %v3374_v43  ;;  %v3372_v20 = vsel %vm3371_vm14, %v15315_v24, %v3368_v16 }
 0xc17   : > { %v3385_v8 = vmul.f32 %v3372_v20, %v17328_v11 }
 0xc18   : > { %v3376_v36 = vmul.f32 0.5, %v3375_v3 }
 0xc19   : > { %v3392_v7 = vmul.f32 %v15169_v61, %v3385_v8 }
 0xc1a   : > { %v3377_v39 = vsub.f32 1.5, %v3376_v36 }
 0xc1b   : > { %v3399_v14 = vadd.f32 %v15170_v55, %v3392_v7 }
 0xc1c   : > { %v3378_v42 = vmul.f32 %v15317_v0, %v3377_v39 }
 0xc1e   : > { %v3382_v9 = vsel %vm3381_vm1, %v15317_v0, %v3378_v42 }
 0xc1f   : > { %v3386_v13 = vmul.f32 %v3382_v9, %v17336_v28 }
 0xc21   : > { %v3393_v12 = vmul.f32 %v15169_v61, %v3386_v13 }
 0xc23   : > { %v3400_v51 = vadd.f32 %v15170_v55, %v3393_v12 }
 0xc25   : > { %v3402_v19 = vpack.c.bf16 %v3400_v51, %v3399_v14 }
 0xc27   : > { %3618 = vmatmul.bf16.gmra.mxu3 %v3402_v19  ;;  %3637 = vmatmul.bf16.gmra.mxu0 %v3402_v19 }
 0xc28   : > { %3656 = vmatmul.bf16.gmra.mxu1 %v3402_v19  ;;  %3675 = vmatmul.bf16.gmra.mxu2 %v3402_v19 }
 0xc2a   : > { %v3633_v11 = vpop.f32.mrf.mxu0 }
 0xc2b   : > { %v17352_v22 = vadd.f32 %v3633_v11, %v17347_v23  ;;  %v3652_v31 = vpop.f32.mrf.mxu1 }
 0xc2c   : > { %v17355_v5 = vadd.f32 %v3652_v31, %v17349_v26 }
 0xc2d   : > { %v17358_v38 = vmul.f32 0.70710677, %v17352_v22 }
 0xc2e   : > { %v17363_v41 = vmul.f32 0.70710677, %v17355_v5 }
 0xc2f   : > { %v3753_v28 = vmul.f32 %v17358_v38, %v17358_v38 }
 0xc30   : > { %v3793_v2 = vmul.f32 %v17363_v41, %v17363_v41  ;;  %v3614_v40 = vpop.f32.mrf.mxu3 }
 0xc31   : > { %v17369_v47 = vmin.f32 %v3753_v28, 16.0  ;;  %v17372_v57 = vadd.f32 %v3614_v40, %v17360_v25  ;;  %v3671_v61 = vpop.f32.mrf.mxu2 }
 0xc32   : > { %v17374_v4 = vmin.f32 %v3793_v2, 16.0  ;;  %v17392_v32 = vadd.f32 %v3671_v61, %v17382_v60  ;;  %v3635_v62 = vpop.f32.mrf.mxu0 }
 0xc33   : > { %v3755_v15 = vmul.f32 2.1237322e-06, %v17369_v47  ;;  %v3766_v30 = vmul.f32 3.8918573e-05, %v17369_v47  ;;  %v17380_v27 = vmul.f32 0.70710677, %v17372_v57  ;;  %v17397_v24 = vadd.f32 %v3635_v62, %v17347_v23  ;;  %v3654_v12 = vpop.f32.mrf.mxu1 }
 0xc34   : > { %v3806_v35 = vmul.f32 3.8918573e-05, %v17374_v4  ;;  %v3795_v21 = vmul.f32 2.1237322e-06, %v17374_v4  ;;  %v17402_v56 = vmul.f32 0.70710677, %v17392_v32  ;;  %v17422_v31 = vadd.f32 %v3654_v12, %v17349_v26 }
 0xc35   : > { %v3767_v37 = vadd.f32 0.001143296, %v3766_v30  ;;  %v3713_v33 = vmul.f32 %v17380_v27, %v17380_v27  ;;  %v3756_v18 = vadd.f32 0.00028619796, %v3755_v15  ;;  %v17407_v3 = vmul.f32 0.70710677, %v17397_v24 }
 0xc36   : > { %v3807_v50 = vadd.f32 0.001143296, %v3806_v35  ;;  %v3796_v48 = vadd.f32 0.00028619796, %v3795_v21  ;;  %v3833_v39 = vmul.f32 %v17402_v56, %v17402_v56  ;;  %v17431_v21 = vmul.f32 0.70710677, %v17422_v31 }
 0xc37   : > { %v3768_v55 = vmul.f32 %v3767_v37, %v17369_v47  ;;  %v17389_v44 = vmin.f32 %v3713_v33, 16.0  ;;  %v3757_v45 = vmul.f32 %v3756_v18, %v17369_v47  ;;  %v3913_v7 = vmul.f32 %v17407_v3, %v17407_v3 }
 0xc38   : > { %v3808_v49 = vmul.f32 %v3807_v50, %v17374_v4  ;;  %v3797_v59 = vmul.f32 %v3796_v48, %v17374_v4  ;;  %v17418_v19 = vmin.f32 %v3833_v39, 16.0 }
 0xc39   : > { %v3769_v6 = vadd.f32 0.014752088, %v3768_v55  ;;  %v3726_v58 = vmul.f32 3.8918573e-05, %v17389_v44  ;;  %v3758_v16 = vadd.f32 0.0036580483, %v3757_v45  ;;  %v3953_v45 = vmul.f32 %v17431_v21, %v17431_v21 }
 0xc3a   : > { %v3809_v63 = vadd.f32 0.014752088, %v3808_v49  ;;  %v3798_v42 = vadd.f32 0.0036580483, %v3797_v59  ;;  %v3715_v13 = vmul.f32 2.1237322e-06, %v17389_v44 }
 0xc3b   : > { %v3770_v1 = vmul.f32 %v3769_v6, %v17369_v47  ;;  %v3727_v36 = vadd.f32 0.001143296, %v3726_v58  ;;  %v3759_v9 = vmul.f32 %v3758_v16, %v17369_v47  ;;  %v17424_v40 = vmin.f32 %v3913_v7, 16.0 }
 0xc3c   : > { %v3810_v54 = vmul.f32 %v3809_v63, %v17374_v4  ;;  %v3799_v11 = vmul.f32 %v3798_v42, %v17374_v4  ;;  %v3716_v2 = vadd.f32 0.00028619796, %v3715_v13  ;;  %v3846_v37 = vmul.f32 3.8918573e-05, %v17418_v19 }
 0xc3d   : > { %v3771_v53 = vadd.f32 0.112945676, %v3770_v1  ;;  %v3728_v34 = vmul.f32 %v3727_v36, %v17389_v44  ;;  %v3760_v28 = vadd.f32 0.05243302, %v3759_v9  ;;  %v3835_v18 = vmul.f32 2.1237322e-06, %v17418_v19 }
 0xc3e   : > { %v3811_v0 = vadd.f32 0.112945676, %v3810_v54  ;;  %v3800_v61 = vadd.f32 0.05243302, %v3799_v11  ;;  %v3717_v33 = vmul.f32 %v3716_v2, %v17389_v44  ;;  %v3915_v55 = vmul.f32 2.1237322e-06, %v17424_v40 }
 0xc3f   : > { %v3772_v43 = vmul.f32 %v3771_v53, %v17369_v47  ;;  %v3729_v35 = vadd.f32 0.014752088, %v3728_v34  ;;  %v3761_v50 = vmul.f32 %v3760_v28, %v17369_v47  ;;  %v3847_v6 = vadd.f32 0.001143296, %v3846_v37  ;;  %v3616_v37 = vpop.f32.mrf.mxu3 }
 0xc40   : > { %v3812_v20 = vmul.f32 %v3811_v0, %v17374_v4  ;;  %v3926_v48 = vmul.f32 3.8918573e-05, %v17424_v40  ;;  %v3916_v63 = vadd.f32 0.00028619796, %v3915_v55  ;;  %v3801_v1 = vmul.f32 %v3800_v61, %v17374_v4 }
 0xc41   : > { %v3773_v8 = vadd.f32 0.4994258, %v3772_v43  ;;  %v3730_v62 = vmul.f32 %v3729_v35, %v17389_v44  ;;  %v3718_v54 = vadd.f32 0.0036580483, %v3717_v33  ;;  %v3836_v58 = vadd.f32 0.00028619796, %v3835_v18 }
 0xc42   : > { %v3813_v51 = vadd.f32 0.4994258, %v3812_v20  ;;  %v3762_v53 = vadd.f32 0.18741608, %v3761_v50  ;;  %v3848_v0 = vmul.f32 %v3847_v6, %v17418_v19  ;;  %v3927_v16 = vadd.f32 0.001143296, %v3926_v48 }
 0xc43   : > { %v3774_v14 = vmul.f32 %v3773_v8, %v17369_v47  ;;  %v3731_v59 = vadd.f32 0.112945676, %v3730_v62  ;;  %v3917_v20 = vmul.f32 %v3916_v63, %v17424_v40  ;;  %v17450_v36 = vmin.f32 %v3953_v45, 16.0 }
 0xc44   : > { %v3814_v30 = vmul.f32 %v3813_v51, %v17374_v4  ;;  %v3802_v39 = vadd.f32 0.18741608, %v3801_v1  ;;  %v3719_v8 = vmul.f32 %v3718_v54, %v17389_v44  ;;  %v3837_v42 = vmul.f32 %v3836_v58, %v17418_v19 }
 0xc45   : > { %v17426_v15 = vadd.f32 1.0, %v3774_v14  ;;  %v3763_v9 = vmul.f32 %v3762_v53, %v17369_v47  ;;  %v3732_v13 = vmul.f32 %v3731_v59, %v17389_v44  ;;  %v3849_v7 = vadd.f32 0.014752088, %v3848_v0 }
 0xc46   : > { %v17438_v49 = vadd.f32 1.0, %v3814_v30  ;;  %v3928_v12 = vmul.f32 %v3927_v16, %v17424_v40  ;;  %v3918_v34 = vadd.f32 0.0036580483, %v3917_v20  ;;  %v3955_v28 = vmul.f32 2.1237322e-06, %v17450_v36 }
 0xc47   : > { %15318 = vrcp.f32 %v17426_v15  ;;  %v3803_v2 = vmul.f32 %v3802_v39, %v17374_v4  ;;  %v3720_v30 = vadd.f32 0.05243302, %v3719_v8  ;;  %v3838_v35 = vadd.f32 0.0036580483, %v3837_v42  ;;  %v14193_v8 = vld [vmem:[#allocation23 + $0x78] sm:$0xff] }
 0xc48   : > { %15320 = vrcp.f32 %v17438_v49  ;;  %v3929_v11 = vadd.f32 0.014752088, %v3928_v12  ;;  %v3764_v47 = vadd.f32 1.1283791, %v3763_v9  ;;  %v3733_v61 = vadd.f32 0.4994258, %v3732_v13  ;;  %4672 = vmatpush.bf16.msra.mxu0 %v14193_v8 }
 0xc49   : > { %v3850_v50 = vmul.f32 %v3849_v7, %v17418_v19  ;;  %v17466_v18 = vmul.f32 0.5, %v17352_v22  ;;  %v17471_v6 = vmul.f32 0.5, %v17397_v24  ;;  %v3919_v4 = vmul.f32 %v3918_v34, %v17424_v40  ;;  %v14201_v42 = vld [vmem:[#allocation23 + $0xb8] sm:$0xff] }
 0xc4a   : > { %v3930_v33 = vmul.f32 %v3929_v11, %v17424_v40  ;;  %v3956_v48 = vadd.f32 0.00028619796, %v3955_v28  ;;  %v3966_v63 = vmul.f32 3.8918573e-05, %v17450_v36  ;;  %v17476_v45 = vadd.f32 %v3616_v37, %v17360_v25  ;;  %4691 = vmatpush.bf16.msrb.mxu1 %v14201_v42 }
 0xc4b   : > { %v3804_v1 = vadd.f32 1.1283791, %v3803_v2  ;;  %v3721_v54 = vmul.f32 %v3720_v30, %v17389_v44  ;;  %v3839_v22 = vmul.f32 %v3838_v35, %v17418_v19  ;;  %v17481_v53 = vmul.f32 %v3764_v47, %v17358_v38 }
 0xc4c   : > { %v3931_v58 = vadd.f32 0.112945676, %v3930_v33  ;;  %v3785_v24 = vand.u32 2147483647, %v17426_v15  ;;  %v3734_v59 = vmul.f32 %v3733_v61, %v17389_v44  ;;  %v3851_v0 = vadd.f32 0.112945676, %v3850_v50 }
 0xc4d   : > { %v17447_v43 = vpop.eup %15318  ;;  %vm3781_vm2 = vweird.f32 %v17426_v15  ;;  %v3920_v9 = vadd.f32 0.05243302, %v3919_v4  ;;  %v3957_v13 = vmul.f32 %v3956_v48, %v17450_v36  ;;  %v3967_v7 = vadd.f32 0.001143296, %v3966_v63  ;;  %v14192_v50 = vld [vmem:[#allocation23 + $0x70] sm:$0xff] }
 0xc4e   : > { %v3777_v14 = vmul.f32 %v17447_v43, %v17426_v15  ;;  %v17459_v51 = vpop.eup %15320  ;;  %v3932_v39 = vmul.f32 %v3931_v58, %v17424_v40  ;;  %v17490_v38 = vmul.f32 0.70710677, %v17476_v45  ;;  %v3787_v12 = vand.u32 2147483648, %v17426_v15  ;;  %v14200_v33 = vld [vmem:[#allocation23 + $0xb0] sm:$0xff]  ;;  %4673 = vmatpush.bf16.msra.mxu0 %v14192_v50 }
 0xc4f   : > { %v3817_v62 = vmul.f32 %v17459_v51, %v17438_v49  ;;  %v3825_v34 = vand.u32 2147483647, %v17438_v49  ;;  %vm17497_vm3 = vcmp.eq.f32.partialorder %v3785_v24, 8.507059e+37  ;;  %v3827_v2 = vand.u32 2147483648, %v17438_v49  ;;  %4692 = vmatpush.bf16.msrb.mxu1 %v14200_v33  ;;  %v14185_v24 = vld [vmem:[#allocation23 + $0x38] sm:$0xff]  ;;  %v14184_v33 = vld [vmem:[#allocation23 + $0x30] sm:$0xff] }
 0xc50   : > { %v3778_v55 = vsub.f32 1.0, %v3777_v14  ;;  %v17494_v14 = vmul.f32 %v3804_v1, %v17363_v41  ;;  %v3933_v11 = vadd.f32 0.4994258, %v3932_v39  ;;  %v17502_v30 = vadd.f32 1.0, %v3734_v59  ;;  %v14209_v59 = vld [vmem:[#allocation23 + $0xf8] sm:$0xff]  ;;  %v3673_v39 = vpop.f32.mrf.mxu2  ;;  %4653 = vmatpush.bf16.msrb.mxu3 %v14185_v24 }
 0xc51   : > { %v3818_v20 = vsub.f32 1.0, %v3817_v62  ;;  %v3852_v35 = vmul.f32 %v3851_v0, %v17418_v19  ;;  %v3968_v37 = vmul.f32 %v3967_v7, %v17450_v36  ;;  %vm3782_vm4 = vweird.f32 %v17447_v43  ;;  %4710 = vmatpush.bf16.msra.mxu2 %v14209_v59 }
 0xc52   : > { %v3779_v16 = vmul.f32 %v17447_v43, %v3778_v55  ;;  %v3934_v47 = vmul.f32 %v3933_v11, %v17424_v40  ;;  %v3873_v61 = vmul.f32 %v17490_v38, %v17490_v38  ;;  %v3921_v62 = vmul.f32 %v3920_v9, %v17424_v40  ;;  %vm17524_vm6 = vmor %vm3781_vm2, %vm3782_vm4  ;;  %v14191_v9 = vld [vmem:[#allocation23 + $0x68] sm:$0xff] }
 0xc53   : > { %v3819_v41 = vmul.f32 %v17459_v51, %v3818_v20  ;;  %v3958_v4 = vadd.f32 0.0036580483, %v3957_v13  ;;  %v3969_v48 = vadd.f32 0.014752088, %v3968_v37  ;;  %vm3821_vm5 = vweird.f32 %v17438_v49  ;;  %v14199_v13 = vld [vmem:[#allocation23 + $0xa8] sm:$0xff]  ;;  %4674 = vmatpush.bf16.msra.mxu0 %v14191_v9 }
 0xc54   : > { %v3780_v55 = vadd.f32 %v17447_v43, %v3779_v16  ;;  %v3722_v63 = vadd.f32 0.18741608, %v3721_v54  ;;  %v17514_v1 = vadd.f32 1.0, %v3934_v47  ;;  %v17516_v58 = vmin.f32 %v3873_v61, 16.0  ;;  %4693 = vmatpush.bf16.msrb.mxu1 %v14199_v13  ;;  %4654 = vmatpush.bf16.msrb.mxu3 %v14184_v33 }
 0xc55   : > { %v3788_v0 = vor.u32 1.1754944e-38, %v3787_v12  ;;  %15322 = vrcp.f32 %v17502_v30  ;;  %v3853_v20 = vadd.f32 0.4994258, %v3852_v35  ;;  %v3970_v16 = vmul.f32 %v3969_v48, %v17450_v36 }
 0xc56   : > { %v3820_v8 = vadd.f32 %v17459_v51, %v3819_v41  ;;  %vm3822_vm7 = vweird.f32 %v17459_v51  ;;  %v3840_v42 = vadd.f32 0.05243302, %v3839_v22  ;;  %15324 = vrcp.f32 %v17514_v1 }
 0xc57   : > { %v3784_v7 = vsel %vm17524_vm6, %v17447_v43, %v3780_v55  ;;  %v3922_v15 = vadd.f32 0.18741608, %v3921_v62  ;;  %v3959_v12 = vmul.f32 %v3958_v4, %v17450_v36  ;;  %v3971_v11 = vadd.f32 0.112945676, %v3970_v16  ;;  %vm17545_vm8 = vmor %vm3821_vm5, %vm3822_vm7  ;;  %v14208_v55 = vld [vmem:[#allocation23 + $0xf0] sm:$0xff] }
 0xc58   : > { %v3723_v35 = vmul.f32 %v3722_v63, %v17389_v44  ;;  %v3875_v37 = vmul.f32 2.1237322e-06, %v17516_v58  ;;  %v3886_v22 = vmul.f32 3.8918573e-05, %v17516_v58  ;;  %v17539_v41 = vadd.f32 %v3673_v39, %v17382_v60  ;;  %v14198_v63 = vld [vmem:[#allocation23 + $0xa0] sm:$0xff]  ;;  %4711 = vmatpush.bf16.msra.mxu2 %v14208_v55 }
 0xc59   : > { %vm17549_vm9 = vcmp.eq.f32.partialorder %v3825_v34, 8.507059e+37  ;;  %v3828_v44 = vor.u32 1.1754944e-38, %v3827_v2  ;;  %v3854_v61 = vmul.f32 %v3853_v20, %v17418_v19  ;;  %v3972_v50 = vmul.f32 %v3971_v11, %v17450_v36  ;;  %v14190_v34 = vld [vmem:[#allocation23 + $0x60] sm:$0xff]  ;;  %4694 = vmatpush.bf16.msrb.mxu1 %v14198_v63 }
 0xc5a   : > { %v3789_v62 = vsel %vm17497_vm3, %v3788_v0, %v3784_v7  ;;  %v3824_v49 = vsel %vm17545_vm8, %v17459_v51, %v3820_v8  ;;  %v3876_v4 = vadd.f32 0.00028619796, %v3875_v37  ;;  %v3887_v48 = vadd.f32 0.001143296, %v3886_v22  ;;  %4675 = vmatpush.bf16.msra.mxu0 %v14190_v34  ;;  %v14183_v8 = vld [vmem:[#allocation23 + $0x28] sm:$0xff]  ;;  %v14189_v37 = vld [vmem:[#allocation23 + $0x58] sm:$0xff] }
 0xc5b   : > { %v17560_v24 = vpop.eup %15322  ;;  %v17563_v2 = vmul.f32 %v3840_v42, %v17418_v19  ;;  %v3923_v59 = vmul.f32 %v3922_v15, %v17424_v40  ;;  %v3960_v20 = vadd.f32 0.05243302, %v3959_v12  ;;  %v3973_v16 = vadd.f32 0.4994258, %v3972_v50  ;;  %v14207_v42 = vld [vmem:[#allocation23 + $0xe8] sm:$0xff]  ;;  %4655 = vmatpush.bf16.msrb.mxu3 %v14183_v8 }
 0xc5c   : > { %v17566_v28 = vpop.eup %15324  ;;  %v17568_v0 = vadd.f32 1.1283791, %v3723_v35  ;;  %v3877_v51 = vmul.f32 %v3876_v4, %v17516_v58  ;;  %v3888_v39 = vmul.f32 %v3887_v48, %v17516_v58  ;;  %v17573_v54 = vmul.f32 0.70710677, %v17539_v41  ;;  %4712 = vmatpush.bf16.msra.mxu2 %v14207_v42 }
 0xc5d   : > { %v3790_v40 = vmul.f32 %v3789_v62, %v17481_v53  ;;  %v17578_v9 = vsel %vm17549_vm9, %v3828_v44, %v3824_v49  ;;  %v17580_v13 = vadd.f32 1.0, %v3854_v61  ;;  %v3937_v7 = vmul.f32 %v17566_v28, %v17514_v1  ;;  %v14197_v53 = vld [vmem:[#allocation23 + $0x98] sm:$0xff]  ;;  %v14182_v62 = vld [vmem:[#allocation23 + $0x20] sm:$0xff] }
 0xc5e   : > { %v3737_v15 = vmul.f32 %v17560_v24, %v17502_v30  ;;  %v3974_v12 = vmul.f32 %v3973_v16, %v17450_v36  ;;  %v3889_v11 = vadd.f32 0.014752088, %v3888_v39  ;;  %v3993_v35 = vmul.f32 %v17573_v54, %v17573_v54  ;;  %4676 = vmatpush.bf16.msra.mxu0 %v14189_v37  ;;  %4695 = vmatpush.bf16.msrb.mxu1 %v14197_v53  ;;  %v14206_v49 = vld [vmem:[#allocation23 + $0xe0] sm:$0xff] }
 0xc5f   : > { %v3924_v22 = vadd.f32 1.1283791, %v3923_v59  ;;  %v3938_v43 = vsub.f32 1.0, %v3937_v7  ;;  %v3947_v47 = vand.u32 2147483648, %v17514_v1  ;;  %v3961_v44 = vmul.f32 %v3960_v20, %v17450_v36  ;;  %v14188_v59 = vld [vmem:[#allocation23 + $0x50] sm:$0xff]  ;;  %4656 = vmatpush.bf16.msrb.mxu3 %v14182_v62 }
 0xc60   : > { %v17591_v61 = vadd.f32 1.0, %v3974_v12  ;;  %v3878_v50 = vadd.f32 0.0036580483, %v3877_v51  ;;  %v3890_v33 = vmul.f32 %v3889_v11, %v17516_v58  ;;  %v17594_v55 = vmin.f32 %v3993_v35, 16.0  ;;  %v14196_v20 = vld [vmem:[#allocation23 + $0x90] sm:$0xff]  ;;  %4713 = vmatpush.bf16.msra.mxu2 %v14206_v49  ;;  %v14205_v12 = vld [vmem:[#allocation23 + $0xd8] sm:$0xff] }
 0xc61   : > { %15326 = vrcp.f32 %v17580_v13  ;;  %v3939_v4 = vmul.f32 %v17566_v28, %v3938_v43  ;;  %vm3942_vm10 = vweird.f32 %v17566_v28  ;;  %v3945_v48 = vand.u32 2147483647, %v17514_v1 }
 0xc62   : > { %v11335_v34 = vclamps-f32 %v3790_v40, 1.0  ;;  %v3738_v63 = vsub.f32 1.0, %v3737_v15  ;;  %vm3941_vm11 = vweird.f32 %v17514_v1  ;;  %15328 = vrcp.f32 %v17591_v61  ;;  %4677 = vmatpush.bf16.msra.mxu0 %v14188_v59  ;;  %4696 = vmatpush.bf16.msrb.mxu1 %v14196_v20  ;;  %v14181_v15 = vld [vmem:[#allocation23 + $0x18] sm:$0xff]  ;;  %v14180_v59 = vld [vmem:[#allocation23 + $0x10] sm:$0xff] }
 0xc63   : > { %v3940_v16 = vadd.f32 %v17566_v28, %v3939_v4  ;;  %v3962_v51 = vadd.f32 0.18741608, %v3961_v44  ;;  %v3891_v39 = vadd.f32 0.112945676, %v3890_v33  ;;  %v3995_v8 = vmul.f32 2.1237322e-06, %v17594_v55  ;;  %vm3943_vm12 = vmor %vm3941_vm11, %vm3942_vm10  ;;  %4657 = vmatpush.bf16.msrb.mxu3 %v14181_v15 }
 0xc64   : > { %v3925_v42 = vmul.f32 %v3924_v22, %v17407_v3  ;;  %v3948_v40 = vor.u32 1.1754944e-38, %v3947_v47  ;;  %v3879_v1 = vmul.f32 %v3878_v50, %v17516_v58  ;;  %v4006_v7 = vmul.f32 3.8918573e-05, %v17594_v55  ;;  %v14187_v47 = vld [vmem:[#allocation23 + $0x48] sm:$0xff]  ;;  %4714 = vmatpush.bf16.msra.mxu2 %v14205_v12  ;;  %v14204_v20 = vld [vmem:[#allocation23 + $0xd0] sm:$0xff] }
 0xc65   : > { %v3944_v11 = vsel %vm3943_vm12, %v17566_v28, %v3940_v16  ;;  %vm3946_vm13 = vcmp.eq.f32.partialorder %v3945_v48, 8.507059e+37  ;;  %v3892_v35 = vmul.f32 %v3891_v39, %v17516_v58  ;;  %v3996_v37 = vadd.f32 0.00028619796, %v3995_v8  ;;  %v14195_v44 = vld [vmem:[#allocation23 + $0x88] sm:$0xff] }
 0xc66   : > { %v4354_v53 = vadd.f32 1.0, %v11335_v34  ;;  %v3739_v3 = vmul.f32 %v17560_v24, %v3738_v63  ;;  %v3949_v22 = vsel %vm3946_vm13, %v3948_v40, %v3944_v11  ;;  %v4007_v43 = vadd.f32 0.001143296, %v4006_v7  ;;  %4678 = vmatpush.bf16.msra.mxu0 %v14187_v47  ;;  %4697 = vmatpush.bf16.msrb.mxu1 %v14195_v44  ;;  %v14194_v7 = vld [vmem:[#allocation23 + $0x80] sm:$0xff] }
 0xc67   : > { %v17612_v50 = vpop.eup %15326  ;;  %vm3741_vm14 = vweird.f32 %v17502_v30  ;;  %v3950_v33 = vmul.f32 %v3949_v22, %v3925_v42  ;;  %v3963_v62 = vmul.f32 %v3962_v51, %v17450_v36  ;;  %v3893_v49 = vadd.f32 0.4994258, %v3892_v35  ;;  %4658 = vmatpush.bf16.msrb.mxu3 %v14180_v59 }
 0xc68   : > { %v17616_v28 = vpop.eup %15328  ;;  %v3745_v4 = vand.u32 2147483647, %v17502_v30  ;;  %v3880_v48 = vadd.f32 0.05243302, %v3879_v1  ;;  %v3997_v34 = vmul.f32 %v3996_v37, %v17594_v55  ;;  %v4008_v63 = vmul.f32 %v4007_v43, %v17594_v55  ;;  %v14186_v1 = vld [vmem:[#allocation23 + $0x40] sm:$0xff]  ;;  %4715 = vmatpush.bf16.msra.mxu2 %v14204_v20 }
 0xc69   : > { %v3830_v16 = vmul.f32 %v17578_v9, %v17494_v14  ;;  %vm3742_vm15 = vweird.f32 %v17560_v24  ;;  %v11339_v36 = vclamps-f32 %v3950_v33, 1.0  ;;  %v3977_v51 = vmul.f32 %v17616_v28, %v17591_v61 }
 0xc6a   : > { %v4370_v39 = vmul.f32 %v4354_v53, %v17466_v18  ;;  %v3740_v8 = vadd.f32 %v17560_v24, %v3739_v3  ;;  %v3894_v42 = vmul.f32 %v3893_v49, %v17516_v58  ;;  %v4009_v40 = vadd.f32 0.014752088, %v4008_v63  ;;  %4679 = vmatpush.bf16.msra.mxu0 %v14186_v1  ;;  %4698 = vmatpush.bf16.msrb.mxu1 %v14194_v7  ;;  %v14179_v53 = vld [vmem:[#allocation23 + $0x8] sm:$0xff]  ;;  %vm17646_vm1 = vmor %vm3741_vm14, %vm3742_vm15 }
 0xc6b   : > { %v4358_v15 = vadd.f32 1.0, %v11339_v36  ;;  %v3964_v12 = vadd.f32 1.1283791, %v3963_v62  ;;  %v3978_v11 = vsub.f32 1.0, %v3977_v51  ;;  %v3987_v14 = vand.u32 2147483648, %v17591_v61  ;;  %v14203_v3 = vld [vmem:[#allocation23 + $0xc8] sm:$0xff]  ;;  %4659 = vmatpush.bf16.msrb.mxu3 %v14179_v53 }
 0xc6c   : > { %v3881_v9 = vmul.f32 %v3880_v48, %v17516_v58  ;;  %v17631_v35 = vadd.f32 1.0, %v3894_v42  ;;  %v3998_v37 = vadd.f32 0.0036580483, %v3997_v34  ;;  %v4010_v18 = vmul.f32 %v4009_v40, %v17594_v55  ;;  %4716 = vmatpush.bf16.msra.mxu2 %v14203_v3  ;;  %v14178_v36 = vld [vmem:[#allocation23] sm:$0xff] }
 0xc6d   : > { %v4374_v22 = vmul.f32 %v4358_v15, %v17471_v6  ;;  %v3979_v43 = vmul.f32 %v17616_v28, %v3978_v11  ;;  %vm3982_vm0 = vweird.f32 %v17616_v28  ;;  %v3985_v47 = vand.u32 2147483647, %v17591_v61  ;;  %v14202_v51 = vld [vmem:[#allocation23 + $0xc0] sm:$0xff] }
 0xc6e   : > { %v11336_v44 = vclamps-f32 %v3830_v16, 1.0  ;;  %v3747_v33 = vand.u32 2147483648, %v17502_v30  ;;  %v3857_v62 = vmul.f32 %v17612_v50, %v17580_v13  ;;  %15330 = vrcp.f32 %v17631_v35 }
 0xc6f   : > { %v4386_v49 = vpack.c.bf16 %v4374_v22, %v4370_v39  ;;  %v3980_v48 = vadd.f32 %v17616_v28, %v3979_v43  ;;  %vm3981_vm2 = vweird.f32 %v17591_v61  ;;  %v4011_v34 = vadd.f32 0.112945676, %v4010_v18  ;;  %4660 = vmatpush.bf16.msrb.mxu3 %v14178_v36 }
 0xc70   : > { %v3744_v63 = vsel %vm17646_vm1, %v17560_v24, %v3740_v8  ;;  %vm3983_vm3 = vmor %vm3981_vm2, %vm3982_vm0  ;;  %v3988_v59 = vor.u32 1.1754944e-38, %v3987_v14  ;;  %v3882_v20 = vadd.f32 0.18741608, %v3881_v9  ;;  %v3999_v16 = vmul.f32 %v3998_v37, %v17594_v55  ;;  %4717 = vmatpush.bf16.msra.mxu2 %v14202_v51 }
 0xc71   : > { %v3965_v39 = vmul.f32 %v3964_v12, %v17431_v21  ;;  %v3984_v42 = vsel %vm3983_vm3, %v17616_v28, %v3980_v48  ;;  %vm3986_vm4 = vcmp.eq.f32.partialorder %v3985_v47, 8.507059e+37  ;;  %v4012_v61 = vmul.f32 %v4011_v34, %v17594_v55  ;;  %4680 = vmatmul.bf16.vlgmr.msra.gmra.mxu0 %v4386_v49 }
 0xc72   : > { %v3748_v40 = vor.u32 1.1754944e-38, %v3747_v33  ;;  %v3842_v1 = vadd.f32 0.18741608, %v17563_v2  ;;  %v3858_v7 = vsub.f32 1.0, %v3857_v62  ;;  %v3989_v24 = vsel %vm3986_vm4, %v3988_v59, %v3984_v42 }
 0xc73   : > { %v4355_v8 = vadd.f32 1.0, %v11336_v44  ;;  %vm3746_vm5 = vcmp.eq.f32.partialorder %v3745_v4, 8.507059e+37  ;;  %v3990_v15 = vmul.f32 %v3989_v24, %v3965_v39  ;;  %v4013_v11 = vadd.f32 0.4994258, %v4012_v61 }
 0xc74   : > { %v15331_v21 = vpop.eup %15330  ;;  %v3749_v12 = vsel %vm3746_vm5, %v3748_v40, %v3744_v63  ;;  %v3883_v28 = vmul.f32 %v3882_v20, %v17516_v58  ;;  %v4000_v14 = vadd.f32 0.05243302, %v3999_v16  ;;  %v3683_v9 = vmul.f32 0.5, %v17355_v5 }
 0xc75   : > { %v3725_v2 = vmul.f32 %v17568_v0, %v17380_v27  ;;  %v11340_v37 = vclamps-f32 %v3990_v15, 1.0  ;;  %v3897_v18 = vmul.f32 %v15331_v21, %v17631_v35  ;;  %v3843_v30 = vmul.f32 %v3842_v1, %v17418_v19 }
 0xc76   : > { %v3859_v4 = vmul.f32 %v17612_v50, %v3858_v7  ;;  %v3687_v53 = vmul.f32 0.5, %v17422_v31  ;;  %v4014_v3 = vmul.f32 %v4013_v11, %v17594_v55  ;;  %v4371_v22 = vmul.f32 %v4355_v8, %v3683_v9 }
 0xc77   : > { %v3750_v43 = vmul.f32 %v3749_v12, %v3725_v2  ;;  %v4359_v58 = vadd.f32 1.0, %v11340_v37  ;;  %v3898_v47 = vsub.f32 1.0, %v3897_v18  ;;  %v3884_v44 = vadd.f32 1.1283791, %v3883_v28 }
 0xc78   : > { %v3907_v5 = vand.u32 2147483648, %v17631_v35  ;;  %v4001_v27 = vmul.f32 %v4000_v14, %v17594_v55  ;;  %v4015_v0 = vadd.f32 1.0, %v4014_v3  ;;  %vm3902_vm6 = vweird.f32 %v15331_v21 }
 0xc79   : > { %v4375_v33 = vmul.f32 %v4359_v58, %v3687_v53  ;;  %v3899_v62 = vmul.f32 %v15331_v21, %v3898_v47  ;;  %v3905_v19 = vand.u32 2147483647, %v17631_v35  ;;  %v3860_v6 = vadd.f32 %v17612_v50, %v3859_v4 }
 0xc7a   : > { %vm3861_vm7 = vweird.f32 %v17580_v13  ;;  %vm3862_vm8 = vweird.f32 %v17612_v50  ;;  %15332 = vrcp.f32 %v4015_v0  ;;  %v3867_v31 = vand.u32 2147483648, %v17580_v13 }
 0xc7b   : > { %v4387_v49 = vpack.c.bf16 %v4375_v33, %v4371_v22  ;;  %v3900_v48 = vadd.f32 %v15331_v21, %v3899_v62  ;;  %vm3901_vm9 = vweird.f32 %v17631_v35  ;;  %v11334_v34 = vclamps-f32 %v3750_v43, 1.0  ;;  %vm3863_vm11 = vmor %vm3861_vm7, %vm3862_vm8 }
 0xc7c   : > { %v3865_v63 = vand.u32 2147483647, %v17580_v13  ;;  %vm3903_vm10 = vmor %vm3901_vm9, %vm3902_vm6  ;;  %v3908_v59 = vor.u32 1.1754944e-38, %v3907_v5  ;;  %v4002_v20 = vadd.f32 0.18741608, %v4001_v27  ;;  %v3885_v16 = vmul.f32 %v3884_v44, %v17490_v38 }
 0xc7d   : > { %v3904_v36 = vsel %vm3903_vm10, %v15331_v21, %v3900_v48  ;;  %vm3906_vm12 = vcmp.eq.f32.partialorder %v3905_v19, 8.507059e+37  ;;  %4699 = vmatmul.bf16.vlgmr.msrb.gmra.mxu1 %v4387_v49  ;;  %v3844_v51 = vadd.f32 1.1283791, %v3843_v30  ;;  %v3864_v39 = vsel %vm3863_vm11, %v17612_v50, %v3860_v6 }
 0xc7e   : > { %v3909_v42 = vsel %vm3906_vm12, %v3908_v59, %v3904_v36  ;;  %v3868_v61 = vor.u32 1.1754944e-38, %v3867_v31  ;;  %v4353_v35 = vadd.f32 1.0, %v11334_v34  ;;  %vm3866_vm13 = vcmp.eq.f32.partialorder %v3865_v63, 8.507059e+37 }
 0xc7f   : > { %v3910_v40 = vmul.f32 %v3909_v42, %v3885_v16  ;;  %v4003_v13 = vmul.f32 %v4002_v20, %v17594_v55  ;;  %v3681_v15 = vmul.f32 0.5, %v17372_v57  ;;  %v3845_v38 = vmul.f32 %v3844_v51, %v17402_v56 }
 0xc80   : > { %v15333_v1 = vpop.eup %15332  ;;  %v3869_v7 = vsel %vm3866_vm13, %v3868_v61, %v3864_v39  ;;  %v3685_v11 = vmul.f32 0.5, %v17476_v45  ;;  %v4027_v9 = vand.u32 2147483648, %v4015_v0  ;;  %v4025_v18 = vand.u32 2147483647, %v4015_v0 }
 0xc81   : > { %v11338_v24 = vclamps-f32 %v3910_v40, 1.0  ;;  %v4017_v8 = vmul.f32 %v15333_v1, %v4015_v0  ;;  %v4369_v50 = vmul.f32 %v4353_v35, %v3681_v15  ;;  %v3870_v28 = vmul.f32 %v3869_v7, %v3845_v38 }
 0xc82   : > { %v4004_v14 = vadd.f32 1.1283791, %v4003_v13  ;;  %vm4022_vm14 = vweird.f32 %v15333_v1  ;;  %vm4021_vm15 = vweird.f32 %v4015_v0  ;;  %v4028_v4 = vor.u32 1.1754944e-38, %v4027_v9 }
 0xc83   : > { %v4357_v21 = vadd.f32 1.0, %v11338_v24  ;;  %v4018_v12 = vsub.f32 1.0, %v4017_v8  ;;  %vm4023_vm0 = vmor %vm4021_vm15, %vm4022_vm14  ;;  %v11337_v57 = vclamps-f32 %v3870_v28, 1.0  ;;  %vm4026_vm1 = vcmp.eq.f32.partialorder %v4025_v18, 8.507059e+37 }
 0xc84   : > { %v4005_v56 = vmul.f32 %v4004_v14, %v17573_v54  ;;  %v3684_v58 = vmul.f32 0.5, %v17392_v32  ;;  %v3688_v47 = vmul.f32 0.5, %v17539_v41 }
 0xc85   : > { %v4373_v2 = vmul.f32 %v4357_v21, %v3685_v11  ;;  %v4019_v37 = vmul.f32 %v15333_v1, %v4018_v12  ;;  %v4356_v22 = vadd.f32 1.0, %v11337_v57 }
 0xc87   : > { %v4385_v55 = vpack.c.bf16 %v4373_v2, %v4369_v50  ;;  %v4020_v30 = vadd.f32 %v15333_v1, %v4019_v37  ;;  %v4372_v5 = vmul.f32 %v4356_v22, %v3684_v58 }
 0xc89   : > { %v4024_v53 = vsel %vm4023_vm0, %v15333_v1, %v4020_v30  ;;  %4661 = vmatmul.bf16.vlgmr.msrb.gmra.mxu3 %v4385_v55 }
 0xc8a   : > { %v4029_v45 = vsel %vm4026_vm1, %v4028_v4, %v4024_v53 }
 0xc8b   : > { %v4030_v3 = vmul.f32 %v4029_v45, %v4005_v56 }
 0xc8d   : > { %v11341_v43 = vclamps-f32 %v4030_v3, 1.0 }
 0xc8f   : > { %v4360_v44 = vadd.f32 1.0, %v11341_v43 }
 0xc91   : > { %v4376_v27 = vmul.f32 %v4360_v44, %v3688_v47 }
 0xc93   : > { %v4388_v0 = vpack.c.bf16 %v4376_v27, %v4372_v5 }
 0xc95   : > { %4718 = vmatmul.bf16.vlgmr.msra.gmra.mxu2 %v4388_v0 }
 0xca4   : > { %v3638_v33 = vpop.f32.mrf.mxu0 }
 0xca5   : > { %v17690_v62 = vadd.f32 %v3638_v33, %v17347_v23  ;;  %v3657_v59 = vpop.f32.mrf.mxu1 }
 0xca6   : > { %v17705_v16 = vadd.f32 %v3657_v59, %v17349_v26 }
 0xca7   : > { %v17693_v54 = vmul.f32 0.70710677, %v17690_v62 }
 0xca8   : > { %v17708_v39 = vmul.f32 0.70710677, %v17705_v16 }
 0xca9   : > { %v4073_v19 = vmul.f32 %v17693_v54, %v17693_v54 }
 0xcaa   : > { %v4113_v40 = vmul.f32 %v17708_v39, %v17708_v39  ;;  %v3619_v1 = vpop.f32.mrf.mxu3 }
 0xcab   : > { %v17697_v6 = vmin.f32 %v4073_v19, 16.0  ;;  %v3676_v35 = vpop.f32.mrf.mxu2  ;;  %v17717_v7 = vadd.f32 %v3619_v1, %v17360_v25 }
 0xcac   : > { %v17720_v24 = vadd.f32 %v3676_v35, %v17382_v60  ;;  %v17722_v8 = vmin.f32 %v4113_v40, 16.0  ;;  %v3640_v28 = vpop.f32.mrf.mxu0 }
 0xcad   : > { %v4086_v32 = vmul.f32 3.8918573e-05, %v17697_v6  ;;  %v4075_v34 = vmul.f32 2.1237322e-06, %v17697_v6  ;;  %v17728_v21 = vmul.f32 0.70710677, %v17717_v7  ;;  %v17744_v4 = vadd.f32 %v3640_v28, %v17347_v23 }
 0xcae   : > { %v4126_v38 = vmul.f32 3.8918573e-05, %v17722_v8  ;;  %v4115_v11 = vmul.f32 2.1237322e-06, %v17722_v8  ;;  %v17731_v12 = vmul.f32 0.70710677, %v17720_v24 }
 0xcaf   : > { %v4087_v41 = vadd.f32 0.001143296, %v4086_v32  ;;  %v4076_v36 = vadd.f32 0.00028619796, %v4075_v34  ;;  %v4033_v14 = vmul.f32 %v17728_v21, %v17728_v21  ;;  %v17757_v5 = vmul.f32 0.70710677, %v17744_v4 }
 0xcb0   : > { %v4127_v50 = vadd.f32 0.001143296, %v4126_v38  ;;  %v4153_v9 = vmul.f32 %v17731_v12, %v17731_v12  ;;  %v4116_v18 = vadd.f32 0.00028619796, %v4115_v11 }
 0xcb1   : > { %v4088_v31 = vmul.f32 %v4087_v41, %v17697_v6  ;;  %v4077_v61 = vmul.f32 %v4076_v36, %v17697_v6  ;;  %v17739_v55 = vmin.f32 %v4033_v14, 16.0 }
 0xcb2   : > { %v4128_v37 = vmul.f32 %v4127_v50, %v17722_v8  ;;  %v17741_v30 = vmin.f32 %v4153_v9, 16.0  ;;  %v4117_v23 = vmul.f32 %v4116_v18, %v17722_v8 }
 0xcb3   : > { %v4089_v49 = vadd.f32 0.014752088, %v4088_v31  ;;  %v4078_v15 = vadd.f32 0.0036580483, %v4077_v61  ;;  %v4035_v53 = vmul.f32 2.1237322e-06, %v17739_v55 }
 0xcb4   : > { %v4129_v56 = vadd.f32 0.014752088, %v4128_v37  ;;  %v4046_v45 = vmul.f32 3.8918573e-05, %v17739_v55  ;;  %v4155_v43 = vmul.f32 2.1237322e-06, %v17741_v30 }
 0xcb5   : > { %v4090_v48 = vmul.f32 %v4089_v49, %v17697_v6  ;;  %v4079_v2 = vmul.f32 %v4078_v15, %v17697_v6  ;;  %v4166_v58 = vmul.f32 3.8918573e-05, %v17741_v30  ;;  %v4036_v33 = vadd.f32 0.00028619796, %v4035_v53 }
 0xcb6   : > { %v4130_v22 = vmul.f32 %v4129_v56, %v17722_v8  ;;  %v4047_v44 = vadd.f32 0.001143296, %v4046_v45  ;;  %v4156_v31 = vadd.f32 0.00028619796, %v4155_v43 }
 0xcb7   : > { %v4091_v63 = vadd.f32 0.112945676, %v4090_v48  ;;  %v4080_v3 = vadd.f32 0.05243302, %v4079_v2  ;;  %v4167_v0 = vadd.f32 0.001143296, %v4166_v58  ;;  %v3659_v48 = vpop.f32.mrf.mxu1 }
 0xcb8   : > { %v4131_v27 = vadd.f32 0.112945676, %v4130_v22  ;;  %v4048_v19 = vmul.f32 %v4047_v44, %v17739_v55  ;;  %v17768_v40 = vadd.f32 %v3659_v48, %v17349_v26  ;;  %v4157_v35 = vmul.f32 %v4156_v31, %v17741_v30  ;;  %v3621_v31 = vpop.f32.mrf.mxu3 }
 0xcb9   : > { %v4092_v20 = vmul.f32 %v4091_v63, %v17697_v6  ;;  %v4081_v32 = vmul.f32 %v4080_v3, %v17697_v6  ;;  %v4168_v49 = vmul.f32 %v4167_v0, %v17741_v30  ;;  %v4118_v63 = vadd.f32 0.0036580483, %v4117_v23 }
 0xcba   : > { %v4132_v41 = vmul.f32 %v4131_v27, %v17722_v8  ;;  %v4049_v59 = vadd.f32 0.014752088, %v4048_v19  ;;  %v17779_v26 = vmul.f32 0.70710677, %v17768_v40  ;;  %v4158_v56 = vadd.f32 0.0036580483, %v4157_v35 }
 0xcbb   : > { %v4093_v51 = vadd.f32 0.4994258, %v4092_v20  ;;  %v4233_v20 = vmul.f32 %v17757_v5, %v17757_v5  ;;  %v4082_v1 = vadd.f32 0.18741608, %v4081_v32  ;;  %v4119_v11 = vmul.f32 %v4118_v63, %v17722_v8 }
 0xcbc   : > { %v4133_v36 = vadd.f32 0.4994258, %v4132_v41  ;;  %v4050_v61 = vmul.f32 %v4049_v59, %v17739_v55  ;;  %v4273_v44 = vmul.f32 %v17779_v26, %v17779_v26 }
 0xcbd   : > { %v4094_v42 = vmul.f32 %v4093_v51, %v17697_v6  ;;  %v4169_v51 = vadd.f32 0.014752088, %v4168_v49  ;;  %v17774_v28 = vmin.f32 %v4233_v20, 16.0  ;;  %v4083_v18 = vmul.f32 %v4082_v1, %v17697_v6 }
 0xcbe   : > { %v4051_v50 = vadd.f32 0.112945676, %v4050_v61  ;;  %v4134_v14 = vmul.f32 %v4133_v36, %v17722_v8  ;;  %v4120_v45 = vadd.f32 0.05243302, %v4119_v11  ;;  %v17806_v59 = vmin.f32 %v4273_v44, 16.0 }
 0xcbf   : > { %v17714_v13 = vadd.f32 1.0, %v4094_v42  ;;  %v4037_v42 = vmul.f32 %v4036_v33, %v17739_v55  ;;  %v4170_v15 = vmul.f32 %v4169_v51, %v17741_v30  ;;  %v4235_v3 = vmul.f32 2.1237322e-06, %v17774_v28 }
 0xcc0   : > { %v4052_v37 = vmul.f32 %v4051_v50, %v17739_v55  ;;  %v17786_v43 = vadd.f32 1.0, %v4134_v14  ;;  %v4159_v33 = vmul.f32 %v4158_v56, %v17741_v30  ;;  %v4084_v19 = vadd.f32 1.1283791, %v4083_v18 }
 0xcc1   : > { %15334 = vrcp.f32 %v17714_v13  ;;  %v4171_v9 = vadd.f32 0.112945676, %v4170_v15  ;;  %v4038_v2 = vadd.f32 0.0036580483, %v4037_v42  ;;  %v4107_v22 = vand.u32 2147483648, %v17714_v13 }
 0xcc2   : > { %v4053_v58 = vadd.f32 0.4994258, %v4052_v37  ;;  %vm4101_vm3 = vweird.f32 %v17714_v13  ;;  %v4105_v23 = vand.u32 2147483647, %v17714_v13  ;;  %v4236_v41 = vadd.f32 0.00028619796, %v4235_v3  ;;  %v3678_v3 = vpop.f32.mrf.mxu2 }
 0xcc3   : > { %v4039_v6 = vmul.f32 %v4038_v2, %v17739_v55  ;;  %v4108_v49 = vor.u32 1.1754944e-38, %v4107_v22  ;;  %15336 = vrcp.f32 %v17786_v43  ;;  %v4246_v63 = vmul.f32 3.8918573e-05, %v17774_v28 }
 0xcc4   : > { %v4054_v0 = vmul.f32 %v4053_v58, %v17739_v55  ;;  %vm4106_vm5 = vcmp.eq.f32.partialorder %v4105_v23, 8.507059e+37  ;;  %v4160_v51 = vadd.f32 0.05243302, %v4159_v33  ;;  %v4085_v42 = vmul.f32 %v4084_v19, %v17693_v54 }
 0xcc5   : > { %v4237_v1 = vmul.f32 %v4236_v41, %v17774_v28  ;;  %v4247_v11 = vadd.f32 0.001143296, %v4246_v63  ;;  %v4275_v50 = vmul.f32 2.1237322e-06, %v17806_v59  ;;  %v17831_v22 = vmul.f32 0.5, %v17690_v62 }
 0xcc6   : > { %v17808_v36 = vadd.f32 1.0, %v4054_v0  ;;  %v17838_v44 = vmul.f32 0.5, %v17744_v4  ;;  %v17843_v62 = vadd.f32 %v3678_v3, %v17382_v60  ;;  %vm4141_vm6 = vweird.f32 %v17786_v43 }
 0xcc7   : > { %v17746_v57 = vpop.eup %15334  ;;  %v4238_v37 = vadd.f32 0.0036580483, %v4237_v1  ;;  %v4248_v18 = vmul.f32 %v4247_v11, %v17774_v28  ;;  %v4276_v56 = vadd.f32 0.00028619796, %v4275_v50 }
 0xcc8   : > { %v4097_v47 = vmul.f32 %v17746_v57, %v17714_v13  ;;  %vm4102_vm2 = vweird.f32 %v17746_v57  ;;  %v4121_v13 = vmul.f32 %v4120_v45, %v17722_v8  ;;  %15338 = vrcp.f32 %v17808_v36 }
 0xcc9   : > { %vm17794_vm4 = vmor %vm4101_vm3, %vm4102_vm2  ;;  %v17818_v14 = vpop.eup %15336  ;;  %v4249_v27 = vadd.f32 0.014752088, %v4248_v18  ;;  %v4239_v33 = vmul.f32 %v4238_v37, %v17774_v28  ;;  %v4277_v19 = vmul.f32 %v4276_v56, %v17806_v59  ;;  %v4065_v3 = vand.u32 2147483647, %v17808_v36 }
 0xcca   : > { %v4098_v34 = vsub.f32 1.0, %v4097_v47  ;;  %v4172_v47 = vmul.f32 %v4171_v9, %v17741_v30  ;;  %v4122_v61 = vadd.f32 0.18741608, %v4121_v13  ;;  %v4286_v9 = vmul.f32 3.8918573e-05, %v17806_v59 }
 0xccb   : > { %v4137_v58 = vmul.f32 %v17818_v14, %v17786_v43  ;;  %v4147_v13 = vand.u32 2147483648, %v17786_v43  ;;  %v4250_v41 = vmul.f32 %v4249_v27, %v17774_v28  ;;  %vm4142_vm7 = vweird.f32 %v17818_v14 }
 0xccc   : > { %v4099_v38 = vmul.f32 %v17746_v57, %v4098_v34  ;;  %v4173_v48 = vadd.f32 0.4994258, %v4172_v47  ;;  %v4040_v34 = vadd.f32 0.05243302, %v4039_v6  ;;  %v4123_v2 = vmul.f32 %v4122_v61, %v17722_v8  ;;  %vm17904_vm9 = vmor %vm4141_vm6, %vm4142_vm7 }
 0xccd   : > { %v4287_v45 = vadd.f32 0.001143296, %v4286_v9  ;;  %v4145_v61 = vand.u32 2147483647, %v17786_v43  ;;  %vm4061_vm10 = vweird.f32 %v17808_v36  ;;  %vm17918_vm12 = vcmp.eq.f32.partialorder %v4065_v3, 8.507059e+37 }
 0xcce   : > { %v4100_v53 = vadd.f32 %v17746_v57, %v4099_v38  ;;  %v4174_v35 = vmul.f32 %v4173_v48, %v17741_v30  ;;  %v4041_v38 = vmul.f32 %v4040_v34, %v17739_v55  ;;  %v4124_v0 = vadd.f32 1.1283791, %v4123_v2 }
 0xccf   : > { %v4288_v4 = vmul.f32 %v4287_v45, %v17806_v59  ;;  %v4278_v48 = vadd.f32 0.0036580483, %v4277_v19  ;;  %vm17877_vm8 = vcmp.eq.f32.partialorder %v4145_v61, 8.507059e+37 }
 0xcd0   : > { %v4104_v32 = vsel %vm17794_vm4, %v17746_v57, %v4100_v53  ;;  %v17811_v57 = vadd.f32 %v3621_v31, %v17360_v25  ;;  %v4161_v25 = vmul.f32 %v4160_v51, %v17741_v30  ;;  %v17828_v53 = vadd.f32 1.0, %v4174_v35 }
 0xcd1   : > { %v4109_v20 = vsel %vm4106_vm5, %v4108_v49, %v4104_v32  ;;  %v4042_v47 = vadd.f32 0.18741608, %v4041_v38  ;;  %v17845_v32 = vpop.eup %15338  ;;  %v4138_v31 = vsub.f32 1.0, %v4137_v58  ;;  %v4289_v51 = vadd.f32 0.014752088, %v4288_v4 }
 0xcd2   : > { %v4110_v15 = vmul.f32 %v4109_v20, %v4085_v42  ;;  %v17824_v54 = vmul.f32 0.70710677, %v17811_v57  ;;  %v4162_v8 = vadd.f32 0.18741608, %v4161_v25  ;;  %15340 = vrcp.f32 %v17828_v53 }
 0xcd3   : > { %v4043_v49 = vmul.f32 %v4042_v47, %v17739_v55  ;;  %v4251_v20 = vadd.f32 0.112945676, %v4250_v41  ;;  %v17858_v42 = vmul.f32 %v4124_v0, %v17708_v39  ;;  %v4057_v1 = vmul.f32 %v17845_v32, %v17808_v36 }
 0xcd4   : > { %v4193_v23 = vmul.f32 %v17824_v54, %v17824_v54  ;;  %v11343_v6 = vclamps-f32 %v4110_v15, 1.0  ;;  %v4163_v60 = vmul.f32 %v4162_v8, %v17741_v30  ;;  %v4240_v35 = vadd.f32 0.05243302, %v4239_v33 }
 0xcd5   : > { %v4148_v15 = vor.u32 1.1754944e-38, %v4147_v13  ;;  %v4252_v55 = vmul.f32 %v4251_v20, %v17774_v28  ;;  %v4279_v38 = vmul.f32 %v4278_v48, %v17806_v59  ;;  %v4290_v11 = vmul.f32 %v4289_v51, %v17806_v59 }
 0xcd6   : > { %v17852_v34 = vmin.f32 %v4193_v23, 16.0  ;;  %v17854_v63 = vadd.f32 1.0, %v11343_v6  ;;  %v4139_v30 = vmul.f32 %v17818_v14, %v4138_v31  ;;  %v4044_v50 = vadd.f32 1.1283791, %v4043_v49 }
 0xcd7   : > { %v17869_v39 = vmul.f32 0.70710677, %v17843_v62  ;;  %v17874_v2 = vadd.f32 1.1283791, %v4163_v60  ;;  %v4253_v37 = vadd.f32 0.4994258, %v4252_v55  ;;  %v4241_v58 = vmul.f32 %v4240_v35, %v17774_v28 }
 0xcd8   : > { %v4195_v25 = vmul.f32 2.1237322e-06, %v17852_v34  ;;  %v17871_v9 = vpop.eup %15340  ;;  %v4291_v18 = vadd.f32 0.112945676, %v4290_v11  ;;  %v4058_v45 = vsub.f32 1.0, %v4057_v1  ;;  %v4140_v27 = vadd.f32 %v17818_v14, %v4139_v30 }
 0xcd9   : > { %v4254_v47 = vmul.f32 %v4253_v37, %v17774_v28  ;;  %v4280_v23 = vadd.f32 0.05243302, %v4279_v38  ;;  %v4206_v8 = vmul.f32 3.8918573e-05, %v17852_v34  ;;  %v4177_v0 = vmul.f32 %v17871_v9, %v17828_v53 }
 0xcda   : > { %v4292_v6 = vmul.f32 %v4291_v18, %v17806_v59  ;;  %v4196_v33 = vadd.f32 0.00028619796, %v4195_v25  ;;  %v4313_v19 = vmul.f32 %v17869_v39, %v17869_v39  ;;  %v4067_v13 = vand.u32 2147483648, %v17808_v36 }
 0xcdb   : > { %v17892_v41 = vadd.f32 1.0, %v4254_v47  ;;  %v4207_v31 = vadd.f32 0.001143296, %v4206_v8  ;;  %v17895_v49 = vmul.f32 %v4044_v50, %v17728_v21  ;;  %v4059_v48 = vmul.f32 %v17845_v32, %v4058_v45 }
 0xcdc   : > { %v4293_v4 = vadd.f32 0.4994258, %v4292_v6  ;;  %v4242_v60 = vadd.f32 0.18741608, %v4241_v58  ;;  %v17898_v20 = vmin.f32 %v4313_v19, 16.0  ;;  %v4187_v61 = vand.u32 2147483648, %v17828_v53 }
 0xcdd   : > { %15342 = vrcp.f32 %v17892_v41  ;;  %v4281_v21 = vmul.f32 %v4280_v23, %v17806_v59  ;;  %v4144_v1 = vsel %vm17904_vm9, %v17818_v14, %v4140_v27  ;;  %v4178_v35 = vsub.f32 1.0, %v4177_v0 }
 0xcde   : > { %v4294_v55 = vmul.f32 %v4293_v4, %v17806_v59  ;;  %v4197_v43 = vmul.f32 %v4196_v33, %v17852_v34  ;;  %vm4062_vm11 = vweird.f32 %v17845_v32  ;;  %v4068_v11 = vor.u32 1.1754944e-38, %v4067_v13 }
 0xcdf   : > { %v4185_v30 = vand.u32 2147483647, %v17828_v53  ;;  %v4208_v50 = vmul.f32 %v4207_v31, %v17852_v34  ;;  %v4060_v25 = vadd.f32 %v17845_v32, %v4059_v48  ;;  %v4243_v14 = vmul.f32 %v4242_v60, %v17774_v28  ;;  %vm17940_vm13 = vmor %vm4061_vm10, %vm4062_vm11 }
 0xce0   : > { %v17926_v37 = vadd.f32 1.0, %v4294_v55  ;;  %v4315_v18 = vmul.f32 2.1237322e-06, %v17898_v20  ;;  %v4149_v45 = vsel %vm17877_vm8, %v4148_v15, %v4144_v1  ;;  %v4282_v3 = vadd.f32 0.18741608, %v4281_v21 }
 0xce1   : > { %v4209_v58 = vadd.f32 0.014752088, %v4208_v50  ;;  %v4326_v47 = vmul.f32 3.8918573e-05, %v17898_v20  ;;  %v4179_v23 = vmul.f32 %v17871_v9, %v4178_v35  ;;  %v17933_v6 = vor.u32 1.1754944e-38, %v4187_v61 }
 0xce2   : > { %15344 = vrcp.f32 %v17926_v37  ;;  %v4198_v8 = vadd.f32 0.0036580483, %v4197_v43  ;;  %vm4182_vm14 = vweird.f32 %v17871_v9  ;;  %v4316_v56 = vadd.f32 0.00028619796, %v4315_v18 }
 0xce3   : > { %v15343_v27 = vpop.eup %15342  ;;  %v4210_v15 = vmul.f32 %v4209_v58, %v17852_v34  ;;  %v4327_v0 = vadd.f32 0.001143296, %v4326_v47  ;;  %v17947_v33 = vmul.f32 %v4149_v45, %v17858_v42  ;;  %v4064_v19 = vsel %vm17940_vm13, %v17845_v32, %v4060_v25 }
 0xce4   : > { %vm4181_vm15 = vweird.f32 %v17828_v53  ;;  %v4244_v36 = vadd.f32 1.1283791, %v4243_v14  ;;  %v4257_v13 = vmul.f32 %v15343_v27, %v17892_v41  ;;  %v4283_v4 = vmul.f32 %v4282_v3, %v17806_v59 }
 0xce5   : > { %v4211_v31 = vadd.f32 0.112945676, %v4210_v15  ;;  %v4317_v48 = vmul.f32 %v4316_v56, %v17898_v20  ;;  %v4328_v60 = vmul.f32 %v4327_v0, %v17898_v20  ;;  %v4180_v51 = vadd.f32 %v17871_v9, %v4179_v23  ;;  %vm17980_vm5 = vmor %vm4181_vm15, %vm4182_vm14 }
 0xce6   : > { %v4258_v42 = vsub.f32 1.0, %v4257_v13  ;;  %v4265_v61 = vand.u32 2147483647, %v17892_v41  ;;  %v4199_v21 = vmul.f32 %v4198_v8, %v17852_v34  ;;  %v4267_v32 = vand.u32 2147483648, %v17892_v41 }
 0xce7   : > { %v4212_v1 = vmul.f32 %v4211_v31, %v17852_v34  ;;  %v4318_v35 = vadd.f32 0.0036580483, %v4317_v48  ;;  %v4329_v55 = vadd.f32 0.014752088, %v4328_v60  ;;  %v4069_v59 = vsel %vm17918_vm12, %v4068_v11, %v4064_v19 }
 0xce8   : > { %v15345_v43 = vpop.eup %15344  ;;  %v4245_v50 = vmul.f32 %v4244_v36, %v17757_v5  ;;  %v4259_v25 = vmul.f32 %v15343_v27, %v4258_v42  ;;  %vm4262_vm0 = vweird.f32 %v15343_v27  ;;  %vm17965_vm1 = vcmp.eq.f32.partialorder %v4185_v30, 8.507059e+37 }
 0xce9   : > { %vm4261_vm2 = vweird.f32 %v17892_v41  ;;  %v4284_v18 = vadd.f32 1.1283791, %v4283_v4  ;;  %v4297_v45 = vmul.f32 %v15345_v43, %v17926_v37  ;;  %v4213_v3 = vadd.f32 0.4994258, %v4212_v1 }
 0xcea   : > { %v4260_v58 = vadd.f32 %v15343_v27, %v4259_v25  ;;  %vm4266_vm3 = vcmp.eq.f32.partialorder %v4265_v61, 8.507059e+37  ;;  %v4200_v47 = vadd.f32 0.05243302, %v4199_v21  ;;  %v4330_v38 = vmul.f32 %v4329_v55, %v17898_v20  ;;  %vm4263_vm4 = vmor %vm4261_vm2, %vm4262_vm0 }
 0xceb   : > { %v4268_v11 = vor.u32 1.1754944e-38, %v4267_v32  ;;  %v4298_v5 = vsub.f32 1.0, %v4297_v45  ;;  %v4214_v23 = vmul.f32 %v4213_v3, %v17852_v34  ;;  %v4319_v30 = vmul.f32 %v4318_v35, %v17898_v20 }
 0xcec   : > { %v4264_v8 = vsel %vm4263_vm4, %v15343_v27, %v4260_v58  ;;  %v4305_v28 = vand.u32 2147483647, %v17926_v37  ;;  %v4307_v41 = vand.u32 2147483648, %v17926_v37  ;;  %v4331_v15 = vadd.f32 0.112945676, %v4330_v38 }
 0xced   : > { %v4269_v0 = vsel %vm4266_vm3, %v4268_v11, %v4264_v8  ;;  %v4299_v19 = vmul.f32 %v15345_v43, %v4298_v5  ;;  %vm4302_vm6 = vweird.f32 %v15345_v43  ;;  %v4215_v36 = vadd.f32 1.0, %v4214_v23 }
 0xcee   : > { %v4184_v27 = vsel %vm17980_vm5, %v17871_v9, %v4180_v51  ;;  %v4270_v13 = vmul.f32 %v4269_v0, %v4245_v50  ;;  %v4201_v4 = vmul.f32 %v4200_v47, %v17852_v34  ;;  %v4332_v31 = vmul.f32 %v4331_v15, %v17898_v20 }
 0xcef   : > { %v4300_v48 = vadd.f32 %v15345_v43, %v4299_v19  ;;  %vm4301_vm7 = vweird.f32 %v17926_v37  ;;  %15346 = vrcp.f32 %v4215_v36  ;;  %v4320_v53 = vadd.f32 0.05243302, %v4319_v30 }
 0xcf0   : > { %v11344_v60 = vclamps-f32 %v17947_v33, 1.0  ;;  %v11347_v42 = vclamps-f32 %v4270_v13, 1.0  ;;  %vm4303_vm8 = vmor %vm4301_vm7, %vm4302_vm6  ;;  %v4308_v61 = vor.u32 1.1754944e-38, %v4307_v41  ;;  %v4333_v21 = vadd.f32 0.4994258, %v4332_v31 }
 0xcf1   : > { %v4070_v32 = vmul.f32 %v4069_v59, %v17895_v49  ;;  %v4285_v9 = vmul.f32 %v4284_v18, %v17779_v26  ;;  %v4304_v51 = vsel %vm4303_vm8, %v15345_v43, %v4300_v48  ;;  %vm4306_vm9 = vcmp.eq.f32.partialorder %v4305_v28, 8.507059e+37  ;;  %v14247_v31 = vld [vmem:[#allocation26 + $0x128] sm:$0xf0]  ;;  %v11780_v48 = vld [vmem:[#allocation26 + $0x258] sm:$0xf] }
 0xcf2   : > { %v4189_v1 = vsel %vm17965_vm1, %v17933_v6, %v4184_v27  ;;  %v4366_v35 = vadd.f32 1.0, %v11347_v42  ;;  %v4309_v37 = vsel %vm4306_vm9, %v4308_v61, %v4304_v51  ;;  %v4202_v55 = vadd.f32 0.18741608, %v4201_v4  ;;  %v14287_v61 = vld [vmem:[#allocation26 + $0x268] sm:$0xf0] }
 0xcf3   : > { %v4165_v33 = vmul.f32 %v17874_v2, %v17731_v12  ;;  %v4310_v50 = vmul.f32 %v4309_v37, %v4285_v9  ;;  %v4321_v25 = vmul.f32 %v4320_v53, %v17898_v20  ;;  %v4334_v45 = vmul.f32 %v4333_v21, %v17898_v20  ;;  %v11940_v21 = vld [vmem:[#allocation26 + $0x398] sm:$0xf] }
 0xcf4   : > { %v4378_v26 = vmul.f32 %v17854_v63, %v17831_v22  ;;  %v3691_v49 = vmul.f32 0.5, %v17705_v16  ;;  %v4382_v43 = vmul.f32 %v4366_v35, %v17838_v44  ;;  %v3695_v6 = vmul.f32 0.5, %v17768_v40 }
 0xcf5   : > { %v15347_v59 = vpop.eup %15346  ;;  %v4363_v14 = vadd.f32 1.0, %v11344_v60  ;;  %v18005_v18 = vmul.f32 %v4189_v1, %v4165_v33  ;;  %v11348_v3 = vclamps-f32 %v4310_v50, 1.0  ;;  %v18007_v12 = vadd.f32 1.0, %v4334_v45  ;;  %v18040_v1 = vld [vmem:[#allocation25] ss:$0 sm:$0xff] }
 0xcf6   : > { %v11342_v2 = vclamps-f32 %v4070_v32, 1.0  ;;  %v4203_v58 = vmul.f32 %v4202_v55, %v17852_v34  ;;  %v4217_v47 = vmul.f32 %v15347_v59, %v4215_v36  ;;  %v4390_v38 = vpack.c.bf16 %v4382_v43, %v4378_v26  ;;  %v14327_v32 = vld [vmem:[#allocation26 + $0x3a8] sm:$0xf0]  ;;  %v12100_v55 = vld [vmem:[#allocation26 + $0x4d8] sm:$0xf] }
 0xcf7   : > { %v4367_v11 = vadd.f32 1.0, %v11348_v3  ;;  %v4225_v22 = vand.u32 2147483647, %v4215_v36  ;;  %v4322_v63 = vadd.f32 0.18741608, %v4321_v25  ;;  %15348 = vrcp.f32 %v18007_v12 }
 0xcf8   : > { %v18012_v16 = vmul.f32 0.5, %v17717_v7  ;;  %v4218_v40 = vsub.f32 1.0, %v4217_v47  ;;  %v4227_v44 = vand.u32 2147483648, %v4215_v36  ;;  %4685 = vmatmul.bf16.gmra.mxu0 %v4390_v38  ;;  %v4379_v5 = vmul.f32 %v4363_v14, %v3691_v49  ;;  %v11600_v26 = vld [vmem:[#allocation26 + $0xf0] sm:$0xf] }
 0xcf9   : > { %v4383_v23 = vmul.f32 %v4367_v11, %v3695_v6  ;;  %v18015_v30 = vmul.f32 0.5, %v17811_v57  ;;  %vm4222_vm10 = vweird.f32 %v15347_v59  ;;  %v18017_v34 = vadd.f32 1.0, %v11342_v2  ;;  %v14242_v49 = vld [vmem:[#allocation26 + $0x100] sm:$0xf0]  ;;  %v11760_v6 = vld [vmem:[#allocation26 + $0x230] sm:$0xf] }
 0xcfa   : > { %v11345_v8 = vclamps-f32 %v18005_v18, 1.0  ;;  %v4204_v28 = vadd.f32 1.1283791, %v4203_v58  ;;  %v4219_v41 = vmul.f32 %v15347_v59, %v4218_v40  ;;  %vm4221_vm11 = vweird.f32 %v4215_v36  ;;  %v11620_v36 = vld [vmem:[#allocation26 + $0x118] sm:$0xf] }
 0xcfb   : > { %vm18020_vm12 = vcmp.eq.f32.partialorder %v4225_v22, 8.507059e+37  ;;  %v4323_v7 = vmul.f32 %v4322_v63, %v17898_v20  ;;  %v4391_v56 = vpack.c.bf16 %v4383_v23, %v4379_v5  ;;  %vm18025_vm13 = vmor %vm4221_vm11, %vm4222_vm10  ;;  %v4228_v57 = vor.u32 1.1754944e-38, %v4227_v44  ;;  %v11920_v14 = vld [vmem:[#allocation26 + $0x370] sm:$0xf]  ;;  %v14322_v38 = vld [vmem:[#allocation26 + $0x380] sm:$0xf0] }
 0xcfc   : > { %v4220_v0 = vadd.f32 %v15347_v59, %v4219_v41  ;;  %v4345_v27 = vand.u32 2147483647, %v18007_v12  ;;  %v4347_v13 = vand.u32 2147483648, %v18007_v12  ;;  %v4205_v53 = vmul.f32 %v4204_v28, %v17824_v54  ;;  %v14367_v54 = vld [vmem:[#allocation26 + $0x4e8] sm:$0xf0] }
 0xcfd   : > { %v18031_v4 = vpop.eup %15348  ;;  %4704 = vmatmul.bf16.gmra.mxu1 %v4391_v56  ;;  %v11621_v42 = vor.u32 %v14247_v31, %v11620_v36  ;;  %v4324_v51 = vadd.f32 1.1283791, %v4323_v7  ;;  %v11781_v35 = vor.u32 %v14287_v61, %v11780_v48  ;;  %v11941_v37 = vor.u32 %v14327_v32, %v11940_v21  ;;  %v12080_v11 = vld [vmem:[#allocation26 + $0x4b0] sm:$0xf]  ;;  %v14362_v63 = vld [vmem:[#allocation26 + $0x4c0] sm:$0xf0] }
 0xcfe   : > { %v4224_v20 = vsel %vm18025_vm13, %v15347_v59, %v4220_v0  ;;  %v4337_v60 = vmul.f32 %v18031_v4, %v18007_v12  ;;  %vm18042_vm14 = vcmp.eq.f32.partialorder %v4345_v27, 8.507059e+37  ;;  %v12101_v45 = vor.u32 %v14367_v54, %v12100_v55  ;;  %v14282_v59 = vld [vmem:[#allocation26 + $0x240] sm:$0xf0]  ;;  %v11580_v40 = vld [vmem:[#allocation26 + $0xc8] sm:$0xf] }
 0xcff   : > { %v4229_v9 = vsel %vm18020_vm12, %v4228_v57, %v4224_v20  ;;  %8690 = vmatpush.bf16.msra.mxu3 %v11621_v42  ;;  %vm4342_vm15 = vweird.f32 %v18031_v4  ;;  %8703 = vmatpush.bf16.msrb.mxu0 %v11781_v35  ;;  %v11601_v43 = vor.u32 %v14242_v49, %v11600_v26  ;;  %v4348_v58 = vor.u32 1.1754944e-38, %v4347_v13  ;;  %v14237_v44 = vld [vmem:[#allocation26 + $0xd8] sm:$0xf0]  ;;  %v11740_v56 = vld [vmem:[#allocation26 + $0x208] sm:$0xf]  ;;  %v4681_v20 = vpop.f32.mrf.mxu0 }
 0xd00   : > { %v4230_v33 = vmul.f32 %v4229_v9, %v4205_v53  ;;  %v4338_v50 = vsub.f32 1.0, %v4337_v60  ;;  %8716 = vmatpush.bf16.msra.mxu1 %v11941_v37  ;;  %8729 = vmatpush.bf16.msrb.mxu2 %v12101_v45  ;;  %v11761_v47 = vor.u32 %v14282_v59, %v11760_v6  ;;  %vm4341_vm0 = vweird.f32 %v18007_v12  ;;  %v14277_v0 = vld [vmem:[#allocation26 + $0x218] sm:$0xf0]  ;;  %v11900_v27 = vld [vmem:[#allocation26 + $0x348] sm:$0xf]  ;;  %v4700_v6 = vpop.f32.mrf.mxu1 }
 0xd01   : > { %v11921_v22 = vor.u32 %v14322_v38, %v11920_v14  ;;  %vm18052_vm1 = vmor %vm4341_vm0, %vm4342_vm15  ;;  %v12081_v15 = vor.u32 %v14362_v63, %v12080_v11  ;;  %v11581_v7 = vor.u32 %v14237_v44, %v11580_v40  ;;  %v4377_v12 = vmul.f32 %v18017_v34, %v18012_v16  ;;  %v14317_v13 = vld [vmem:[#allocation26 + $0x358] sm:$0xf0]  ;;  %v12060_v36 = vld [vmem:[#allocation26 + $0x488] sm:$0xf] }
 0xd02   : > { %v11346_v3 = vclamps-f32 %v4230_v33, 1.0  ;;  %v4339_v2 = vmul.f32 %v18031_v4, %v4338_v50  ;;  %v11741_v57 = vor.u32 %v14277_v0, %v11740_v56  ;;  %v4325_v48 = vmul.f32 %v4324_v51, %v17869_v39  ;;  %v14357_v16 = vld [vmem:[#allocation26 + $0x498] sm:$0xf0]  ;;  %v11560_v34 = vld [vmem:[#allocation26 + $0xa0] sm:$0xf] }
 0xd03   : > { %8691 = vmatpush.bf16.msra.mxu3 %v11601_v43  ;;  %8704 = vmatpush.bf16.msrb.mxu0 %v11761_v47  ;;  %v11901_v60 = vor.u32 %v14317_v13, %v11900_v27  ;;  %v14232_v42 = vld [vmem:[#allocation26 + $0xb0] sm:$0xf0]  ;;  %v12061_v21 = vor.u32 %v14357_v16, %v12060_v36  ;;  %v11720_v32 = vld [vmem:[#allocation26 + $0x1e0] sm:$0xf]  ;;  %v11540_v45 = vld [vmem:[#allocation26 + $0x78] sm:$0xf] }
 0xd04   : > { %v4365_v5 = vadd.f32 1.0, %v11346_v3  ;;  %v4340_v23 = vadd.f32 %v18031_v4, %v4339_v2  ;;  %8717 = vmatpush.bf16.msra.mxu1 %v11921_v22  ;;  %8730 = vmatpush.bf16.msrb.mxu2 %v12081_v15  ;;  %v14272_v9 = vld [vmem:[#allocation26 + $0x1f0] sm:$0xf0]  ;;  %v11880_v35 = vld [vmem:[#allocation26 + $0x320] sm:$0xf]  ;;  %v11561_v51 = vor.u32 %v14232_v42, %v11560_v34  ;;  %v4364_v49 = vadd.f32 1.0, %v11345_v8 }
 0xd05   : > { %v14312_v55 = vld [vmem:[#allocation26 + $0x330] sm:$0xf0]  ;;  %v11721_v33 = vor.u32 %v14272_v9, %v11720_v32  ;;  %v14227_v25 = vld [vmem:[#allocation26 + $0x88] sm:$0xf0]  ;;  %v11700_v26 = vld [vmem:[#allocation26 + $0x1b8] sm:$0xf] }
 0xd06   : > { %v4381_v31 = vmul.f32 %v4365_v5, %v18015_v30  ;;  %v4344_v53 = vsel %vm18052_vm1, %v18031_v4, %v4340_v23  ;;  %v12040_v4 = vld [vmem:[#allocation26 + $0x460] sm:$0xf]  ;;  %v14352_v54 = vld [vmem:[#allocation26 + $0x470] sm:$0xf0]  ;;  %v11881_v50 = vor.u32 %v14312_v55, %v11880_v35  ;;  %v14267_v14 = vld [vmem:[#allocation26 + $0x1c8] sm:$0xf0]  ;;  %v11541_v18 = vor.u32 %v14227_v25, %v11540_v45 }
 0xd07   : > { %v4349_v61 = vsel %vm18042_vm14, %v4348_v58, %v4344_v53  ;;  %8692 = vmatpush.bf16.msra.mxu3 %v11581_v7  ;;  %8705 = vmatpush.bf16.msrb.mxu0 %v11741_v57  ;;  %v12041_v59 = vor.u32 %v14352_v54, %v12040_v4  ;;  %v11860_v3 = vld [vmem:[#allocation26 + $0x2f8] sm:$0xf]  ;;  %v3692_v2 = vmul.f32 0.5, %v17720_v24  ;;  %v14307_v58 = vld [vmem:[#allocation26 + $0x308] sm:$0xf0]  ;;  %v3696_v38 = vmul.f32 0.5, %v17843_v62 }
 0xd08   : > { %v4350_v30 = vmul.f32 %v4349_v61, %v4325_v48  ;;  %v4389_v37 = vpack.c.bf16 %v4381_v31, %v4377_v12  ;;  %8718 = vmatpush.bf16.msra.mxu1 %v11901_v60  ;;  %8731 = vmatpush.bf16.msrb.mxu2 %v12061_v21  ;;  %v12020_v47 = vld [vmem:[#allocation26 + $0x438] sm:$0xf]  ;;  %v14347_v8 = vld [vmem:[#allocation26 + $0x448] sm:$0xf0]  ;;  %v11520_v40 = vld [vmem:[#allocation26 + $0x50] sm:$0xf]  ;;  %v11701_v5 = vor.u32 %v14267_v14, %v11700_v26  ;;  %v4702_v35 = vpop.f32.mrf.mxu1 }
 0xd09   : > { %v11861_v23 = vor.u32 %v14307_v58, %v11860_v3  ;;  %v14222_v28 = vld [vmem:[#allocation26 + $0x60] sm:$0xf0]  ;;  %v11680_v24 = vld [vmem:[#allocation26 + $0x190] sm:$0xf]  ;;  %v4380_v15 = vmul.f32 %v4364_v49, %v3692_v2  ;;  %v12021_v0 = vor.u32 %v14347_v8, %v12020_v47  ;;  %v11500_v60 = vld [vmem:[#allocation26 + $0x28] sm:$0xf] }
 0xd0a   : > { %v11349_v43 = vclamps-f32 %v4350_v30, 1.0  ;;  %4666 = vmatmul.bf16.gmra.mxu3 %v4389_v37  ;;  %v11840_v62 = vld [vmem:[#allocation26 + $0x2d0] sm:$0xf]  ;;  %v14302_v56 = vld [vmem:[#allocation26 + $0x2e0] sm:$0xf0]  ;;  %v11521_v27 = vor.u32 %v14222_v28, %v11520_v40  ;;  %vm9667_vm2 = vcmask 1040384  }
 0xd0b   : > { %8693 = vmatpush.bf16.msra.mxu3 %v11561_v51  ;;  %8706 = vmatpush.bf16.msrb.mxu0 %v11721_v33  ;;  %v12000_v36 = vld [vmem:[#allocation26 + $0x410] sm:$0xf]  ;;  %v14342_v31 = vld [vmem:[#allocation26 + $0x420] sm:$0xf0]  ;;  %v14217_v16 = vld [vmem:[#allocation26 + $0x38] sm:$0xf0] }
 0xd0c   : > { %v4662_v41 = vpop.f32.mrf.mxu3  ;;  %v4368_v11 = vadd.f32 1.0, %v11349_v43  ;;  %8719 = vmatpush.bf16.msra.mxu1 %v11881_v50  ;;  %8732 = vmatpush.bf16.msrb.mxu2 %v12041_v59  ;;  %v11660_v34 = vld [vmem:[#allocation26 + $0x168] sm:$0xf]  ;;  %v14257_v42 = vld [vmem:[#allocation26 + $0x178] sm:$0xf0]  ;;  %v12001_v9 = vor.u32 %v14342_v31, %v12000_v36  ;;  %v11501_v30 = vor.u32 %v14217_v16, %v11500_v60 }
 0xd0d   : > { %v4663_v19 = vadd.f32 %v18040_v1, %v4662_v41  ;;  %v14262_v41 = vld [vmem:[#allocation26 + $0x1a0] sm:$0xf0]  ;;  %v11820_v61 = vld [vmem:[#allocation26 + $0x2a8] sm:$0xf]  ;;  %v14297_v21 = vld [vmem:[#allocation26 + $0x2b8] sm:$0xf0]  ;;  %v11661_v55 = vor.u32 %v14257_v42, %v11660_v34 }
 0xd0e   : > { %v4384_v7 = vmul.f32 %v4368_v11, %v3696_v38  ;;  %v11681_v13 = vor.u32 %v14262_v41, %v11680_v24  ;;  %v11980_v37 = vld [vmem:[#allocation26 + $0x3e8] sm:$0xf]  ;;  %v11821_v4 = vor.u32 %v14297_v21, %v11820_v61  ;;  %v11480_v54 = vld [vmem:[#allocation26] sm:$0xf]  ;;  %v14212_v33 = vld [vmem:[#allocation26 + $0x10] sm:$0xf0] }
 0xd0f   : > { %v4682_v39 = vadd.f32 %v4681_v20, %v4663_v19  ;;  %v4683_v19 = vpop.f32.mrf.mxu0  ;;  %8694 = vmatpush.bf16.msra.mxu3 %v11541_v18  ;;  %8707 = vmatpush.bf16.msrb.mxu0 %v11701_v5  ;;  %v11841_v20 = vor.u32 %v14302_v56, %v11840_v62  ;;  %v14407_v50 = vld [vmem:[#allocation26 + $0x628] sm:$0xf0]  ;;  %v11640_v45 = vld [vmem:[#allocation26 + $0x140] sm:$0xf]  ;;  %v14252_v25 = vld [vmem:[#allocation26 + $0x150] sm:$0xf0]  ;;  %v11481_v59 = vor.u32 %v14212_v33, %v11480_v54 }
 0xd10   : > { %v4392_v12 = vpack.c.bf16 %v4384_v7, %v4380_v15  ;;  %8720 = vmatpush.bf16.msra.mxu1 %v11861_v23  ;;  %8733 = vmatpush.bf16.msrb.mxu2 %v12021_v0  ;;  %v11800_v49 = vld [vmem:[#allocation26 + $0x280] sm:$0xf]  ;;  %v14292_v43 = vld [vmem:[#allocation26 + $0x290] sm:$0xf0]  ;;  %v11641_v47 = vor.u32 %v14252_v25, %v11640_v45  ;;  %v14447_v18 = vld [vmem:[#allocation26 + $0x768] sm:$0xf0] }
 0xd11   : > { %v4701_v22 = vadd.f32 %v4700_v6, %v4682_v39  ;;  %v14337_v39 = vld [vmem:[#allocation26 + $0x3f8] sm:$0xf0]  ;;  %v11960_v14 = vld [vmem:[#allocation26 + $0x3c0] sm:$0xf]  ;;  %v14332_v3 = vld [vmem:[#allocation26 + $0x3d0] sm:$0xf0]  ;;  %v11801_v38 = vor.u32 %v14292_v43, %v11800_v49 }
 0xd12   : > { %4723 = vmatmul.bf16.gmra.mxu2 %v4392_v12  ;;  %v11981_v26 = vor.u32 %v14337_v39, %v11980_v37  ;;  %v12580_v8 = vld [vmem:[#allocation26 + $0x898] sm:$0xf]  ;;  %v14527_v23 = vld [vmem:[#allocation26 + $0x9e8] sm:$0xf0]  ;;  %v12240_v41 = vld [vmem:[#allocation26 + $0x5f0] sm:$0xf] }
 0xd13   : > { %8695 = vmatpush.bf16.msra.mxu3 %v11521_v27  ;;  %8708 = vmatpush.bf16.msrb.mxu0 %v11681_v13  ;;  %v12740_v5 = vld [vmem:[#allocation26 + $0x9d8] sm:$0xf]  ;;  %v14402_v15 = vld [vmem:[#allocation26 + $0x600] sm:$0xf0]  ;;  %v12560_v56 = vld [vmem:[#allocation26 + $0x870] sm:$0xf] }
 0xd14   : > { %v4664_v63 = vpop.f32.mrf.mxu3  ;;  %8721 = vmatpush.bf16.msra.mxu1 %v11841_v20  ;;  %8734 = vmatpush.bf16.msrb.mxu2 %v12001_v9  ;;  %v12741_v24 = vor.u32 %v14527_v23, %v12740_v5  ;;  %v12241_v7 = vor.u32 %v14402_v15, %v12240_v41  ;;  %v14442_v62 = vld [vmem:[#allocation26 + $0x740] sm:$0xf0]  ;;  %v12220_v13 = vld [vmem:[#allocation26 + $0x5c8] sm:$0xf]  ;;  %v14397_v31 = vld [vmem:[#allocation26 + $0x5d8] sm:$0xf0] }
 0xd15   : > { %v4665_v44 = vadd.f32 %v18040_v1, %v4664_v63  ;;  %v12420_v63 = vld [vmem:[#allocation26 + $0x758] sm:$0xf]  ;;  %v14482_v0 = vld [vmem:[#allocation26 + $0x880] sm:$0xf0]  ;;  %v14437_v20 = vld [vmem:[#allocation26 + $0x718] sm:$0xf0] }
 0xd16   : > { %v12421_v40 = vor.u32 %v14447_v18, %v12420_v63  ;;  %v14522_v27 = vld [vmem:[#allocation26 + $0x9c0] sm:$0xf0]  ;;  %v12540_v60 = vld [vmem:[#allocation26 + $0x848] sm:$0xf]  ;;  %v14477_v34 = vld [vmem:[#allocation26 + $0x858] sm:$0xf0] }
 0xd17   : > { %v4684_v53 = vadd.f32 %v4683_v19, %v4665_v44  ;;  %8696 = vmatpush.bf16.msra.mxu3 %v11501_v30  ;;  %8709 = vmatpush.bf16.msrb.mxu0 %v11661_v55  ;;  %v14487_v44 = vld [vmem:[#allocation26 + $0x8a8] sm:$0xf0]  ;;  %v12561_v19 = vor.u32 %v14482_v0, %v12560_v56  ;;  %v12700_v42 = vld [vmem:[#allocation26 + $0x988] sm:$0xf]  ;;  %v14517_v61 = vld [vmem:[#allocation26 + $0x998] sm:$0xf0]  ;;  %v12541_v21 = vor.u32 %v14477_v34, %v12540_v60 }
 0xd18   : > { %v4719_v57 = vpop.f32.mrf.mxu2  ;;  %8722 = vmatpush.bf16.msra.mxu1 %v11821_v4  ;;  %8735 = vmatpush.bf16.msrb.mxu2 %v11981_v26  ;;  %v12581_v28 = vor.u32 %v14487_v44, %v12580_v8  ;;  %v12200_v9 = vld [vmem:[#allocation26 + $0x5a0] sm:$0xf]  ;;  %v14432_v39 = vld [vmem:[#allocation26 + $0x6f0] sm:$0xf0]  ;;  %v12180_v45 = vld [vmem:[#allocation26 + $0x578] sm:$0xf] }
 0xd19   : > { %v4720_v48 = vadd.f32 %v4719_v57, %v4701_v22  ;;  %v4703_v51 = vadd.f32 %v4702_v35, %v4684_v53  ;;  %v11961_v22 = vor.u32 %v14332_v3, %v11960_v14  ;;  %v12720_v57 = vld [vmem:[#allocation26 + $0x9b0] sm:$0xf]  ;;  %v12380_v53 = vld [vmem:[#allocation26 + $0x708] sm:$0xf]  ;;  %v14392_v35 = vld [vmem:[#allocation26 + $0x5b0] sm:$0xf0] }
 0xd1a   : > { %v12721_v36 = vor.u32 %v14522_v27, %v12720_v57  ;;  %v12381_v16 = vor.u32 %v14437_v20, %v12380_v53  ;;  %v12201_v30 = vor.u32 %v14392_v35, %v12200_v9  ;;  %v12360_v37 = vld [vmem:[#allocation26 + $0x6e0] sm:$0xf]  ;;  %v14472_v4 = vld [vmem:[#allocation26 + $0x830] sm:$0xf0]  ;;  %v14387_v25 = vld [vmem:[#allocation26 + $0x588] sm:$0xf0] }
 0xd1b   : > { %v4729_v32 = vadd.f32 %v4720_v48, %v17125_v29  ;;  %v12260_v29 = vld [vmem:[#allocation26 + $0x618] sm:$0xf]  ;;  %8697 = vmatpush.bf16.msra.mxu3 %v11481_v59  ;;  %8710 = vmatpush.bf16.msrb.mxu0 %v11641_v47  ;;  %v12221_v48 = vor.u32 %v14397_v31, %v12220_v13  ;;  %v12361_v55 = vor.u32 %v14432_v39, %v12360_v37  ;;  %v12680_v54 = vld [vmem:[#allocation26 + $0x960] sm:$0xf]  ;;  %v14512_v33 = vld [vmem:[#allocation26 + $0x970] sm:$0xf0] }
 0xd1c   : > { %v12261_v58 = vor.u32 %v14407_v50, %v12260_v29  ;;  %8723 = vmatpush.bf16.msra.mxu1 %v11801_v38  ;;  %8736 = vmatpush.bf16.msrb.mxu2 %v11961_v22  ;;  %v12681_v50 = vor.u32 %v14512_v33, %v12680_v54  ;;  %v12181_v26 = vor.u32 %v14387_v25, %v12180_v45  ;;  %v12340_v49 = vld [vmem:[#allocation26 + $0x6b8] sm:$0xf]  ;;  %v14427_v43 = vld [vmem:[#allocation26 + $0x6c8] sm:$0xf0]  ;;  %v12160_v38 = vld [vmem:[#allocation26 + $0x550] sm:$0xf] }
 0xd1d   : > { %4733 = vst [vmem:[%s18075_s0] sm:$0xff] %v4729_v32  ;;  %v12701_v32 = vor.u32 %v14517_v61, %v12700_v42  ;;  %v12341_v59 = vor.u32 %v14427_v43, %v12340_v49  ;;  %v14467_v14 = vld [vmem:[#allocation26 + $0x808] sm:$0xf0]  ;;  %v12660_v3 = vld [vmem:[#allocation26 + $0x938] sm:$0xf]  ;;  %v12320_v63 = vld [vmem:[#allocation26 + $0x690] sm:$0xf] }
 0xd1e   : > { %v14422_v18 = vld [vmem:[#allocation26 + $0x6a0] sm:$0xf0]  ;;  %v12480_v8 = vld [vmem:[#allocation26 + $0x7d0] sm:$0xf]  ;;  %v12140_v41 = vld [vmem:[#allocation26 + $0x528] sm:$0xf] }
 0xd1f   : > { %8742 = vmatpush.bf16.msrb.mxu3 %v12261_v58  ;;  %8755 = vmatpush.bf16.msra.mxu0 %v12421_v40  ;;  %v12321_v40 = vor.u32 %v14422_v18, %v12320_v63  ;;  %v14462_v44 = vld [vmem:[#allocation26 + $0x7e0] sm:$0xf0]  ;;  %v12640_v5 = vld [vmem:[#allocation26 + $0x910] sm:$0xf]  ;;  %v14377_v15 = vld [vmem:[#allocation26 + $0x538] sm:$0xf0] }
 0xd20   : > { %v4721_v6 = vpop.f32.mrf.mxu2  ;;  %8768 = vmatpush.bf16.msrb.mxu1 %v12581_v28  ;;  %8781 = vmatpush.bf16.msra.mxu2 %v12741_v24  ;;  %v14502_v23 = vld [vmem:[#allocation26 + $0x920] sm:$0xf0]  ;;  %v12481_v28 = vor.u32 %v14462_v44, %v12480_v8  ;;  %v12460_v56 = vld [vmem:[#allocation26 + $0x7a8] sm:$0xf]  ;;  %v14497_v57 = vld [vmem:[#allocation26 + $0x8f8] sm:$0xf0] }
 0xd21   : > { %v4722_v2 = vadd.f32 %v4721_v6, %v4703_v51  ;;  %v12520_v51 = vld [vmem:[#allocation26 + $0x820] sm:$0xf]  ;;  %v12500_v6 = vld [vmem:[#allocation26 + $0x7f8] sm:$0xf]  ;;  %v12641_v24 = vor.u32 %v14502_v23, %v12640_v5  ;;  %v14372_v31 = vld [vmem:[#allocation26 + $0x510] sm:$0xf0] }
 0xd22   : > { %v12521_v29 = vor.u32 %v14472_v4, %v12520_v51  ;;  %v12501_v58 = vor.u32 %v14467_v14, %v12500_v6  ;;  %v12280_v53 = vld [vmem:[#allocation26 + $0x640] sm:$0xf]  ;;  %v14412_v20 = vld [vmem:[#allocation26 + $0x650] sm:$0xf0]  ;;  %v12900_v25 = vld [vmem:[#allocation26 + $0xb18] sm:$0xf] }
 0xd23   : > { %v4730_v11 = vadd.f32 %v4722_v2, %v17282_v52  ;;  %v12400_v52 = vld [vmem:[#allocation26 + $0x730] sm:$0xf]  ;;  %8743 = vmatpush.bf16.msrb.mxu3 %v12241_v7  ;;  %v14507_v2 = vld [vmem:[#allocation26 + $0x948] sm:$0xf0]  ;;  %v12300_v7 = vld [vmem:[#allocation26 + $0x668] sm:$0xf]  ;;  %v12281_v60 = vor.u32 %v14412_v20, %v12280_v53 }
 0xd24   : > { %v12401_v12 = vor.u32 %v14442_v62, %v12400_v52  ;;  %8769 = vmatpush.bf16.msrb.mxu1 %v12561_v19  ;;  %8782 = vmatpush.bf16.msra.mxu2 %v12721_v36  ;;  %v12661_v47 = vor.u32 %v14507_v2, %v12660_v3  ;;  %v12141_v52 = vor.u32 %v14377_v15, %v12140_v41  ;;  %v14417_v62 = vld [vmem:[#allocation26 + $0x678] sm:$0xf0]  ;;  %v12620_v19 = vld [vmem:[#allocation26 + $0x8e8] sm:$0xf]  ;;  %v12120_v36 = vld [vmem:[#allocation26 + $0x500] sm:$0xf] }
 0xd25   : > { %4734 = vst [vmem:[%s18075_s0 + $0x8] sm:$0xff] %v4730_v11  ;;  %v14382_v11 = vld [vmem:[#allocation26 + $0x560] sm:$0xf0]  ;;  %v12301_v0 = vor.u32 %v14417_v62, %v12300_v7  ;;  %v12621_v13 = vor.u32 %v14497_v57, %v12620_v19  ;;  %v14452_v34 = vld [vmem:[#allocation26 + $0x790] sm:$0xf0]  ;;  %s16094_s0 = scalar_lea.hbm %s18654_s6, 32 }
 0xd26   : > { %8756 = vmatpush.bf16.msra.mxu0 %v12401_v12  ;;  %v12161_v22 = vor.u32 %v14382_v11, %v12160_v38  ;;  %v14457_v12 = vld [vmem:[#allocation26 + $0x7b8] sm:$0xf0]  ;;  %v12600_v42 = vld [vmem:[#allocation26 + $0x8c0] sm:$0xf]  ;;  %v13060_v49 = vld [vmem:[#allocation26 + $0xc58] sm:$0xf]  ;;  %p16096_p2 = scmp.lt.s32.totalorder %s16094_s0, %s16090_s5 }
 0xd27   : > { %8744 = vmatpush.bf16.msrb.mxu3 %v12221_v48  ;;  %v12461_v27 = vor.u32 %v14457_v12, %v12460_v56  ;;  %v12121_v48 = vor.u32 %v14372_v31, %v12120_v36  ;;  %v14607_v43 = vld [vmem:[#allocation26 + $0xc68] sm:$0xf0]  ;;  %v13220_v2 = vld [vmem:[#allocation26 + $0xd98] sm:$0xf]  ;;  %v12880_v8 = vld [vmem:[#allocation26 + $0xaf0] sm:$0xf] }
 0xd28   : > { %8770 = vmatpush.bf16.msrb.mxu1 %v12541_v21  ;;  %8783 = vmatpush.bf16.msra.mxu2 %v12701_v32  ;;  %v14492_v21 = vld [vmem:[#allocation26 + $0x8d0] sm:$0xf0]  ;;  %v13380_v38 = vld [vmem:[#allocation26 + $0xed8] sm:$0xf]  ;;  %v14687_v11 = vld [vmem:[#allocation26 + $0xee8] sm:$0xf0]  ;;  %v13061_v5 = vor.u32 %v14607_v43, %v13060_v49  ;;  %p16097_p3 = por %p16096_p2, %p16095_p0 }
 0xd29   : > { %v12601_v32 = vor.u32 %v14492_v21, %v12600_v42  ;;  %v13040_v23 = vld [vmem:[#allocation26 + $0xc30] sm:$0xf]  ;;  %v13381_v7 = vor.u32 %v14687_v11, %v13380_v38  ;;  %v14642_v56 = vld [vmem:[#allocation26 + $0xd80] sm:$0xf0]  ;;  %v14557_v36 = vld [vmem:[#allocation26 + $0xad8] sm:$0xf0] }
 0xd2a   : > { %8757 = vmatpush.bf16.msra.mxu0 %v12381_v16  ;;  %v12440_v16 = vld [vmem:[#allocation26 + $0x780] sm:$0xf]  ;;  %v13200_v62 = vld [vmem:[#allocation26 + $0xd70] sm:$0xf]  ;;  %v13020_v20 = vld [vmem:[#allocation26 + $0xc08] sm:$0xf]  ;;  %p16098_p7 = pnand %p16097_p3, %p16093_p13 }
 0xd2b   : > { %8745 = vmatpush.bf16.msrb.mxu3 %v12201_v30  ;;  %v12441_v61 = vor.u32 %v14452_v34, %v12440_v16  ;;  %v13360_v57 = vld [vmem:[#allocation26 + $0xeb0] sm:$0xf]  ;;  %v13180_v16 = vld [vmem:[#allocation26 + $0xd48] sm:$0xf]  ;;  %v14587_v38 = vld [vmem:[#allocation26 + $0xbc8] sm:$0xf0] }
 0xd2c   : > { %8771 = vmatpush.bf16.msrb.mxu1 %v12521_v29  ;;  %8784 = vmatpush.bf16.msra.mxu2 %v12681_v50  ;;  %v13340_v21 = vld [vmem:[#allocation26 + $0xe88] sm:$0xf]  ;;  %v13140_v11 = vld [vmem:[#allocation26 + $0xcf8] sm:$0xf] }
 0xd2e   : > { %8758 = vmatpush.bf16.msra.mxu0 %v12361_v55 }
 0xd2f   : > { %8746 = vmatpush.bf16.msrb.mxu3 %v12181_v26  ;;  %v14567_v26 = vld [vmem:[#allocation26 + $0xb28] sm:$0xf0] }
 0xd30   : > { %8772 = vmatpush.bf16.msrb.mxu1 %v12501_v58  ;;  %8785 = vmatpush.bf16.msra.mxu2 %v12661_v47  ;;  %v14647_v58 = vld [vmem:[#allocation26 + $0xda8] sm:$0xf0]  ;;  %v12901_v47 = vor.u32 %v14567_v26, %v12900_v25  ;;  %v14672_v25 = vld [vmem:[#allocation26 + $0xe70] sm:$0xf0] }
 0xd32   : > { %8759 = vmatpush.bf16.msra.mxu0 %v12341_v59 }
 0xd33   : > { %8747 = vmatpush.bf16.msrb.mxu3 %v12161_v22 }
 0xd34   : > { %8773 = vmatpush.bf16.msrb.mxu1 %v12481_v28  ;;  %8786 = vmatpush.bf16.msra.mxu2 %v12641_v24  ;;  %v14602_v28 = vld [vmem:[#allocation26 + $0xc40] sm:$0xf0] }
 0xd35   : > { %v13041_v31 = vor.u32 %v14602_v28, %v13040_v23 }
 0xd36   : > { %8760 = vmatpush.bf16.msra.mxu0 %v12321_v40  ;;  %v14562_v40 = vld [vmem:[#allocation26 + $0xb00] sm:$0xf0] }
 0xd37   : > { %8748 = vmatpush.bf16.msrb.mxu3 %v12141_v52  ;;  %v13221_v52 = vor.u32 %v14647_v58, %v13220_v2  ;;  %v12881_v19 = vor.u32 %v14562_v40, %v12880_v8  ;;  %v14667_v8 = vld [vmem:[#allocation26 + $0xe48] sm:$0xf0] }
 0xd38   : > { %8774 = vmatpush.bf16.msrb.mxu1 %v12461_v27  ;;  %8787 = vmatpush.bf16.msra.mxu2 %v12621_v13  ;;  %v14682_v27 = vld [vmem:[#allocation26 + $0xec0] sm:$0xf0]  ;;  %v12860_v13 = vld [vmem:[#allocation26 + $0xac8] sm:$0xf] }
 0xd39   : > { %v13361_v53 = vor.u32 %v14682_v27, %v13360_v57  ;;  %v12861_v42 = vor.u32 %v14557_v36, %v12860_v13  ;;  %v14622_v57 = vld [vmem:[#allocation26 + $0xce0] sm:$0xf0]  ;;  %v13280_v13 = vld [vmem:[#allocation26 + $0xe10] sm:$0xf] }
 0xd3a   : > { %8761 = vmatpush.bf16.msra.mxu0 %v12301_v0  ;;  %v14662_v36 = vld [vmem:[#allocation26 + $0xe20] sm:$0xf0] }
 0xd3b   : > { %8749 = vmatpush.bf16.msrb.mxu3 %v12121_v48  ;;  %v13201_v48 = vor.u32 %v14642_v56, %v13200_v62 }
 0xd3c   : > { %8775 = vmatpush.bf16.msrb.mxu1 %v12441_v61  ;;  %8788 = vmatpush.bf16.msra.mxu2 %v12601_v32  ;;  %v14637_v61 = vld [vmem:[#allocation26 + $0xd58] sm:$0xf0] }
 0xd3d   : > { %v14677_v32 = vld [vmem:[#allocation26 + $0xe98] sm:$0xf0] }
 0xd3e   : > { %8762 = vmatpush.bf16.msra.mxu0 %v12281_v60  ;;  %v14597_v60 = vld [vmem:[#allocation26 + $0xc18] sm:$0xf0] }
 0xd75   : > { %v4686_v9 = vpop.f32.mrf.mxu0 }
 0xd7a   : > { %v4705_v37 = vpop.f32.mrf.mxu1 }
 0xd7d   : > { %v4688_v29 = vpop.f32.mrf.mxu0 }
 0xd82   : > { %v4707_v6 = vpop.f32.mrf.mxu1 }
 0xd8d   : > { %v4667_v35 = vpop.f32.mrf.mxu3 }
 0xd8e   : > { %v4668_v30 = vadd.f32 %v18040_v1, %v4667_v35  ;;  %v14552_v35 = vld [vmem:[#allocation26 + $0xab0] sm:$0xf0] }
 0xd90   : > { %v4687_v39 = vadd.f32 %v4686_v9, %v4668_v30  ;;  %v12840_v9 = vld [vmem:[#allocation26 + $0xaa0] sm:$0xf]  ;;  %v13021_v30 = vor.u32 %v14597_v60, %v13020_v20  ;;  %v12940_v60 = vld [vmem:[#allocation26 + $0xb68] sm:$0xf] }
 0xd92   : > { %v4706_v51 = vadd.f32 %v4705_v37, %v4687_v39  ;;  %v13000_v37 = vld [vmem:[#allocation26 + $0xbe0] sm:$0xf]  ;;  %v14592_v39 = vld [vmem:[#allocation26 + $0xbf0] sm:$0xf0] }
 0xd93   : > { %v13001_v43 = vor.u32 %v14592_v39, %v13000_v37  ;;  %v14532_v37 = vld [vmem:[#allocation26 + $0xa10] sm:$0xf0]  ;;  %v13540_v39 = vld [vmem:[#allocation26 + $0x1018] sm:$0xf] }
 0xd95   : > { %v4724_v55 = vpop.f32.mrf.mxu2  ;;  %v4669_v4 = vpop.f32.mrf.mxu3 }
 0xd96   : > { %v4725_v54 = vadd.f32 %v4724_v55, %v4706_v51  ;;  %v4670_v33 = vadd.f32 %v18040_v1, %v4669_v4  ;;  %v13181_v55 = vor.u32 %v14637_v61, %v13180_v16  ;;  %v13341_v4 = vor.u32 %v14677_v32, %v13340_v21  ;;  %v14577_v16 = vld [vmem:[#allocation26 + $0xb78] sm:$0xf0]  ;;  %v13260_v32 = vld [vmem:[#allocation26 + $0xde8] sm:$0xf] }
 0xd97   : > { %v13281_v61 = vor.u32 %v14662_v36, %v13280_v13  ;;  %v14617_v21 = vld [vmem:[#allocation26 + $0xcb8] sm:$0xf0]  ;;  %v14240_v13 = vld [vmem:[#allocation26 + $0xf4] sm:$0xf]  ;;  %v11602_v36 = vld [vmem:[#allocation26 + $0x104] sm:$0xf0] }
 0xd98   : > { %v18083_v50 = vadd.f32 %v4725_v54, %v17311_v17  ;;  %v4689_v45 = vadd.f32 %v4688_v29, %v4670_v33  ;;  %v13160_v54 = vld [vmem:[#allocation26 + $0xd20] sm:$0xf]  ;;  %v12841_v29 = vor.u32 %v14552_v35, %v12840_v9  ;;  %v14657_v9 = vld [vmem:[#allocation26 + $0xdf8] sm:$0xf0] }
 0xd9a   : > { %v4763_v59 = vpack.c.bf16 %v18083_v50, %v18083_v50  ;;  %v4736_v14 = vrot.slane %v18083_v50, 1  ;;  %v4738_v3 = vrot.slane %v18083_v50, 2  ;;  %v4708_v1 = vadd.f32 %v4707_v6, %v4689_v45  ;;  %v13320_v45 = vld [vmem:[#allocation26 + $0xe60] sm:$0xf] }
 0xd9b   : > { %v4740_v17 = vrot.slane %v18083_v50, 3  ;;  %v4742_v51 = vrot.slane %v18083_v50, 4  ;;  %v4744_v33 = vrot.slane %v18083_v50, 5  ;;  %v4746_v26 = vrot.slane %v18083_v50, 6 }
 0xd9c   : > { %v18090_v22 = vshrl.u32 %v4763_v59, 16  ;;  %v4764_v63 = vpack.c.bf16 %v4736_v14, %v4736_v14  ;;  %v4765_v18 = vpack.c.bf16 %v4738_v3, %v4738_v3  ;;  %v12820_v59 = vld [vmem:[#allocation26 + $0xa78] sm:$0xf]  ;;  %v14547_v14 = vld [vmem:[#allocation26 + $0xa88] sm:$0xf0]  ;;  %v13321_v2 = vor.u32 %v14672_v25, %v13320_v45 }
 0xd9d   : > { %v4766_v44 = vpack.c.bf16 %v4740_v17, %v4740_v17  ;;  %v4726_v24 = vpop.f32.mrf.mxu2  ;;  %v4767_v6 = vpack.c.bf16 %v4742_v51, %v4742_v51  ;;  %v4768_v58 = vpack.c.bf16 %v4744_v33, %v4744_v33  ;;  %v12821_v50 = vor.u32 %v14547_v14, %v12820_v59  ;;  %v14727_v51 = vld [vmem:[#allocation26 + $0x1028] sm:$0xf0]  ;;  %v13080_v33 = vld [vmem:[#allocation26 + $0xc80] sm:$0xf]  ;;  %v13860_v14 = vld [vmem:[#allocation26 + $0x1298] sm:$0xf] }
 0xd9e   : > { %8698 = vmatmul.bf16.vlgmr.msra.gmra.mxu3 %v18090_v22  ;;  %v18093_v41 = vshrl.u32 %v4764_v63, 16  ;;  %v18095_v15 = vshrl.u32 %v4765_v18, 16  ;;  %v4727_v0 = vadd.f32 %v4726_v24, %v4708_v1  ;;  %v12980_v1 = vld [vmem:[#allocation26 + $0xbb8] sm:$0xf]  ;;  %v14627_v63 = vld [vmem:[#allocation26 + $0xd08] sm:$0xf0]  ;;  %v13261_v25 = vor.u32 %v14657_v9, %v13260_v32 }
 0xd9f   : > { %8794 = vmatpush.bf16.msra.mxu3 %v12901_v47  ;;  %v18097_v12 = vshrl.u32 %v4766_v44, 16  ;;  %v4769_v47 = vpack.c.bf16 %v4746_v26, %v4746_v26  ;;  %v13300_v18 = vld [vmem:[#allocation26 + $0xe38] sm:$0xf]  ;;  %v18109_v40 = vshrl.u32 %v4767_v6, 16  ;;  %v12800_v44 = vld [vmem:[#allocation26 + $0xa50] sm:$0xf]  ;;  %v12981_v28 = vor.u32 %v14587_v38, %v12980_v1 }
 0xda0   : > { %8711 = vmatmul.bf16.vlgmr.msrb.gmra.mxu0 %v18093_v41  ;;  %8724 = vmatmul.bf16.vlgmr.msra.gmra.mxu1 %v18095_v15  ;;  %v18103_v34 = vadd.f32 %v4727_v0, %v17317_v46  ;;  %v14632_v46 = vld [vmem:[#allocation26 + $0xd30] sm:$0xf0]  ;;  %v18111_v23 = vshrl.u32 %v4768_v58, 16  ;;  %v13141_v24 = vor.u32 %v14627_v63, %v13140_v11  ;;  %v13301_v0 = vor.u32 %v14667_v8, %v13300_v18  ;;  %v13240_v26 = vld [vmem:[#allocation26 + $0xdc0] sm:$0xf] }
 0xda1   : > { %8737 = vmatmul.bf16.vlgmr.msrb.gmra.mxu2 %v18097_v12  ;;  %8807 = vmatpush.bf16.msrb.mxu0 %v13061_v5  ;;  %v13161_v3 = vor.u32 %v14632_v46, %v13160_v54  ;;  %v14542_v5 = vld [vmem:[#allocation26 + $0xa60] sm:$0xf0]  ;;  %v18114_v62 = vshrl.u32 %v4769_v47, 16  ;;  %v12941_v54 = vor.u32 %v14577_v16, %v12940_v60  ;;  %v14767_v59 = vld [vmem:[#allocation26 + $0x1168] sm:$0xf0]  ;;  %v13541_v58 = vor.u32 %v14727_v51, %v13540_v39 }
 0xda2   : > { %8820 = vmatpush.bf16.msra.mxu1 %v13221_v52  ;;  %8833 = vmatpush.bf16.msrb.mxu2 %v13381_v7  ;;  %v4749_v49 = vrot.slane %v18103_v34, 7  ;;  %v12960_v52 = vld [vmem:[#allocation26 + $0xb90] sm:$0xf]  ;;  %v14582_v7 = vld [vmem:[#allocation26 + $0xba0] sm:$0xf0]  ;;  %v12801_v27 = vor.u32 %v14542_v5, %v12800_v44  ;;  %v4751_v45 = vrot.slane %v18103_v34, 1  ;;  %v4771_v63 = vpack.c.bf16 %v18103_v34, %v18103_v34 }
 0xda3   : > { %8795 = vmatpush.bf16.msra.mxu3 %v12881_v19  ;;  %v13120_v19 = vld [vmem:[#allocation26 + $0xcd0] sm:$0xf]  ;;  %v14807_v47 = vld [vmem:[#allocation26 + $0x12a8] sm:$0xf0]  ;;  %v14722_v5 = vld [vmem:[#allocation26 + $0x1000] sm:$0xf0]  ;;  %v11605_v9 = vor.u32 %v14240_v13, %v11602_v36 }
 0xda4   : > { %v4770_v17 = vpack.c.bf16 %v4749_v49, %v4749_v49  ;;  %v13121_v20 = vor.u32 %v14622_v57, %v13120_v19  ;;  %v14652_v49 = vld [vmem:[#allocation26 + $0xdd0] sm:$0xf0]  ;;  %v11622_v38 = vld [vmem:[#allocation26 + $0x12c] sm:$0xf0]  ;;  %v14762_v19 = vld [vmem:[#allocation26 + $0x1140] sm:$0xf0] }
 0xda5   : > { %8808 = vmatpush.bf16.msrb.mxu0 %v13041_v31  ;;  %v12780_v31 = vld [vmem:[#allocation26 + $0xa28] sm:$0xf]  ;;  %v13241_v18 = vor.u32 %v14652_v49, %v13240_v26  ;;  %v13520_v44 = vld [vmem:[#allocation26 + $0xff0] sm:$0xf]  ;;  %v14717_v16 = vld [vmem:[#allocation26 + $0xfd8] sm:$0xf0] }
 0xda6   : > { %8821 = vmatpush.bf16.msra.mxu1 %v13201_v48  ;;  %8834 = vmatpush.bf16.msrb.mxu2 %v13361_v53  ;;  %v18116_v56 = vshrl.u32 %v4770_v17, 16  ;;  %v14537_v48 = vld [vmem:[#allocation26 + $0xa38] sm:$0xf0]  ;;  %v12961_v53 = vor.u32 %v14582_v7, %v12960_v52  ;;  %v13840_v57 = vld [vmem:[#allocation26 + $0x1270] sm:$0xf] }
 0xda7   : > { %8796 = vmatpush.bf16.msra.mxu3 %v12861_v42  ;;  %v13100_v42 = vld [vmem:[#allocation26 + $0xca8] sm:$0xf]  ;;  %v12781_v35 = vor.u32 %v14537_v48, %v12780_v31  ;;  %v14245_v17 = vld [vmem:[#allocation26 + $0x11c] sm:$0xf]  ;;  %v18126_v31 = vshrl.u32 %v4771_v63, 16  ;;  %v13521_v48 = vor.u32 %v14722_v5, %v13520_v44 }
 0xda8   : > { %v13101_v46 = vor.u32 %v14617_v21, %v13100_v42  ;;  %v13500_v60 = vld [vmem:[#allocation26 + $0xfc8] sm:$0xf]  ;;  %v14235_v39 = vld [vmem:[#allocation26 + $0xcc] sm:$0xf]  ;;  %v11582_v51 = vld [vmem:[#allocation26 + $0xdc] sm:$0xf0] }
 0xda9   : > { %8809 = vmatpush.bf16.msrb.mxu0 %v13021_v30  ;;  %v12760_v30 = vld [vmem:[#allocation26 + $0xa00] sm:$0xf]  ;;  %v13660_v42 = vld [vmem:[#allocation26 + $0x1108] sm:$0xf]  ;;  %v14792_v49 = vld [vmem:[#allocation26 + $0x1230] sm:$0xf0] }
 0xdaa   : > { %8822 = vmatpush.bf16.msra.mxu1 %v13181_v55  ;;  %8835 = vmatpush.bf16.msrb.mxu2 %v13341_v4  ;;  %v12920_v55 = vld [vmem:[#allocation26 + $0xb40] sm:$0xf]  ;;  %v14572_v4 = vld [vmem:[#allocation26 + $0xb50] sm:$0xf0]  ;;  %v12761_v6 = vor.u32 %v14532_v37, %v12760_v30  ;;  %v13820_v30 = vld [vmem:[#allocation26 + $0x1248] sm:$0xf] }
 0xdab   : > { %8797 = vmatpush.bf16.msra.mxu3 %v12841_v29  ;;  %v14612_v29 = vld [vmem:[#allocation26 + $0xc90] sm:$0xf0]  ;;  %v12921_v1 = vor.u32 %v14572_v4, %v12920_v55  ;;  %v14797_v37 = vld [vmem:[#allocation26 + $0x1258] sm:$0xf0]  ;;  %v13501_v55 = vor.u32 %v14717_v16, %v13500_v60  ;;  %v13800_v26 = vld [vmem:[#allocation26 + $0x1220] sm:$0xf] }
 0xdac   : > { %v13081_v11 = vor.u32 %v14612_v29, %v13080_v33  ;;  %v13821_v33 = vor.u32 %v14797_v37, %v13820_v30  ;;  %v11585_v29 = vor.u32 %v14235_v39, %v11582_v51  ;;  %v14225_v63 = vld [vmem:[#allocation26 + $0x7c] sm:$0xf]  ;;  %v13440_v44 = vld [vmem:[#allocation26 + $0xf50] sm:$0xf]  ;;  %v14702_v5 = vld [vmem:[#allocation26 + $0xf60] sm:$0xf0] }
 0xdad   : > { %8810 = vmatpush.bf16.msrb.mxu0 %v13001_v43  ;;  %v13700_v43 = vld [vmem:[#allocation26 + $0x1158] sm:$0xf]  ;;  %v13441_v13 = vor.u32 %v14702_v5, %v13440_v44  ;;  %v4757_v60 = vrot.slane %v18103_v34, 4  ;;  %v14777_v30 = vld [vmem:[#allocation26 + $0x11b8] sm:$0xf0] }
 0xdae   : > { %8823 = vmatpush.bf16.msra.mxu1 %v13161_v3  ;;  %8836 = vmatpush.bf16.msrb.mxu2 %v13321_v2  ;;  %v4753_v3 = vrot.slane %v18103_v34, 2  ;;  %v4755_v2 = vrot.slane %v18103_v34, 3  ;;  %v13701_v8 = vor.u32 %v14767_v59, %v13700_v43  ;;  %v14230_v43 = vld [vmem:[#allocation26 + $0xa4] sm:$0xf]  ;;  %v14215_v37 = vld [vmem:[#allocation26 + $0x2c] sm:$0xf] }
 0xdaf   : > { %8750 = vmatmul.bf16.vlgmr.msrb.gmra.mxu3 %v18109_v40  ;;  %v11502_v39 = vld [vmem:[#allocation26 + $0x3c] sm:$0xf0] }
 0xdb0   : > { %8798 = vmatpush.bf16.msra.mxu3 %v12821_v50  ;;  %8763 = vmatmul.bf16.vlgmr.msra.gmra.mxu0 %v18111_v23  ;;  %v4772_v50 = vpack.c.bf16 %v4751_v45, %v4751_v45  ;;  %v4773_v52 = vpack.c.bf16 %v4753_v3, %v4753_v3  ;;  %v4774_v7 = vpack.c.bf16 %v4755_v2, %v4755_v2  ;;  %v13640_v45 = vld [vmem:[#allocation26 + $0x10e0] sm:$0xf]  ;;  %v13460_v3 = vld [vmem:[#allocation26 + $0xf78] sm:$0xf]  ;;  %v14707_v2 = vld [vmem:[#allocation26 + $0xf88] sm:$0xf0] }
 0xdb1   : > { %8776 = vmatmul.bf16.vlgmr.msrb.gmra.mxu1 %v18114_v62  ;;  %8789 = vmatmul.bf16.vlgmr.msra.gmra.mxu2 %v18116_v56 }
 0xdb2   : > { %8811 = vmatpush.bf16.msrb.mxu0 %v12981_v28  ;;  %8824 = vmatpush.bf16.msra.mxu1 %v13141_v24  ;;  %v13861_v28 = vor.u32 %v14807_v47, %v13860_v14  ;;  %v11625_v24 = vor.u32 %v14245_v17, %v11622_v38  ;;  %v18132_v21 = vshrl.u32 %v4774_v7, 16  ;;  %v13620_v47 = vld [vmem:[#allocation26 + $0x10b8] sm:$0xf]  ;;  %v14747_v17 = vld [vmem:[#allocation26 + $0x10c8] sm:$0xf0] }
 0xdb3   : > { %8837 = vmatpush.bf16.msrb.mxu2 %v13301_v0  ;;  %v13680_v0 = vld [vmem:[#allocation26 + $0x1130] sm:$0xf]  ;;  %v13780_v38 = vld [vmem:[#allocation26 + $0x11f8] sm:$0xf]  ;;  %v14742_v7 = vld [vmem:[#allocation26 + $0x10a0] sm:$0xf0] }
 0xdb4   : > { %8799 = vmatpush.bf16.msra.mxu3 %v12801_v27  ;;  %v14802_v27 = vld [vmem:[#allocation26 + $0x1280] sm:$0xf0] }
 0xdb5   : > { %v13841_v32 = vor.u32 %v14802_v27, %v13840_v57  ;;  %v14220_v57 = vld [vmem:[#allocation26 + $0x54] sm:$0xf]  ;;  %v11522_v27 = vld [vmem:[#allocation26 + $0x64] sm:$0xf0] }
 0xdb6   : > { %8812 = vmatpush.bf16.msrb.mxu0 %v12961_v53  ;;  %8825 = vmatpush.bf16.msra.mxu1 %v13121_v20  ;;  %v18128_v53 = vshrl.u32 %v4772_v50, 16  ;;  %v13681_v20 = vor.u32 %v14762_v19, %v13680_v0  ;;  %v11542_v50 = vld [vmem:[#allocation26 + $0x8c] sm:$0xf0]  ;;  %v14782_v19 = vld [vmem:[#allocation26 + $0x11e0] sm:$0xf0] }
 0xdb7   : > { %8838 = vmatpush.bf16.msrb.mxu2 %v13281_v61  ;;  %v18130_v61 = vshrl.u32 %v4773_v52, 16  ;;  %v13600_v52 = vld [vmem:[#allocation26 + $0x1090] sm:$0xf] }
 0xdb8   : > { %8800 = vmatpush.bf16.msra.mxu3 %v12781_v35  ;;  %v14757_v35 = vld [vmem:[#allocation26 + $0x1118] sm:$0xf0]  ;;  %v13760_v0 = vld [vmem:[#allocation26 + $0x11d0] sm:$0xf]  ;;  %v13601_v36 = vor.u32 %v14742_v7, %v13600_v52  ;;  %v14280_v52 = vld [vmem:[#allocation26 + $0x234] sm:$0xf] }
 0xdb9   : > { %v13661_v4 = vor.u32 %v14757_v35, %v13660_v42  ;;  %v13761_v16 = vor.u32 %v14782_v19, %v13760_v0  ;;  %v11525_v42 = vor.u32 %v14220_v57, %v11522_v27  ;;  %v13740_v35 = vld [vmem:[#allocation26 + $0x11a8] sm:$0xf]  ;;  %v14320_v57 = vld [vmem:[#allocation26 + $0x374] sm:$0xf] }
 0xdba   : > { %8813 = vmatpush.bf16.msrb.mxu0 %v12941_v54  ;;  %8826 = vmatpush.bf16.msra.mxu1 %v13101_v46  ;;  %v13480_v54 = vld [vmem:[#allocation26 + $0xfa0] sm:$0xf]  ;;  %v14712_v46 = vld [vmem:[#allocation26 + $0xfb0] sm:$0xf0]  ;;  %v11762_v7 = vld [vmem:[#allocation26 + $0x244] sm:$0xf0] }
 0xdbb   : > { %8839 = vmatpush.bf16.msrb.mxu2 %v13261_v25  ;;  %v14752_v25 = vld [vmem:[#allocation26 + $0x10f0] sm:$0xf0]  ;;  %v13481_v59 = vor.u32 %v14712_v46, %v13480_v54  ;;  %v4761_v54 = vrot.slane %v18103_v34, 6  ;;  %v11922_v27 = vld [vmem:[#allocation26 + $0x384] sm:$0xf0] }
 0xdbc   : > { %8801 = vmatpush.bf16.msra.mxu3 %v12761_v6  ;;  %v11562_v6 = vld [vmem:[#allocation26 + $0xb4] sm:$0xf0]  ;;  %v13641_v14 = vor.u32 %v14752_v25, %v13640_v45  ;;  %v11782_v45 = vld [vmem:[#allocation26 + $0x26c] sm:$0xf0]  ;;  %v13741_v25 = vor.u32 %v14777_v30, %v13740_v35  ;;  %v11742_v35 = vld [vmem:[#allocation26 + $0x21c] sm:$0xf0] }
 0xdbe   : > { %8814 = vmatpush.bf16.msrb.mxu0 %v12921_v1  ;;  %8827 = vmatpush.bf16.msra.mxu1 %v13081_v11  ;;  %v11565_v1 = vor.u32 %v14230_v43, %v11562_v6  ;;  %v14787_v11 = vld [vmem:[#allocation26 + $0x1208] sm:$0xf0]  ;;  %v14732_v43 = vld [vmem:[#allocation26 + $0x1050] sm:$0xf0]  ;;  %v13720_v6 = vld [vmem:[#allocation26 + $0x1180] sm:$0xf] }
 0xdbf   : > { %8840 = vmatpush.bf16.msrb.mxu2 %v13241_v18  ;;  %8802 = vmatmul.bf16.vlgmr.msra.gmra.mxu3 %v18126_v31  ;;  %v13461_v18 = vor.u32 %v14707_v2, %v13460_v3  ;;  %v11482_v3 = vld [vmem:[#allocation26 + $0x14] sm:$0xf0]  ;;  %v4775_v2 = vpack.c.bf16 %v4757_v60, %v4757_v60  ;;  %v11765_v60 = vor.u32 %v14280_v52, %v11762_v7  ;;  %v14260_v52 = vld [vmem:[#allocation26 + $0x194] sm:$0xf]  ;;  %v11682_v7 = vld [vmem:[#allocation26 + $0x1a4] sm:$0xf0] }
 0xdc0   : > { %8846 = vmatpush.bf16.msrb.mxu3 %v13541_v58  ;;  %v13801_v58 = vor.u32 %v14792_v49, %v13800_v26  ;;  %v11505_v26 = vor.u32 %v14215_v37, %v11502_v39  ;;  %v13560_v49 = vld [vmem:[#allocation26 + $0x1040] sm:$0xf]  ;;  %v14315_v39 = vld [vmem:[#allocation26 + $0x34c] sm:$0xf] }
 0xdc1   : > { %8815 = vmatmul.bf16.vlgmr.msrb.gmra.mxu0 %v18128_v53  ;;  %8828 = vmatmul.bf16.vlgmr.msra.gmra.mxu1 %v18130_v61  ;;  %v18141_v44 = vshrl.u32 %v4775_v2, 16  ;;  %v12202_v2 = vld [vmem:[#allocation26 + $0x5b4] sm:$0xf0] }
 0xdc2   : > { %8859 = vmatpush.bf16.msra.mxu0 %v13701_v8  ;;  %8872 = vmatpush.bf16.msrb.mxu1 %v13861_v28  ;;  %v13621_v8 = vor.u32 %v14747_v17, %v13620_v47  ;;  %v13781_v28 = vor.u32 %v14787_v11, %v13780_v38  ;;  %v14365_v47 = vld [vmem:[#allocation26 + $0x4dc] sm:$0xf]  ;;  %v13561_v38 = vor.u32 %v14732_v43, %v13560_v49  ;;  %v12102_v11 = vld [vmem:[#allocation26 + $0x4ec] sm:$0xf0]  ;;  %v14310_v43 = vld [vmem:[#allocation26 + $0x324] sm:$0xf] }
 0xdc3   : > { %8885 = vmatpush.bf16.msra.mxu2 %v11625_v24  ;;  %v11545_v24 = vor.u32 %v14225_v63, %v11542_v50  ;;  %v14405_v63 = vld [vmem:[#allocation26 + $0x61c] sm:$0xf]  ;;  %v12262_v50 = vld [vmem:[#allocation26 + $0x62c] sm:$0xf0]  ;;  %v12105_v0 = vor.u32 %v14365_v47, %v12102_v11 }
 0xdc4   : > { %8847 = vmatpush.bf16.msrb.mxu3 %v13521_v48  ;;  %8841 = vmatmul.bf16.vlgmr.msrb.gmra.mxu2 %v18132_v21  ;;  %v13420_v48 = vld [vmem:[#allocation26 + $0xf28] sm:$0xf]  ;;  %v12265_v19 = vor.u32 %v14405_v63, %v12262_v50  ;;  %v11702_v47 = vld [vmem:[#allocation26 + $0x1cc] sm:$0xf0]  ;;  %v14305_v11 = vld [vmem:[#allocation26 + $0x2fc] sm:$0xf] }
 0xdc5   : > { %v11862_v63 = vld [vmem:[#allocation26 + $0x30c] sm:$0xf0]  ;;  %v14345_v50 = vld [vmem:[#allocation26 + $0x43c] sm:$0xf] }
 0xdc6   : > { %8860 = vmatpush.bf16.msra.mxu0 %v13681_v20  ;;  %8873 = vmatpush.bf16.msrb.mxu1 %v13841_v32  ;;  %v14697_v20 = vld [vmem:[#allocation26 + $0xf38] sm:$0xf0]  ;;  %v13580_v32 = vld [vmem:[#allocation26 + $0x1068] sm:$0xf] }
 0xdc7   : > { %8886 = vmatpush.bf16.msra.mxu2 %v11605_v9  ;;  %v14737_v9 = vld [vmem:[#allocation26 + $0x1078] sm:$0xf0]  ;;  %v13421_v51 = vor.u32 %v14697_v20, %v13420_v48  ;;  %v14400_v48 = vld [vmem:[#allocation26 + $0x5f4] sm:$0xf]  ;;  %v12242_v20 = vld [vmem:[#allocation26 + $0x604] sm:$0xf0] }
 0xdc8   : > { %8848 = vmatpush.bf16.msrb.mxu3 %v13501_v55  ;;  %v13400_v55 = vld [vmem:[#allocation26 + $0xf00] sm:$0xf]  ;;  %v13581_v46 = vor.u32 %v14737_v9, %v13580_v32  ;;  %v11925_v32 = vor.u32 %v14320_v57, %v11922_v27  ;;  %v14275_v9 = vld [vmem:[#allocation26 + $0x20c] sm:$0xf]  ;;  %v12245_v37 = vor.u32 %v14400_v48, %v12242_v20  ;;  %v14300_v57 = vld [vmem:[#allocation26 + $0x2d4] sm:$0xf] }
 0xdc9   : > { %v11842_v27 = vld [vmem:[#allocation26 + $0x2e4] sm:$0xf0]  ;;  %v14380_v48 = vld [vmem:[#allocation26 + $0x554] sm:$0xf] }
 0xdca   : > { %8861 = vmatpush.bf16.msra.mxu0 %v13661_v4  ;;  %8874 = vmatpush.bf16.msrb.mxu1 %v13821_v33  ;;  %v4759_v4 = vrot.slane %v18103_v34, 5  ;;  %v14692_v33 = vld [vmem:[#allocation26 + $0xf10] sm:$0xf0]  ;;  %v11942_v34 = vld [vmem:[#allocation26 + $0x3ac] sm:$0xf0] }
 0xdcb   : > { %8887 = vmatpush.bf16.msra.mxu2 %v11585_v29  ;;  %v14285_v29 = vld [vmem:[#allocation26 + $0x25c] sm:$0xf]  ;;  %v12162_v20 = vld [vmem:[#allocation26 + $0x564] sm:$0xf0] }
 0xdcc   : > { %8849 = vmatpush.bf16.msrb.mxu3 %v13481_v59  ;;  %v14772_v59 = vld [vmem:[#allocation26 + $0x1190] sm:$0xf0]  ;;  %v11785_v17 = vor.u32 %v14285_v29, %v11782_v45  ;;  %v14270_v45 = vld [vmem:[#allocation26 + $0x1e4] sm:$0xf] }
 0xdce   : > { %8862 = vmatpush.bf16.msra.mxu0 %v13641_v14  ;;  %8875 = vmatpush.bf16.msrb.mxu1 %v13801_v58  ;;  %v14210_v14 = vld [vmem:[#allocation26 + $0x4] sm:$0xf]  ;;  %v13401_v58 = vor.u32 %v14692_v33, %v13400_v55  ;;  %v14355_v55 = vld [vmem:[#allocation26 + $0x48c] sm:$0xf]  ;;  %v11745_v33 = vor.u32 %v14275_v9, %v11742_v35  ;;  %v11662_v35 = vld [vmem:[#allocation26 + $0x17c] sm:$0xf0] }
 0xdcf   : > { %8888 = vmatpush.bf16.msra.mxu2 %v11565_v1  ;;  %v14325_v1 = vld [vmem:[#allocation26 + $0x39c] sm:$0xf]  ;;  %v14255_v9 = vld [vmem:[#allocation26 + $0x16c] sm:$0xf] }
 0xdd0   : > { %8850 = vmatpush.bf16.msrb.mxu3 %v13461_v18  ;;  %v13721_v18 = vor.u32 %v14772_v59, %v13720_v6  ;;  %v11945_v5 = vor.u32 %v14325_v1, %v11942_v34  ;;  %v11882_v6 = vld [vmem:[#allocation26 + $0x334] sm:$0xf0]  ;;  %v14350_v59 = vld [vmem:[#allocation26 + $0x464] sm:$0xf]  ;;  %v14265_v34 = vld [vmem:[#allocation26 + $0x1bc] sm:$0xf] }
 0xdd1   : > { %v11885_v1 = vor.u32 %v14310_v43, %v11882_v6 }
 0xdd2   : > { %8863 = vmatpush.bf16.msra.mxu0 %v13621_v8  ;;  %8876 = vmatpush.bf16.msrb.mxu1 %v13781_v28  ;;  %v11485_v8 = vor.u32 %v14210_v14, %v11482_v3  ;;  %v4776_v28 = vpack.c.bf16 %v4759_v4, %v4759_v4  ;;  %v12062_v4 = vld [vmem:[#allocation26 + $0x49c] sm:$0xf0]  ;;  %v12042_v14 = vld [vmem:[#allocation26 + $0x474] sm:$0xf0]  ;;  %v14390_v3 = vld [vmem:[#allocation26 + $0x5a4] sm:$0xf] }
 0xdd3   : > { %8889 = vmatpush.bf16.msra.mxu2 %v11545_v24  ;;  %v4777_v24 = vpack.c.bf16 %v4761_v54, %v4761_v54  ;;  %v14395_v54 = vld [vmem:[#allocation26 + $0x5cc] sm:$0xf] }
 0xdd4   : > { %8851 = vmatpush.bf16.msrb.mxu3 %v13441_v13  ;;  %v14360_v13 = vld [vmem:[#allocation26 + $0x4b4] sm:$0xf] }
 0xdd6   : > { %8864 = vmatpush.bf16.msra.mxu0 %v13601_v36  ;;  %8877 = vmatpush.bf16.msrb.mxu1 %v13761_v16  ;;  %v12082_v36 = vld [vmem:[#allocation26 + $0x4c4] sm:$0xf0]  ;;  %v18144_v16 = vshrl.u32 %v4776_v28, 16  ;;  %v11705_v28 = vor.u32 %v14265_v34, %v11702_v47  ;;  %v14485_v47 = vld [vmem:[#allocation26 + $0x89c] sm:$0xf] }
 0xdd7   : > { %8890 = vmatpush.bf16.msra.mxu2 %v11525_v42  ;;  %v18146_v42 = vshrl.u32 %v4777_v24, 16  ;;  %v12085_v30 = vor.u32 %v14360_v13, %v12082_v36  ;;  %v11865_v24 = vor.u32 %v14305_v11, %v11862_v63  ;;  %v14340_v13 = vld [vmem:[#allocation26 + $0x414] sm:$0xf]  ;;  %v12002_v36 = vld [vmem:[#allocation26 + $0x424] sm:$0xf0] }
 0xdd8   : > { %8852 = vmatpush.bf16.msrb.mxu3 %v13421_v51  ;;  %v11902_v51 = vld [vmem:[#allocation26 + $0x35c] sm:$0xf0] }
 0xdd9   : > { %v11905_v29 = vor.u32 %v14315_v39, %v11902_v51  ;;  %v14295_v39 = vld [vmem:[#allocation26 + $0x2ac] sm:$0xf]  ;;  %v11822_v51 = vld [vmem:[#allocation26 + $0x2bc] sm:$0xf0] }
 0xdda   : > { %8865 = vmatpush.bf16.msra.mxu0 %v13581_v46  ;;  %8878 = vmatpush.bf16.msrb.mxu1 %v13741_v25  ;;  %v12222_v46 = vld [vmem:[#allocation26 + $0x5dc] sm:$0xf0]  ;;  %v11722_v25 = vld [vmem:[#allocation26 + $0x1f4] sm:$0xf0] }
 0xddb   : > { %8891 = vmatpush.bf16.msra.mxu2 %v11505_v26  ;;  %v12065_v26 = vor.u32 %v14355_v55, %v12062_v4  ;;  %v12225_v49 = vor.u32 %v14395_v54, %v12222_v46  ;;  %v14335_v55 = vld [vmem:[#allocation26 + $0x3ec] sm:$0xf]  ;;  %v11982_v4 = vld [vmem:[#allocation26 + $0x3fc] sm:$0xf0] }
 0xddc   : > { %8853 = vmatpush.bf16.msrb.mxu3 %v13401_v58  ;;  %v11725_v58 = vor.u32 %v14270_v45, %v11722_v25  ;;  %v14375_v54 = vld [vmem:[#allocation26 + $0x52c] sm:$0xf]  ;;  %v12142_v46 = vld [vmem:[#allocation26 + $0x53c] sm:$0xf0]  ;;  %v11825_v45 = vor.u32 %v14295_v39, %v11822_v51  ;;  %v11642_v25 = vld [vmem:[#allocation26 + $0x154] sm:$0xf0]  ;;  %v11985_v43 = vor.u32 %v14335_v55, %v11982_v4 }
 0xddd   : > { %v12145_v6 = vor.u32 %v14375_v54, %v12142_v46  ;;  %v14475_v39 = vld [vmem:[#allocation26 + $0x84c] sm:$0xf]  ;;  %v12542_v51 = vld [vmem:[#allocation26 + $0x85c] sm:$0xf0] }
 0xdde   : > { %8866 = vmatpush.bf16.msra.mxu0 %v13561_v38  ;;  %8879 = vmatpush.bf16.msrb.mxu1 %v13721_v18  ;;  %v12205_v38 = vor.u32 %v14390_v3, %v12202_v2  ;;  %v12022_v18 = vld [vmem:[#allocation26 + $0x44c] sm:$0xf0]  ;;  %v14330_v3 = vld [vmem:[#allocation26 + $0x3c4] sm:$0xf]  ;;  %v11962_v2 = vld [vmem:[#allocation26 + $0x3d4] sm:$0xf0] }
 0xddf   : > { %8892 = vmatpush.bf16.msra.mxu2 %v11485_v8  ;;  %8854 = vmatmul.bf16.vlgmr.msrb.gmra.mxu3 %v18141_v44  ;;  %v14385_v8 = vld [vmem:[#allocation26 + $0x57c] sm:$0xf]  ;;  %v14515_v55 = vld [vmem:[#allocation26 + $0x98c] sm:$0xf]  ;;  %v12702_v4 = vld [vmem:[#allocation26 + $0x99c] sm:$0xf0] }
 0xde0   : > { %8898 = vmatpush.bf16.msra.mxu3 %v11785_v17  ;;  %v12045_v17 = vor.u32 %v14350_v59, %v12042_v14  ;;  %v14290_v59 = vld [vmem:[#allocation26 + $0x284] sm:$0xf]  ;;  %v11802_v14 = vld [vmem:[#allocation26 + $0x294] sm:$0xf0]  ;;  %v14555_v54 = vld [vmem:[#allocation26 + $0xacc] sm:$0xf] }
 0xde1   : > { %8867 = vmatmul.bf16.vlgmr.msra.gmra.mxu0 %v18144_v16  ;;  %8880 = vmatmul.bf16.vlgmr.msrb.gmra.mxu1 %v18146_v42  ;;  %v11805_v63 = vor.u32 %v14290_v59, %v11802_v14  ;;  %v12862_v46 = vld [vmem:[#allocation26 + $0xadc] sm:$0xf0]  ;;  %v14510_v59 = vld [vmem:[#allocation26 + $0x964] sm:$0xf]  ;;  %v12682_v14 = vld [vmem:[#allocation26 + $0x974] sm:$0xf0] }
 0xde2   : > { %8911 = vmatpush.bf16.msrb.mxu0 %v11945_v5  ;;  %8924 = vmatpush.bf16.msra.mxu1 %v12105_v0  ;;  %v12182_v5 = vld [vmem:[#allocation26 + $0x58c] sm:$0xf0]  ;;  %v12025_v0 = vor.u32 %v14345_v50, %v12022_v18  ;;  %v14565_v18 = vld [vmem:[#allocation26 + $0xb1c] sm:$0xf] }
 0xde3   : > { %8937 = vmatpush.bf16.msrb.mxu2 %v12265_v19  ;;  %v12185_v19 = vor.u32 %v14385_v8, %v12182_v5  ;;  %v12742_v50 = vld [vmem:[#allocation26 + $0x9ec] sm:$0xf0]  ;;  %v11965_v5 = vor.u32 %v14330_v3, %v11962_v2  ;;  %v14550_v3 = vld [vmem:[#allocation26 + $0xaa4] sm:$0xf]  ;;  %v12842_v2 = vld [vmem:[#allocation26 + $0xab4] sm:$0xf0] }
 0xde4   : > { %8893 = vmatmul.bf16.vlgmr.msra.gmra.mxu2 %v18090_v22  ;;  %8899 = vmatpush.bf16.msra.mxu3 %v11765_v60  ;;  %v11685_v60 = vor.u32 %v14260_v52, %v11682_v7  ;;  %v12902_v8 = vld [vmem:[#allocation26 + $0xb2c] sm:$0xf0]  ;;  %v14440_v52 = vld [vmem:[#allocation26 + $0x734] sm:$0xf]  ;;  %v12402_v7 = vld [vmem:[#allocation26 + $0x744] sm:$0xf0] }
 0xde6   : > { %8912 = vmatpush.bf16.msrb.mxu0 %v11925_v32  ;;  %8925 = vmatpush.bf16.msra.mxu1 %v12085_v30  ;;  %v11845_v32 = vor.u32 %v14300_v57, %v11842_v27  ;;  %v12005_v30 = vor.u32 %v14340_v13, %v12002_v36  ;;  %v14480_v57 = vld [vmem:[#allocation26 + $0x874] sm:$0xf]  ;;  %v12562_v27 = vld [vmem:[#allocation26 + $0x884] sm:$0xf0] }
 0xde7   : > { %8938 = vmatpush.bf16.msrb.mxu2 %v12245_v37  ;;  %v12165_v37 = vor.u32 %v14380_v48, %v12162_v20  ;;  %v14520_v13 = vld [vmem:[#allocation26 + $0x9b4] sm:$0xf]  ;;  %v12722_v36 = vld [vmem:[#allocation26 + $0x9c4] sm:$0xf0] }
 0xde8   : > { %8900 = vmatpush.bf16.msra.mxu3 %v11745_v33  ;;  %v11665_v33 = vor.u32 %v14255_v9, %v11662_v35  ;;  %v14560_v48 = vld [vmem:[#allocation26 + $0xaf4] sm:$0xf]  ;;  %v12882_v20 = vld [vmem:[#allocation26 + $0xb04] sm:$0xf0]  ;;  %v14435_v9 = vld [vmem:[#allocation26 + $0x70c] sm:$0xf] }
 0xde9   : > { %v12382_v35 = vld [vmem:[#allocation26 + $0x71c] sm:$0xf0] }
 0xdea   : > { %8913 = vmatpush.bf16.msrb.mxu0 %v11905_v29  ;;  %8926 = vmatpush.bf16.msra.mxu1 %v12065_v26  ;;  %v14250_v29 = vld [vmem:[#allocation26 + $0x144] sm:$0xf]  ;;  %v14445_v26 = vld [vmem:[#allocation26 + $0x75c] sm:$0xf] }
 0xdeb   : > { %8939 = vmatpush.bf16.msrb.mxu2 %v12225_v49  ;;  %v12422_v49 = vld [vmem:[#allocation26 + $0x76c] sm:$0xf0]  ;;  %v11645_v34 = vor.u32 %v14250_v29, %v11642_v25  ;;  %v12545_v29 = vor.u32 %v14475_v39, %v12542_v51  ;;  %v12362_v25 = vld [vmem:[#allocation26 + $0x6f4] sm:$0xf0]  ;;  %v14455_v39 = vld [vmem:[#allocation26 + $0x7ac] sm:$0xf] }
 0xdec   : > { %8901 = vmatpush.bf16.msra.mxu3 %v11725_v58  ;;  %v14370_v58 = vld [vmem:[#allocation26 + $0x504] sm:$0xf]  ;;  %v12425_v11 = vor.u32 %v14445_v26, %v12422_v49  ;;  %v12705_v26 = vor.u32 %v14515_v55, %v12702_v4  ;;  %v12865_v49 = vor.u32 %v14555_v54, %v12862_v46  ;;  %v12462_v51 = vld [vmem:[#allocation26 + $0x7bc] sm:$0xf0]  ;;  %v14495_v55 = vld [vmem:[#allocation26 + $0x8ec] sm:$0xf] }
 0xded   : > { %v12622_v4 = vld [vmem:[#allocation26 + $0x8fc] sm:$0xf0]  ;;  %v14535_v54 = vld [vmem:[#allocation26 + $0xa2c] sm:$0xf] }
 0xdee   : > { %8914 = vmatpush.bf16.msrb.mxu0 %v11885_v1  ;;  %8927 = vmatpush.bf16.msra.mxu1 %v12045_v17  ;;  %v12122_v1 = vld [vmem:[#allocation26 + $0x514] sm:$0xf0]  ;;  %v12582_v17 = vld [vmem:[#allocation26 + $0x8ac] sm:$0xf0]  ;;  %v12782_v46 = vld [vmem:[#allocation26 + $0xa3c] sm:$0xf0] }
 0xdef   : > { %8940 = vmatpush.bf16.msrb.mxu2 %v12205_v38  ;;  %v14525_v38 = vld [vmem:[#allocation26 + $0x9dc] sm:$0xf] }
 0xdf0   : > { %8902 = vmatpush.bf16.msra.mxu3 %v11705_v28  ;;  %v12125_v28 = vor.u32 %v14370_v58, %v12122_v1 }
 0xdf2   : > { %8915 = vmatpush.bf16.msrb.mxu0 %v11865_v24  ;;  %8928 = vmatpush.bf16.msra.mxu1 %v12025_v0  ;;  %v12585_v24 = vor.u32 %v14485_v47, %v12582_v17  ;;  %v12745_v0 = vor.u32 %v14525_v38, %v12742_v50  ;;  %v12342_v47 = vld [vmem:[#allocation26 + $0x6cc] sm:$0xf0]  ;;  %v12685_v17 = vor.u32 %v14510_v59, %v12682_v14  ;;  %v14505_v50 = vld [vmem:[#allocation26 + $0x93c] sm:$0xf]  ;;  %v14450_v59 = vld [vmem:[#allocation26 + $0x784] sm:$0xf] }
 0xdf3   : > { %8941 = vmatpush.bf16.msrb.mxu2 %v12185_v19  ;;  %v12905_v19 = vor.u32 %v14565_v18, %v12902_v8  ;;  %v12845_v38 = vor.u32 %v14550_v3, %v12842_v2  ;;  %v12662_v18 = vld [vmem:[#allocation26 + $0x94c] sm:$0xf0]  ;;  %v14545_v8 = vld [vmem:[#allocation26 + $0xa7c] sm:$0xf]  ;;  %v12442_v14 = vld [vmem:[#allocation26 + $0x794] sm:$0xf0] }
 0xdf4   : > { %8903 = vmatpush.bf16.msra.mxu3 %v11685_v60  ;;  %v12405_v60 = vor.u32 %v14440_v52, %v12402_v7  ;;  %v14420_v52 = vld [vmem:[#allocation26 + $0x694] sm:$0xf]  ;;  %v12322_v7 = vld [vmem:[#allocation26 + $0x6a4] sm:$0xf0]  ;;  %v14490_v3 = vld [vmem:[#allocation26 + $0x8c4] sm:$0xf] }
 0xdf5   : > { %v12602_v2 = vld [vmem:[#allocation26 + $0x8d4] sm:$0xf0] }
 0xdf6   : > { %8916 = vmatpush.bf16.msrb.mxu0 %v11845_v32  ;;  %8929 = vmatpush.bf16.msra.mxu1 %v12005_v30  ;;  %v12565_v32 = vor.u32 %v14480_v57, %v12562_v27  ;;  %v12725_v30 = vor.u32 %v14520_v13, %v12722_v36  ;;  %v14460_v57 = vld [vmem:[#allocation26 + $0x7d4] sm:$0xf]  ;;  %v12482_v27 = vld [vmem:[#allocation26 + $0x7e4] sm:$0xf0] }
 0xdf7   : > { %8942 = vmatpush.bf16.msrb.mxu2 %v12165_v37  ;;  %v12885_v37 = vor.u32 %v14560_v48, %v12882_v20  ;;  %v14500_v13 = vld [vmem:[#allocation26 + $0x914] sm:$0xf]  ;;  %v12642_v36 = vld [vmem:[#allocation26 + $0x924] sm:$0xf0] }
 0xdf8   : > { %8904 = vmatpush.bf16.msra.mxu3 %v11665_v33  ;;  %v12385_v33 = vor.u32 %v14435_v9, %v12382_v35  ;;  %v14540_v48 = vld [vmem:[#allocation26 + $0xa54] sm:$0xf]  ;;  %v12802_v20 = vld [vmem:[#allocation26 + $0xa64] sm:$0xf0]  ;;  %v14415_v9 = vld [vmem:[#allocation26 + $0x66c] sm:$0xf] }
 0xdf9   : > { %v12302_v35 = vld [vmem:[#allocation26 + $0x67c] sm:$0xf0] }
 0xdfa   : > { %8917 = vmatpush.bf16.msrb.mxu0 %v11825_v45  ;;  %8930 = vmatpush.bf16.msra.mxu1 %v11985_v43  ;;  %v14430_v45 = vld [vmem:[#allocation26 + $0x6e4] sm:$0xf] }
 0xdfb   : > { %8943 = vmatpush.bf16.msrb.mxu2 %v12145_v6  ;;  %v14470_v43 = vld [vmem:[#allocation26 + $0x824] sm:$0xf]  ;;  %v12522_v6 = vld [vmem:[#allocation26 + $0x834] sm:$0xf0]  ;;  %v12365_v58 = vor.u32 %v14430_v45, %v12362_v25  ;;  %v12465_v45 = vor.u32 %v14455_v39, %v12462_v51  ;;  %v13182_v51 = vld [vmem:[#allocation26 + $0xd5c] sm:$0xf0] }
 0xdfc   : > { %8905 = vmatpush.bf16.msra.mxu3 %v11645_v34  ;;  %v12525_v1 = vor.u32 %v14470_v43, %v12522_v6  ;;  %v14425_v34 = vld [vmem:[#allocation26 + $0x6bc] sm:$0xf]  ;;  %v12282_v25 = vld [vmem:[#allocation26 + $0x654] sm:$0xf0]  ;;  %v12625_v43 = vor.u32 %v14495_v55, %v12622_v4  ;;  %v12785_v6 = vor.u32 %v14535_v54, %v12782_v46  ;;  %v14675_v55 = vld [vmem:[#allocation26 + $0xe8c] sm:$0xf] }
 0xdfd   : > { %v13342_v4 = vld [vmem:[#allocation26 + $0xe9c] sm:$0xf0]  ;;  %v14715_v54 = vld [vmem:[#allocation26 + $0xfcc] sm:$0xf] }
 0xdfe   : > { %8918 = vmatpush.bf16.msrb.mxu0 %v11805_v63  ;;  %8931 = vmatpush.bf16.msra.mxu1 %v11965_v5  ;;  %v12502_v63 = vld [vmem:[#allocation26 + $0x80c] sm:$0xf0]  ;;  %v13502_v46 = vld [vmem:[#allocation26 + $0xfdc] sm:$0xf0] }
 0xdff   : > { %8944 = vmatpush.bf16.msrb.mxu2 %v12125_v28  ;;  %8906 = vmatmul.bf16.vlgmr.msra.gmra.mxu3 %v18093_v41  ;;  %v12822_v5 = vld [vmem:[#allocation26 + $0xa8c] sm:$0xf0]  ;;  %v12345_v28 = vor.u32 %v14425_v34, %v12342_v47  ;;  %v14645_v47 = vld [vmem:[#allocation26 + $0xd9c] sm:$0xf] }
 0xe00   : > { %8950 = vmatpush.bf16.msrb.mxu3 %v12425_v11  ;;  %v14465_v11 = vld [vmem:[#allocation26 + $0x7fc] sm:$0xf] }
 0xe01   : > { %8919 = vmatmul.bf16.vlgmr.msrb.gmra.mxu0 %v18095_v15  ;;  %8932 = vmatmul.bf16.vlgmr.msra.gmra.mxu1 %v18097_v12 }
 0xe02   : > { %8963 = vmatpush.bf16.msra.mxu0 %v12585_v24  ;;  %8976 = vmatpush.bf16.msrb.mxu1 %v12745_v0  ;;  %v12505_v24 = vor.u32 %v14465_v11, %v12502_v63  ;;  %v12665_v0 = vor.u32 %v14505_v50, %v12662_v18  ;;  %v12445_v63 = vor.u32 %v14450_v59, %v12442_v14  ;;  %v13382_v50 = vld [vmem:[#allocation26 + $0xeec] sm:$0xf0]  ;;  %v14725_v18 = vld [vmem:[#allocation26 + $0x101c] sm:$0xf] }
 0xe03   : > { %8989 = vmatpush.bf16.msra.mxu2 %v12905_v19  ;;  %v12825_v19 = vor.u32 %v14545_v8, %v12822_v5  ;;  %v13542_v8 = vld [vmem:[#allocation26 + $0x102c] sm:$0xf0]  ;;  %v12605_v5 = vor.u32 %v14490_v3, %v12602_v2  ;;  %v13345_v59 = vor.u32 %v14675_v55, %v13342_v4  ;;  %v13505_v14 = vor.u32 %v14715_v54, %v13502_v46  ;;  %v13162_v3 = vld [vmem:[#allocation26 + $0xd34] sm:$0xf0]  ;;  %v14670_v2 = vld [vmem:[#allocation26 + $0xe64] sm:$0xf] }
 0xe04   : > { %8945 = vmatmul.bf16.vlgmr.msrb.gmra.mxu2 %v18109_v40  ;;  %8951 = vmatpush.bf16.msrb.mxu3 %v12405_v60  ;;  %v12325_v60 = vor.u32 %v14420_v52, %v12322_v7  ;;  %v14600_v52 = vld [vmem:[#allocation26 + $0xc34] sm:$0xf]  ;;  %v13042_v7 = vld [vmem:[#allocation26 + $0xc44] sm:$0xf0] }
 0xe05   : > { %v13282_v55 = vld [vmem:[#allocation26 + $0xe24] sm:$0xf0]  ;;  %v14700_v4 = vld [vmem:[#allocation26 + $0xf54] sm:$0xf] }
 0xe06   : > { %8964 = vmatpush.bf16.msra.mxu0 %v12565_v32  ;;  %8977 = vmatpush.bf16.msrb.mxu1 %v12725_v30  ;;  %v12485_v32 = vor.u32 %v14460_v57, %v12482_v27  ;;  %v12645_v30 = vor.u32 %v14500_v13, %v12642_v36  ;;  %v14640_v57 = vld [vmem:[#allocation26 + $0xd74] sm:$0xf]  ;;  %v13202_v27 = vld [vmem:[#allocation26 + $0xd84] sm:$0xf0] }
 0xe07   : > { %8990 = vmatpush.bf16.msra.mxu2 %v12885_v37  ;;  %v12805_v37 = vor.u32 %v14540_v48, %v12802_v20  ;;  %v14680_v13 = vld [vmem:[#allocation26 + $0xeb4] sm:$0xf]  ;;  %v13362_v36 = vld [vmem:[#allocation26 + $0xec4] sm:$0xf0] }
 0xe08   : > { %8952 = vmatpush.bf16.msrb.mxu3 %v12385_v33  ;;  %v12305_v33 = vor.u32 %v14415_v9, %v12302_v35  ;;  %v14720_v48 = vld [vmem:[#allocation26 + $0xff4] sm:$0xf]  ;;  %v13522_v20 = vld [vmem:[#allocation26 + $0x1004] sm:$0xf0]  ;;  %v14595_v9 = vld [vmem:[#allocation26 + $0xc0c] sm:$0xf] }
 0xe09   : > { %v13022_v35 = vld [vmem:[#allocation26 + $0xc1c] sm:$0xf0]  ;;  %v13525_v39 = vor.u32 %v14720_v48, %v13522_v20  ;;  %v13442_v54 = vld [vmem:[#allocation26 + $0xf64] sm:$0xf0] }
 0xe0a   : > { %8965 = vmatpush.bf16.msra.mxu0 %v12545_v29  ;;  %8978 = vmatpush.bf16.msrb.mxu1 %v12705_v26  ;;  %v14410_v29 = vld [vmem:[#allocation26 + $0x644] sm:$0xf]  ;;  %v14605_v26 = vld [vmem:[#allocation26 + $0xc5c] sm:$0xf] }
 0xe0b   : > { %8991 = vmatpush.bf16.msra.mxu2 %v12865_v49  ;;  %v13062_v49 = vld [vmem:[#allocation26 + $0xc6c] sm:$0xf0]  ;;  %v12285_v34 = vor.u32 %v14410_v29, %v12282_v25  ;;  %v13025_v29 = vor.u32 %v14595_v9, %v13022_v35 }
 0xe0c   : > { %8953 = vmatpush.bf16.msrb.mxu3 %v12365_v58  ;;  %v14530_v58 = vld [vmem:[#allocation26 + $0xa04] sm:$0xf]  ;;  %v13065_v11 = vor.u32 %v14605_v26, %v13062_v49 }
 0xe0d   : > { %v14590_v49 = vld [vmem:[#allocation26 + $0xbe4] sm:$0xf] }
 0xe0e   : > { %8966 = vmatpush.bf16.msra.mxu0 %v12525_v1  ;;  %8979 = vmatpush.bf16.msrb.mxu1 %v12685_v17  ;;  %v12762_v1 = vld [vmem:[#allocation26 + $0xa14] sm:$0xf0]  ;;  %v13222_v17 = vld [vmem:[#allocation26 + $0xdac] sm:$0xf0] }
 0xe0f   : > { %8992 = vmatpush.bf16.msra.mxu2 %v12845_v38  ;;  %v14685_v38 = vld [vmem:[#allocation26 + $0xedc] sm:$0xf] }
 0xe10   : > { %8954 = vmatpush.bf16.msrb.mxu3 %v12345_v28  ;;  %v12765_v28 = vor.u32 %v14530_v58, %v12762_v1  ;;  %v13322_v1 = vld [vmem:[#allocation26 + $0xe74] sm:$0xf0] }
 0xe12   : > { %8967 = vmatpush.bf16.msra.mxu0 %v12505_v24  ;;  %8980 = vmatpush.bf16.msrb.mxu1 %v12665_v0  ;;  %v13225_v24 = vor.u32 %v14645_v47, %v13222_v17  ;;  %v13385_v0 = vor.u32 %v14685_v38, %v13382_v50  ;;  %v13482_v47 = vld [vmem:[#allocation26 + $0xfb4] sm:$0xf0]  ;;  %v12982_v50 = vld [vmem:[#allocation26 + $0xbcc] sm:$0xf0] }
 0xe13   : > { %8993 = vmatpush.bf16.msra.mxu2 %v12825_v19  ;;  %v13545_v19 = vor.u32 %v14725_v18, %v13542_v8  ;;  %v13325_v18 = vor.u32 %v14670_v2, %v13322_v1  ;;  %v13262_v2 = vld [vmem:[#allocation26 + $0xdfc] sm:$0xf0] }
 0xe14   : > { %8955 = vmatpush.bf16.msrb.mxu3 %v12325_v60  ;;  %v13045_v60 = vor.u32 %v14600_v52, %v13042_v7  ;;  %v14665_v52 = vld [vmem:[#allocation26 + $0xe3c] sm:$0xf]  ;;  %v13302_v7 = vld [vmem:[#allocation26 + $0xe4c] sm:$0xf0]  ;;  %v13422_v1 = vld [vmem:[#allocation26 + $0xf3c] sm:$0xf0] }
 0xe15   : > { %v13305_v35 = vor.u32 %v14665_v52, %v13302_v7  ;;  %v13082_v52 = vld [vmem:[#allocation26 + $0xc94] sm:$0xf0]  ;;  %v14650_v7 = vld [vmem:[#allocation26 + $0xdc4] sm:$0xf] }
 0xe16   : > { %8968 = vmatpush.bf16.msra.mxu0 %v12485_v32  ;;  %8981 = vmatpush.bf16.msrb.mxu1 %v12645_v30  ;;  %v13205_v32 = vor.u32 %v14640_v57, %v13202_v27  ;;  %v14635_v30 = vld [vmem:[#allocation26 + $0xd4c] sm:$0xf] }
 0xe17   : > { %8994 = vmatpush.bf16.msra.mxu2 %v12805_v37  ;;  %v13365_v37 = vor.u32 %v14680_v13, %v13362_v36 }
 0xe18   : > { %8956 = vmatpush.bf16.msrb.mxu3 %v12305_v33  ;;  %v18158_v33 = vld [vmem:[#allocation28] sm:$0x1f] }
 0xe19   : > { %v8680_v58 = vperm.slane %v18158_v33, 0 }
 0xe1a   : > { %8969 = vmatpush.bf16.msra.mxu0 %v12465_v45  ;;  %8982 = vmatpush.bf16.msrb.mxu1 %v12625_v43  ;;  %v13185_v45 = vor.u32 %v14635_v30, %v13182_v51  ;;  %v13002_v43 = vld [vmem:[#allocation26 + $0xbf4] sm:$0xf0]  ;;  %v14660_v51 = vld [vmem:[#allocation26 + $0xe14] sm:$0xf] }
 0xe1b   : > { %8995 = vmatpush.bf16.msra.mxu2 %v12785_v6  ;;  %v14630_v6 = vld [vmem:[#allocation26 + $0xd24] sm:$0xf]  ;;  %v13005_v17 = vor.u32 %v14590_v49, %v13002_v43  ;;  %v14575_v49 = vld [vmem:[#allocation26 + $0xb6c] sm:$0xf]  ;;  %v12942_v43 = vld [vmem:[#allocation26 + $0xb7c] sm:$0xf0] }
 0xe1c   : > { %8957 = vmatpush.bf16.msrb.mxu3 %v12285_v34  ;;  %v14710_v34 = vld [vmem:[#allocation26 + $0xfa4] sm:$0xf]  ;;  %v13165_v38 = vor.u32 %v14630_v6, %v13162_v3  ;;  %v13285_v6 = vor.u32 %v14660_v51, %v13282_v55  ;;  %v14655_v3 = vld [vmem:[#allocation26 + $0xdec] sm:$0xf] }
 0xe1d   : > { %v8712_v25 = vpop.f32.mrf.mxu0  ;;  %v8725_v26 = vpop.f32.mrf.mxu1  ;;  %v13485_v8 = vor.u32 %v14710_v34, %v13482_v47  ;;  %v12945_v34 = vor.u32 %v14575_v49, %v12942_v43  ;;  %v14800_v49 = vld [vmem:[#allocation26 + $0x1274] sm:$0xf]  ;;  %v13842_v43 = vld [vmem:[#allocation26 + $0x1284] sm:$0xf0] }
 0xe1e   : > { %8970 = vmatpush.bf16.msra.mxu0 %v12445_v63  ;;  %8983 = vmatpush.bf16.msrb.mxu1 %v12605_v5  ;;  %v14585_v63 = vld [vmem:[#allocation26 + $0xbbc] sm:$0xf] }
 0xe1f   : > { %8996 = vmatpush.bf16.msra.mxu2 %v12765_v28  ;;  %8958 = vmatmul.bf16.vlgmr.msrb.gmra.mxu3 %v18111_v23  ;;  %v14625_v28 = vld [vmem:[#allocation26 + $0xcfc] sm:$0xf]  ;;  %v12985_v27 = vor.u32 %v14585_v63, %v12982_v50  ;;  %v12922_v63 = vld [vmem:[#allocation26 + $0xb54] sm:$0xf0] }
 0xe20   : > { %9002 = vmatpush.bf16.msra.mxu3 %v13065_v11  ;;  %v14765_v50 = vld [vmem:[#allocation26 + $0x115c] sm:$0xf] }
 0xe21   : > { %8971 = vmatmul.bf16.vlgmr.msra.gmra.mxu0 %v18114_v62  ;;  %8984 = vmatmul.bf16.vlgmr.msrb.gmra.mxu1 %v18116_v56  ;;  %v8699_v11 = vpop.f32.mrf.mxu3 }
 0xe22   : > { %9015 = vmatpush.bf16.msrb.mxu0 %v13225_v24  ;;  %9028 = vmatpush.bf16.msra.mxu1 %v13385_v0  ;;  %v8700_v5 = vadd.f32 %v8699_v11, %v8680_v58  ;;  %v13142_v24 = vld [vmem:[#allocation26 + $0xd0c] sm:$0xf0]  ;;  %v14705_v0 = vld [vmem:[#allocation26 + $0xf7c] sm:$0xf]  ;;  %v14695_v58 = vld [vmem:[#allocation26 + $0xf2c] sm:$0xf] }
 0xe23   : > { %9041 = vmatpush.bf16.msrb.mxu2 %v13545_v19  ;;  %v13462_v19 = vld [vmem:[#allocation26 + $0xf8c] sm:$0xf0]  ;;  %v13145_v36 = vor.u32 %v14625_v28, %v13142_v24  ;;  %v14610_v24 = vld [vmem:[#allocation26 + $0xc84] sm:$0xf] }
 0xe24   : > { %8997 = vmatmul.bf16.vlgmr.msra.gmra.mxu2 %v18126_v31  ;;  %9003 = vmatpush.bf16.msra.mxu3 %v13045_v60  ;;  %v8713_v57 = vadd.f32 %v8712_v25, %v8700_v5  ;;  %v8738_v13 = vpop.f32.mrf.mxu2  ;;  %v14580_v60 = vld [vmem:[#allocation26 + $0xb94] sm:$0xf]  ;;  %v13465_v30 = vor.u32 %v14705_v0, %v13462_v19  ;;  %v13425_v5 = vor.u32 %v14695_v58, %v13422_v1  ;;  %v13242_v0 = vld [vmem:[#allocation26 + $0xdd4] sm:$0xf0]  ;;  %v14690_v19 = vld [vmem:[#allocation26 + $0xf04] sm:$0xf] }
 0xe25   : > { %v8714_v48 = vpop.f32.mrf.mxu0  ;;  %v8727_v20 = vpop.f32.mrf.mxu1 }
 0xe26   : > { %9016 = vmatpush.bf16.msrb.mxu0 %v13205_v32  ;;  %9029 = vmatpush.bf16.msra.mxu1 %v13365_v37  ;;  %v12962_v32 = vld [vmem:[#allocation26 + $0xba4] sm:$0xf0]  ;;  %v8726_v9 = vadd.f32 %v8725_v26, %v8713_v57  ;;  %v14620_v37 = vld [vmem:[#allocation26 + $0xcd4] sm:$0xf]  ;;  %v13445_v26 = vor.u32 %v14700_v4, %v13442_v54  ;;  %v13402_v57 = vld [vmem:[#allocation26 + $0xf14] sm:$0xf0] }
 0xe27   : > { %9042 = vmatpush.bf16.msrb.mxu2 %v13525_v39  ;;  %v13122_v39 = vld [vmem:[#allocation26 + $0xce4] sm:$0xf0]  ;;  %v11628_v48 = vld [vmem:[#allocation26 + $0x120] sm:$0xf]  ;;  %v14760_v4 = vld [vmem:[#allocation26 + $0x1134] sm:$0xf] }
 0xe28   : > { %9004 = vmatpush.bf16.msra.mxu3 %v13025_v29  ;;  %v8739_v46 = vadd.f32 %v8738_v13, %v8726_v9  ;;  %v12965_v29 = vor.u32 %v14580_v60, %v12962_v32  ;;  %v14805_v13 = vld [vmem:[#allocation26 + $0x129c] sm:$0xf]  ;;  %v13085_v60 = vor.u32 %v14610_v24, %v13082_v52  ;;  %v14248_v32 = vld [vmem:[#allocation26 + $0x130] sm:$0xf0]  ;;  %v11788_v9 = vld [vmem:[#allocation26 + $0x260] sm:$0xf] }
 0xe29   : > { %v8701_v25 = vpop.f32.mrf.mxu3  ;;  %v13682_v54 = vld [vmem:[#allocation26 + $0x1144] sm:$0xf0]  ;;  %v11748_v24 = vld [vmem:[#allocation26 + $0x210] sm:$0xf]  ;;  %v14278_v52 = vld [vmem:[#allocation26 + $0x220] sm:$0xf0] }
 0xe2a   : > { %9017 = vmatpush.bf16.msrb.mxu0 %v13185_v45  ;;  %9030 = vmatpush.bf16.msra.mxu1 %v13345_v59  ;;  %v13125_v45 = vor.u32 %v14620_v37, %v13122_v39  ;;  %v14615_v59 = vld [vmem:[#allocation26 + $0xcac] sm:$0xf]  ;;  %v13405_v37 = vor.u32 %v14690_v19, %v13402_v57  ;;  %v14750_v19 = vld [vmem:[#allocation26 + $0x10e4] sm:$0xf]  ;;  %v13642_v57 = vld [vmem:[#allocation26 + $0x10f4] sm:$0xf0] }
 0xe2b   : > { %9043 = vmatpush.bf16.msrb.mxu2 %v13505_v14  ;;  %v13102_v14 = vld [vmem:[#allocation26 + $0xcbc] sm:$0xf0] }
 0xe2c   : > { %9005 = vmatpush.bf16.msra.mxu3 %v13005_v17  ;;  %v8740_v47 = vpop.f32.mrf.mxu2  ;;  %v14570_v17 = vld [vmem:[#allocation26 + $0xb44] sm:$0xf] }
 0xe2d   : > { %v8764_v11 = vpop.f32.mrf.mxu0  ;;  %v14755_v47 = vld [vmem:[#allocation26 + $0x110c] sm:$0xf] }
 0xe2e   : > { %9018 = vmatpush.bf16.msrb.mxu0 %v13165_v38  ;;  %9031 = vmatpush.bf16.msra.mxu1 %v13325_v18  ;;  %v13105_v38 = vor.u32 %v14615_v59, %v13102_v14  ;;  %v13702_v18 = vld [vmem:[#allocation26 + $0x116c] sm:$0xf0]  ;;  %v8777_v28 = vpop.f32.mrf.mxu1  ;;  %v14243_v14 = vld [vmem:[#allocation26 + $0x108] sm:$0xf0] }
 0xe2f   : > { %9044 = vmatpush.bf16.msrb.mxu2 %v13485_v8  ;;  %v13265_v8 = vor.u32 %v14655_v3, %v13262_v2  ;;  %v13705_v20 = vor.u32 %v14765_v50, %v13702_v18  ;;  %v11768_v3 = vld [vmem:[#allocation26 + $0x238] sm:$0xf]  ;;  %v14283_v2 = vld [vmem:[#allocation26 + $0x248] sm:$0xf0]  ;;  %v13822_v50 = vld [vmem:[#allocation26 + $0x125c] sm:$0xf0] }
 0xe30   : > { %9006 = vmatpush.bf16.msra.mxu3 %v12985_v27  ;;  %v12925_v27 = vor.u32 %v14570_v17, %v12922_v63  ;;  %v13662_v17 = vld [vmem:[#allocation26 + $0x111c] sm:$0xf0]  ;;  %v11769_v63 = vor.u32 %v14283_v2, %v11768_v3  ;;  %v11588_v18 = vld [vmem:[#allocation26 + $0xd0] sm:$0xf]  ;;  %v14740_v3 = vld [vmem:[#allocation26 + $0x1094] sm:$0xf] }
 0xe31   : > { %v13602_v2 = vld [vmem:[#allocation26 + $0x10a4] sm:$0xf0] }
 0xe32   : > { %9019 = vmatpush.bf16.msrb.mxu0 %v13145_v36  ;;  %9032 = vmatpush.bf16.msra.mxu1 %v13305_v35  ;;  %v13862_v36 = vld [vmem:[#allocation26 + $0x12ac] sm:$0xf0]  ;;  %v14288_v35 = vld [vmem:[#allocation26 + $0x270] sm:$0xf0]  ;;  %v8751_v39 = vpop.f32.mrf.mxu3 }
 0xe33   : > { %9045 = vmatpush.bf16.msrb.mxu2 %v13465_v30  ;;  %v13245_v30 = vor.u32 %v14650_v7, %v13242_v0  ;;  %v8752_v51 = vadd.f32 %v8751_v39, %v8739_v46  ;;  %v13865_v55 = vor.u32 %v14805_v13, %v13862_v36  ;;  %v13685_v46 = vor.u32 %v14760_v4, %v13682_v54  ;;  %v13622_v4 = vld [vmem:[#allocation26 + $0x10cc] sm:$0xf0] }
 0xe34   : > { %9007 = vmatpush.bf16.msra.mxu3 %v12965_v29  ;;  %v11629_v29 = vor.u32 %v14248_v32, %v11628_v48  ;;  %v8790_v25 = vpop.f32.mrf.mxu2  ;;  %v11749_v13 = vor.u32 %v14278_v52, %v11748_v24  ;;  %v14790_v48 = vld [vmem:[#allocation26 + $0x1224] sm:$0xf]  ;;  %v14233_v32 = vld [vmem:[#allocation26 + $0xb8] sm:$0xf0] }
 0xe35   : > { %v8766_v59 = vpop.f32.mrf.mxu0 }
 0xe36   : > { %9020 = vmatpush.bf16.msrb.mxu0 %v13125_v45  ;;  %9033 = vmatpush.bf16.msra.mxu1 %v13285_v6  ;;  %v11789_v45 = vor.u32 %v14288_v35, %v11788_v9  ;;  %v11608_v6 = vld [vmem:[#allocation26 + $0xf8] sm:$0xf]  ;;  %v8779_v58 = vpop.f32.mrf.mxu1  ;;  %v11728_v9 = vld [vmem:[#allocation26 + $0x1e8] sm:$0xf]  ;;  %v14273_v35 = vld [vmem:[#allocation26 + $0x1f8] sm:$0xf0] }
 0xe37   : > { %9046 = vmatpush.bf16.msrb.mxu2 %v13445_v26  ;;  %v8765_v26 = vadd.f32 %v8764_v11, %v8752_v51  ;;  %v14795_v11 = vld [vmem:[#allocation26 + $0x124c] sm:$0xf] }
 0xe38   : > { %9008 = vmatpush.bf16.msra.mxu3 %v12945_v34  ;;  %v13845_v34 = vor.u32 %v14800_v49, %v13842_v43  ;;  %v13825_v0 = vor.u32 %v14795_v11, %v13822_v50  ;;  %v11548_v49 = vld [vmem:[#allocation26 + $0x80] sm:$0xf]  ;;  %v14228_v43 = vld [vmem:[#allocation26 + $0x90] sm:$0xf0]  ;;  %v11688_v11 = vld [vmem:[#allocation26 + $0x198] sm:$0xf] }
 0xe39   : > { %v8778_v1 = vadd.f32 %v8777_v28, %v8765_v26  ;;  %v13665_v28 = vor.u32 %v14755_v47, %v13662_v17  ;;  %v14268_v26 = vld [vmem:[#allocation26 + $0x1d0] sm:$0xf0]  ;;  %v11549_v58 = vor.u32 %v14228_v43, %v11548_v49  ;;  %v13762_v47 = vld [vmem:[#allocation26 + $0x11e4] sm:$0xf0]  ;;  %v11528_v17 = vld [vmem:[#allocation26 + $0x58] sm:$0xf] }
 0xe3a   : > { %9021 = vmatpush.bf16.msrb.mxu0 %v13105_v38  ;;  %9034 = vmatpush.bf16.msra.mxu1 %v13265_v8  ;;  %v11609_v38 = vor.u32 %v14243_v14, %v11608_v6  ;;  %v8753_v7 = vpop.f32.mrf.mxu3  ;;  %v11708_v6 = vld [vmem:[#allocation26 + $0x1c0] sm:$0xf]  ;;  %v14263_v50 = vld [vmem:[#allocation26 + $0x1a8] sm:$0xf0]  ;;  %v11488_v49 = vld [vmem:[#allocation26 + $0x8] sm:$0xf] }
 0xe3b   : > { %9047 = vmatpush.bf16.msrb.mxu2 %v13425_v5  ;;  %v8791_v8 = vadd.f32 %v8790_v25, %v8778_v1  ;;  %v14238_v5 = vld [vmem:[#allocation26 + $0xe0] sm:$0xf0]  ;;  %v13782_v25 = vld [vmem:[#allocation26 + $0x120c] sm:$0xf0]  ;;  %v11709_v1 = vor.u32 %v14268_v26, %v11708_v6  ;;  %v14213_v43 = vld [vmem:[#allocation26 + $0x18] sm:$0xf0] }
 0xe3c   : > { %9009 = vmatpush.bf16.msra.mxu3 %v12925_v27  ;;  %v11589_v27 = vor.u32 %v14238_v5, %v11588_v18  ;;  %v8792_v36 = vpop.f32.mrf.mxu2  ;;  %v13605_v5 = vor.u32 %v14740_v3, %v13602_v2  ;;  %v11648_v6 = vld [vmem:[#allocation26 + $0x148] sm:$0xf]  ;;  %v14253_v26 = vld [vmem:[#allocation26 + $0x158] sm:$0xf0]  ;;  %v12108_v3 = vld [vmem:[#allocation26 + $0x4e0] sm:$0xf] }
 0xe3d   : > { %v13742_v36 = vld [vmem:[#allocation26 + $0x11bc] sm:$0xf0]  ;;  %v14368_v2 = vld [vmem:[#allocation26 + $0x4f0] sm:$0xf0] }
 0xe3e   : > { %9022 = vmatpush.bf16.msrb.mxu0 %v13085_v60  ;;  %9035 = vmatpush.bf16.msra.mxu1 %v13245_v30  ;;  %v11568_v60 = vld [vmem:[#allocation26 + $0xa8] sm:$0xf]  ;;  %v13645_v30 = vor.u32 %v14750_v19, %v13642_v57  ;;  %v8829_v39 = vpop.f32.mrf.mxu1  ;;  %v13582_v19 = vld [vmem:[#allocation26 + $0x107c] sm:$0xf0] }
 0xe3f   : > { %9048 = vmatpush.bf16.msrb.mxu2 %v13405_v37  ;;  %9010 = vmatmul.bf16.vlgmr.msra.gmra.mxu3 %v18128_v53  ;;  %v8816_v37 = vpop.f32.mrf.mxu0  ;;  %v11569_v54 = vor.u32 %v14233_v32, %v11568_v60  ;;  %v11668_v60 = vld [vmem:[#allocation26 + $0x170] sm:$0xf]  ;;  %v14258_v32 = vld [vmem:[#allocation26 + $0x180] sm:$0xf0] }
 0xe40   : > { %9054 = vmatpush.bf16.msrb.mxu3 %v13705_v20  ;;  %v13802_v20 = vld [vmem:[#allocation26 + $0x1234] sm:$0xf0] }
 0xe41   : > { %9023 = vmatmul.bf16.vlgmr.msrb.gmra.mxu0 %v18130_v61  ;;  %9036 = vmatmul.bf16.vlgmr.msra.gmra.mxu1 %v18132_v21  ;;  %v13805_v51 = vor.u32 %v14790_v48, %v13802_v20  ;;  %v14218_v20 = vld [vmem:[#allocation26 + $0x40] sm:$0xf0] }
 0xe42   : > { %9067 = vmatpush.bf16.msra.mxu0 %v13865_v55  ;;  %9080 = vmatpush.bf16.msrb.mxu1 %v11629_v29  ;;  %v14745_v55 = vld [vmem:[#allocation26 + $0x10bc] sm:$0xf]  ;;  %v11729_v29 = vor.u32 %v14273_v35, %v11728_v9  ;;  %v14730_v35 = vld [vmem:[#allocation26 + $0x1044] sm:$0xf] }
 0xe43   : > { %9093 = vmatpush.bf16.msra.mxu2 %v11789_v45  ;;  %v14785_v45 = vld [vmem:[#allocation26 + $0x11fc] sm:$0xf]  ;;  %v13625_v59 = vor.u32 %v14745_v55, %v13622_v4  ;;  %v11948_v55 = vld [vmem:[#allocation26 + $0x3a0] sm:$0xf]  ;;  %v14328_v4 = vld [vmem:[#allocation26 + $0x3b0] sm:$0xf0] }
 0xe44   : > { %9049 = vmatmul.bf16.vlgmr.msrb.gmra.mxu2 %v18141_v44  ;;  %9055 = vmatpush.bf16.msrb.mxu3 %v13685_v46  ;;  %v13785_v14 = vor.u32 %v14785_v45, %v13782_v25  ;;  %v8803_v46 = vpop.f32.mrf.mxu3  ;;  %v11669_v45 = vor.u32 %v14258_v32, %v11668_v60  ;;  %v14770_v25 = vld [vmem:[#allocation26 + $0x1184] sm:$0xf]  ;;  %v12068_v60 = vld [vmem:[#allocation26 + $0x490] sm:$0xf] }
 0xe45   : > { %v14358_v32 = vld [vmem:[#allocation26 + $0x4a0] sm:$0xf0] }
 0xe46   : > { %9068 = vmatpush.bf16.msra.mxu0 %v13845_v34  ;;  %9081 = vmatpush.bf16.msrb.mxu1 %v11609_v38  ;;  %v14780_v34 = vld [vmem:[#allocation26 + $0x11d4] sm:$0xf]  ;;  %v8804_v38 = vadd.f32 %v8803_v46, %v8791_v8  ;;  %v11508_v8 = vld [vmem:[#allocation26 + $0x30] sm:$0xf]  ;;  %v12268_v46 = vld [vmem:[#allocation26 + $0x620] sm:$0xf] }
 0xe47   : > { %9094 = vmatpush.bf16.msra.mxu2 %v11769_v63  ;;  %v14223_v63 = vld [vmem:[#allocation26 + $0x68] sm:$0xf0]  ;;  %v8842_v18 = vpop.f32.mrf.mxu2  ;;  %v8818_v24 = vpop.f32.mrf.mxu0  ;;  %v13765_v7 = vor.u32 %v14780_v34, %v13762_v47  ;;  %v14408_v34 = vld [vmem:[#allocation26 + $0x630] sm:$0xf0]  ;;  %v12428_v47 = vld [vmem:[#allocation26 + $0x760] sm:$0xf] }
 0xe48   : > { %9056 = vmatpush.bf16.msrb.mxu3 %v13665_v28  ;;  %v8817_v52 = vadd.f32 %v8816_v37, %v8804_v38  ;;  %v8831_v28 = vpop.f32.mrf.mxu1  ;;  %v11529_v57 = vor.u32 %v14223_v63, %v11528_v17  ;;  %v14448_v17 = vld [vmem:[#allocation26 + $0x770] sm:$0xf0]  ;;  %v11489_v38 = vor.u32 %v14213_v43, %v11488_v49  ;;  %v11649_v63 = vor.u32 %v14253_v26, %v11648_v6  ;;  %v14353_v49 = vld [vmem:[#allocation26 + $0x478] sm:$0xf0]  ;;  %v12208_v43 = vld [vmem:[#allocation26 + $0x5a8] sm:$0xf] }
 0xe49   : > { %v12429_v24 = vor.u32 %v14448_v17, %v12428_v47  ;;  %v14363_v28 = vld [vmem:[#allocation26 + $0x4c8] sm:$0xf0]  ;;  %v14393_v6 = vld [vmem:[#allocation26 + $0x5b8] sm:$0xf0]  ;;  %v12368_v26 = vld [vmem:[#allocation26 + $0x6e8] sm:$0xf] }
 0xe4a   : > { %9069 = vmatpush.bf16.msra.mxu0 %v13825_v0  ;;  %9082 = vmatpush.bf16.msrb.mxu1 %v11589_v27  ;;  %v14735_v0 = vld [vmem:[#allocation26 + $0x106c] sm:$0xf]  ;;  %v11689_v27 = vor.u32 %v14263_v50, %v11688_v11  ;;  %v8830_v48 = vadd.f32 %v8829_v39, %v8817_v52  ;;  %v13722_v39 = vld [vmem:[#allocation26 + $0x1194] sm:$0xf0]  ;;  %v12109_v11 = vor.u32 %v14368_v2, %v12108_v3  ;;  %v12028_v17 = vld [vmem:[#allocation26 + $0x440] sm:$0xf] }
 0xe4b   : > { %9095 = vmatpush.bf16.msra.mxu2 %v11749_v13  ;;  %v14775_v13 = vld [vmem:[#allocation26 + $0x11ac] sm:$0xf]  ;;  %v13585_v9 = vor.u32 %v14735_v0, %v13582_v19  ;;  %v11928_v50 = vld [vmem:[#allocation26 + $0x378] sm:$0xf] }
 0xe4c   : > { %9057 = vmatpush.bf16.msrb.mxu3 %v13645_v30  ;;  %v18166_v30 = vadd.f32 %v8842_v18, %v8830_v48  ;;  %v13745_v37 = vor.u32 %v14775_v13, %v13742_v36  ;;  %v14323_v18 = vld [vmem:[#allocation26 + $0x388] sm:$0xf0]  ;;  %v12088_v52 = vld [vmem:[#allocation26 + $0x4b8] sm:$0xf]  ;;  %v11908_v36 = vld [vmem:[#allocation26 + $0x350] sm:$0xf] }
 0xe4d   : > { %v14403_v0 = vld [vmem:[#allocation26 + $0x608] sm:$0xf0]  ;;  %v12408_v19 = vld [vmem:[#allocation26 + $0x738] sm:$0xf]  ;;  %v12089_v13 = vor.u32 %v14363_v28, %v12088_v52 }
 0xe4e   : > { %9070 = vmatpush.bf16.msra.mxu0 %v13805_v51  ;;  %9083 = vmatpush.bf16.msrb.mxu1 %v11569_v54  ;;  %v13562_v51 = vld [vmem:[#allocation26 + $0x1054] sm:$0xf0]  ;;  %v8805_v54 = vpop.f32.mrf.mxu3 }
 0xe4f   : > { %9096 = vmatpush.bf16.msra.mxu2 %v11729_v29  ;;  %v11509_v29 = vor.u32 %v14218_v20, %v11508_v8  ;;  %v14318_v8 = vld [vmem:[#allocation26 + $0x360] sm:$0xf0]  ;;  %v11888_v54 = vld [vmem:[#allocation26 + $0x328] sm:$0xf] }
 0xe50   : > { %9058 = vmatpush.bf16.msrb.mxu3 %v13625_v59  ;;  %v8844_v59 = vpop.f32.mrf.mxu2 }
 0xe51   : > { %v14433_v59 = vld [vmem:[#allocation26 + $0x6f8] sm:$0xf0] }
 0xe52   : > { %9071 = vmatpush.bf16.msra.mxu0 %v13785_v14  ;;  %9084 = vmatpush.bf16.msrb.mxu1 %v11549_v58  ;;  %v13565_v14 = vor.u32 %v14730_v35, %v13562_v51  ;;  %v11949_v58 = vor.u32 %v14328_v4, %v11948_v55  ;;  %v14398_v35 = vld [vmem:[#allocation26 + $0x5e0] sm:$0xf0]  ;;  %v11909_v55 = vor.u32 %v14318_v8, %v11908_v36  ;;  %v12168_v36 = vld [vmem:[#allocation26 + $0x558] sm:$0xf] }
 0xe53   : > { %9097 = vmatpush.bf16.msra.mxu2 %v11709_v1  ;;  %v13725_v1 = vor.u32 %v14770_v25, %v13722_v39  ;;  %v14438_v51 = vld [vmem:[#allocation26 + $0x720] sm:$0xf0]  ;;  %v12069_v4 = vor.u32 %v14358_v32, %v12068_v60  ;;  %v12048_v39 = vld [vmem:[#allocation26 + $0x468] sm:$0xf]  ;;  %v12369_v47 = vor.u32 %v14433_v59, %v12368_v26  ;;  %v12328_v60 = vld [vmem:[#allocation26 + $0x698] sm:$0xf] }
 0xe54   : > { %9059 = vmatpush.bf16.msrb.mxu3 %v13605_v5  ;;  %v12269_v5 = vor.u32 %v14408_v34, %v12268_v46  ;;  %v12049_v46 = vor.u32 %v14353_v49, %v12048_v39  ;;  %v12209_v34 = vor.u32 %v14393_v6, %v12208_v43  ;;  %v14423_v32 = vld [vmem:[#allocation26 + $0x6a8] sm:$0xf0]  ;;  %v12148_v39 = vld [vmem:[#allocation26 + $0x530] sm:$0xf]  ;;  %v14378_v49 = vld [vmem:[#allocation26 + $0x540] sm:$0xf0] }
 0xe55   : > { %v12308_v43 = vld [vmem:[#allocation26 + $0x670] sm:$0xf]  ;;  %v14418_v6 = vld [vmem:[#allocation26 + $0x680] sm:$0xf0] }
 0xe56   : > { %9072 = vmatpush.bf16.msra.mxu0 %v13765_v7  ;;  %9085 = vmatpush.bf16.msrb.mxu1 %v11529_v57  ;;  %v12248_v7 = vld [vmem:[#allocation26 + $0x5f8] sm:$0xf]  ;;  %v14443_v57 = vld [vmem:[#allocation26 + $0x748] sm:$0xf0] }
 0xe57   : > { %9098 = vmatpush.bf16.msra.mxu2 %v11689_v27  ;;  %v11929_v27 = vor.u32 %v14323_v18, %v11928_v50  ;;  %v12249_v48 = vor.u32 %v14403_v0, %v12248_v7  ;;  %v12409_v20 = vor.u32 %v14443_v57, %v12408_v19  ;;  %v12348_v50 = vld [vmem:[#allocation26 + $0x6c0] sm:$0xf]  ;;  %v14428_v18 = vld [vmem:[#allocation26 + $0x6d0] sm:$0xf0]  ;;  %v11848_v7 = vld [vmem:[#allocation26 + $0x2d8] sm:$0xf] }
 0xe58   : > { %9060 = vmatpush.bf16.msrb.mxu3 %v13585_v9  ;;  %v12228_v9 = vld [vmem:[#allocation26 + $0x5d0] sm:$0xf]  ;;  %v14303_v0 = vld [vmem:[#allocation26 + $0x2e8] sm:$0xf0]  ;;  %v12349_v57 = vor.u32 %v14428_v18, %v12348_v50  ;;  %v12288_v50 = vld [vmem:[#allocation26 + $0x648] sm:$0xf] }
 0xe59   : > { %v14413_v18 = vld [vmem:[#allocation26 + $0x658] sm:$0xf0] }
 0xe5a   : > { %9073 = vmatpush.bf16.msra.mxu0 %v13745_v37  ;;  %9086 = vmatpush.bf16.msrb.mxu1 %v11509_v29  ;;  %v12388_v37 = vld [vmem:[#allocation26 + $0x710] sm:$0xf]  ;;  %v14313_v29 = vld [vmem:[#allocation26 + $0x338] sm:$0xf0] }
 0xe5b   : > { %9099 = vmatpush.bf16.msra.mxu2 %v11669_v45  ;;  %v12229_v45 = vor.u32 %v14398_v35, %v12228_v9  ;;  %v12389_v25 = vor.u32 %v14438_v51, %v12388_v37  ;;  %v11849_v9 = vor.u32 %v14303_v0, %v11848_v7 }
 0xe5c   : > { %9061 = vmatpush.bf16.msrb.mxu3 %v13565_v14  ;;  %v11889_v14 = vor.u32 %v14313_v29, %v11888_v54  ;;  %v12329_v29 = vor.u32 %v14423_v32, %v12328_v60  ;;  %v14483_v60 = vld [vmem:[#allocation26 + $0x888] sm:$0xf0] }
 0xe5e   : > { %9074 = vmatpush.bf16.msra.mxu0 %v13725_v1  ;;  %9087 = vmatpush.bf16.msrb.mxu1 %v11489_v38  ;;  %v8868_v3 = vpop.f32.mrf.mxu0  ;;  %v8881_v2 = vpop.f32.mrf.mxu1  ;;  %v14308_v1 = vld [vmem:[#allocation26 + $0x310] sm:$0xf0] }
 0xe5f   : > { %9100 = vmatpush.bf16.msra.mxu2 %v11649_v63  ;;  %9062 = vmatmul.bf16.vlgmr.msrb.gmra.mxu3 %v18144_v16  ;;  %v14348_v38 = vld [vmem:[#allocation26 + $0x450] sm:$0xf0]  ;;  %v12188_v63 = vld [vmem:[#allocation26 + $0x580] sm:$0xf] }
 0xe60   : > { %9106 = vmatpush.bf16.msra.mxu3 %v11949_v58  ;;  %v11868_v58 = vld [vmem:[#allocation26 + $0x300] sm:$0xf]  ;;  %v12029_v28 = vor.u32 %v14348_v38, %v12028_v17  ;;  %v14333_v17 = vld [vmem:[#allocation26 + $0x3d8] sm:$0xf0]  ;;  %v12128_v38 = vld [vmem:[#allocation26 + $0x508] sm:$0xf] }
 0xe61   : > { %9075 = vmatmul.bf16.vlgmr.msra.gmra.mxu0 %v18146_v42  ;;  %9088 = vmatmul.bf16.vlgmr.msrb.gmra.mxu1 %v18090_v22 }
 0xe62   : > { %9119 = vmatpush.bf16.msrb.mxu0 %v12109_v11  ;;  %9132 = vmatpush.bf16.msra.mxu1 %v12269_v5  ;;  %v14388_v11 = vld [vmem:[#allocation26 + $0x590] sm:$0xf0]  ;;  %v11869_v5 = vor.u32 %v14308_v1, %v11868_v58  ;;  %v12149_v1 = vor.u32 %v14378_v49, %v12148_v39  ;;  %v14478_v39 = vld [vmem:[#allocation26 + $0x860] sm:$0xf0] }
 0xe63   : > { %9145 = vmatpush.bf16.msrb.mxu2 %v12429_v24  ;;  %v8855_v24 = vpop.f32.mrf.mxu3  ;;  %v12189_v19 = vor.u32 %v14388_v11, %v12188_v63  ;;  %v14488_v58 = vld [vmem:[#allocation26 + $0x8b0] sm:$0xf0]  ;;  %v14373_v11 = vld [vmem:[#allocation26 + $0x518] sm:$0xf0] }
 0xe64   : > { %9101 = vmatmul.bf16.vlgmr.msra.gmra.mxu2 %v18093_v41  ;;  %9107 = vmatpush.bf16.msra.mxu3 %v11929_v27  ;;  %v8856_v52 = vadd.f32 %v8855_v24, %v18166_v30  ;;  %v12008_v27 = vld [vmem:[#allocation26 + $0x418] sm:$0xf]  ;;  %v12748_v24 = vld [vmem:[#allocation26 + $0x9e0] sm:$0xf] }
 0xe66   : > { %9120 = vmatpush.bf16.msrb.mxu0 %v12089_v13  ;;  %9133 = vmatpush.bf16.msra.mxu1 %v12249_v48  ;;  %v14343_v13 = vld [vmem:[#allocation26 + $0x428] sm:$0xf0]  ;;  %v8869_v8 = vadd.f32 %v8868_v3, %v8856_v52  ;;  %v8870_v35 = vpop.f32.mrf.mxu0  ;;  %v8883_v30 = vpop.f32.mrf.mxu1  ;;  %v14528_v52 = vld [vmem:[#allocation26 + $0x9f0] sm:$0xf0] }
 0xe67   : > { %9146 = vmatpush.bf16.msrb.mxu2 %v12409_v20  ;;  %v18173_v48 = vpop.f32.mrf.mxu2  ;;  %v14383_v20 = vld [vmem:[#allocation26 + $0x568] sm:$0xf0]  ;;  %v12009_v51 = vor.u32 %v14343_v13, %v12008_v27  ;;  %v14608_v27 = vld [vmem:[#allocation26 + $0xc70] sm:$0xf0]  ;;  %v12129_v13 = vor.u32 %v14373_v11, %v12128_v38  ;;  %v12728_v35 = vld [vmem:[#allocation26 + $0x9b8] sm:$0xf] }
 0xe68   : > { %9108 = vmatpush.bf16.msra.mxu3 %v11909_v55  ;;  %v18175_v37 = vadd.f32 %v8881_v2, %v8869_v8  ;;  %v11828_v55 = vld [vmem:[#allocation26 + $0x2b0] sm:$0xf]  ;;  %v12169_v54 = vor.u32 %v14383_v20, %v12168_v36  ;;  %v14293_v2 = vld [vmem:[#allocation26 + $0x298] sm:$0xf0]  ;;  %v12289_v36 = vor.u32 %v14413_v18, %v12288_v50  ;;  %v12749_v8 = vor.u32 %v14528_v52, %v12748_v24  ;;  %v12568_v20 = vld [vmem:[#allocation26 + $0x878] sm:$0xf] }
 0xe69   : > { %v14523_v30 = vld [vmem:[#allocation26 + $0x9c8] sm:$0xf0]  ;;  %v14513_v11 = vld [vmem:[#allocation26 + $0x978] sm:$0xf0]  ;;  %v12848_v50 = vld [vmem:[#allocation26 + $0xaa8] sm:$0xf] }
 0xe6a   : > { %9121 = vmatpush.bf16.msrb.mxu0 %v12069_v4  ;;  %9134 = vmatpush.bf16.msra.mxu1 %v12229_v45  ;;  %v14298_v4 = vld [vmem:[#allocation26 + $0x2c0] sm:$0xf0]  ;;  %v11988_v45 = vld [vmem:[#allocation26 + $0x3f0] sm:$0xf]  ;;  %v14553_v18 = vld [vmem:[#allocation26 + $0xab8] sm:$0xf0] }
 0xe6b   : > { %9147 = vmatpush.bf16.msrb.mxu2 %v12389_v25  ;;  %v14338_v25 = vld [vmem:[#allocation26 + $0x400] sm:$0xf0]  ;;  %v11829_v26 = vor.u32 %v14298_v4, %v11828_v55  ;;  %v8857_v59 = vpop.f32.mrf.mxu3  ;;  %v14563_v55 = vld [vmem:[#allocation26 + $0xb08] sm:$0xf0]  ;;  %v13048_v4 = vld [vmem:[#allocation26 + $0xc38] sm:$0xf] }
 0xe6c   : > { %9109 = vmatpush.bf16.msra.mxu3 %v11889_v14  ;;  %v11808_v14 = vld [vmem:[#allocation26 + $0x288] sm:$0xf]  ;;  %v11989_v3 = vor.u32 %v14338_v25, %v11988_v45  ;;  %v12729_v45 = vor.u32 %v14523_v30, %v12728_v35  ;;  %v12548_v25 = vld [vmem:[#allocation26 + $0x850] sm:$0xf]  ;;  %v14593_v24 = vld [vmem:[#allocation26 + $0xbf8] sm:$0xf0] }
 0xe6d   : > { %v12868_v59 = vld [vmem:[#allocation26 + $0xad0] sm:$0xf] }
 0xe6e   : > { %9122 = vmatpush.bf16.msrb.mxu0 %v12049_v46  ;;  %9135 = vmatpush.bf16.msra.mxu1 %v12209_v34  ;;  %v12588_v46 = vld [vmem:[#allocation26 + $0x8a0] sm:$0xf]  ;;  %v12309_v34 = vor.u32 %v14418_v6, %v12308_v43  ;;  %v12708_v6 = vld [vmem:[#allocation26 + $0x990] sm:$0xf] }
 0xe6f   : > { %9148 = vmatpush.bf16.msrb.mxu2 %v12369_v47  ;;  %v11968_v47 = vld [vmem:[#allocation26 + $0x3c8] sm:$0xf]  ;;  %v8896_v63 = vpop.f32.mrf.mxu2  ;;  %v12589_v7 = vor.u32 %v14488_v58, %v12588_v46  ;;  %v12549_v46 = vor.u32 %v14478_v39, %v12548_v25  ;;  %v8681_v58 = vperm.slane %v18158_v33, 1  ;;  %v12648_v25 = vld [vmem:[#allocation26 + $0x918] sm:$0xf] }
 0xe70   : > { %9110 = vmatpush.bf16.msra.mxu3 %v11869_v5  ;;  %v11809_v5 = vor.u32 %v14293_v2, %v11808_v14  ;;  %v11969_v0 = vor.u32 %v14333_v17, %v11968_v47  ;;  %v14558_v14 = vld [vmem:[#allocation26 + $0xae0] sm:$0xf0]  ;;  %v14473_v47 = vld [vmem:[#allocation26 + $0x838] sm:$0xf0]  ;;  %v12688_v63 = vld [vmem:[#allocation26 + $0x968] sm:$0xf] }
 0xe71   : > { %v14598_v2 = vld [vmem:[#allocation26 + $0xc20] sm:$0xf0]  ;;  %v12869_v17 = vor.u32 %v14558_v14, %v12868_v59  ;;  %v12689_v33 = vor.u32 %v14513_v11, %v12688_v63  ;;  %v14503_v39 = vld [vmem:[#allocation26 + $0x928] sm:$0xf0]  ;;  %v12788_v11 = vld [vmem:[#allocation26 + $0xa30] sm:$0xf] }
 0xe72   : > { %9123 = vmatpush.bf16.msrb.mxu0 %v12029_v28  ;;  %9136 = vmatpush.bf16.msra.mxu1 %v12189_v19  ;;  %v12908_v28 = vld [vmem:[#allocation26 + $0xb20] sm:$0xf]  ;;  %v14568_v19 = vld [vmem:[#allocation26 + $0xb30] sm:$0xf0]  ;;  %v14583_v59 = vld [vmem:[#allocation26 + $0xba8] sm:$0xf0] }
 0xe73   : > { %9149 = vmatpush.bf16.msrb.mxu2 %v12349_v57  ;;  %v13068_v57 = vld [vmem:[#allocation26 + $0xc60] sm:$0xf]  ;;  %v12909_v32 = vor.u32 %v14568_v19, %v12908_v28  ;;  %v14468_v19 = vld [vmem:[#allocation26 + $0x810] sm:$0xf0]  ;;  %v14498_v63 = vld [vmem:[#allocation26 + $0x900] sm:$0xf0] }
 0xe74   : > { %9111 = vmatpush.bf16.msra.mxu3 %v11849_v9  ;;  %v13069_v9 = vor.u32 %v14608_v27, %v13068_v57  ;;  %v12849_v57 = vor.u32 %v14553_v18, %v12848_v50  ;;  %v14538_v18 = vld [vmem:[#allocation26 + $0xa40] sm:$0xf0] }
 0xe76   : > { %9124 = vmatpush.bf16.msrb.mxu0 %v12009_v51  ;;  %9137 = vmatpush.bf16.msra.mxu1 %v12169_v54  ;;  %v12888_v51 = vld [vmem:[#allocation26 + $0xaf8] sm:$0xf]  ;;  %v14603_v54 = vld [vmem:[#allocation26 + $0xc48] sm:$0xf0] }
 0xe77   : > { %9150 = vmatpush.bf16.msrb.mxu2 %v12329_v29  ;;  %v12569_v29 = vor.u32 %v14483_v60, %v12568_v20  ;;  %v12889_v49 = vor.u32 %v14563_v55, %v12888_v51  ;;  %v13049_v43 = vor.u32 %v14603_v54, %v13048_v4  ;;  %v8895_v20 = vadd.f32 %v18173_v48, %v8681_v58  ;;  %v14548_v60 = vld [vmem:[#allocation26 + $0xa90] sm:$0xf0]  ;;  %v12488_v4 = vld [vmem:[#allocation26 + $0x7d8] sm:$0xf]  ;;  %v14463_v54 = vld [vmem:[#allocation26 + $0x7e8] sm:$0xf0] }
 0xe78   : > { %9112 = vmatpush.bf16.msra.mxu3 %v11829_v26  ;;  %v14518_v26 = vld [vmem:[#allocation26 + $0x9a0] sm:$0xf0]  ;;  %v12489_v14 = vor.u32 %v14463_v54, %v12488_v4  ;;  %v12649_v58 = vor.u32 %v14503_v39, %v12648_v25  ;;  %v13548_v4 = vld [vmem:[#allocation26 + $0x1020] sm:$0xf]  ;;  %v14768_v39 = vld [vmem:[#allocation26 + $0x1170] sm:$0xf0] }
 0xe79   : > { %v13708_v25 = vld [vmem:[#allocation26 + $0x1160] sm:$0xf] }
 0xe7a   : > { %9125 = vmatpush.bf16.msrb.mxu0 %v11989_v3  ;;  %9138 = vmatpush.bf16.msra.mxu1 %v12149_v1  ;;  %v13028_v3 = vld [vmem:[#allocation26 + $0xc10] sm:$0xf]  ;;  %v12709_v1 = vor.u32 %v14518_v26, %v12708_v6  ;;  %v14543_v6 = vld [vmem:[#allocation26 + $0xa68] sm:$0xf0]  ;;  %v12968_v26 = vld [vmem:[#allocation26 + $0xb98] sm:$0xf] }
 0xe7b   : > { %9151 = vmatpush.bf16.msrb.mxu2 %v12309_v34  ;;  %v12528_v34 = vld [vmem:[#allocation26 + $0x828] sm:$0xf]  ;;  %v13029_v38 = vor.u32 %v14598_v2, %v13028_v3 }
 0xe7c   : > { %9113 = vmatpush.bf16.msra.mxu3 %v11809_v5  ;;  %v13008_v5 = vld [vmem:[#allocation26 + $0xbe8] sm:$0xf]  ;;  %v12529_v52 = vor.u32 %v14473_v47, %v12528_v34  ;;  %v14458_v34 = vld [vmem:[#allocation26 + $0x7c0] sm:$0xf0] }
 0xe7d   : > { %v13009_v27 = vor.u32 %v14593_v24, %v13008_v5  ;;  %v12948_v5 = vld [vmem:[#allocation26 + $0xb70] sm:$0xf]  ;;  %v14578_v24 = vld [vmem:[#allocation26 + $0xb80] sm:$0xf0] }
 0xe7e   : > { %9126 = vmatpush.bf16.msrb.mxu0 %v11969_v0  ;;  %9139 = vmatpush.bf16.msra.mxu1 %v12129_v13  ;;  %v8920_v28 = vpop.f32.mrf.mxu0  ;;  %v12508_v0 = vld [vmem:[#allocation26 + $0x800] sm:$0xf] }
 0xe7f   : > { %9152 = vmatpush.bf16.msrb.mxu2 %v12289_v36  ;;  %9114 = vmatmul.bf16.vlgmr.msra.gmra.mxu3 %v18095_v15  ;;  %v12668_v13 = vld [vmem:[#allocation26 + $0x940] sm:$0xf]  ;;  %v14508_v36 = vld [vmem:[#allocation26 + $0x950] sm:$0xf0]  ;;  %v12509_v35 = vor.u32 %v14468_v19, %v12508_v0  ;;  %v14453_v0 = vld [vmem:[#allocation26 + $0x798] sm:$0xf0] }
 0xe80   : > { %9158 = vmatpush.bf16.msrb.mxu3 %v12589_v7  ;;  %v8933_v7 = vpop.f32.mrf.mxu1  ;;  %v12669_v55 = vor.u32 %v14508_v36, %v12668_v13  ;;  %v13228_v19 = vld [vmem:[#allocation26 + $0xda0] sm:$0xf]  ;;  %v12949_v13 = vor.u32 %v14578_v24, %v12948_v5  ;;  %v12608_v36 = vld [vmem:[#allocation26 + $0x8c8] sm:$0xf]  ;;  %v13348_v5 = vld [vmem:[#allocation26 + $0xe90] sm:$0xf] }
 0xe81   : > { %9127 = vmatmul.bf16.vlgmr.msrb.gmra.mxu0 %v18097_v12  ;;  %9140 = vmatmul.bf16.vlgmr.msra.gmra.mxu1 %v18109_v40  ;;  %v14678_v24 = vld [vmem:[#allocation26 + $0xea0] sm:$0xf0] }
 0xe82   : > { %9171 = vmatpush.bf16.msra.mxu0 %v12749_v8  ;;  %9184 = vmatpush.bf16.msrb.mxu1 %v12909_v32  ;;  %v12828_v8 = vld [vmem:[#allocation26 + $0xa80] sm:$0xf]  ;;  %v8907_v30 = vpop.f32.mrf.mxu3 }
 0xe83   : > { %9197 = vmatpush.bf16.msra.mxu2 %v13069_v9  ;;  %v12988_v32 = vld [vmem:[#allocation26 + $0xbc0] sm:$0xf]  ;;  %v14588_v9 = vld [vmem:[#allocation26 + $0xbd0] sm:$0xf0]  ;;  %v8908_v51 = vadd.f32 %v8907_v30, %v8895_v20  ;;  %v12768_v20 = vld [vmem:[#allocation26 + $0xa08] sm:$0xf] }
 0xe84   : > { %9153 = vmatmul.bf16.vlgmr.msrb.gmra.mxu2 %v18111_v23  ;;  %9159 = vmatpush.bf16.msrb.mxu3 %v12569_v29  ;;  %v12829_v29 = vor.u32 %v14548_v60, %v12828_v8  ;;  %v14493_v8 = vld [vmem:[#allocation26 + $0x8d8] sm:$0xf0] }
 0xe86   : > { %9172 = vmatpush.bf16.msra.mxu0 %v12729_v45  ;;  %9185 = vmatpush.bf16.msrb.mxu1 %v12889_v49  ;;  %v12989_v45 = vor.u32 %v14588_v9, %v12988_v32  ;;  %v12808_v49 = vld [vmem:[#allocation26 + $0xa58] sm:$0xf]  ;;  %v8922_v3 = vpop.f32.mrf.mxu0  ;;  %v14533_v32 = vld [vmem:[#allocation26 + $0xa18] sm:$0xf0]  ;;  %v12928_v9 = vld [vmem:[#allocation26 + $0xb48] sm:$0xf] }
 0xe87   : > { %9198 = vmatpush.bf16.msra.mxu2 %v13049_v43  ;;  %v8921_v43 = vadd.f32 %v8920_v28, %v8908_v51  ;;  %v8946_v48 = vpop.f32.mrf.mxu2  ;;  %v12809_v47 = vor.u32 %v14543_v6, %v12808_v49  ;;  %v13388_v51 = vld [vmem:[#allocation26 + $0xee0] sm:$0xf]  ;;  %v12769_v49 = vor.u32 %v14533_v32, %v12768_v20  ;;  %v13208_v6 = vld [vmem:[#allocation26 + $0xd78] sm:$0xf]  ;;  %v14673_v20 = vld [vmem:[#allocation26 + $0xe78] sm:$0xf0] }
 0xe88   : > { %9160 = vmatpush.bf16.msrb.mxu3 %v12549_v46  ;;  %v8935_v2 = vpop.f32.mrf.mxu1  ;;  %v13368_v3 = vld [vmem:[#allocation26 + $0xeb8] sm:$0xf]  ;;  %v14713_v32 = vld [vmem:[#allocation26 + $0xfb8] sm:$0xf0] }
 0xe89   : > { %v8934_v46 = vadd.f32 %v8933_v7, %v8921_v43  ;;  %v14683_v2 = vld [vmem:[#allocation26 + $0xec8] sm:$0xf0] }
 0xe8a   : > { %9173 = vmatpush.bf16.msra.mxu0 %v12709_v1  ;;  %9186 = vmatpush.bf16.msrb.mxu1 %v12869_v17  ;;  %v12468_v1 = vld [vmem:[#allocation26 + $0x7b0] sm:$0xf]  ;;  %v12969_v17 = vor.u32 %v14583_v59, %v12968_v26  ;;  %v8909_v28 = vpop.f32.mrf.mxu3  ;;  %v14643_v26 = vld [vmem:[#allocation26 + $0xd88] sm:$0xf0] }
 0xe8b   : > { %9199 = vmatpush.bf16.msra.mxu2 %v13029_v38  ;;  %v12628_v38 = vld [vmem:[#allocation26 + $0x8f0] sm:$0xf]  ;;  %v18183_v50 = vadd.f32 %v8946_v48, %v8934_v46  ;;  %v13528_v46 = vld [vmem:[#allocation26 + $0xff8] sm:$0xf]  ;;  %v14718_v28 = vld [vmem:[#allocation26 + $0xfe0] sm:$0xf0] }
 0xe8c   : > { %9161 = vmatpush.bf16.msrb.mxu3 %v12529_v52  ;;  %v12469_v52 = vor.u32 %v14458_v34, %v12468_v1  ;;  %v12629_v7 = vor.u32 %v14498_v63, %v12628_v38  ;;  %v13688_v1 = vld [vmem:[#allocation26 + $0x1138] sm:$0xf]  ;;  %v14763_v34 = vld [vmem:[#allocation26 + $0x1148] sm:$0xf0]  ;;  %v13188_v38 = vld [vmem:[#allocation26 + $0xd50] sm:$0xf] }
 0xe8d   : > { %v14638_v63 = vld [vmem:[#allocation26 + $0xd60] sm:$0xf0] }
 0xe8e   : > { %9174 = vmatpush.bf16.msra.mxu0 %v12689_v33  ;;  %9187 = vmatpush.bf16.msrb.mxu1 %v12849_v57  ;;  %v12448_v33 = vld [vmem:[#allocation26 + $0x788] sm:$0xf]  ;;  %v14648_v57 = vld [vmem:[#allocation26 + $0xdb0] sm:$0xf0] }
 0xe8f   : > { %9200 = vmatpush.bf16.msra.mxu2 %v13009_v27  ;;  %v12789_v27 = vor.u32 %v14538_v18, %v12788_v11  ;;  %v8948_v60 = vpop.f32.mrf.mxu2  ;;  %v12449_v30 = vor.u32 %v14453_v0, %v12448_v33  ;;  %v13229_v54 = vor.u32 %v14648_v57, %v13228_v19  ;;  %v13689_v18 = vor.u32 %v14763_v34, %v13688_v1  ;;  %v13668_v33 = vld [vmem:[#allocation26 + $0x1110] sm:$0xf]  ;;  %v13168_v57 = vld [vmem:[#allocation26 + $0xd28] sm:$0xf] }
 0xe90   : > { %9162 = vmatpush.bf16.msrb.mxu3 %v12509_v35  ;;  %v14573_v35 = vld [vmem:[#allocation26 + $0xb58] sm:$0xf0]  ;;  %v13189_v0 = vor.u32 %v14638_v63, %v13188_v38  ;;  %v13349_v19 = vor.u32 %v14678_v24, %v13348_v5  ;;  %v13488_v60 = vld [vmem:[#allocation26 + $0xfa8] sm:$0xf]  ;;  %v13448_v38 = vld [vmem:[#allocation26 + $0xf58] sm:$0xf] }
 0xe91   : > { %v12929_v43 = vor.u32 %v14573_v35, %v12928_v9  ;;  %v13648_v9 = vld [vmem:[#allocation26 + $0x10e8] sm:$0xf]  ;;  %v14753_v35 = vld [vmem:[#allocation26 + $0x10f8] sm:$0xf0]  ;;  %v13608_v5 = vld [vmem:[#allocation26 + $0x1098] sm:$0xf] }
 0xe92   : > { %9175 = vmatpush.bf16.msra.mxu0 %v12669_v55  ;;  %9188 = vmatpush.bf16.msrb.mxu1 %v12829_v29  ;;  %v14688_v55 = vld [vmem:[#allocation26 + $0xef0] sm:$0xf0]  ;;  %v12609_v29 = vor.u32 %v14493_v8, %v12608_v36  ;;  %v13328_v8 = vld [vmem:[#allocation26 + $0xe68] sm:$0xf]  ;;  %v14743_v24 = vld [vmem:[#allocation26 + $0x10a8] sm:$0xf0] }
 0xe93   : > { %9201 = vmatpush.bf16.msra.mxu2 %v12989_v45  ;;  %v14728_v45 = vld [vmem:[#allocation26 + $0x1030] sm:$0xf0]  ;;  %v13389_v48 = vor.u32 %v14688_v55, %v13388_v51 }
 0xe94   : > { %9163 = vmatpush.bf16.msrb.mxu3 %v12489_v14  ;;  %v13549_v59 = vor.u32 %v14728_v45, %v13548_v4  ;;  %v13709_v14 = vor.u32 %v14768_v39, %v13708_v25  ;;  %v13329_v4 = vor.u32 %v14673_v20, %v13328_v8  ;;  %v13489_v45 = vor.u32 %v14713_v32, %v13488_v60  ;;  %v13308_v39 = vld [vmem:[#allocation26 + $0xe40] sm:$0xf]  ;;  %v13428_v8 = vld [vmem:[#allocation26 + $0xf30] sm:$0xf]  ;;  %v14698_v60 = vld [vmem:[#allocation26 + $0xf40] sm:$0xf0] }
 0xe95   : > { %v13649_v25 = vor.u32 %v14753_v35, %v13648_v9  ;;  %v13588_v32 = vld [vmem:[#allocation26 + $0x1070] sm:$0xf]  ;;  %v14738_v9 = vld [vmem:[#allocation26 + $0x1080] sm:$0xf0] }
 0xe96   : > { %9176 = vmatpush.bf16.msra.mxu0 %v12649_v58  ;;  %9189 = vmatpush.bf16.msrb.mxu1 %v12809_v47  ;;  %v14723_v58 = vld [vmem:[#allocation26 + $0x1008] sm:$0xf0]  ;;  %v13209_v47 = vor.u32 %v14643_v26, %v13208_v6  ;;  %v13628_v6 = vld [vmem:[#allocation26 + $0x10c0] sm:$0xf]  ;;  %v14748_v26 = vld [vmem:[#allocation26 + $0x10d0] sm:$0xf0] }
 0xe97   : > { %9202 = vmatpush.bf16.msra.mxu2 %v12969_v17  ;;  %v13369_v17 = vor.u32 %v14683_v2, %v13368_v3  ;;  %v13529_v11 = vor.u32 %v14723_v58, %v13528_v46  ;;  %v13128_v46 = vld [vmem:[#allocation26 + $0xcd8] sm:$0xf]  ;;  %v14623_v58 = vld [vmem:[#allocation26 + $0xce8] sm:$0xf0]  ;;  %v13629_v34 = vor.u32 %v14748_v26, %v13628_v6  ;;  %v14693_v6 = vld [vmem:[#allocation26 + $0xf18] sm:$0xf0] }
 0xe98   : > { %9164 = vmatpush.bf16.msrb.mxu3 %v12469_v52  ;;  %v13508_v52 = vld [vmem:[#allocation26 + $0xfd0] sm:$0xf]  ;;  %v13568_v26 = vld [vmem:[#allocation26 + $0x1048] sm:$0xf] }
 0xe9a   : > { %9177 = vmatpush.bf16.msra.mxu0 %v12629_v7  ;;  %9190 = vmatpush.bf16.msrb.mxu1 %v12789_v27  ;;  %v14758_v7 = vld [vmem:[#allocation26 + $0x1120] sm:$0xf0]  ;;  %v14633_v27 = vld [vmem:[#allocation26 + $0xd38] sm:$0xf0] }
 0xe9b   : > { %9203 = vmatpush.bf16.msra.mxu2 %v12949_v13  ;;  %v13509_v13 = vor.u32 %v14718_v28, %v13508_v52  ;;  %v13669_v36 = vor.u32 %v14758_v7, %v13668_v33  ;;  %v13129_v52 = vor.u32 %v14623_v58, %v13128_v46  ;;  %v14286_v46 = vld [vmem:[#allocation26 + $0x264] sm:$0xf] }
 0xe9c   : > { %9165 = vmatpush.bf16.msrb.mxu3 %v12449_v30  ;;  %v13169_v30 = vor.u32 %v14633_v27, %v13168_v57  ;;  %v13609_v27 = vor.u32 %v14743_v24, %v13608_v5  ;;  %v14803_v5 = vld [vmem:[#allocation26 + $0x1288] sm:$0xf0] }
 0xe9e   : > { %9178 = vmatpush.bf16.msra.mxu0 %v12609_v29  ;;  %9191 = vmatpush.bf16.msrb.mxu1 %v12769_v49  ;;  %v8972_v51 = vpop.f32.mrf.mxu0  ;;  %v8985_v55 = vpop.f32.mrf.mxu1  ;;  %v14628_v29 = vld [vmem:[#allocation26 + $0xd10] sm:$0xf0] }
 0xe9f   : > { %9204 = vmatpush.bf16.msra.mxu2 %v12929_v43  ;;  %9166 = vmatmul.bf16.vlgmr.msrb.gmra.mxu3 %v18114_v62  ;;  %v14668_v49 = vld [vmem:[#allocation26 + $0xe50] sm:$0xf0]  ;;  %v13468_v43 = vld [vmem:[#allocation26 + $0xf80] sm:$0xf] }
 0xea0   : > { %9210 = vmatpush.bf16.msra.mxu3 %v13229_v54  ;;  %v13148_v54 = vld [vmem:[#allocation26 + $0xd00] sm:$0xf]  ;;  %v13309_v2 = vor.u32 %v14668_v49, %v13308_v39  ;;  %v13248_v39 = vld [vmem:[#allocation26 + $0xdc8] sm:$0xf]  ;;  %v14653_v49 = vld [vmem:[#allocation26 + $0xdd8] sm:$0xf0] }
 0xea1   : > { %9179 = vmatmul.bf16.vlgmr.msra.gmra.mxu0 %v18116_v56  ;;  %9192 = vmatmul.bf16.vlgmr.msrb.gmra.mxu1 %v18126_v31 }
 0xea2   : > { %9223 = vmatpush.bf16.msrb.mxu0 %v13389_v48  ;;  %9236 = vmatpush.bf16.msra.mxu1 %v13549_v59  ;;  %v14708_v48 = vld [vmem:[#allocation26 + $0xf90] sm:$0xf0]  ;;  %v13149_v59 = vor.u32 %v14628_v29, %v13148_v54  ;;  %v13868_v54 = vld [vmem:[#allocation26 + $0x12a0] sm:$0xf] }
 0xea3   : > { %9249 = vmatpush.bf16.msrb.mxu2 %v13709_v14  ;;  %v8959_v14 = vpop.f32.mrf.mxu3  ;;  %v13469_v1 = vor.u32 %v14708_v48, %v13468_v43  ;;  %v14808_v29 = vld [vmem:[#allocation26 + $0x12b0] sm:$0xf0]  ;;  %v13408_v43 = vld [vmem:[#allocation26 + $0xf08] sm:$0xf] }
 0xea4   : > { %9205 = vmatmul.bf16.vlgmr.msra.gmra.mxu2 %v18128_v53  ;;  %9211 = vmatpush.bf16.msra.mxu3 %v13209_v47  ;;  %v8960_v3 = vadd.f32 %v8959_v14, %v18183_v50  ;;  %v13288_v47 = vld [vmem:[#allocation26 + $0xe18] sm:$0xf]  ;;  %v13869_v58 = vor.u32 %v14808_v29, %v13868_v54  ;;  %v13808_v29 = vld [vmem:[#allocation26 + $0x1228] sm:$0xf] }
 0xea6   : > { %9224 = vmatpush.bf16.msrb.mxu0 %v13369_v17  ;;  %9237 = vmatpush.bf16.msra.mxu1 %v13529_v11  ;;  %v14663_v17 = vld [vmem:[#allocation26 + $0xe28] sm:$0xf0]  ;;  %v8973_v63 = vadd.f32 %v8972_v51, %v8960_v3  ;;  %v8974_v28 = vpop.f32.mrf.mxu0  ;;  %v8987_v33 = vpop.f32.mrf.mxu1  ;;  %v13088_v51 = vld [vmem:[#allocation26 + $0xc88] sm:$0xf]  ;;  %v14246_v3 = vld [vmem:[#allocation26 + $0x124] sm:$0xf] }
 0xea7   : > { %9250 = vmatpush.bf16.msrb.mxu2 %v13689_v18  ;;  %v8998_v11 = vpop.f32.mrf.mxu2  ;;  %v14703_v18 = vld [vmem:[#allocation26 + $0xf68] sm:$0xf0]  ;;  %v13289_v7 = vor.u32 %v14663_v17, %v13288_v47  ;;  %v14326_v47 = vld [vmem:[#allocation26 + $0x3a4] sm:$0xf]  ;;  %v11950_v17 = vld [vmem:[#allocation26 + $0x3b4] sm:$0xf0] }
 0xea8   : > { %9212 = vmatpush.bf16.msra.mxu3 %v13189_v0  ;;  %v8986_v50 = vadd.f32 %v8985_v55, %v8973_v63  ;;  %v13108_v0 = vld [vmem:[#allocation26 + $0xcb0] sm:$0xf]  ;;  %v13449_v57 = vor.u32 %v14703_v18, %v13448_v38  ;;  %v13409_v38 = vor.u32 %v14693_v6, %v13408_v43  ;;  %v13848_v18 = vld [vmem:[#allocation26 + $0x1278] sm:$0xf]  ;;  %v14241_v28 = vld [vmem:[#allocation26 + $0xfc] sm:$0xf] }
 0xea9   : > { %v11610_v33 = vld [vmem:[#allocation26 + $0x10c] sm:$0xf0]  ;;  %v11570_v43 = vld [vmem:[#allocation26 + $0xbc] sm:$0xf0] }
 0xeaa   : > { %9225 = vmatpush.bf16.msrb.mxu0 %v13349_v19  ;;  %9238 = vmatpush.bf16.msra.mxu1 %v13509_v13  ;;  %v14618_v19 = vld [vmem:[#allocation26 + $0xcc0] sm:$0xf0]  ;;  %v13268_v13 = vld [vmem:[#allocation26 + $0xdf0] sm:$0xf]  ;;  %v18190_v20 = vadd.f32 %v8998_v11, %v8986_v50  ;;  %v14281_v50 = vld [vmem:[#allocation26 + $0x23c] sm:$0xf] }
 0xeab   : > { %9251 = vmatpush.bf16.msrb.mxu2 %v13669_v36  ;;  %v14658_v36 = vld [vmem:[#allocation26 + $0xe00] sm:$0xf0]  ;;  %v13109_v35 = vor.u32 %v14618_v19, %v13108_v0  ;;  %v14321_v0 = vld [vmem:[#allocation26 + $0x37c] sm:$0xf]  ;;  %v11930_v19 = vld [vmem:[#allocation26 + $0x38c] sm:$0xf0] }
 0xeac   : > { %9213 = vmatpush.bf16.msra.mxu3 %v13169_v30  ;;  %v8961_v30 = vpop.f32.mrf.mxu3  ;;  %v13269_v55 = vor.u32 %v14658_v36, %v13268_v13  ;;  %v13828_v13 = vld [vmem:[#allocation26 + $0x1250] sm:$0xf]  ;;  %v14798_v36 = vld [vmem:[#allocation26 + $0x1260] sm:$0xf0]  ;;  %v11730_v6 = vld [vmem:[#allocation26 + $0x1fc] sm:$0xf0] }
 0xead   : > { %v11750_v30 = vld [vmem:[#allocation26 + $0x224] sm:$0xf0] }
 0xeae   : > { %9226 = vmatpush.bf16.msrb.mxu0 %v13329_v4  ;;  %9239 = vmatpush.bf16.msra.mxu1 %v13489_v45  ;;  %v14613_v4 = vld [vmem:[#allocation26 + $0xc98] sm:$0xf0]  ;;  %v13429_v45 = vor.u32 %v14698_v60, %v13428_v8  ;;  %v11933_v60 = vor.u32 %v14321_v0, %v11930_v19 }
 0xeaf   : > { %9252 = vmatpush.bf16.msrb.mxu2 %v13649_v25  ;;  %v13589_v25 = vor.u32 %v14738_v9, %v13588_v32  ;;  %v9000_v48 = vpop.f32.mrf.mxu2  ;;  %v13089_v14 = vor.u32 %v14613_v4, %v13088_v51  ;;  %v14236_v32 = vld [vmem:[#allocation26 + $0xd4] sm:$0xf]  ;;  %v11590_v9 = vld [vmem:[#allocation26 + $0xe4] sm:$0xf0]  ;;  %v13829_v4 = vor.u32 %v14798_v36, %v13828_v13  ;;  %v14261_v13 = vld [vmem:[#allocation26 + $0x19c] sm:$0xf] }
 0xeb0   : > { %9214 = vmatpush.bf16.msra.mxu3 %v13149_v59  ;;  %v14733_v59 = vld [vmem:[#allocation26 + $0x1058] sm:$0xf0]  ;;  %v14316_v51 = vld [vmem:[#allocation26 + $0x354] sm:$0xf]  ;;  %v11593_v54 = vor.u32 %v14236_v32, %v11590_v9  ;;  %v14271_v48 = vld [vmem:[#allocation26 + $0x1ec] sm:$0xf] }
 0xeb1   : > { %v13569_v63 = vor.u32 %v14733_v59, %v13568_v26  ;;  %v14311_v26 = vld [vmem:[#allocation26 + $0x32c] sm:$0xf]  ;;  %v11890_v59 = vld [vmem:[#allocation26 + $0x33c] sm:$0xf0]  ;;  %v14301_v32 = vld [vmem:[#allocation26 + $0x2dc] sm:$0xf] }
 0xeb2   : > { %9227 = vmatpush.bf16.msrb.mxu0 %v13309_v2  ;;  %9240 = vmatpush.bf16.msra.mxu1 %v13469_v1  ;;  %v11630_v2 = vld [vmem:[#allocation26 + $0x134] sm:$0xf0]  ;;  %v13249_v1 = vor.u32 %v14653_v49, %v13248_v39  ;;  %v14231_v49 = vld [vmem:[#allocation26 + $0xac] sm:$0xf]  ;;  %v11850_v9 = vld [vmem:[#allocation26 + $0x2ec] sm:$0xf0] }
 0xeb3   : > { %9253 = vmatpush.bf16.msrb.mxu2 %v13629_v34  ;;  %v11790_v34 = vld [vmem:[#allocation26 + $0x274] sm:$0xf0]  ;;  %v11633_v11 = vor.u32 %v14246_v3, %v11630_v2 }
 0xeb4   : > { %9215 = vmatpush.bf16.msra.mxu3 %v13129_v52  ;;  %v11793_v24 = vor.u32 %v14286_v46, %v11790_v34  ;;  %v11953_v52 = vor.u32 %v14326_v47, %v11950_v17  ;;  %v11573_v46 = vor.u32 %v14231_v49, %v11570_v43  ;;  %v11733_v34 = vor.u32 %v14271_v48, %v11730_v6  ;;  %v14226_v17 = vld [vmem:[#allocation26 + $0x84] sm:$0xf]  ;;  %v14256_v49 = vld [vmem:[#allocation26 + $0x174] sm:$0xf]  ;;  %v11670_v48 = vld [vmem:[#allocation26 + $0x184] sm:$0xf0] }
 0xeb5   : > { %v11893_v47 = vor.u32 %v14311_v26, %v11890_v59  ;;  %v14296_v6 = vld [vmem:[#allocation26 + $0x2b4] sm:$0xf]  ;;  %v11830_v26 = vld [vmem:[#allocation26 + $0x2c4] sm:$0xf0] }
 0xeb6   : > { %9228 = vmatpush.bf16.msrb.mxu0 %v13289_v7  ;;  %9241 = vmatpush.bf16.msra.mxu1 %v13449_v57  ;;  %v11770_v7 = vld [vmem:[#allocation26 + $0x24c] sm:$0xf0]  ;;  %v13849_v57 = vor.u32 %v14803_v5, %v13848_v18  ;;  %v14306_v18 = vld [vmem:[#allocation26 + $0x304] sm:$0xf]  ;;  %v11870_v5 = vld [vmem:[#allocation26 + $0x314] sm:$0xf0] }
 0xeb7   : > { %9254 = vmatpush.bf16.msrb.mxu2 %v13609_v27  ;;  %v11613_v27 = vor.u32 %v14241_v28, %v11610_v33  ;;  %v11773_v8 = vor.u32 %v14281_v50, %v11770_v7  ;;  %v13768_v50 = vld [vmem:[#allocation26 + $0x11d8] sm:$0xf]  ;;  %v14783_v7 = vld [vmem:[#allocation26 + $0x11e8] sm:$0xf0]  ;;  %v11873_v19 = vor.u32 %v14306_v18, %v11870_v5  ;;  %v11650_v18 = vld [vmem:[#allocation26 + $0x15c] sm:$0xf0] }
 0xeb8   : > { %9216 = vmatpush.bf16.msra.mxu3 %v13109_v35  ;;  %v14276_v35 = vld [vmem:[#allocation26 + $0x214] sm:$0xf]  ;;  %v14291_v5 = vld [vmem:[#allocation26 + $0x28c] sm:$0xf] }
 0xeba   : > { %9229 = vmatpush.bf16.msrb.mxu0 %v13269_v55  ;;  %9242 = vmatpush.bf16.msra.mxu1 %v13429_v45  ;;  %v11910_v55 = vld [vmem:[#allocation26 + $0x364] sm:$0xf0]  ;;  %v14793_v45 = vld [vmem:[#allocation26 + $0x1238] sm:$0xf0] }
 0xebb   : > { %9255 = vmatpush.bf16.msrb.mxu2 %v13589_v25  ;;  %v11753_v25 = vor.u32 %v14276_v35, %v11750_v30  ;;  %v11913_v39 = vor.u32 %v14316_v51, %v11910_v55  ;;  %v13769_v35 = vor.u32 %v14783_v7, %v13768_v50  ;;  %v14446_v50 = vld [vmem:[#allocation26 + $0x764] sm:$0xf] }
 0xebc   : > { %9217 = vmatpush.bf16.msra.mxu3 %v13089_v14  ;;  %v13809_v14 = vor.u32 %v14793_v45, %v13808_v29  ;;  %v11853_v45 = vor.u32 %v14301_v32, %v11850_v9  ;;  %v12090_v32 = vld [vmem:[#allocation26 + $0x4cc] sm:$0xf0] }
 0xebe   : > { %9230 = vmatpush.bf16.msrb.mxu0 %v13249_v1  ;;  %9243 = vmatpush.bf16.msra.mxu1 %v13409_v38  ;;  %v9024_v3 = vpop.f32.mrf.mxu0  ;;  %v9037_v2 = vpop.f32.mrf.mxu1  ;;  %v14788_v1 = vld [vmem:[#allocation26 + $0x1210] sm:$0xf0]  ;;  %v11550_v38 = vld [vmem:[#allocation26 + $0x94] sm:$0xf0] }
 0xebf   : > { %9256 = vmatpush.bf16.msrb.mxu2 %v13569_v63  ;;  %9218 = vmatmul.bf16.vlgmr.msra.gmra.mxu3 %v18130_v61  ;;  %v14266_v63 = vld [vmem:[#allocation26 + $0x1c4] sm:$0xf]  ;;  %v11553_v33 = vor.u32 %v14226_v17, %v11550_v38  ;;  %v14211_v17 = vld [vmem:[#allocation26 + $0xc] sm:$0xf]  ;;  %v11490_v38 = vld [vmem:[#allocation26 + $0x1c] sm:$0xf0] }
 0xec0   : > { %9262 = vmatpush.bf16.msrb.mxu3 %v13869_v58  ;;  %v13788_v58 = vld [vmem:[#allocation26 + $0x1200] sm:$0xf] }
 0xec1   : > { %9231 = vmatmul.bf16.vlgmr.msrb.gmra.mxu0 %v18132_v21  ;;  %9244 = vmatmul.bf16.vlgmr.msra.gmra.mxu1 %v18141_v44 }
 0xec2   : > { %9275 = vmatpush.bf16.msra.mxu0 %v11633_v11  ;;  %9288 = vmatpush.bf16.msrb.mxu1 %v11793_v24  ;;  %v11710_v11 = vld [vmem:[#allocation26 + $0x1d4] sm:$0xf0]  ;;  %v13789_v24 = vor.u32 %v14788_v1, %v13788_v58  ;;  %v14366_v58 = vld [vmem:[#allocation26 + $0x4e4] sm:$0xf] }
 0xec3   : > { %9301 = vmatpush.bf16.msra.mxu2 %v11953_v52  ;;  %v9011_v52 = vpop.f32.mrf.mxu3  ;;  %v11713_v0 = vor.u32 %v14266_v63, %v11710_v11  ;;  %v12110_v1 = vld [vmem:[#allocation26 + $0x4f4] sm:$0xf0]  ;;  %v14251_v63 = vld [vmem:[#allocation26 + $0x14c] sm:$0xf] }
 0xec4   : > { %9257 = vmatmul.bf16.vlgmr.msrb.gmra.mxu2 %v18144_v16  ;;  %9263 = vmatpush.bf16.msrb.mxu3 %v13849_v57  ;;  %v9012_v28 = vadd.f32 %v9011_v52, %v18190_v20  ;;  %v14221_v57 = vld [vmem:[#allocation26 + $0x5c] sm:$0xf]  ;;  %v12113_v7 = vor.u32 %v14366_v58, %v12110_v1  ;;  %v14351_v1 = vld [vmem:[#allocation26 + $0x46c] sm:$0xf] }
 0xec6   : > { %9276 = vmatpush.bf16.msra.mxu0 %v11613_v27  ;;  %9289 = vmatpush.bf16.msrb.mxu1 %v11773_v8  ;;  %v11530_v27 = vld [vmem:[#allocation26 + $0x6c] sm:$0xf0]  ;;  %v9025_v36 = vadd.f32 %v9024_v3, %v9012_v28  ;;  %v9026_v30 = vpop.f32.mrf.mxu0  ;;  %v9039_v51 = vpop.f32.mrf.mxu1  ;;  %v13728_v3 = vld [vmem:[#allocation26 + $0x1188] sm:$0xf]  ;;  %v14406_v28 = vld [vmem:[#allocation26 + $0x624] sm:$0xf] }
 0xec7   : > { %9302 = vmatpush.bf16.msra.mxu2 %v11933_v60  ;;  %v9050_v8 = vpop.f32.mrf.mxu2  ;;  %v11690_v60 = vld [vmem:[#allocation26 + $0x1ac] sm:$0xf0]  ;;  %v11533_v55 = vor.u32 %v14221_v57, %v11530_v27  ;;  %v14486_v57 = vld [vmem:[#allocation26 + $0x8a4] sm:$0xf]  ;;  %v12590_v27 = vld [vmem:[#allocation26 + $0x8b4] sm:$0xf0] }
 0xec8   : > { %9264 = vmatpush.bf16.msrb.mxu3 %v13829_v4  ;;  %v9038_v20 = vadd.f32 %v9037_v2, %v9025_v36  ;;  %v13748_v4 = vld [vmem:[#allocation26 + $0x11b0] sm:$0xf]  ;;  %v11693_v29 = vor.u32 %v14261_v13, %v11690_v60  ;;  %v11653_v13 = vor.u32 %v14251_v63, %v11650_v18  ;;  %v14361_v60 = vld [vmem:[#allocation26 + $0x4bc] sm:$0xf]  ;;  %v12210_v63 = vld [vmem:[#allocation26 + $0x5bc] sm:$0xf0] }
 0xec9   : > { %v14401_v30 = vld [vmem:[#allocation26 + $0x5fc] sm:$0xf]  ;;  %v12250_v51 = vld [vmem:[#allocation26 + $0x60c] sm:$0xf0]  ;;  %v12370_v18 = vld [vmem:[#allocation26 + $0x6fc] sm:$0xf0] }
 0xeca   : > { %9277 = vmatpush.bf16.msra.mxu0 %v11593_v54  ;;  %9290 = vmatpush.bf16.msrb.mxu1 %v11753_v25  ;;  %v14778_v54 = vld [vmem:[#allocation26 + $0x11c0] sm:$0xf0]  ;;  %v14216_v25 = vld [vmem:[#allocation26 + $0x34] sm:$0xf]  ;;  %v18197_v43 = vadd.f32 %v9050_v8, %v9038_v20  ;;  %v14441_v20 = vld [vmem:[#allocation26 + $0x73c] sm:$0xf] }
 0xecb   : > { %9303 = vmatpush.bf16.msra.mxu2 %v11913_v39  ;;  %v11510_v39 = vld [vmem:[#allocation26 + $0x44] sm:$0xf0]  ;;  %v13749_v59 = vor.u32 %v14778_v54, %v13748_v4  ;;  %v14481_v4 = vld [vmem:[#allocation26 + $0x87c] sm:$0xf]  ;;  %v12570_v54 = vld [vmem:[#allocation26 + $0x88c] sm:$0xf0] }
 0xecc   : > { %9265 = vmatpush.bf16.msrb.mxu3 %v13809_v14  ;;  %v9013_v14 = vpop.f32.mrf.mxu3  ;;  %v11513_v2 = vor.u32 %v14216_v25, %v11510_v39  ;;  %v14356_v25 = vld [vmem:[#allocation26 + $0x494] sm:$0xf]  ;;  %v12070_v39 = vld [vmem:[#allocation26 + $0x4a4] sm:$0xf0] }
 0xecd   : > { %v12390_v14 = vld [vmem:[#allocation26 + $0x724] sm:$0xf0] }
 0xece   : > { %9278 = vmatpush.bf16.msra.mxu0 %v11573_v46  ;;  %9291 = vmatpush.bf16.msrb.mxu1 %v11733_v34  ;;  %v14773_v46 = vld [vmem:[#allocation26 + $0x1198] sm:$0xf0]  ;;  %v11673_v34 = vor.u32 %v14256_v49, %v11670_v48  ;;  %v12573_v48 = vor.u32 %v14481_v4, %v12570_v54  ;;  %v12010_v54 = vld [vmem:[#allocation26 + $0x42c] sm:$0xf0] }
 0xecf   : > { %9304 = vmatpush.bf16.msra.mxu2 %v11893_v47  ;;  %v11833_v47 = vor.u32 %v14296_v6, %v11830_v26  ;;  %v9052_v11 = vpop.f32.mrf.mxu2  ;;  %v13729_v52 = vor.u32 %v14773_v46, %v13728_v3  ;;  %v14396_v6 = vld [vmem:[#allocation26 + $0x5d4] sm:$0xf]  ;;  %v12230_v26 = vld [vmem:[#allocation26 + $0x5e4] sm:$0xf0]  ;;  %v12073_v46 = vor.u32 %v14356_v25, %v12070_v39  ;;  %v14341_v4 = vld [vmem:[#allocation26 + $0x41c] sm:$0xf] }
 0xed0   : > { %9266 = vmatpush.bf16.msrb.mxu3 %v13789_v24  ;;  %v11810_v24 = vld [vmem:[#allocation26 + $0x29c] sm:$0xf0]  ;;  %v14476_v3 = vld [vmem:[#allocation26 + $0x854] sm:$0xf]  ;;  %v12233_v58 = vor.u32 %v14396_v6, %v12230_v26  ;;  %v14431_v11 = vld [vmem:[#allocation26 + $0x6ec] sm:$0xf] }
 0xed1   : > { %v11813_v36 = vor.u32 %v14291_v5, %v11810_v24  ;;  %v14471_v5 = vld [vmem:[#allocation26 + $0x82c] sm:$0xf]  ;;  %v12530_v24 = vld [vmem:[#allocation26 + $0x83c] sm:$0xf0]  ;;  %v14381_v39 = vld [vmem:[#allocation26 + $0x55c] sm:$0xf] }
 0xed2   : > { %9279 = vmatpush.bf16.msra.mxu0 %v11553_v33  ;;  %9292 = vmatpush.bf16.msrb.mxu1 %v11713_v0  ;;  %v12270_v33 = vld [vmem:[#allocation26 + $0x634] sm:$0xf0]  ;;  %v11493_v0 = vor.u32 %v14211_v17, %v11490_v38  ;;  %v14391_v38 = vld [vmem:[#allocation26 + $0x5ac] sm:$0xf] }
 0xed3   : > { %9305 = vmatpush.bf16.msra.mxu2 %v11873_v19  ;;  %v12430_v19 = vld [vmem:[#allocation26 + $0x774] sm:$0xf0]  ;;  %v12273_v8 = vor.u32 %v14406_v28, %v12270_v33 }
 0xed4   : > { %9267 = vmatpush.bf16.msrb.mxu3 %v13769_v35  ;;  %v12433_v9 = vor.u32 %v14446_v50, %v12430_v19  ;;  %v12593_v35 = vor.u32 %v14486_v57, %v12590_v27  ;;  %v15370_v50 = vld [vmem:[#allocation28] sm:$0x1f]  ;;  %v12030_v57 = vld [vmem:[#allocation26 + $0x454] sm:$0xf0]  ;;  %v12373_v27 = vor.u32 %v14431_v11, %v12370_v18  ;;  %v12150_v11 = vld [vmem:[#allocation26 + $0x544] sm:$0xf0] }
 0xed5   : > { %v14346_v19 = vld [vmem:[#allocation26 + $0x444] sm:$0xf]  ;;  %v14416_v18 = vld [vmem:[#allocation26 + $0x674] sm:$0xf] }
 0xed6   : > { %9280 = vmatpush.bf16.msra.mxu0 %v11533_v55  ;;  %9293 = vmatpush.bf16.msrb.mxu1 %v11693_v29  ;;  %v12410_v55 = vld [vmem:[#allocation26 + $0x74c] sm:$0xf0]  ;;  %v12093_v29 = vor.u32 %v14361_v60, %v12090_v32  ;;  %v14426_v60 = vld [vmem:[#allocation26 + $0x6c4] sm:$0xf]  ;;  %v12350_v32 = vld [vmem:[#allocation26 + $0x6d4] sm:$0xf0] }
 0xed7   : > { %9306 = vmatpush.bf16.msra.mxu2 %v11853_v45  ;;  %v12253_v45 = vor.u32 %v14401_v30, %v12250_v51  ;;  %v12413_v49 = vor.u32 %v14441_v20, %v12410_v55  ;;  %v12033_v30 = vor.u32 %v14346_v19, %v12030_v57  ;;  %v14526_v19 = vld [vmem:[#allocation26 + $0x9e4] sm:$0xf]  ;;  %v12750_v57 = vld [vmem:[#allocation26 + $0x9f4] sm:$0xf0] }
 0xed8   : > { %9268 = vmatpush.bf16.msrb.mxu3 %v13749_v59  ;;  %v14436_v59 = vld [vmem:[#allocation26 + $0x714] sm:$0xf] }
 0xeda   : > { %9281 = vmatpush.bf16.msra.mxu0 %v11513_v2  ;;  %9294 = vmatpush.bf16.msrb.mxu1 %v11673_v34  ;;  %v12550_v2 = vld [vmem:[#allocation26 + $0x864] sm:$0xf0]  ;;  %v12050_v34 = vld [vmem:[#allocation26 + $0x47c] sm:$0xf0] }
 0xedb   : > { %9307 = vmatpush.bf16.msra.mxu2 %v11833_v47  ;;  %v12393_v47 = vor.u32 %v14436_v59, %v12390_v14  ;;  %v12553_v17 = vor.u32 %v14476_v3, %v12550_v2  ;;  %v12330_v59 = vld [vmem:[#allocation26 + $0x6ac] sm:$0xf0]  ;;  %v14461_v14 = vld [vmem:[#allocation26 + $0x7dc] sm:$0xf] }
 0xedc   : > { %9269 = vmatpush.bf16.msrb.mxu3 %v13729_v52  ;;  %v12053_v52 = vor.u32 %v14351_v1, %v12050_v34  ;;  %v12490_v3 = vld [vmem:[#allocation26 + $0x7ec] sm:$0xf0]  ;;  %v14336_v34 = vld [vmem:[#allocation26 + $0x3f4] sm:$0xf] }
 0xede   : > { %9282 = vmatpush.bf16.msra.mxu0 %v11493_v0  ;;  %9295 = vmatpush.bf16.msrb.mxu1 %v11653_v13  ;;  %v9076_v28 = vpop.f32.mrf.mxu0  ;;  %v9089_v33 = vpop.f32.mrf.mxu1  ;;  %v12213_v0 = vor.u32 %v14391_v38, %v12210_v63  ;;  %v12533_v13 = vor.u32 %v14471_v5, %v12530_v24  ;;  %v12493_v38 = vor.u32 %v14461_v14, %v12490_v3  ;;  %v14376_v63 = vld [vmem:[#allocation26 + $0x534] sm:$0xf]  ;;  %v12310_v5 = vld [vmem:[#allocation26 + $0x684] sm:$0xf0]  ;;  %v12730_v14 = vld [vmem:[#allocation26 + $0x9cc] sm:$0xf0] }
 0xedf   : > { %9308 = vmatpush.bf16.msra.mxu2 %v11813_v36  ;;  %9270 = vmatmul.bf16.vlgmr.msrb.gmra.mxu3 %v18146_v42  ;;  %v14386_v36 = vld [vmem:[#allocation26 + $0x584] sm:$0xf]  ;;  %v14456_v24 = vld [vmem:[#allocation26 + $0x7b4] sm:$0xf] }
 0xee0   : > { %9314 = vmatpush.bf16.msra.mxu3 %v12113_v7  ;;  %v8682_v7 = vperm.slane %v15370_v50, 2  ;;  %v14331_v50 = vld [vmem:[#allocation26 + $0x3cc] sm:$0xf] }
 0xee1   : > { %9283 = vmatmul.bf16.vlgmr.msra.gmra.mxu0 %v18090_v22  ;;  %9296 = vmatmul.bf16.vlgmr.msrb.gmra.mxu1 %v18093_v41 }
 0xee2   : > { %9327 = vmatpush.bf16.msrb.mxu0 %v12273_v8  ;;  %9340 = vmatpush.bf16.msra.mxu1 %v12433_v9  ;;  %v12190_v8 = vld [vmem:[#allocation26 + $0x594] sm:$0xf0]  ;;  %v14466_v9 = vld [vmem:[#allocation26 + $0x804] sm:$0xf]  ;;  %v9063_v51 = vpop.f32.mrf.mxu3 }
 0xee3   : > { %9353 = vmatpush.bf16.msrb.mxu2 %v12593_v35  ;;  %v12510_v35 = vld [vmem:[#allocation26 + $0x814] sm:$0xf0]  ;;  %v9064_v20 = vadd.f32 %v9063_v51, %v18197_v43  ;;  %v12193_v55 = vor.u32 %v14386_v36, %v12190_v8  ;;  %v12013_v43 = vor.u32 %v14341_v4, %v12010_v54  ;;  %v14371_v36 = vld [vmem:[#allocation26 + $0x50c] sm:$0xf]  ;;  %v12130_v8 = vld [vmem:[#allocation26 + $0x51c] sm:$0xf0]  ;;  %v12753_v54 = vor.u32 %v14526_v19, %v12750_v57 }
 0xee4   : > { %9309 = vmatmul.bf16.vlgmr.msra.gmra.mxu2 %v18095_v15  ;;  %9315 = vmatpush.bf16.msra.mxu3 %v12093_v29  ;;  %v9090_v29 = vadd.f32 %v9089_v33, %v8682_v7  ;;  %v12513_v25 = vor.u32 %v14466_v9, %v12510_v35  ;;  %v12153_v7 = vor.u32 %v14376_v63, %v12150_v11  ;;  %v12290_v9 = vld [vmem:[#allocation26 + $0x65c] sm:$0xf0]  ;;  %v14451_v35 = vld [vmem:[#allocation26 + $0x78c] sm:$0xf]  ;;  %v14606_v4 = vld [vmem:[#allocation26 + $0xc64] sm:$0xf] }
 0xee5   : > { %v18204_v6 = vadd.f32 %v9076_v28, %v9064_v20  ;;  %v14566_v20 = vld [vmem:[#allocation26 + $0xb24] sm:$0xf]  ;;  %v14516_v11 = vld [vmem:[#allocation26 + $0x994] sm:$0xf] }
 0xee6   : > { %9328 = vmatpush.bf16.msrb.mxu0 %v12253_v45  ;;  %9341 = vmatpush.bf16.msra.mxu1 %v12413_v49  ;;  %v12353_v45 = vor.u32 %v14426_v60, %v12350_v32  ;;  %v12170_v49 = vld [vmem:[#allocation26 + $0x56c] sm:$0xf0]  ;;  %v14411_v60 = vld [vmem:[#allocation26 + $0x64c] sm:$0xf] }
 0xee7   : > { %9354 = vmatpush.bf16.msrb.mxu2 %v12573_v48  ;;  %v14421_v48 = vld [vmem:[#allocation26 + $0x69c] sm:$0xf]  ;;  %v9102_v26 = vpop.f32.mrf.mxu2  ;;  %v12173_v1 = vor.u32 %v14381_v39, %v12170_v49  ;;  %v13230_v39 = vld [vmem:[#allocation26 + $0xdb4] sm:$0xf0]  ;;  %v12293_v49 = vor.u32 %v14411_v60, %v12290_v9  ;;  %v14551_v60 = vld [vmem:[#allocation26 + $0xaac] sm:$0xf] }
 0xee8   : > { %9316 = vmatpush.bf16.msra.mxu3 %v12073_v46  ;;  %v18206_v2 = vadd.f32 %v9102_v26, %v9090_v29  ;;  %v9078_v46 = vpop.f32.mrf.mxu0  ;;  %v12133_v29 = vor.u32 %v14371_v36, %v12130_v8  ;;  %v14591_v9 = vld [vmem:[#allocation26 + $0xbec] sm:$0xf] }
 0xee9   : > { %v14561_v46 = vld [vmem:[#allocation26 + $0xafc] sm:$0xf] }
 0xeea   : > { %9329 = vmatpush.bf16.msrb.mxu0 %v12233_v58  ;;  %9342 = vmatpush.bf16.msra.mxu1 %v12393_v47  ;;  %v9091_v58 = vpop.f32.mrf.mxu1  ;;  %v11990_v47 = vld [vmem:[#allocation26 + $0x404] sm:$0xf0]  ;;  %v9065_v33 = vpop.f32.mrf.mxu3 }
 0xeeb   : > { %9355 = vmatpush.bf16.msrb.mxu2 %v12553_v17  ;;  %v12333_v17 = vor.u32 %v14421_v48, %v12330_v59  ;;  %v11993_v28 = vor.u32 %v14336_v34, %v11990_v47  ;;  %v14521_v59 = vld [vmem:[#allocation26 + $0x9bc] sm:$0xf]  ;;  %v12890_v58 = vld [vmem:[#allocation26 + $0xb0c] sm:$0xf0]  ;;  %v14596_v33 = vld [vmem:[#allocation26 + $0xc14] sm:$0xf] }
 0xeec   : > { %9317 = vmatpush.bf16.msra.mxu3 %v12053_v52  ;;  %v12470_v52 = vld [vmem:[#allocation26 + $0x7c4] sm:$0xf0]  ;;  %v13050_v34 = vld [vmem:[#allocation26 + $0xc4c] sm:$0xf0]  ;;  %v14641_v47 = vld [vmem:[#allocation26 + $0xd7c] sm:$0xf]  ;;  %v12893_v63 = vor.u32 %v14561_v46, %v12890_v58 }
 0xeee   : > { %9330 = vmatpush.bf16.msrb.mxu0 %v12213_v0  ;;  %9343 = vmatpush.bf16.msra.mxu1 %v12373_v27  ;;  %v11970_v0 = vld [vmem:[#allocation26 + $0x3dc] sm:$0xf0]  ;;  %v12313_v27 = vor.u32 %v14416_v18, %v12310_v5  ;;  %v12710_v18 = vld [vmem:[#allocation26 + $0x9a4] sm:$0xf0] }
 0xeef   : > { %9356 = vmatpush.bf16.msrb.mxu2 %v12533_v13  ;;  %v12473_v13 = vor.u32 %v14456_v24, %v12470_v52  ;;  %v9104_v32 = vpop.f32.mrf.mxu2  ;;  %v11973_v51 = vor.u32 %v14331_v50, %v11970_v0  ;;  %v14556_v52 = vld [vmem:[#allocation26 + $0xad4] sm:$0xf]  ;;  %v13030_v50 = vld [vmem:[#allocation26 + $0xc24] sm:$0xf0]  ;;  %v12713_v19 = vor.u32 %v14516_v11, %v12710_v18  ;;  %v12810_v11 = vld [vmem:[#allocation26 + $0xa6c] sm:$0xf0] }
 0xef0   : > { %9318 = vmatpush.bf16.msra.mxu3 %v12033_v30  ;;  %v12450_v30 = vld [vmem:[#allocation26 + $0x79c] sm:$0xf0]  ;;  %v13190_v0 = vld [vmem:[#allocation26 + $0xd64] sm:$0xf0]  ;;  %v13033_v36 = vor.u32 %v14596_v33, %v13030_v50  ;;  %v14581_v18 = vld [vmem:[#allocation26 + $0xb9c] sm:$0xf] }
 0xef1   : > { %v12453_v48 = vor.u32 %v14451_v35, %v12450_v30  ;;  %v12850_v32 = vld [vmem:[#allocation26 + $0xabc] sm:$0xf0]  ;;  %v14631_v30 = vld [vmem:[#allocation26 + $0xd2c] sm:$0xf]  ;;  %v13130_v33 = vld [vmem:[#allocation26 + $0xcec] sm:$0xf0] }
 0xef2   : > { %9331 = vmatpush.bf16.msrb.mxu0 %v12193_v55  ;;  %9344 = vmatpush.bf16.msra.mxu1 %v12353_v45  ;;  %v12910_v55 = vld [vmem:[#allocation26 + $0xb34] sm:$0xf0]  ;;  %v13010_v35 = vld [vmem:[#allocation26 + $0xbfc] sm:$0xf0] }
 0xef3   : > { %9357 = vmatpush.bf16.msrb.mxu2 %v12513_v25  ;;  %v13070_v45 = vld [vmem:[#allocation26 + $0xc74] sm:$0xf0]  ;;  %v14646_v25 = vld [vmem:[#allocation26 + $0xda4] sm:$0xf]  ;;  %v12913_v26 = vor.u32 %v14566_v20, %v12910_v55 }
 0xef4   : > { %9319 = vmatpush.bf16.msra.mxu3 %v12013_v43  ;;  %v13073_v3 = vor.u32 %v14606_v4, %v13070_v45  ;;  %v13233_v43 = vor.u32 %v14646_v25, %v13230_v39  ;;  %v12670_v45 = vld [vmem:[#allocation26 + $0x954] sm:$0xf0]  ;;  %v13013_v25 = vor.u32 %v14591_v9, %v13010_v35  ;;  %v12950_v35 = vld [vmem:[#allocation26 + $0xb84] sm:$0xf0] }
 0xef6   : > { %9332 = vmatpush.bf16.msrb.mxu0 %v12173_v1  ;;  %9345 = vmatpush.bf16.msra.mxu1 %v12333_v17  ;;  %v14601_v1 = vld [vmem:[#allocation26 + $0xc3c] sm:$0xf]  ;;  %v13210_v17 = vld [vmem:[#allocation26 + $0xd8c] sm:$0xf0] }
 0xef7   : > { %9358 = vmatpush.bf16.msrb.mxu2 %v12493_v38  ;;  %v12733_v38 = vor.u32 %v14521_v59, %v12730_v14  ;;  %v13053_v5 = vor.u32 %v14601_v1, %v13050_v34  ;;  %v13213_v24 = vor.u32 %v14641_v47, %v13210_v17  ;;  %v12990_v59 = vld [vmem:[#allocation26 + $0xbd4] sm:$0xf0]  ;;  %v14626_v14 = vld [vmem:[#allocation26 + $0xd04] sm:$0xf]  ;;  %v14501_v34 = vld [vmem:[#allocation26 + $0x91c] sm:$0xf] }
 0xef8   : > { %9320 = vmatpush.bf16.msra.mxu3 %v11993_v28  ;;  %v12870_v28 = vld [vmem:[#allocation26 + $0xae4] sm:$0xf0]  ;;  %v12650_v47 = vld [vmem:[#allocation26 + $0x92c] sm:$0xf0] }
 0xef9   : > { %v12873_v57 = vor.u32 %v14556_v52, %v12870_v28  ;;  %v12970_v52 = vld [vmem:[#allocation26 + $0xbac] sm:$0xf0]  ;;  %v14621_v28 = vld [vmem:[#allocation26 + $0xcdc] sm:$0xf]  ;;  %v12653_v50 = vor.u32 %v14501_v34, %v12650_v47  ;;  %v13550_v34 = vld [vmem:[#allocation26 + $0x1034] sm:$0xf0] }
 0xefa   : > { %9333 = vmatpush.bf16.msrb.mxu0 %v12153_v7  ;;  %9346 = vmatpush.bf16.msra.mxu1 %v12313_v27  ;;  %v14636_v7 = vld [vmem:[#allocation26 + $0xd54] sm:$0xf]  ;;  %v14511_v27 = vld [vmem:[#allocation26 + $0x96c] sm:$0xf]  ;;  %v14766_v47 = vld [vmem:[#allocation26 + $0x1164] sm:$0xf] }
 0xefb   : > { %9359 = vmatpush.bf16.msrb.mxu2 %v12473_v13  ;;  %v12690_v13 = vld [vmem:[#allocation26 + $0x97c] sm:$0xf0]  ;;  %v13193_v8 = vor.u32 %v14636_v7, %v13190_v0 }
 0xefc   : > { %9321 = vmatpush.bf16.msra.mxu3 %v11973_v51  ;;  %v13170_v51 = vld [vmem:[#allocation26 + $0xd3c] sm:$0xf0]  ;;  %v12693_v20 = vor.u32 %v14511_v27, %v12690_v13  ;;  %v12630_v27 = vld [vmem:[#allocation26 + $0x904] sm:$0xf0]  ;;  %v12973_v13 = vor.u32 %v14581_v18, %v12970_v52  ;;  %v13870_v18 = vld [vmem:[#allocation26 + $0x12b4] sm:$0xf0] }
 0xefd   : > { %v13173_v39 = vor.u32 %v14631_v30, %v13170_v51  ;;  %v14616_v30 = vld [vmem:[#allocation26 + $0xcb4] sm:$0xf]  ;;  %v13110_v51 = vld [vmem:[#allocation26 + $0xcc4] sm:$0xf0] }
 0xefe   : > { %9334 = vmatpush.bf16.msrb.mxu0 %v12133_v29  ;;  %9347 = vmatpush.bf16.msra.mxu1 %v12293_v49  ;;  %v9128_v55 = vpop.f32.mrf.mxu0  ;;  %v9141_v4 = vpop.f32.mrf.mxu1  ;;  %v14506_v29 = vld [vmem:[#allocation26 + $0x944] sm:$0xf] }
 0xeff   : > { %9360 = vmatpush.bf16.msrb.mxu2 %v12453_v48  ;;  %9322 = vmatmul.bf16.vlgmr.msra.gmra.mxu3 %v18097_v12  ;;  %v14546_v49 = vld [vmem:[#allocation26 + $0xa84] sm:$0xf]  ;;  %v12830_v48 = vld [vmem:[#allocation26 + $0xa94] sm:$0xf0] }
 0xf00   : > { %9366 = vmatpush.bf16.msrb.mxu3 %v12753_v54  ;;  %v12853_v54 = vor.u32 %v14551_v60, %v12850_v32  ;;  %v12833_v1 = vor.u32 %v14546_v49, %v12830_v48  ;;  %v12790_v60 = vld [vmem:[#allocation26 + $0xa44] sm:$0xf0]  ;;  %v14576_v32 = vld [vmem:[#allocation26 + $0xb74] sm:$0xf]  ;;  %v13113_v49 = vor.u32 %v14616_v30, %v13110_v51  ;;  %v14531_v48 = vld [vmem:[#allocation26 + $0xa0c] sm:$0xf] }
 0xf01   : > { %9335 = vmatmul.bf16.vlgmr.msrb.gmra.mxu0 %v18109_v40  ;;  %9348 = vmatmul.bf16.vlgmr.msra.gmra.mxu1 %v18111_v23  ;;  %v14716_v51 = vld [vmem:[#allocation26 + $0xfd4] sm:$0xf] }
 0xf02   : > { %9379 = vmatpush.bf16.msra.mxu0 %v12913_v26  ;;  %9392 = vmatpush.bf16.msrb.mxu1 %v13073_v3  ;;  %v14586_v26 = vld [vmem:[#allocation26 + $0xbc4] sm:$0xf]  ;;  %v13150_v3 = vld [vmem:[#allocation26 + $0xd14] sm:$0xf0]  ;;  %v9115_v46 = vpop.f32.mrf.mxu3 }
 0xf03   : > { %9405 = vmatpush.bf16.msra.mxu2 %v13233_v43  ;;  %v12673_v43 = vor.u32 %v14506_v29, %v12670_v45  ;;  %v9116_v58 = vadd.f32 %v9115_v46, %v18206_v2  ;;  %v12993_v17 = vor.u32 %v14586_v26, %v12990_v59  ;;  %v12610_v29 = vld [vmem:[#allocation26 + $0x8dc] sm:$0xf0]  ;;  %v14686_v45 = vld [vmem:[#allocation26 + $0xee4] sm:$0xf]  ;;  %v14571_v59 = vld [vmem:[#allocation26 + $0xb4c] sm:$0xf] }
 0xf04   : > { %9361 = vmatmul.bf16.vlgmr.msrb.gmra.mxu2 %v18114_v62  ;;  %9367 = vmatpush.bf16.msrb.mxu3 %v12733_v38  ;;  %v13153_v38 = vor.u32 %v14626_v14, %v13150_v3  ;;  %v12770_v26 = vld [vmem:[#allocation26 + $0xa1c] sm:$0xf0] }
 0xf05   : > { %v12930_v3 = vld [vmem:[#allocation26 + $0xb5c] sm:$0xf0] }
 0xf06   : > { %9380 = vmatpush.bf16.msra.mxu0 %v12893_v63  ;;  %9393 = vmatpush.bf16.msrb.mxu1 %v13053_v5  ;;  %v14541_v63 = vld [vmem:[#allocation26 + $0xa5c] sm:$0xf]  ;;  %v9129_v5 = vadd.f32 %v9128_v55, %v9116_v58  ;;  %v9130_v7 = vpop.f32.mrf.mxu0  ;;  %v9143_v0 = vpop.f32.mrf.mxu1  ;;  %v13090_v46 = vld [vmem:[#allocation26 + $0xc9c] sm:$0xf0] }
 0xf07   : > { %9406 = vmatpush.bf16.msra.mxu2 %v13213_v24  ;;  %v9154_v24 = vpop.f32.mrf.mxu2  ;;  %v14721_v0 = vld [vmem:[#allocation26 + $0xffc] sm:$0xf] }
 0xf08   : > { %9368 = vmatpush.bf16.msrb.mxu3 %v12713_v19  ;;  %v9142_v2 = vadd.f32 %v9141_v4, %v9129_v5  ;;  %v12813_v19 = vor.u32 %v14541_v63, %v12810_v11  ;;  %v13710_v63 = vld [vmem:[#allocation26 + $0x1174] sm:$0xf0]  ;;  %v14806_v11 = vld [vmem:[#allocation26 + $0x12a4] sm:$0xf]  ;;  %v12933_v5 = vor.u32 %v14571_v59, %v12930_v3  ;;  %v14711_v59 = vld [vmem:[#allocation26 + $0xfac] sm:$0xf] }
 0xf09   : > { %v13873_v7 = vor.u32 %v14806_v11, %v13870_v18  ;;  %v14751_v3 = vld [vmem:[#allocation26 + $0x10ec] sm:$0xf] }
 0xf0a   : > { %9381 = vmatpush.bf16.msra.mxu0 %v12873_v57  ;;  %9394 = vmatpush.bf16.msrb.mxu1 %v13033_v36  ;;  %v14496_v57 = vld [vmem:[#allocation26 + $0x8f4] sm:$0xf]  ;;  %v13133_v36 = vor.u32 %v14621_v28, %v13130_v33  ;;  %v18213_v9 = vadd.f32 %v9154_v24, %v9142_v2  ;;  %v9117_v55 = vpop.f32.mrf.mxu3  ;;  %v14681_v28 = vld [vmem:[#allocation26 + $0xebc] sm:$0xf]  ;;  %v13370_v33 = vld [vmem:[#allocation26 + $0xecc] sm:$0xf0] }
 0xf0b   : > { %9407 = vmatpush.bf16.msra.mxu2 %v13193_v8  ;;  %v14536_v8 = vld [vmem:[#allocation26 + $0xa34] sm:$0xf]  ;;  %v13530_v2 = vld [vmem:[#allocation26 + $0x100c] sm:$0xf0] }
 0xf0c   : > { %9369 = vmatpush.bf16.msrb.mxu3 %v12693_v20  ;;  %v12633_v20 = vor.u32 %v14496_v57, %v12630_v27  ;;  %v12793_v4 = vor.u32 %v14536_v8, %v12790_v60  ;;  %v13690_v57 = vld [vmem:[#allocation26 + $0x114c] sm:$0xf0]  ;;  %v14801_v27 = vld [vmem:[#allocation26 + $0x127c] sm:$0xf]  ;;  %v13533_v8 = vor.u32 %v14721_v0, %v13530_v2  ;;  %v14676_v60 = vld [vmem:[#allocation26 + $0xe94] sm:$0xf] }
 0xf0d   : > { %v14756_v55 = vld [vmem:[#allocation26 + $0x1114] sm:$0xf] }
 0xf0e   : > { %9382 = vmatpush.bf16.msra.mxu0 %v12853_v54  ;;  %9395 = vmatpush.bf16.msrb.mxu1 %v13013_v25  ;;  %v14491_v54 = vld [vmem:[#allocation26 + $0x8cc] sm:$0xf]  ;;  %v13390_v25 = vld [vmem:[#allocation26 + $0xef4] sm:$0xf0] }
 0xf0f   : > { %9408 = vmatpush.bf16.msra.mxu2 %v13173_v39  ;;  %v12953_v39 = vor.u32 %v14576_v32, %v12950_v35  ;;  %v9156_v14 = vpop.f32.mrf.mxu2  ;;  %v12613_v58 = vor.u32 %v14491_v54, %v12610_v29  ;;  %v13350_v32 = vld [vmem:[#allocation26 + $0xea4] sm:$0xf0] }
 0xf10   : > { %9370 = vmatpush.bf16.msrb.mxu3 %v12673_v43  ;;  %v14611_v43 = vld [vmem:[#allocation26 + $0xc8c] sm:$0xf]  ;;  %v13670_v54 = vld [vmem:[#allocation26 + $0x1124] sm:$0xf0]  ;;  %v13490_v14 = vld [vmem:[#allocation26 + $0xfbc] sm:$0xf0] }
 0xf11   : > { %v13093_v24 = vor.u32 %v14611_v43, %v13090_v46  ;;  %v13830_v29 = vld [vmem:[#allocation26 + $0x1264] sm:$0xf0]  ;;  %v13650_v43 = vld [vmem:[#allocation26 + $0x10fc] sm:$0xf0]  ;;  %v14791_v46 = vld [vmem:[#allocation26 + $0x122c] sm:$0xf] }
 0xf12   : > { %9383 = vmatpush.bf16.msra.mxu0 %v12833_v1  ;;  %9396 = vmatpush.bf16.msrb.mxu1 %v12993_v17  ;;  %v14726_v1 = vld [vmem:[#allocation26 + $0x1024] sm:$0xf]  ;;  %v13393_v17 = vor.u32 %v14686_v45, %v13390_v25  ;;  %v13353_v45 = vor.u32 %v14676_v60, %v13350_v32  ;;  %v13653_v11 = vor.u32 %v14751_v3, %v13650_v43  ;;  %v13450_v60 = vld [vmem:[#allocation26 + $0xf6c] sm:$0xf0]  ;;  %v14741_v32 = vld [vmem:[#allocation26 + $0x109c] sm:$0xf] }
 0xf13   : > { %9409 = vmatpush.bf16.msra.mxu2 %v13153_v38  ;;  %v12773_v38 = vor.u32 %v14531_v48, %v12770_v26  ;;  %v13553_v52 = vor.u32 %v14726_v1, %v13550_v34  ;;  %v13673_v48 = vor.u32 %v14756_v55, %v13670_v54  ;;  %v13770_v55 = vld [vmem:[#allocation26 + $0x11ec] sm:$0xf0]  ;;  %v13590_v43 = vld [vmem:[#allocation26 + $0x1084] sm:$0xf0] }
 0xf14   : > { %9371 = vmatpush.bf16.msrb.mxu3 %v12653_v50  ;;  %v13713_v50 = vor.u32 %v14766_v47, %v13710_v63  ;;  %v13310_v63 = vld [vmem:[#allocation26 + $0xe54] sm:$0xf0] }
 0xf16   : > { %9384 = vmatpush.bf16.msra.mxu0 %v12813_v19  ;;  %9397 = vmatpush.bf16.msrb.mxu1 %v12973_v13  ;;  %v14761_v19 = vld [vmem:[#allocation26 + $0x113c] sm:$0xf]  ;;  %v13850_v13 = vld [vmem:[#allocation26 + $0x128c] sm:$0xf0] }
 0xf17   : > { %9410 = vmatpush.bf16.msra.mxu2 %v13133_v36  ;;  %v13373_v36 = vor.u32 %v14681_v28, %v13370_v33  ;;  %v13693_v35 = vor.u32 %v14761_v19, %v13690_v57  ;;  %v13853_v30 = vor.u32 %v14801_v27, %v13850_v13  ;;  %v13630_v28 = vld [vmem:[#allocation26 + $0x10d4] sm:$0xf0]  ;;  %v14786_v33 = vld [vmem:[#allocation26 + $0x1204] sm:$0xf]  ;;  %v14661_v57 = vld [vmem:[#allocation26 + $0xe1c] sm:$0xf] }
 0xf18   : > { %9372 = vmatpush.bf16.msrb.mxu3 %v12633_v20  ;;  %v13510_v20 = vld [vmem:[#allocation26 + $0xfe4] sm:$0xf0]  ;;  %v13290_v27 = vld [vmem:[#allocation26 + $0xe2c] sm:$0xf0] }
 0xf19   : > { %v13513_v25 = vor.u32 %v14716_v51, %v13510_v20  ;;  %v13610_v51 = vld [vmem:[#allocation26 + $0x10ac] sm:$0xf0]  ;;  %v14781_v20 = vld [vmem:[#allocation26 + $0x11dc] sm:$0xf]  ;;  %v13293_v54 = vor.u32 %v14661_v57, %v13290_v27  ;;  %v11956_v27 = vld [vmem:[#allocation26 + $0x3a8] sm:$0xf] }
 0xf1a   : > { %9385 = vmatpush.bf16.msra.mxu0 %v12793_v4  ;;  %9398 = vmatpush.bf16.msrb.mxu1 %v12953_v39  ;;  %v14796_v4 = vld [vmem:[#allocation26 + $0x1254] sm:$0xf]  ;;  %v14671_v39 = vld [vmem:[#allocation26 + $0xe6c] sm:$0xf]  ;;  %v14289_v57 = vld [vmem:[#allocation26 + $0x278] sm:$0xf0] }
 0xf1b   : > { %9411 = vmatpush.bf16.msra.mxu2 %v13113_v49  ;;  %v13330_v49 = vld [vmem:[#allocation26 + $0xe7c] sm:$0xf0]  ;;  %v13833_v26 = vor.u32 %v14796_v4, %v13830_v29 }
 0xf1c   : > { %9373 = vmatpush.bf16.msrb.mxu3 %v12613_v58  ;;  %v13810_v58 = vld [vmem:[#allocation26 + $0x123c] sm:$0xf0]  ;;  %v13333_v1 = vor.u32 %v14671_v39, %v13330_v49  ;;  %v13270_v39 = vld [vmem:[#allocation26 + $0xe04] sm:$0xf0]  ;;  %v13613_v49 = vor.u32 %v14741_v32, %v13610_v51  ;;  %v14369_v32 = vld [vmem:[#allocation26 + $0x4f8] sm:$0xf0] }
 0xf1d   : > { %v13813_v18 = vor.u32 %v14791_v46, %v13810_v58  ;;  %v14776_v46 = vld [vmem:[#allocation26 + $0x11b4] sm:$0xf]  ;;  %v13750_v58 = vld [vmem:[#allocation26 + $0x11c4] sm:$0xf0] }
 0xf1e   : > { %9386 = vmatpush.bf16.msra.mxu0 %v12773_v38  ;;  %9399 = vmatpush.bf16.msrb.mxu1 %v12933_v5  ;;  %v9180_v34 = vpop.f32.mrf.mxu0  ;;  %v9193_v47 = vpop.f32.mrf.mxu1  ;;  %v14666_v38 = vld [vmem:[#allocation26 + $0xe44] sm:$0xf] }
 0xf1f   : > { %9412 = vmatpush.bf16.msra.mxu2 %v13093_v24  ;;  %9374 = vmatmul.bf16.vlgmr.msrb.gmra.mxu3 %v18116_v56  ;;  %v14706_v5 = vld [vmem:[#allocation26 + $0xf84] sm:$0xf]  ;;  %v13470_v24 = vld [vmem:[#allocation26 + $0xf94] sm:$0xf0] }
 0xf20   : > { %9418 = vmatpush.bf16.msra.mxu3 %v13393_v17  ;;  %v13493_v17 = vor.u32 %v14711_v59, %v13490_v14  ;;  %v13473_v19 = vor.u32 %v14706_v5, %v13470_v24  ;;  %v13430_v59 = vld [vmem:[#allocation26 + $0xf44] sm:$0xf0]  ;;  %v14736_v14 = vld [vmem:[#allocation26 + $0x1074] sm:$0xf]  ;;  %v13753_v5 = vor.u32 %v14776_v46, %v13750_v58  ;;  %v14691_v24 = vld [vmem:[#allocation26 + $0xf0c] sm:$0xf] }
 0xf21   : > { %9387 = vmatmul.bf16.vlgmr.msra.gmra.mxu0 %v18126_v31  ;;  %9400 = vmatmul.bf16.vlgmr.msrb.gmra.mxu1 %v18128_v53  ;;  %v11756_v58 = vld [vmem:[#allocation26 + $0x218] sm:$0xf] }
 0xf22   : > { %9431 = vmatpush.bf16.msrb.mxu0 %v13553_v52  ;;  %9444 = vmatpush.bf16.msra.mxu1 %v13713_v50  ;;  %v14746_v52 = vld [vmem:[#allocation26 + $0x10c4] sm:$0xf]  ;;  %v13790_v50 = vld [vmem:[#allocation26 + $0x1214] sm:$0xf0]  ;;  %v9167_v0 = vpop.f32.mrf.mxu3 }
 0xf23   : > { %9457 = vmatpush.bf16.msrb.mxu2 %v13873_v7  ;;  %v13313_v7 = vor.u32 %v14666_v38, %v13310_v63  ;;  %v9168_v2 = vadd.f32 %v9167_v0, %v18213_v9  ;;  %v13633_v13 = vor.u32 %v14746_v52, %v13630_v28  ;;  %v13250_v38 = vld [vmem:[#allocation26 + $0xddc] sm:$0xf0]  ;;  %v11636_v63 = vld [vmem:[#allocation26 + $0x128] sm:$0xf]  ;;  %v14731_v28 = vld [vmem:[#allocation26 + $0x104c] sm:$0xf] }
 0xf24   : > { %9413 = vmatmul.bf16.vlgmr.msra.gmra.mxu2 %v18130_v61  ;;  %9419 = vmatpush.bf16.msra.mxu3 %v13373_v36  ;;  %v13793_v36 = vor.u32 %v14786_v33, %v13790_v50  ;;  %v13410_v52 = vld [vmem:[#allocation26 + $0xf1c] sm:$0xf0] }
 0xf25   : > { %v13570_v50 = vld [vmem:[#allocation26 + $0x105c] sm:$0xf0] }
 0xf26   : > { %9432 = vmatpush.bf16.msrb.mxu0 %v13533_v8  ;;  %9445 = vmatpush.bf16.msra.mxu1 %v13693_v35  ;;  %v14701_v8 = vld [vmem:[#allocation26 + $0xf5c] sm:$0xf]  ;;  %v9181_v35 = vadd.f32 %v9180_v34, %v9168_v2  ;;  %v9182_v4 = vpop.f32.mrf.mxu0  ;;  %v9195_v29 = vpop.f32.mrf.mxu1  ;;  %v13730_v0 = vld [vmem:[#allocation26 + $0x119c] sm:$0xf0] }
 0xf27   : > { %9458 = vmatpush.bf16.msrb.mxu2 %v13853_v30  ;;  %v9206_v30 = vpop.f32.mrf.mxu2  ;;  %v11776_v29 = vld [vmem:[#allocation26 + $0x240] sm:$0xf] }
 0xf28   : > { %9420 = vmatpush.bf16.msra.mxu3 %v13353_v45  ;;  %v9194_v9 = vadd.f32 %v9193_v47, %v9181_v35  ;;  %v13453_v45 = vor.u32 %v14701_v8, %v13450_v60  ;;  %v14329_v8 = vld [vmem:[#allocation26 + $0x3b8] sm:$0xf0]  ;;  %v12116_v60 = vld [vmem:[#allocation26 + $0x4e8] sm:$0xf]  ;;  %v13573_v35 = vor.u32 %v14731_v28, %v13570_v50  ;;  %v11736_v28 = vld [vmem:[#allocation26 + $0x1f0] sm:$0xf] }
 0xf29   : > { %v12117_v4 = vor.u32 %v14369_v32, %v12116_v60  ;;  %v11896_v50 = vld [vmem:[#allocation26 + $0x330] sm:$0xf] }
 0xf2a   : > { %9433 = vmatpush.bf16.msrb.mxu0 %v13513_v25  ;;  %9446 = vmatpush.bf16.msra.mxu1 %v13673_v48  ;;  %v14656_v25 = vld [vmem:[#allocation26 + $0xdf4] sm:$0xf]  ;;  %v13773_v48 = vor.u32 %v14781_v20, %v13770_v55  ;;  %v18220_v3 = vadd.f32 %v9206_v30, %v9194_v9  ;;  %v9169_v34 = vpop.f32.mrf.mxu3  ;;  %v11616_v20 = vld [vmem:[#allocation26 + $0x100] sm:$0xf] }
 0xf2b   : > { %9459 = vmatpush.bf16.msrb.mxu2 %v13833_v26  ;;  %v14696_v26 = vld [vmem:[#allocation26 + $0xf34] sm:$0xf]  ;;  %v11916_v34 = vld [vmem:[#allocation26 + $0x358] sm:$0xf] }
 0xf2c   : > { %9421 = vmatpush.bf16.msra.mxu3 %v13333_v1  ;;  %v13273_v1 = vor.u32 %v14656_v25, %v13270_v39  ;;  %v13433_v47 = vor.u32 %v14696_v26, %v13430_v59  ;;  %v14244_v55 = vld [vmem:[#allocation26 + $0x110] sm:$0xf0]  ;;  %v12096_v39 = vld [vmem:[#allocation26 + $0x4c0] sm:$0xf]  ;;  %v11596_v59 = vld [vmem:[#allocation26 + $0xd8] sm:$0xf] }
 0xf2d   : > { %v14284_v9 = vld [vmem:[#allocation26 + $0x250] sm:$0xf0] }
 0xf2e   : > { %9434 = vmatpush.bf16.msrb.mxu0 %v13493_v17  ;;  %9447 = vmatpush.bf16.msra.mxu1 %v13653_v11  ;;  %v14651_v17 = vld [vmem:[#allocation26 + $0xdcc] sm:$0xf]  ;;  %v14249_v11 = vld [vmem:[#allocation26 + $0x138] sm:$0xf0]  ;;  %v14324_v25 = vld [vmem:[#allocation26 + $0x390] sm:$0xf0]  ;;  %v11777_v26 = vor.u32 %v14284_v9, %v11776_v29 }
 0xf2f   : > { %9460 = vmatpush.bf16.msrb.mxu2 %v13813_v18  ;;  %v13593_v18 = vor.u32 %v14736_v14, %v13590_v43  ;;  %v9208_v33 = vpop.f32.mrf.mxu2  ;;  %v13253_v2 = vor.u32 %v14651_v17, %v13250_v38  ;;  %v14239_v14 = vld [vmem:[#allocation26 + $0xe8] sm:$0xf0] }
 0xf30   : > { %9422 = vmatpush.bf16.msra.mxu3 %v13313_v7  ;;  %v14771_v7 = vld [vmem:[#allocation26 + $0x118c] sm:$0xf]  ;;  %v14274_v33 = vld [vmem:[#allocation26 + $0x200] sm:$0xf0] }
 0xf31   : > { %v13733_v30 = vor.u32 %v14771_v7, %v13730_v0  ;;  %v14319_v17 = vld [vmem:[#allocation26 + $0x368] sm:$0xf0]  ;;  %v14314_v7 = vld [vmem:[#allocation26 + $0x340] sm:$0xf0]  ;;  %v12056_v0 = vld [vmem:[#allocation26 + $0x470] sm:$0xf] }
 0xf32   : > { %9435 = vmatpush.bf16.msrb.mxu0 %v13473_v19  ;;  %9448 = vmatpush.bf16.msra.mxu1 %v13633_v13  ;;  %v11796_v19 = vld [vmem:[#allocation26 + $0x268] sm:$0xf]  ;;  %v11637_v13 = vor.u32 %v14249_v11, %v11636_v63  ;;  %v14359_v38 = vld [vmem:[#allocation26 + $0x4a8] sm:$0xf0]  ;;  %v11597_v63 = vor.u32 %v14239_v14, %v11596_v59  ;;  %v11897_v60 = vor.u32 %v14314_v7, %v11896_v50  ;;  %v14264_v59 = vld [vmem:[#allocation26 + $0x1b0] sm:$0xf0] }
 0xf33   : > { %9461 = vmatpush.bf16.msrb.mxu2 %v13793_v36  ;;  %v13413_v36 = vor.u32 %v14691_v24, %v13410_v52  ;;  %v11797_v51 = vor.u32 %v14289_v57, %v11796_v19  ;;  %v11917_v24 = vor.u32 %v14319_v17, %v11916_v34  ;;  %v11856_v14 = vld [vmem:[#allocation26 + $0x2e0] sm:$0xf]  ;;  %v14344_v34 = vld [vmem:[#allocation26 + $0x430] sm:$0xf0]  ;;  %v14299_v7 = vld [vmem:[#allocation26 + $0x2c8] sm:$0xf0] }
 0xf34   : > { %9423 = vmatpush.bf16.msra.mxu3 %v13293_v54  ;;  %v11957_v54 = vor.u32 %v14329_v8, %v11956_v27  ;;  %v14229_v8 = vld [vmem:[#allocation26 + $0x98] sm:$0xf0] }
 0xf36   : > { %9436 = vmatpush.bf16.msrb.mxu0 %v13453_v45  ;;  %9449 = vmatpush.bf16.msra.mxu1 %v13613_v49  ;;  %v11936_v45 = vld [vmem:[#allocation26 + $0x380] sm:$0xf]  ;;  %v14364_v49 = vld [vmem:[#allocation26 + $0x4d0] sm:$0xf0] }
 0xf37   : > { %9462 = vmatpush.bf16.msrb.mxu2 %v13773_v48  ;;  %v11617_v48 = vor.u32 %v14244_v55, %v11616_v20  ;;  %v11937_v43 = vor.u32 %v14324_v25, %v11936_v45  ;;  %v12097_v46 = vor.u32 %v14364_v49, %v12096_v39  ;;  %v14309_v20 = vld [vmem:[#allocation26 + $0x318] sm:$0xf0]  ;;  %v12036_v55 = vld [vmem:[#allocation26 + $0x448] sm:$0xf]  ;;  %v11536_v25 = vld [vmem:[#allocation26 + $0x60] sm:$0xf] }
 0xf38   : > { %9424 = vmatpush.bf16.msra.mxu3 %v13273_v1  ;;  %v14279_v1 = vld [vmem:[#allocation26 + $0x228] sm:$0xf0]  ;;  %v14224_v39 = vld [vmem:[#allocation26 + $0x70] sm:$0xf0] }
 0xf39   : > { %v11757_v11 = vor.u32 %v14279_v1, %v11756_v58  ;;  %v14304_v58 = vld [vmem:[#allocation26 + $0x2f0] sm:$0xf0]  ;;  %v12016_v1 = vld [vmem:[#allocation26 + $0x420] sm:$0xf]  ;;  %v11537_v17 = vor.u32 %v14224_v39, %v11536_v25  ;;  %v14449_v25 = vld [vmem:[#allocation26 + $0x778] sm:$0xf0] }
 0xf3a   : > { %9437 = vmatpush.bf16.msrb.mxu0 %v13433_v47  ;;  %9450 = vmatpush.bf16.msra.mxu1 %v13593_v18  ;;  %v12076_v47 = vld [vmem:[#allocation26 + $0x498] sm:$0xf]  ;;  %v11576_v18 = vld [vmem:[#allocation26 + $0xb0] sm:$0xf]  ;;  %v12596_v39 = vld [vmem:[#allocation26 + $0x8a8] sm:$0xf] }
 0xf3b   : > { %9463 = vmatpush.bf16.msrb.mxu2 %v13753_v5  ;;  %v14234_v5 = vld [vmem:[#allocation26 + $0xc0] sm:$0xf0]  ;;  %v12077_v52 = vor.u32 %v14359_v38, %v12076_v47 }
 0xf3c   : > { %9425 = vmatpush.bf16.msra.mxu3 %v13253_v2  ;;  %v14354_v2 = vld [vmem:[#allocation26 + $0x480] sm:$0xf0]  ;;  %v11577_v19 = vor.u32 %v14234_v5, %v11576_v18  ;;  %v14219_v18 = vld [vmem:[#allocation26 + $0x48] sm:$0xf0]  ;;  %v11857_v5 = vor.u32 %v14304_v58, %v11856_v14  ;;  %v14529_v14 = vld [vmem:[#allocation26 + $0x9f8] sm:$0xf0] }
 0xf3d   : > { %v12057_v32 = vor.u32 %v14354_v2, %v12056_v0  ;;  %v11996_v0 = vld [vmem:[#allocation26 + $0x3f8] sm:$0xf]  ;;  %v14339_v2 = vld [vmem:[#allocation26 + $0x408] sm:$0xf0] }
 0xf3e   : > { %9438 = vmatpush.bf16.msrb.mxu0 %v13413_v36  ;;  %9451 = vmatpush.bf16.msra.mxu1 %v13573_v35  ;;  %v9232_v57 = vpop.f32.mrf.mxu0  ;;  %v9245_v27 = vpop.f32.mrf.mxu1  ;;  %v11556_v36 = vld [vmem:[#allocation26 + $0x88] sm:$0xf] }
 0xf3f   : > { %9464 = vmatpush.bf16.msrb.mxu2 %v13733_v30  ;;  %9426 = vmatmul.bf16.vlgmr.msra.gmra.mxu3 %v18132_v21  ;;  %v11716_v35 = vld [vmem:[#allocation26 + $0x1c8] sm:$0xf]  ;;  %v14269_v30 = vld [vmem:[#allocation26 + $0x1d8] sm:$0xf0] }
 0xf40   : > { %9470 = vmatpush.bf16.msrb.mxu3 %v11637_v13  ;;  %v11737_v13 = vor.u32 %v14274_v33, %v11736_v28  ;;  %v11717_v45 = vor.u32 %v14269_v30, %v11716_v35  ;;  %v14259_v28 = vld [vmem:[#allocation26 + $0x188] sm:$0xf0]  ;;  %v11836_v33 = vld [vmem:[#allocation26 + $0x2b8] sm:$0xf]  ;;  %v11997_v35 = vor.u32 %v14339_v2, %v11996_v0  ;;  %v11656_v30 = vld [vmem:[#allocation26 + $0x150] sm:$0xf] }
 0xf41   : > { %9439 = vmatmul.bf16.vlgmr.msrb.gmra.mxu0 %v18141_v44  ;;  %9452 = vmatmul.bf16.vlgmr.msra.gmra.mxu1 %v18144_v16  ;;  %v12396_v2 = vld [vmem:[#allocation26 + $0x718] sm:$0xf] }
 0xf42   : > { %9483 = vmatpush.bf16.msra.mxu0 %v11797_v51  ;;  %9496 = vmatpush.bf16.msrb.mxu1 %v11957_v54  ;;  %v11876_v51 = vld [vmem:[#allocation26 + $0x308] sm:$0xf]  ;;  %v14349_v54 = vld [vmem:[#allocation26 + $0x458] sm:$0xf0]  ;;  %v9219_v29 = vpop.f32.mrf.mxu3 }
 0xf43   : > { %9509 = vmatpush.bf16.msra.mxu2 %v12117_v4  ;;  %v11557_v4 = vor.u32 %v14229_v8, %v11556_v36  ;;  %v9220_v9 = vadd.f32 %v9219_v29, %v18220_v3  ;;  %v11877_v49 = vor.u32 %v14309_v20, %v11876_v51  ;;  %v14214_v36 = vld [vmem:[#allocation26 + $0x20] sm:$0xf0]  ;;  %v12276_v8 = vld [vmem:[#allocation26 + $0x628] sm:$0xf]  ;;  %v11816_v20 = vld [vmem:[#allocation26 + $0x290] sm:$0xf] }
 0xf44   : > { %9465 = vmatmul.bf16.vlgmr.msrb.gmra.mxu2 %v18146_v42  ;;  %9471 = vmatpush.bf16.msrb.mxu3 %v11617_v48  ;;  %v12037_v48 = vor.u32 %v14349_v54, %v12036_v55  ;;  %v14254_v51 = vld [vmem:[#allocation26 + $0x160] sm:$0xf0] }
 0xf45   : > { %v14294_v54 = vld [vmem:[#allocation26 + $0x2a0] sm:$0xf0] }
 0xf46   : > { %9484 = vmatpush.bf16.msra.mxu0 %v11777_v26  ;;  %9497 = vmatpush.bf16.msrb.mxu1 %v11937_v43  ;;  %v11696_v26 = vld [vmem:[#allocation26 + $0x1a0] sm:$0xf]  ;;  %v9233_v43 = vadd.f32 %v9232_v57, %v9220_v9  ;;  %v9234_v47 = vpop.f32.mrf.mxu0  ;;  %v9247_v38 = vpop.f32.mrf.mxu1  ;;  %v14334_v29 = vld [vmem:[#allocation26 + $0x3e0] sm:$0xf0] }
 0xf47   : > { %9510 = vmatpush.bf16.msra.mxu2 %v12097_v46  ;;  %v9258_v46 = vpop.f32.mrf.mxu2  ;;  %v12416_v38 = vld [vmem:[#allocation26 + $0x740] sm:$0xf] }
 0xf48   : > { %9472 = vmatpush.bf16.msrb.mxu3 %v11597_v63  ;;  %v9246_v3 = vadd.f32 %v9245_v27, %v9233_v43  ;;  %v11697_v63 = vor.u32 %v14264_v59, %v11696_v26  ;;  %v14489_v26 = vld [vmem:[#allocation26 + $0x8b8] sm:$0xf0]  ;;  %v12756_v59 = vld [vmem:[#allocation26 + $0x9e8] sm:$0xf]  ;;  %v11817_v43 = vor.u32 %v14294_v54, %v11816_v20  ;;  %v14434_v20 = vld [vmem:[#allocation26 + $0x700] sm:$0xf0] }
 0xf49   : > { %v12757_v47 = vor.u32 %v14529_v14, %v12756_v59  ;;  %v14474_v54 = vld [vmem:[#allocation26 + $0x840] sm:$0xf0]  ;;  %v12356_v14 = vld [vmem:[#allocation26 + $0x6c8] sm:$0xf] }
 0xf4a   : > { %9485 = vmatpush.bf16.msra.mxu0 %v11757_v11  ;;  %9498 = vmatpush.bf16.msrb.mxu1 %v11917_v24  ;;  %v11516_v11 = vld [vmem:[#allocation26 + $0x38] sm:$0xf]  ;;  %v12017_v24 = vor.u32 %v14344_v34, %v12016_v1  ;;  %v18227_v50 = vadd.f32 %v9258_v46, %v9246_v3  ;;  %v9221_v57 = vpop.f32.mrf.mxu3  ;;  %v12256_v1 = vld [vmem:[#allocation26 + $0x600] sm:$0xf]  ;;  %v14404_v34 = vld [vmem:[#allocation26 + $0x610] sm:$0xf0] }
 0xf4b   : > { %9511 = vmatpush.bf16.msra.mxu2 %v12077_v52  ;;  %v11676_v52 = vld [vmem:[#allocation26 + $0x178] sm:$0xf]  ;;  %v14444_v3 = vld [vmem:[#allocation26 + $0x750] sm:$0xf0] }
 0xf4c   : > { %9473 = vmatpush.bf16.msrb.mxu3 %v11577_v19  ;;  %v11517_v19 = vor.u32 %v14219_v18, %v11516_v11  ;;  %v11677_v27 = vor.u32 %v14259_v28, %v11676_v52  ;;  %v14484_v11 = vld [vmem:[#allocation26 + $0x890] sm:$0xf0]  ;;  %v12736_v18 = vld [vmem:[#allocation26 + $0x9c0] sm:$0xf]  ;;  %v12417_v52 = vor.u32 %v14444_v3, %v12416_v38  ;;  %v12236_v28 = vld [vmem:[#allocation26 + $0x5d8] sm:$0xf] }
 0xf4d   : > { %v12556_v57 = vld [vmem:[#allocation26 + $0x858] sm:$0xf] }
 0xf4e   : > { %9486 = vmatpush.bf16.msra.mxu0 %v11737_v13  ;;  %9499 = vmatpush.bf16.msrb.mxu1 %v11897_v60  ;;  %v11496_v13 = vld [vmem:[#allocation26 + $0x10] sm:$0xf]  ;;  %v14409_v60 = vld [vmem:[#allocation26 + $0x638] sm:$0xf0] }
 0xf4f   : > { %9512 = vmatpush.bf16.msra.mxu2 %v12057_v32  ;;  %v11837_v32 = vor.u32 %v14299_v7, %v11836_v33  ;;  %v9260_v55 = vpop.f32.mrf.mxu2  ;;  %v11497_v9 = vor.u32 %v14214_v36, %v11496_v13  ;;  %v14399_v33 = vld [vmem:[#allocation26 + $0x5e8] sm:$0xf0] }
 0xf50   : > { %9474 = vmatpush.bf16.msrb.mxu3 %v11557_v4  ;;  %v11976_v4 = vld [vmem:[#allocation26 + $0x3d0] sm:$0xf]  ;;  %v14479_v13 = vld [vmem:[#allocation26 + $0x868] sm:$0xf0] }
 0xf51   : > { %v11977_v46 = vor.u32 %v14334_v29, %v11976_v4  ;;  %v14519_v36 = vld [vmem:[#allocation26 + $0x9a8] sm:$0xf0]  ;;  %v12536_v55 = vld [vmem:[#allocation26 + $0x830] sm:$0xf] }
 0xf52   : > { %9487 = vmatpush.bf16.msra.mxu0 %v11717_v45  ;;  %9500 = vmatpush.bf16.msrb.mxu1 %v11877_v49  ;;  %v12436_v45 = vld [vmem:[#allocation26 + $0x768] sm:$0xf]  ;;  %v12277_v49 = vor.u32 %v14409_v60, %v12276_v8  ;;  %v12216_v60 = vld [vmem:[#allocation26 + $0x5b0] sm:$0xf] }
 0xf53   : > { %9513 = vmatpush.bf16.msra.mxu2 %v12037_v48  ;;  %v11657_v48 = vor.u32 %v14254_v51, %v11656_v30  ;;  %v12437_v58 = vor.u32 %v14449_v25, %v12436_v45  ;;  %v12696_v4 = vld [vmem:[#allocation26 + $0x970] sm:$0xf] }
 0xf54   : > { %9475 = vmatpush.bf16.msrb.mxu3 %v11537_v17  ;;  %v12597_v17 = vor.u32 %v14489_v26, %v12596_v39  ;;  %v12537_v26 = vor.u32 %v14474_v54, %v12536_v55  ;;  %v14499_v55 = vld [vmem:[#allocation26 + $0x908] sm:$0xf0] }
 0xf56   : > { %9488 = vmatpush.bf16.msra.mxu0 %v11697_v63  ;;  %9501 = vmatpush.bf16.msrb.mxu1 %v11857_v5  ;;  %v12576_v63 = vld [vmem:[#allocation26 + $0x880] sm:$0xf]  ;;  %v14524_v5 = vld [vmem:[#allocation26 + $0x9d0] sm:$0xf0] }
 0xf57   : > { %9514 = vmatpush.bf16.msra.mxu2 %v12017_v24  ;;  %v12257_v24 = vor.u32 %v14404_v34, %v12256_v1  ;;  %v12577_v7 = vor.u32 %v14484_v11, %v12576_v63  ;;  %v12737_v0 = vor.u32 %v14524_v5, %v12736_v18  ;;  %v14469_v1 = vld [vmem:[#allocation26 + $0x818] sm:$0xf0]  ;;  %v12676_v34 = vld [vmem:[#allocation26 + $0x948] sm:$0xf]  ;;  %v12176_v11 = vld [vmem:[#allocation26 + $0x560] sm:$0xf] }
 0xf58   : > { %9476 = vmatpush.bf16.msrb.mxu3 %v11517_v19  ;;  %v14439_v19 = vld [vmem:[#allocation26 + $0x728] sm:$0xf0]  ;;  %v14384_v18 = vld [vmem:[#allocation26 + $0x570] sm:$0xf0] }
 0xf59   : > { %v12397_v8 = vor.u32 %v14439_v19, %v12396_v2  ;;  %v12656_v2 = vld [vmem:[#allocation26 + $0x920] sm:$0xf]  ;;  %v14504_v19 = vld [vmem:[#allocation26 + $0x930] sm:$0xf0] }
 0xf5a   : > { %9489 = vmatpush.bf16.msra.mxu0 %v11677_v27  ;;  %9502 = vmatpush.bf16.msrb.mxu1 %v11837_v32  ;;  %v12716_v27 = vld [vmem:[#allocation26 + $0x998] sm:$0xf]  ;;  %v14394_v32 = vld [vmem:[#allocation26 + $0x5c0] sm:$0xf0] }
 0xf5b   : > { %9515 = vmatpush.bf16.msra.mxu2 %v11997_v35  ;;  %v18233_v35 = vld [vmem:[#allocation28] sm:$0x1f]  ;;  %v12717_v51 = vor.u32 %v14519_v36, %v12716_v27  ;;  %v12217_v29 = vor.u32 %v14394_v32, %v12216_v60  ;;  %v12657_v32 = vor.u32 %v14504_v19, %v12656_v2 }
 0xf5c   : > { %9477 = vmatpush.bf16.msrb.mxu3 %v11497_v9  ;;  %v8683_v30 = vperm.slane %v18233_v35, 3  ;;  %v13056_v19 = vld [vmem:[#allocation26 + $0xc40] sm:$0xf] }
 0xf5e   : > { %9490 = vmatpush.bf16.msra.mxu0 %v11657_v48  ;;  %9503 = vmatpush.bf16.msrb.mxu1 %v11817_v43  ;;  %v9284_v9 = vpop.f32.mrf.mxu0  ;;  %v9297_v45 = vpop.f32.mrf.mxu1  ;;  %v14389_v48 = vld [vmem:[#allocation26 + $0x598] sm:$0xf0] }
 0xf5f   : > { %9516 = vmatpush.bf16.msra.mxu2 %v11977_v46  ;;  %9478 = vmatmul.bf16.vlgmr.msrb.gmra.mxu3 %v18090_v22  ;;  %v12237_v22 = vor.u32 %v14399_v33, %v12236_v28  ;;  %v9285_v25 = vadd.f32 %v9284_v9, %v8683_v30  ;;  %v14429_v43 = vld [vmem:[#allocation26 + $0x6d8] sm:$0xf0]  ;;  %v12516_v46 = vld [vmem:[#allocation26 + $0x808] sm:$0xf]  ;;  %v14424_v28 = vld [vmem:[#allocation26 + $0x6b0] sm:$0xf0] }
 0xf60   : > { %9522 = vmatpush.bf16.msra.mxu3 %v12277_v49  ;;  %v12196_v49 = vld [vmem:[#allocation26 + $0x588] sm:$0xf]  ;;  %v12357_v63 = vor.u32 %v14429_v43, %v12356_v14  ;;  %v12517_v5 = vor.u32 %v14469_v1, %v12516_v46  ;;  %v12496_v33 = vld [vmem:[#allocation26 + $0x7e0] sm:$0xf]  ;;  %v12316_v30 = vld [vmem:[#allocation26 + $0x678] sm:$0xf] }
 0xf61   : > { %9491 = vmatmul.bf16.vlgmr.msra.gmra.mxu0 %v18093_v41  ;;  %9504 = vmatmul.bf16.vlgmr.msrb.gmra.mxu1 %v18095_v15  ;;  %v12557_v41 = vor.u32 %v14479_v13, %v12556_v57  ;;  %v12376_v15 = vld [vmem:[#allocation26 + $0x6f0] sm:$0xf]  ;;  %v12177_v13 = vor.u32 %v14384_v18, %v12176_v11  ;;  %v14374_v9 = vld [vmem:[#allocation26 + $0x520] sm:$0xf0]  ;;  %v14649_v11 = vld [vmem:[#allocation26 + $0xdb8] sm:$0xf0] }
 0xf62   : > { %9535 = vmatpush.bf16.msrb.mxu0 %v12437_v58  ;;  %9548 = vmatpush.bf16.msra.mxu1 %v12597_v17  ;;  %v12377_v39 = vor.u32 %v14434_v20, %v12376_v15  ;;  %v9298_v58 = vadd.f32 %v9297_v45, %v9285_v25  ;;  %v14509_v17 = vld [vmem:[#allocation26 + $0x958] sm:$0xf0]  ;;  %v9271_v38 = vpop.f32.mrf.mxu3  ;;  %v14459_v15 = vld [vmem:[#allocation26 + $0x7c8] sm:$0xf0]  ;;  %v12636_v20 = vld [vmem:[#allocation26 + $0x8f8] sm:$0xf] }
 0xf63   : > { %9561 = vmatpush.bf16.msrb.mxu2 %v12757_v47  ;;  %v12197_v47 = vor.u32 %v14389_v48, %v12196_v49  ;;  %v18237_v3 = vadd.f32 %v9271_v38, %v18227_v50  ;;  %v12916_v45 = vld [vmem:[#allocation26 + $0xb28] sm:$0xf]  ;;  %v14569_v25 = vld [vmem:[#allocation26 + $0xb38] sm:$0xf0]  ;;  %v12637_v49 = vor.u32 %v14499_v55, %v12636_v20  ;;  %v12296_v48 = vld [vmem:[#allocation26 + $0x650] sm:$0xf] }
 0xf64   : > { %9517 = vmatmul.bf16.vlgmr.msra.gmra.mxu2 %v18097_v12  ;;  %9523 = vmatpush.bf16.msra.mxu3 %v12257_v24  ;;  %v14514_v12 = vld [vmem:[#allocation26 + $0x980] sm:$0xf0]  ;;  %v12677_v24 = vor.u32 %v14509_v17, %v12676_v34  ;;  %v12616_v46 = vld [vmem:[#allocation26 + $0x8d0] sm:$0xf]  ;;  %v13076_v34 = vld [vmem:[#allocation26 + $0xc68] sm:$0xf]  ;;  %v12917_v38 = vor.u32 %v14569_v25, %v12916_v45 }
 0xf65   : > { %v12697_v59 = vor.u32 %v14514_v12, %v12696_v4  ;;  %v12136_v12 = vld [vmem:[#allocation26 + $0x510] sm:$0xf]  ;;  %v14454_v43 = vld [vmem:[#allocation26 + $0x7a0] sm:$0xf0]  ;;  %v14609_v17 = vld [vmem:[#allocation26 + $0xc78] sm:$0xf0] }
 0xf66   : > { %9536 = vmatpush.bf16.msrb.mxu0 %v12417_v52  ;;  %9549 = vmatpush.bf16.msra.mxu1 %v12577_v7  ;;  %v12336_v52 = vld [vmem:[#allocation26 + $0x6a0] sm:$0xf]  ;;  %v9286_v50 = vpop.f32.mrf.mxu0  ;;  %v9299_v27 = vpop.f32.mrf.mxu1  ;;  %v12137_v1 = vor.u32 %v14374_v9, %v12136_v12  ;;  %v13396_v18 = vld [vmem:[#allocation26 + $0xee8] sm:$0xf]  ;;  %v14599_v20 = vld [vmem:[#allocation26 + $0xc28] sm:$0xf0] }
 0xf67   : > { %9562 = vmatpush.bf16.msrb.mxu2 %v12737_v0  ;;  %v9310_v7 = vpop.f32.mrf.mxu2  ;;  %v14464_v0 = vld [vmem:[#allocation26 + $0x7f0] sm:$0xf0]  ;;  %v12337_v36 = vor.u32 %v14424_v28, %v12336_v52  ;;  %v13077_v28 = vor.u32 %v14609_v17, %v13076_v34  ;;  %v13216_v50 = vld [vmem:[#allocation26 + $0xd80] sm:$0xf]  ;;  %v13196_v55 = vld [vmem:[#allocation26 + $0xd58] sm:$0xf] }
 0xf68   : > { %9524 = vmatpush.bf16.msra.mxu3 %v12237_v22  ;;  %v18239_v57 = vadd.f32 %v9310_v7, %v9298_v58  ;;  %v12156_v22 = vld [vmem:[#allocation26 + $0x538] sm:$0xf]  ;;  %v12497_v60 = vor.u32 %v14464_v0, %v12496_v33  ;;  %v14494_v58 = vld [vmem:[#allocation26 + $0x8e0] sm:$0xf0]  ;;  %v12896_v33 = vld [vmem:[#allocation26 + $0xb00] sm:$0xf] }
 0xf69   : > { %v12617_v52 = vor.u32 %v14494_v58, %v12616_v46  ;;  %v14564_v7 = vld [vmem:[#allocation26 + $0xb10] sm:$0xf0]  ;;  %v14679_v12 = vld [vmem:[#allocation26 + $0xea8] sm:$0xf0]  ;;  %v12856_v9 = vld [vmem:[#allocation26 + $0xab0] sm:$0xf] }
 0xf6a   : > { %9537 = vmatpush.bf16.msrb.mxu0 %v12397_v8  ;;  %9550 = vmatpush.bf16.msra.mxu1 %v12557_v41  ;;  %v14379_v8 = vld [vmem:[#allocation26 + $0x548] sm:$0xf0]  ;;  %v9273_v4 = vpop.f32.mrf.mxu3  ;;  %v14644_v27 = vld [vmem:[#allocation26 + $0xd90] sm:$0xf0]  ;;  %v14554_v45 = vld [vmem:[#allocation26 + $0xac0] sm:$0xf0] }
 0xf6b   : > { %9563 = vmatpush.bf16.msrb.mxu2 %v12717_v51  ;;  %v14419_v41 = vld [vmem:[#allocation26 + $0x688] sm:$0xf0]  ;;  %v12476_v51 = vld [vmem:[#allocation26 + $0x7b8] sm:$0xf]  ;;  %v12157_v54 = vor.u32 %v14379_v8, %v12156_v22  ;;  %v14684_v22 = vld [vmem:[#allocation26 + $0xed0] sm:$0xf0]  ;;  %v12897_v8 = vor.u32 %v14564_v7, %v12896_v33 }
 0xf6c   : > { %9525 = vmatpush.bf16.msra.mxu3 %v12217_v29  ;;  %v12317_v29 = vor.u32 %v14419_v41, %v12316_v30  ;;  %v14559_v30 = vld [vmem:[#allocation26 + $0xae8] sm:$0xf0]  ;;  %v13217_v41 = vor.u32 %v14644_v27, %v13216_v50  ;;  %v13356_v4 = vld [vmem:[#allocation26 + $0xe98] sm:$0xf]  ;;  %v12836_v58 = vld [vmem:[#allocation26 + $0xa88] sm:$0xf] }
 0xf6d   : > { %v12816_v7 = vld [vmem:[#allocation26 + $0xa60] sm:$0xf]  ;;  %v14584_v50 = vld [vmem:[#allocation26 + $0xbb0] sm:$0xf0] }
 0xf6e   : > { %9538 = vmatpush.bf16.msrb.mxu0 %v12377_v39  ;;  %9551 = vmatpush.bf16.msra.mxu1 %v12537_v26  ;;  %v12477_v39 = vor.u32 %v14459_v15, %v12476_v51  ;;  %v14414_v26 = vld [vmem:[#allocation26 + $0x660] sm:$0xf0]  ;;  %v13036_v15 = vld [vmem:[#allocation26 + $0xc18] sm:$0xf]  ;;  %v13136_v27 = vld [vmem:[#allocation26 + $0xce0] sm:$0xf] }
 0xf6f   : > { %9564 = vmatpush.bf16.msrb.mxu2 %v12697_v59  ;;  %v12456_v59 = vld [vmem:[#allocation26 + $0x790] sm:$0xf]  ;;  %v9312_v14 = vpop.f32.mrf.mxu2 }
 0xf70   : > { %9526 = vmatpush.bf16.msra.mxu3 %v12197_v47  ;;  %v13236_v47 = vld [vmem:[#allocation26 + $0xda8] sm:$0xf]  ;;  %v12857_v14 = vor.u32 %v14554_v45, %v12856_v9  ;;  %v14619_v45 = vld [vmem:[#allocation26 + $0xcc8] sm:$0xf0] }
 0xf71   : > { %v13237_v0 = vor.u32 %v14649_v11, %v13236_v47  ;;  %v12996_v47 = vld [vmem:[#allocation26 + $0xbc8] sm:$0xf]  ;;  %v14629_v11 = vld [vmem:[#allocation26 + $0xd18] sm:$0xf0] }
 0xf72   : > { %9539 = vmatpush.bf16.msrb.mxu0 %v12357_v63  ;;  %9552 = vmatpush.bf16.msra.mxu1 %v12517_v5  ;;  %v12297_v63 = vor.u32 %v14414_v26, %v12296_v48  ;;  %v14689_v5 = vld [vmem:[#allocation26 + $0xef8] sm:$0xf0]  ;;  %v14594_v48 = vld [vmem:[#allocation26 + $0xc00] sm:$0xf0] }
 0xf73   : > { %9565 = vmatpush.bf16.msrb.mxu2 %v12677_v24  ;;  %v12457_v24 = vor.u32 %v14454_v43, %v12456_v59  ;;  %v13397_v2 = vor.u32 %v14689_v5, %v13396_v18  ;;  %v14634_v26 = vld [vmem:[#allocation26 + $0xd40] sm:$0xf0]  ;;  %v13316_v18 = vld [vmem:[#allocation26 + $0xe48] sm:$0xf]  ;;  %v14669_v5 = vld [vmem:[#allocation26 + $0xe58] sm:$0xf0] }
 0xf74   : > { %9527 = vmatpush.bf16.msra.mxu3 %v12177_v13  ;;  %v14604_v13 = vld [vmem:[#allocation26 + $0xc50] sm:$0xf0]  ;;  %v14674_v59 = vld [vmem:[#allocation26 + $0xe80] sm:$0xf0] }
 0xf76   : > { %9540 = vmatpush.bf16.msrb.mxu0 %v12337_v36  ;;  %9553 = vmatpush.bf16.msra.mxu1 %v12497_v60  ;;  %v13376_v36 = vld [vmem:[#allocation26 + $0xec0] sm:$0xf]  ;;  %v13057_v60 = vor.u32 %v14604_v13, %v13056_v19  ;;  %v13317_v19 = vor.u32 %v14669_v5, %v13316_v18  ;;  %v14769_v18 = vld [vmem:[#allocation26 + $0x1178] sm:$0xf0] }
 0xf77   : > { %9566 = vmatpush.bf16.msrb.mxu2 %v12657_v32  ;;  %v12876_v32 = vld [vmem:[#allocation26 + $0xad8] sm:$0xf]  ;;  %v13377_v51 = vor.u32 %v14684_v22, %v13376_v36  ;;  %v12976_v13 = vld [vmem:[#allocation26 + $0xba0] sm:$0xf] }
 0xf78   : > { %9528 = vmatpush.bf16.msra.mxu3 %v12157_v54  ;;  %v14639_v54 = vld [vmem:[#allocation26 + $0xd68] sm:$0xf0] }
 0xf79   : > { %v13197_v25 = vor.u32 %v14639_v54, %v13196_v55  ;;  %v14539_v55 = vld [vmem:[#allocation26 + $0xa48] sm:$0xf0] }
 0xf7a   : > { %9541 = vmatpush.bf16.msrb.mxu0 %v12317_v29  ;;  %9554 = vmatpush.bf16.msra.mxu1 %v12477_v39  ;;  %v13037_v29 = vor.u32 %v14599_v20, %v13036_v15  ;;  %v13357_v39 = vor.u32 %v14679_v12, %v13356_v4  ;;  %v12977_v15 = vor.u32 %v14584_v50, %v12976_v13  ;;  %v12796_v20 = vld [vmem:[#allocation26 + $0xa38] sm:$0xf]  ;;  %v13696_v50 = vld [vmem:[#allocation26 + $0x1140] sm:$0xf] }
 0xf7b   : > { %9567 = vmatpush.bf16.msrb.mxu2 %v12637_v49  ;;  %v13016_v49 = vld [vmem:[#allocation26 + $0xbf0] sm:$0xf]  ;;  %v12956_v12 = vld [vmem:[#allocation26 + $0xb78] sm:$0xf] }
 0xf7c   : > { %9529 = vmatpush.bf16.msra.mxu3 %v12137_v1  ;;  %v13017_v46 = vor.u32 %v14594_v48, %v13016_v49  ;;  %v14549_v1 = vld [vmem:[#allocation26 + $0xa98] sm:$0xf0]  ;;  %v12797_v49 = vor.u32 %v14539_v55, %v12796_v20  ;;  %v14799_v20 = vld [vmem:[#allocation26 + $0x1268] sm:$0xf0] }
 0xf7e   : > { %9542 = vmatpush.bf16.msrb.mxu0 %v12297_v63  ;;  %9555 = vmatpush.bf16.msra.mxu1 %v12457_v24  ;;  %v9336_v43 = vpop.f32.mrf.mxu0  ;;  %v13156_v63 = vld [vmem:[#allocation26 + $0xd08] sm:$0xf]  ;;  %v12837_v24 = vor.u32 %v14549_v1, %v12836_v58  ;;  %v14574_v58 = vld [vmem:[#allocation26 + $0xb60] sm:$0xf0]  ;;  %v13096_v1 = vld [vmem:[#allocation26 + $0xc90] sm:$0xf] }
 0xf7f   : > { %9568 = vmatpush.bf16.msrb.mxu2 %v12617_v52  ;;  %9530 = vmatmul.bf16.vlgmr.msra.gmra.mxu3 %v18109_v40  ;;  %v12877_v40 = vor.u32 %v14559_v30, %v12876_v32  ;;  %v14664_v32 = vld [vmem:[#allocation26 + $0xe30] sm:$0xf0] }
 0xf80   : > { %9574 = vmatpush.bf16.msrb.mxu3 %v12917_v38  ;;  %v14589_v38 = vld [vmem:[#allocation26 + $0xbd8] sm:$0xf0] }
 0xf81   : > { %9543 = vmatmul.bf16.vlgmr.msrb.gmra.mxu0 %v18111_v23  ;;  %9556 = vmatmul.bf16.vlgmr.msra.gmra.mxu1 %v18114_v62  ;;  %v13176_v23 = vld [vmem:[#allocation26 + $0xd30] sm:$0xf]  ;;  %v12997_v33 = vor.u32 %v14589_v38, %v12996_v47  ;;  %v14654_v38 = vld [vmem:[#allocation26 + $0xde0] sm:$0xf0] }
 0xf82   : > { %9587 = vmatpush.bf16.msra.mxu0 %v13077_v28  ;;  %9600 = vmatpush.bf16.msrb.mxu1 %v13237_v0  ;;  %v13336_v62 = vld [vmem:[#allocation26 + $0xe70] sm:$0xf]  ;;  %v13177_v34 = vor.u32 %v14634_v26, %v13176_v23  ;;  %v9323_v52 = vpop.f32.mrf.mxu3  ;;  %v14544_v0 = vld [vmem:[#allocation26 + $0xa70] sm:$0xf0] }
 0xf83   : > { %9613 = vmatpush.bf16.msra.mxu2 %v13397_v2  ;;  %v13337_v17 = vor.u32 %v14674_v59, %v13336_v62  ;;  %v9324_v28 = vadd.f32 %v9323_v52, %v18239_v57  ;;  %v13157_v2 = vor.u32 %v14629_v11, %v13156_v63  ;;  %v12817_v30 = vor.u32 %v14544_v0, %v12816_v7  ;;  %v12776_v23 = vld [vmem:[#allocation26 + $0xa10] sm:$0xf]  ;;  %v14534_v62 = vld [vmem:[#allocation26 + $0xa20] sm:$0xf0]  ;;  %v13556_v59 = vld [vmem:[#allocation26 + $0x1028] sm:$0xf] }
 0xf84   : > { %9569 = vmatmul.bf16.vlgmr.msrb.gmra.mxu2 %v18116_v56  ;;  %9575 = vmatpush.bf16.msrb.mxu3 %v12897_v8  ;;  %v9349_v56 = vpop.f32.mrf.mxu1  ;;  %v14624_v8 = vld [vmem:[#allocation26 + $0xcf0] sm:$0xf0]  ;;  %v13256_v47 = vld [vmem:[#allocation26 + $0xdd0] sm:$0xf]  ;;  %v12777_v63 = vor.u32 %v14534_v62, %v12776_v23  ;;  %v13716_v11 = vld [vmem:[#allocation26 + $0x1168] sm:$0xf] }
 0xf85   : > { %v9337_v36 = vadd.f32 %v9336_v43, %v9324_v28  ;;  %v13137_v54 = vor.u32 %v14624_v8, %v13136_v27  ;;  %v13876_v52 = vld [vmem:[#allocation26 + $0x12a8] sm:$0xf]  ;;  %v14809_v28 = vld [vmem:[#allocation26 + $0x12b8] sm:$0xf0]  ;;  %v13257_v7 = vor.u32 %v14654_v38, %v13256_v47  ;;  %v13717_v0 = vor.u32 %v14769_v18, %v13716_v11  ;;  %v14764_v27 = vld [vmem:[#allocation26 + $0x1150] sm:$0xf0] }
 0xf86   : > { %9588 = vmatpush.bf16.msra.mxu0 %v13057_v60  ;;  %9601 = vmatpush.bf16.msrb.mxu1 %v13217_v41  ;;  %v13296_v60 = vld [vmem:[#allocation26 + $0xe20] sm:$0xf]  ;;  %v9338_v41 = vpop.f32.mrf.mxu0  ;;  %v13877_v13 = vor.u32 %v14809_v28, %v13876_v52  ;;  %v14749_v62 = vld [vmem:[#allocation26 + $0x10d8] sm:$0xf0]  ;;  %v14744_v38 = vld [vmem:[#allocation26 + $0x10b0] sm:$0xf0] }
 0xf87   : > { %9614 = vmatpush.bf16.msra.mxu2 %v13377_v51  ;;  %v9362_v22 = vpop.f32.mrf.mxu2  ;;  %v9350_v57 = vadd.f32 %v9349_v56, %v9337_v36  ;;  %v13297_v4 = vor.u32 %v14664_v32, %v13296_v60  ;;  %v13856_v36 = vld [vmem:[#allocation26 + $0x1280] sm:$0xf]  ;;  %v13697_v60 = vor.u32 %v14764_v27, %v13696_v50  ;;  %v13516_v32 = vld [vmem:[#allocation26 + $0xfd8] sm:$0xf] }
 0xf88   : > { %9576 = vmatpush.bf16.msrb.mxu3 %v12877_v40  ;;  %v14579_v40 = vld [vmem:[#allocation26 + $0xb88] sm:$0xf0]  ;;  %v13616_v47 = vld [vmem:[#allocation26 + $0x10a0] sm:$0xf]  ;;  %v13756_v27 = vld [vmem:[#allocation26 + $0x11b8] sm:$0xf] }
 0xf89   : > { %v18246_v9 = vadd.f32 %v9362_v22, %v9350_v57  ;;  %v12957_v26 = vor.u32 %v14579_v40, %v12956_v12  ;;  %v14804_v22 = vld [vmem:[#allocation26 + $0x1290] sm:$0xf0]  ;;  %v14759_v57 = vld [vmem:[#allocation26 + $0x1128] sm:$0xf0]  ;;  %v13656_v40 = vld [vmem:[#allocation26 + $0x10f0] sm:$0xf] }
 0xf8a   : > { %9589 = vmatpush.bf16.msra.mxu0 %v13037_v29  ;;  %9602 = vmatpush.bf16.msrb.mxu1 %v13197_v25  ;;  %v13116_v29 = vld [vmem:[#allocation26 + $0xcb8] sm:$0xf]  ;;  %v9325_v48 = vpop.f32.mrf.mxu3  ;;  %v13857_v41 = vor.u32 %v14804_v22, %v13856_v36  ;;  %v13776_v18 = vld [vmem:[#allocation26 + $0x11e0] sm:$0xf]  ;;  %v14779_v36 = vld [vmem:[#allocation26 + $0x11c8] sm:$0xf0] }
 0xf8b   : > { %9615 = vmatpush.bf16.msra.mxu2 %v13357_v39  ;;  %v13276_v25 = vld [vmem:[#allocation26 + $0xdf8] sm:$0xf]  ;;  %v14659_v39 = vld [vmem:[#allocation26 + $0xe08] sm:$0xf0]  ;;  %v13117_v43 = vor.u32 %v14619_v45, %v13116_v29  ;;  %v14754_v29 = vld [vmem:[#allocation26 + $0x1100] sm:$0xf0] }
 0xf8c   : > { %9577 = vmatpush.bf16.msrb.mxu3 %v12857_v14  ;;  %v9351_v51 = vpop.f32.mrf.mxu1  ;;  %v14729_v14 = vld [vmem:[#allocation26 + $0x1038] sm:$0xf0]  ;;  %v13277_v56 = vor.u32 %v14659_v39, %v13276_v25  ;;  %v14794_v45 = vld [vmem:[#allocation26 + $0x1240] sm:$0xf0] }
 0xf8d   : > { %v13557_v5 = vor.u32 %v14729_v14, %v13556_v59  ;;  %v13676_v51 = vld [vmem:[#allocation26 + $0x1118] sm:$0xf]  ;;  %v14709_v48 = vld [vmem:[#allocation26 + $0xf98] sm:$0xf0]  ;;  %v13796_v59 = vld [vmem:[#allocation26 + $0x1208] sm:$0xf] }
 0xf8e   : > { %9590 = vmatpush.bf16.msra.mxu0 %v13017_v46  ;;  %9603 = vmatpush.bf16.msrb.mxu1 %v13177_v34  ;;  %v12936_v46 = vld [vmem:[#allocation26 + $0xb50] sm:$0xf]  ;;  %v14789_v14 = vld [vmem:[#allocation26 + $0x1218] sm:$0xf0] }
 0xf8f   : > { %9616 = vmatpush.bf16.msra.mxu2 %v13337_v17  ;;  %v9364_v34 = vpop.f32.mrf.mxu2  ;;  %v14614_v17 = vld [vmem:[#allocation26 + $0xca0] sm:$0xf0] }
 0xf90   : > { %9578 = vmatpush.bf16.msrb.mxu3 %v12837_v24  ;;  %v12937_v24 = vor.u32 %v14574_v58, %v12936_v46  ;;  %v14704_v34 = vld [vmem:[#allocation26 + $0xf70] sm:$0xf0] }
 0xf92   : > { %9591 = vmatpush.bf16.msra.mxu0 %v12997_v33  ;;  %9604 = vmatpush.bf16.msrb.mxu1 %v13157_v2  ;;  %v13097_v33 = vor.u32 %v14614_v17, %v13096_v1  ;;  %v13536_v2 = vld [vmem:[#allocation26 + $0x1000] sm:$0xf]  ;;  %v13797_v17 = vor.u32 %v14789_v14, %v13796_v59 }
 0xf93   : > { %9617 = vmatpush.bf16.msra.mxu2 %v13317_v19  ;;  %v14724_v19 = vld [vmem:[#allocation26 + $0x1010] sm:$0xf0]  ;;  %v13456_v1 = vld [vmem:[#allocation26 + $0xf60] sm:$0xf] }
 0xf94   : > { %9579 = vmatpush.bf16.msrb.mxu3 %v12817_v30  ;;  %v13537_v8 = vor.u32 %v14724_v19, %v13536_v2  ;;  %v14719_v30 = vld [vmem:[#allocation26 + $0xfe8] sm:$0xf0]  ;;  %v13596_v19 = vld [vmem:[#allocation26 + $0x1078] sm:$0xf] }
 0xf95   : > { %v13517_v55 = vor.u32 %v14719_v30, %v13516_v32  ;;  %v13416_v32 = vld [vmem:[#allocation26 + $0xf10] sm:$0xf]  ;;  %v14694_v30 = vld [vmem:[#allocation26 + $0xf20] sm:$0xf0] }
 0xf96   : > { %9592 = vmatpush.bf16.msra.mxu0 %v12977_v15  ;;  %9605 = vmatpush.bf16.msrb.mxu1 %v13137_v54  ;;  %v13836_v15 = vld [vmem:[#allocation26 + $0x1258] sm:$0xf]  ;;  %v13496_v54 = vld [vmem:[#allocation26 + $0xfb0] sm:$0xf] }
 0xf97   : > { %9618 = vmatpush.bf16.msra.mxu2 %v13297_v4  ;;  %v14714_v4 = vld [vmem:[#allocation26 + $0xfc0] sm:$0xf0]  ;;  %v13837_v12 = vor.u32 %v14799_v20, %v13836_v15  ;;  %v13736_v20 = vld [vmem:[#allocation26 + $0x1190] sm:$0xf] }
 0xf98   : > { %9580 = vmatpush.bf16.msrb.mxu3 %v12797_v49  ;;  %v13497_v25 = vor.u32 %v14714_v4, %v13496_v54  ;;  %v13476_v49 = vld [vmem:[#allocation26 + $0xf88] sm:$0xf] }
 0xf9a   : > { %9593 = vmatpush.bf16.msra.mxu0 %v12957_v26  ;;  %9606 = vmatpush.bf16.msrb.mxu1 %v13117_v43  ;;  %v13636_v26 = vld [vmem:[#allocation26 + $0x10c8] sm:$0xf]  ;;  %v13477_v43 = vor.u32 %v14709_v48, %v13476_v49 }
 0xf9b   : > { %9619 = vmatpush.bf16.msra.mxu2 %v13277_v56  ;;  %v13637_v58 = vor.u32 %v14749_v62, %v13636_v26 }
 0xf9c   : > { %9581 = vmatpush.bf16.msrb.mxu3 %v12777_v63 }
 0xf9e   : > { %9594 = vmatpush.bf16.msra.mxu0 %v12937_v24  ;;  %9607 = vmatpush.bf16.msrb.mxu1 %v13097_v33  ;;  %v9388_v39 = vpop.f32.mrf.mxu0  ;;  %v13457_v24 = vor.u32 %v14704_v34, %v13456_v1 }
 0xf9f   : > { %9620 = vmatpush.bf16.msra.mxu2 %v13257_v7  ;;  %9582 = vmatmul.bf16.vlgmr.msrb.gmra.mxu3 %v18126_v31  ;;  %v13677_v31 = vor.u32 %v14759_v57, %v13676_v51  ;;  %v13617_v7 = vor.u32 %v14744_v38, %v13616_v47  ;;  %v13576_v51 = vld [vmem:[#allocation26 + $0x1050] sm:$0xf]  ;;  %v14734_v57 = vld [vmem:[#allocation26 + $0x1060] sm:$0xf0] }
 0xfa0   : > { %9626 = vmatpush.bf16.msra.mxu3 %v13557_v5  ;;  %v14784_v5 = vld [vmem:[#allocation26 + $0x11f0] sm:$0xf0]  ;;  %v13577_v54 = vor.u32 %v14734_v57, %v13576_v51  ;;  %v9668_v57 = vsel %vm9667_vm2, %v18175_v37, 0.0 }
 0xfa1   : > { %9595 = vmatmul.bf16.vlgmr.msra.gmra.mxu0 %v18128_v53  ;;  %9608 = vmatmul.bf16.vlgmr.msrb.gmra.mxu1 %v18130_v61  ;;  %v13816_v53 = vld [vmem:[#allocation26 + $0x1230] sm:$0xf]  ;;  %v9401_v61 = vpop.f32.mrf.mxu1  ;;  %v13777_v2 = vor.u32 %v14784_v5, %v13776_v18 }
 0xfa2   : > { %9639 = vmatpush.bf16.msrb.mxu0 %v13717_v0  ;;  %9652 = vmatpush.bf16.msra.mxu1 %v13877_v13  ;;  %v13817_v23 = vor.u32 %v14794_v45, %v13816_v53  ;;  %v9375_v56 = vpop.f32.mrf.mxu3  ;;  %v13436_v0 = vld [vmem:[#allocation26 + $0xf38] sm:$0xf]  ;;  %v14739_v13 = vld [vmem:[#allocation26 + $0x1088] sm:$0xf0] }
 0xfa3   : > { %9621 = vmatmul.bf16.vlgmr.msra.gmra.mxu2 %v18132_v21  ;;  %v13657_v21 = vor.u32 %v14754_v29, %v13656_v40  ;;  %v9376_v46 = vadd.f32 %v9375_v56, %v18246_v9  ;;  %v14699_v9 = vld [vmem:[#allocation26 + $0xf48] sm:$0xf0] }
 0xfa4   : > { %9627 = vmatpush.bf16.msra.mxu3 %v13537_v8  ;;  %v13437_v22 = vor.u32 %v14699_v9, %v13436_v0 }
 0xfa5   : > { %v9389_v63 = vadd.f32 %v9388_v39, %v9376_v46 }
 0xfa6   : > { %9640 = vmatpush.bf16.msrb.mxu0 %v13697_v60  ;;  %9653 = vmatpush.bf16.msra.mxu1 %v13857_v41  ;;  %v9390_v52 = vpop.f32.mrf.mxu0  ;;  %v13597_v60 = vor.u32 %v14739_v13, %v13596_v19  ;;  %v13757_v41 = vor.u32 %v14779_v36, %v13756_v27 }
 0xfa7   : > { %v9414_v11 = vpop.f32.mrf.mxu2  ;;  %v9402_v33 = vadd.f32 %v9401_v61, %v9389_v63 }
 0xfa8   : > { %9628 = vmatpush.bf16.msra.mxu3 %v13517_v55  ;;  %v14774_v55 = vld [vmem:[#allocation26 + $0x11a0] sm:$0xf0] }
 0xfa9   : > { %v9403_v28 = vpop.f32.mrf.mxu1  ;;  %v9415_v50 = vadd.f32 %v9414_v11, %v9402_v33  ;;  %v13737_v4 = vor.u32 %v14774_v55, %v13736_v20 }
 0xfaa   : > { %9641 = vmatpush.bf16.msrb.mxu0 %v13677_v31  ;;  %9654 = vmatpush.bf16.msra.mxu1 %v13837_v12  ;;  %v9377_v8 = vpop.f32.mrf.mxu3  ;;  %v13417_v31 = vor.u32 %v14694_v30, %v13416_v32  ;;  %v9669_v30 = vsel %vm9667_vm2, %v18204_v6, 0.0 }
 0xfab   : > { %v9670_v55 = vadd.f32 %v9669_v30, %v9668_v57  ;;  %v14838_v30 = vld [vmem:[#allocation32 + $0xe0] sm:$0xff]  ;;  %v14829_v57 = vld [vmem:[#allocation32 + $0x98] sm:$0xff] }
 0xfac   : > { %9629 = vmatpush.bf16.msra.mxu3 %v13497_v25 }
 0xfae   : > { %9642 = vmatpush.bf16.msrb.mxu0 %v13657_v21  ;;  %9655 = vmatpush.bf16.msra.mxu1 %v13817_v23 }
 0xfaf   : > { %v9416_v15 = vpop.f32.mrf.mxu2 }
 0xfb0   : > { %9630 = vmatpush.bf16.msra.mxu3 %v13477_v43  ;;  %v9671_v15 = vsel %vm9667_vm2, %v18237_v3, 0.0 }
 0xfb2   : > { %9643 = vmatpush.bf16.msrb.mxu0 %v13637_v58  ;;  %9656 = vmatpush.bf16.msra.mxu1 %v13797_v17 }
 0xfb4   : > { %9631 = vmatpush.bf16.msra.mxu3 %v13457_v24 }
 0xfb6   : > { %9644 = vmatpush.bf16.msrb.mxu0 %v13617_v7  ;;  %9657 = vmatpush.bf16.msra.mxu1 %v13777_v2 }
 0xfb8   : > { %9632 = vmatpush.bf16.msra.mxu3 %v13437_v22 }
 0xfba   : > { %9645 = vmatpush.bf16.msrb.mxu0 %v13597_v60  ;;  %9658 = vmatpush.bf16.msra.mxu1 %v13757_v41 }
 0xfbc   : > { %9633 = vmatpush.bf16.msra.mxu3 %v13417_v31 }
 0xfbe   : > { %9646 = vmatpush.bf16.msrb.mxu0 %v13577_v54  ;;  %9659 = vmatpush.bf16.msra.mxu1 %v13737_v4  ;;  %v9440_v12 = vpop.f32.mrf.mxu0  ;;  %v9453_v40 = vpop.f32.mrf.mxu1 }
 0xfbf   : > { %9634 = vmatmul.bf16.vlgmr.msra.gmra.mxu3 %v18141_v44  ;;  %v8684_v44 = vperm.slane %v18233_v35, 4 }
 0xfc1   : > { %9647 = vmatmul.bf16.vlgmr.msrb.gmra.mxu0 %v18144_v16  ;;  %9660 = vmatmul.bf16.vlgmr.msra.gmra.mxu1 %v18146_v42 }
 0xfc2   : > { %v9427_v29 = vpop.f32.mrf.mxu3 }
 0xfc3   : > { %v9428_v53 = vadd.f32 %v9427_v29, %v9415_v50 }
 0xfc5   : > { %v9441_v45 = vadd.f32 %v9440_v12, %v9428_v53  ;;  %v9672_v12 = vadd.f32 %v9671_v15, %v9670_v55  ;;  %v14837_v15 = vld [vmem:[#allocation32 + $0xd8] sm:$0xff] }
 0xfc6   : > { %v9442_v39 = vpop.f32.mrf.mxu0  ;;  %v9455_v61 = vpop.f32.mrf.mxu1 }
 0xfc7   : > { %v9466_v25 = vpop.f32.mrf.mxu2  ;;  %v9454_v21 = vadd.f32 %v9453_v40, %v9441_v45  ;;  %v16232_v61 = vmov 640.0  }
 0xfc8   : > { %15350 = vrcp.f32 %v16232_v61 }
 0xfc9   : > { %v18256_v49 = vadd.f32 %v9466_v25, %v9454_v21 }
 0xfca   : > { %v9429_v48 = vpop.f32.mrf.mxu3 }
 0xfcb   : > { %v9673_v31 = vsel %vm9667_vm2, %v18256_v49, 0.0 }
 0xfcc   : > { %v9674_v53 = vadd.f32 %v9673_v31, %v9672_v12  ;;  %v14812_v31 = vld [vmem:[#allocation32 + $0x10] sm:$0xff] }
 0xfce   : > { %v15351_v21 = vpop.eup %15350 }
 0xfcf   : > { %v9468_v23 = vpop.f32.mrf.mxu2  ;;  %v9680_v48 = vmul.f32 640.0, %v15351_v21  ;;  %vm9684_vm3 = vweird.f32 %v15351_v21 }
 0xfd1   : > { %v9681_v23 = vsub.f32 1.0, %v9680_v48  ;;  %v18299_v48 = vld [vmem:[#allocation31] sm:$0x1f] }
 0xfde   : > { %v9492_v26 = vpop.f32.mrf.mxu0  ;;  %v9505_v62 = vpop.f32.mrf.mxu1 }
 0xfe2   : > { %v9479_v16 = vpop.f32.mrf.mxu3 }
 0xfe3   : > { %v9480_v59 = vadd.f32 %v9479_v16, %v8684_v44 }
 0xfe5   : > { %v9493_v42 = vadd.f32 %v9492_v26, %v9480_v59  ;;  %v9682_v26 = vmul.f32 %v15351_v21, %v9681_v23 }
 0xfe6   : > { %v9494_v43 = vpop.f32.mrf.mxu0  ;;  %v9507_v56 = vpop.f32.mrf.mxu1 }
 0xfe7   : > { %v9518_v14 = vpop.f32.mrf.mxu2  ;;  %v9506_v46 = vadd.f32 %v9505_v62, %v9493_v42  ;;  %v9683_v62 = vadd.f32 %v15351_v21, %v9682_v26 }
 0xfe9   : > { %v9519_v58 = vadd.f32 %v9518_v14, %v9506_v46  ;;  %v9685_v44 = vsel %vm9684_vm3, %v15351_v21, %v9683_v62  ;;  %v14835_v21 = vld [vmem:[#allocation32 + $0xc8] sm:$0xff]  ;;  %v14810_v62 = vld [vmem:[#allocation32] sm:$0xff] }
 0xfea   : > { %v9481_v1 = vpop.f32.mrf.mxu3 }
 0xfef   : > { %v9520_v34 = vpop.f32.mrf.mxu2 }
 0xffe   : > { %v9544_v17 = vpop.f32.mrf.mxu0  ;;  %v9557_v47 = vpop.f32.mrf.mxu1 }
0x1002   : > { %v9531_v38 = vpop.f32.mrf.mxu3 }
0x1003   : > { %v9532_v7 = vadd.f32 %v9531_v38, %v9519_v58 }
0x1005   : > { %v9545_v2 = vadd.f32 %v9544_v17, %v9532_v7  ;;  %v14824_v7 = vld [vmem:[#allocation32 + $0x70] sm:$0xff] }
0x1006   : > { %v9546_v11 = vpop.f32.mrf.mxu0  ;;  %v9559_v18 = vpop.f32.mrf.mxu1 }
0x1007   : > { %v9570_v63 = vpop.f32.mrf.mxu2  ;;  %v9558_v50 = vadd.f32 %v9557_v47, %v9545_v2 }
0x1009   : > { %v9571_v27 = vadd.f32 %v9570_v63, %v9558_v50  ;;  %v14823_v50 = vld [vmem:[#allocation32 + $0x68] sm:$0xff] }
0x100a   : > { %v9533_v5 = vpop.f32.mrf.mxu3 }
0x100f   : > { %v9572_v24 = vpop.f32.mrf.mxu2 }
0x1010   : > { %v14817_v24 = vld [vmem:[#allocation32 + $0x38] sm:$0xff] }
0x1011   : > { %10303 = vmatpush.bf16.msrb.mxu2 %v14817_v24 }
0x101e   : > { %v9596_v52 = vpop.f32.mrf.mxu0  ;;  %v9609_v35 = vpop.f32.mrf.mxu1 }
0x1022   : > { %v9583_v28 = vpop.f32.mrf.mxu3 }
0x1023   : > { %v9584_v36 = vadd.f32 %v9583_v28, %v9571_v27  ;;  %v14816_v28 = vld [vmem:[#allocation32 + $0x30] sm:$0xff]  ;;  %v14831_v27 = vld [vmem:[#allocation32 + $0xa8] sm:$0xff] }
0x1024   : > { %10304 = vmatpush.bf16.msrb.mxu2 %v14816_v28  ;;  %v14848_v28 = vld [vmem:[#allocation32 + $0x130] sm:$0xff] }
0x1025   : > { %v9597_v22 = vadd.f32 %v9596_v52, %v9584_v36  ;;  %v14825_v52 = vld [vmem:[#allocation32 + $0x78] sm:$0xff]  ;;  %v14839_v36 = vld [vmem:[#allocation32 + $0xe8] sm:$0xff] }
0x1026   : > { %v9622_v33 = vpop.f32.mrf.mxu2  ;;  %v9598_v0 = vpop.f32.mrf.mxu0  ;;  %10316 = vmatpush.bf16.msrb.mxu3 %v14825_v52 }
0x1027   : > { %v9611_v9 = vpop.f32.mrf.mxu1  ;;  %v9610_v8 = vadd.f32 %v9609_v35, %v9597_v22  ;;  %v14833_v35 = vld [vmem:[#allocation32 + $0xb8] sm:$0xff]  ;;  %v14832_v0 = vld [vmem:[#allocation32 + $0xb0] sm:$0xff] }
0x1028   : > { %10329 = vmatpush.bf16.msra.mxu0 %v14833_v35  ;;  %v14840_v9 = vld [vmem:[#allocation32 + $0xf0] sm:$0xff] }
0x1029   : > { %v9623_v41 = vadd.f32 %v9622_v33, %v9610_v8  ;;  %v14841_v33 = vld [vmem:[#allocation32 + $0xf8] sm:$0xff]  ;;  %v14814_v8 = vld [vmem:[#allocation32 + $0x20] sm:$0xff] }
0x102a   : > { %v9585_v19 = vpop.f32.mrf.mxu3  ;;  %10342 = vmatpush.bf16.msrb.mxu1 %v14841_v33  ;;  %10317 = vmatpush.bf16.msrb.mxu3 %v14824_v7 }
0x102b   : > { %v14815_v19 = vld [vmem:[#allocation32 + $0x28] sm:$0xff] }
0x102c   : > { %10330 = vmatpush.bf16.msra.mxu0 %v14832_v0  ;;  %10305 = vmatpush.bf16.msrb.mxu2 %v14815_v19 }
0x102e   : > { %v9624_v13 = vpop.f32.mrf.mxu2  ;;  %10343 = vmatpush.bf16.msrb.mxu1 %v14840_v9  ;;  %10318 = vmatpush.bf16.msrb.mxu3 %v14823_v50 }
0x1030   : > { %10331 = vmatpush.bf16.msra.mxu0 %v14831_v27  ;;  %10306 = vmatpush.bf16.msrb.mxu2 %v14814_v8 }
0x1032   : > { %10344 = vmatpush.bf16.msrb.mxu1 %v14839_v36 }
0x1036   : > { %10345 = vmatpush.bf16.msrb.mxu1 %v14838_v30 }
0x103a   : > { %10346 = vmatpush.bf16.msrb.mxu1 %v14837_v15 }
0x103e   : > { %v9648_v60 = vpop.f32.mrf.mxu0  ;;  %v9661_v32 = vpop.f32.mrf.mxu1 }
0x1042   : > { %v9635_v51 = vpop.f32.mrf.mxu3 }
0x1043   : > { %v9636_v20 = vadd.f32 %v9635_v51, %v9623_v41  ;;  %v14813_v41 = vld [vmem:[#allocation32 + $0x18] sm:$0xff] }
0x1044   : > { %v14821_v51 = vld [vmem:[#allocation32 + $0x58] sm:$0xff]  ;;  %10307 = vmatpush.bf16.msrb.mxu2 %v14813_v41 }
0x1045   : > { %v9649_v54 = vadd.f32 %v9648_v60, %v9636_v20  ;;  %v14822_v60 = vld [vmem:[#allocation32 + $0x60] sm:$0xff] }
0x1046   : > { %v9650_v4 = vpop.f32.mrf.mxu0  ;;  %v9663_v40 = vpop.f32.mrf.mxu1  ;;  %10319 = vmatpush.bf16.msrb.mxu3 %v14822_v60 }
0x1047   : > { %v9662_v29 = vadd.f32 %v9661_v32, %v9649_v54  ;;  %v14830_v32 = vld [vmem:[#allocation32 + $0xa0] sm:$0xff]  ;;  %v14820_v54 = vld [vmem:[#allocation32 + $0x50] sm:$0xff] }
0x1048   : > { %10332 = vmatpush.bf16.msra.mxu0 %v14830_v32  ;;  %v14828_v4 = vld [vmem:[#allocation32 + $0x90] sm:$0xff]  ;;  %10308 = vmatpush.bf16.msrb.mxu2 %v14812_v31 }
0x1049   : > { %v9675_v45 = vsel %vm9667_vm2, %v9662_v29, 0.0  ;;  %v14836_v40 = vld [vmem:[#allocation32 + $0xd0] sm:$0xff] }
0x104a   : > { %v9637_v25 = vpop.f32.mrf.mxu3  ;;  %v9676_v39 = vadd.f32 %v9675_v45, %v9674_v53  ;;  %10320 = vmatpush.bf16.msrb.mxu3 %v14821_v51  ;;  %v14811_v53 = vld [vmem:[#allocation32 + $0x8] sm:$0xff]  ;;  %v18297_v45 = vld [vmem:[#allocation29] sm:$0x1f]  ;;  %10347 = vmatpush.bf16.msrb.mxu1 %v14836_v40  ;;  %v9746_v51 = vperm.slane %v18299_v48, 4 }
0x104b   : > { %v14819_v25 = vld [vmem:[#allocation32 + $0x48] sm:$0xff]  ;;  %v9726_v23 = vperm.slane %v18297_v45, 0  ;;  %v9730_v36 = vperm.slane %v18297_v45, 4 }
0x104c   : > { %9677 = vadd.xlane.f32.xlu1 %v9676_v39  ;;  %10333 = vmatpush.bf16.msra.mxu0 %v14829_v57  ;;  %v14827_v39 = vld [vmem:[#allocation32 + $0x88] sm:$0xff] }
0x104d   : > { %10309 = vmatpush.bf16.msrb.mxu2 %v14811_v53 }
0x104e   : > { %10321 = vmatpush.bf16.msrb.mxu3 %v14820_v54  ;;  %10348 = vmatpush.bf16.msrb.mxu1 %v14835_v21 }
0x1050   : > { %10334 = vmatpush.bf16.msra.mxu0 %v14828_v4 }
0x1051   : > { %10310 = vmatpush.bf16.msrb.mxu2 %v14810_v62 }
0x1052   : > { %10322 = vmatpush.bf16.msrb.mxu3 %v14819_v25 }
0x1054   : > { %10335 = vmatpush.bf16.msra.mxu0 %v14827_v39 }
0x10bf   : > { %v9678_v16 = vpop.xlane.xlu1 %9677 }
0x10c0   : > { %v9686_v59 = vmul.f32 %v9685_v44, %v9678_v16  ;;  %v9728_v16 = vperm.slane %v18297_v45, 2 }
0x10c2   : > { %v18269_v42 = vsub.f32 %v18175_v37, %v9686_v59  ;;  %v18272_v14 = vsub.f32 %v18204_v6, %v9686_v59  ;;  %v18275_v43 = vsub.f32 %v18237_v3, %v9686_v59  ;;  %v18278_v56 = vsub.f32 %v18256_v49, %v9686_v59 }
0x10c3   : > { %v18280_v46 = vsub.f32 %v9662_v29, %v9686_v59  ;;  %v9729_v59 = vperm.slane %v18297_v45, 3 }
0x10c4   : > { %v9692_v58 = vmul.f32 %v18269_v42, %v18269_v42  ;;  %v9693_v1 = vmul.f32 %v18272_v14, %v18272_v14  ;;  %v9694_v37 = vmul.f32 %v18275_v43, %v18275_v43  ;;  %v9695_v6 = vmul.f32 %v18278_v56, %v18278_v56 }
0x10c5   : > { %v9696_v17 = vmul.f32 %v18280_v46, %v18280_v46 }
0x10c6   : > { %v9697_v3 = vsel %vm9667_vm2, %v9692_v58, 0.0  ;;  %v9698_v34 = vsel %vm9667_vm2, %v9693_v1, 0.0  ;;  %v9700_v47 = vsel %vm9667_vm2, %v9694_v37, 0.0  ;;  %v9702_v63 = vsel %vm9667_vm2, %v9695_v6, 0.0  ;;  %v14849_v58 = vld [vmem:[#allocation32 + $0x138] sm:$0xff]  ;;  %v14818_v6 = vld [vmem:[#allocation32 + $0x40] sm:$0xff] }
0x10c7   : > { %v9699_v49 = vadd.f32 %v9698_v34, %v9697_v3  ;;  %v9704_v18 = vsel %vm9667_vm2, %v9696_v17, 0.0  ;;  %v9742_v1 = vperm.slane %v18299_v48, 0  ;;  %v14826_v3 = vld [vmem:[#allocation32 + $0x80] sm:$0xff]  ;;  %v9743_v34 = vperm.slane %v18299_v48, 1  ;;  %10355 = vmatpush.bf16.msra.mxu2 %v14849_v58  ;;  %10323 = vmatpush.bf16.msrb.mxu3 %v14818_v6 }
0x10c8   : > { %v9745_v17 = vperm.slane %v18299_v48, 3  ;;  %10336 = vmatpush.bf16.msra.mxu0 %v14826_v3 }
0x10c9   : > { %v9701_v38 = vadd.f32 %v9700_v47, %v9699_v49  ;;  %v9744_v49 = vperm.slane %v18299_v48, 2 }
0x10cb   : > { %v9703_v11 = vadd.f32 %v9702_v63, %v9701_v38  ;;  %10356 = vmatpush.bf16.msra.mxu2 %v14848_v28 }
0x10cd   : > { %v9705_v5 = vadd.f32 %v9704_v18, %v9703_v11  ;;  %v14834_v18 = vld [vmem:[#allocation32 + $0xc0] sm:$0xff] }
0x10ce   : > { %10349 = vmatpush.bf16.msrb.mxu1 %v14834_v18 }
0x10cf   : > { %9706 = vadd.xlane.f32.xlu2 %v9705_v5 }
0x1142   : > { %v9707_v2 = vpop.xlane.xlu2 %9706 }
0x1143   : > { %v9708_v13 = vmul.f32 %v9707_v2, %v9685_v44  ;;  %v9727_v44 = vperm.slane %v18297_v45, 1 }
0x1145   : > { %v9709_v22 = vadd.f32 1e-05, %v9708_v13 }
0x1147   : > { %15352 = vrsqrt.f32 %v9709_v22  ;;  %vm9716_vm5 = vweird.f32 %v9709_v22 }
0x114d   : > { %v15353_v20 = vpop.eup %15352 }
0x114e   : > { %v9711_v55 = vmul.f32 %v15353_v20, %v9709_v22  ;;  %vm9717_vm4 = vweird.f32 %v15353_v20  ;;  %v14846_v22 = vld [vmem:[#allocation32 + $0x120] sm:$0xff] }
0x114f   : > { %vm9718_vm6 = vmor %vm9716_vm5, %vm9717_vm4 }
0x1150   : > { %v9712_v12 = vmul.f32 %v15353_v20, %v9711_v55 }
0x1152   : > { %v9713_v29 = vmul.f32 0.5, %v9712_v12 }
0x1154   : > { %v9714_v61 = vsub.f32 1.5, %v9713_v29 }
0x1156   : > { %v9715_v26 = vmul.f32 %v15353_v20, %v9714_v61 }
0x1158   : > { %v9719_v37 = vsel %vm9718_vm6, %v15353_v20, %v9715_v26 }
0x1159   : > { %v9720_v47 = vmul.f32 %v9719_v37, %v18269_v42  ;;  %v9721_v38 = vmul.f32 %v9719_v37, %v18272_v14  ;;  %v9722_v63 = vmul.f32 %v9719_v37, %v18275_v43  ;;  %v9723_v11 = vmul.f32 %v9719_v37, %v18278_v56  ;;  %v14847_v56 = vld [vmem:[#allocation32 + $0x128] sm:$0xff] }
0x115a   : > { %10357 = vmatpush.bf16.msra.mxu2 %v14847_v56  ;;  %v9724_v32 = vmul.f32 %v9719_v37, %v18280_v46 }
0x115b   : > { %v9736_v5 = vmul.f32 %v9726_v23, %v9720_v47  ;;  %v9737_v24 = vmul.f32 %v9727_v44, %v9721_v38  ;;  %v9738_v52 = vmul.f32 %v9728_v16, %v9722_v63  ;;  %v9739_v35 = vmul.f32 %v9729_v59, %v9723_v11 }
0x115c   : > { %v9740_v40 = vmul.f32 %v9730_v36, %v9724_v32 }
0x115d   : > { %v18313_v33 = vadd.f32 %v9742_v1, %v9736_v5  ;;  %v18315_v42 = vadd.f32 %v9743_v34, %v9737_v24  ;;  %v18317_v14 = vadd.f32 %v9744_v49, %v9738_v52  ;;  %v18319_v43 = vadd.f32 %v9745_v17, %v9739_v35 }
0x115e   : > { %10358 = vmatpush.bf16.msra.mxu2 %v14846_v22  ;;  %v18366_v6 = vadd.f32 %v9746_v51, %v9740_v40 }
0x115f   : > { %v18322_v7 = vmul.f32 0.70710677, %v18313_v33  ;;  %v18325_v0 = vmul.f32 0.70710677, %v18315_v42  ;;  %v18328_v9 = vmul.f32 0.70710677, %v18317_v14 }
0x1160   : > { %v18331_v2 = vmul.f32 0.70710677, %v18319_v43 }
0x1161   : > { %v9767_v19 = vmul.f32 %v18322_v7, %v18322_v7  ;;  %v9807_v13 = vmul.f32 %v18325_v0, %v18325_v0  ;;  %v9847_v50 = vmul.f32 %v18328_v9, %v18328_v9 }
0x1162   : > { %v9887_v27 = vmul.f32 %v18331_v2, %v18331_v2 }
0x1163   : > { %v18342_v8 = vmin.f32 %v9767_v19, 16.0  ;;  %v18344_v60 = vmin.f32 %v9807_v13, 16.0  ;;  %v18347_v30 = vmin.f32 %v9847_v50, 16.0 }
0x1164   : > { %v18349_v41 = vmin.f32 %v9887_v27, 16.0 }
0x1165   : > { %v9769_v57 = vmul.f32 2.1237322e-06, %v18342_v8  ;;  %v9780_v15 = vmul.f32 3.8918573e-05, %v18342_v8  ;;  %v9809_v20 = vmul.f32 2.1237322e-06, %v18344_v60 }
0x1166   : > { %v9820_v55 = vmul.f32 3.8918573e-05, %v18344_v60  ;;  %v9849_v31 = vmul.f32 2.1237322e-06, %v18347_v30  ;;  %v9860_v54 = vmul.f32 3.8918573e-05, %v18347_v30 }
0x1167   : > { %v9770_v46 = vadd.f32 0.00028619796, %v9769_v57  ;;  %v9781_v4 = vadd.f32 0.001143296, %v9780_v15  ;;  %v9810_v12 = vadd.f32 0.00028619796, %v9809_v20 }
0x1168   : > { %v9821_v29 = vadd.f32 0.001143296, %v9820_v55  ;;  %v9850_v53 = vadd.f32 0.00028619796, %v9849_v31  ;;  %v9861_v45 = vadd.f32 0.001143296, %v9860_v54 }
0x1169   : > { %v9771_v25 = vmul.f32 %v9770_v46, %v18342_v8  ;;  %v9782_v39 = vmul.f32 %v9781_v4, %v18342_v8  ;;  %v9811_v61 = vmul.f32 %v9810_v12, %v18344_v60  ;;  %v9889_v21 = vmul.f32 2.1237322e-06, %v18349_v41 }
0x116a   : > { %v9822_v48 = vmul.f32 %v9821_v29, %v18344_v60  ;;  %v9851_v23 = vmul.f32 %v9850_v53, %v18347_v30  ;;  %v9862_v26 = vmul.f32 %v9861_v45, %v18347_v30  ;;  %v9900_v62 = vmul.f32 3.8918573e-05, %v18349_v41 }
0x116b   : > { %v9772_v44 = vadd.f32 0.0036580483, %v9771_v25  ;;  %v9783_v16 = vadd.f32 0.014752088, %v9782_v39  ;;  %v9812_v59 = vadd.f32 0.0036580483, %v9811_v61 }
0x116c   : > { %v9823_v58 = vadd.f32 0.014752088, %v9822_v48  ;;  %v9852_v1 = vadd.f32 0.0036580483, %v9851_v23  ;;  %v9863_v37 = vadd.f32 0.014752088, %v9862_v26 }
0x116d   : > { %v9773_v3 = vmul.f32 %v9772_v44, %v18342_v8  ;;  %v9784_v34 = vmul.f32 %v9783_v16, %v18342_v8  ;;  %v9813_v49 = vmul.f32 %v9812_v59, %v18344_v60  ;;  %v9890_v17 = vadd.f32 0.00028619796, %v9889_v21 }
0x116e   : > { %v9824_v47 = vmul.f32 %v9823_v58, %v18344_v60  ;;  %v9853_v38 = vmul.f32 %v9852_v1, %v18347_v30  ;;  %v9864_v63 = vmul.f32 %v9863_v37, %v18347_v30  ;;  %v9901_v11 = vadd.f32 0.001143296, %v9900_v62 }
0x116f   : > { %v9774_v18 = vadd.f32 0.05243302, %v9773_v3  ;;  %v9785_v5 = vadd.f32 0.112945676, %v9784_v34  ;;  %v9814_v24 = vadd.f32 0.05243302, %v9813_v49  ;;  %v9891_v52 = vmul.f32 %v9890_v17, %v18349_v41 }
0x1170   : > { %v9825_v35 = vadd.f32 0.112945676, %v9824_v47  ;;  %v9854_v28 = vadd.f32 0.05243302, %v9853_v38  ;;  %v9865_v56 = vadd.f32 0.112945676, %v9864_v63  ;;  %v9902_v19 = vmul.f32 %v9901_v11, %v18349_v41 }
0x1171   : > { %v9775_v13 = vmul.f32 %v9774_v18, %v18342_v8  ;;  %v9786_v50 = vmul.f32 %v9785_v5, %v18342_v8  ;;  %v9815_v27 = vmul.f32 %v9814_v24, %v18344_v60  ;;  %v9892_v36 = vadd.f32 0.0036580483, %v9891_v52 }
0x1172   : > { %v9826_v22 = vmul.f32 %v9825_v35, %v18344_v60  ;;  %v9855_v32 = vmul.f32 %v9854_v28, %v18347_v30  ;;  %v9866_v51 = vmul.f32 %v9865_v56, %v18347_v30  ;;  %v9903_v57 = vadd.f32 0.014752088, %v9902_v19  ;;  %v14844_v35 = vld [vmem:[#allocation32 + $0x110] sm:$0xff] }
0x1173   : > { %v9776_v15 = vadd.f32 0.18741608, %v9775_v13  ;;  %v9787_v20 = vadd.f32 0.4994258, %v9786_v50  ;;  %v9816_v55 = vadd.f32 0.18741608, %v9815_v27  ;;  %v9893_v40 = vmul.f32 %v9892_v36, %v18349_v41 }
0x1174   : > { %v9827_v31 = vadd.f32 0.4994258, %v9826_v22  ;;  %v9867_v54 = vadd.f32 0.4994258, %v9866_v51  ;;  %v9904_v46 = vmul.f32 %v9903_v57, %v18349_v41  ;;  %v9856_v12 = vadd.f32 0.18741608, %v9855_v32 }
0x1175   : > { %v9788_v4 = vmul.f32 %v9787_v20, %v18342_v8  ;;  %v18386_v29 = vmul.f32 0.70710677, %v18366_v6  ;;  %v9777_v53 = vmul.f32 %v9776_v15, %v18342_v8  ;;  %v9817_v21 = vmul.f32 %v9816_v55, %v18344_v60  ;;  %v14843_v20 = vld [vmem:[#allocation32 + $0x108] sm:$0xff] }
0x1176   : > { %v9828_v45 = vmul.f32 %v9827_v31, %v18344_v60  ;;  %v9868_v25 = vmul.f32 %v9867_v54, %v18347_v30  ;;  %v9905_v39 = vadd.f32 0.112945676, %v9904_v46  ;;  %v9857_v26 = vmul.f32 %v9856_v12, %v18347_v30 }
0x1177   : > { %v9789_v61 = vadd.f32 1.0, %v9788_v4  ;;  %v9927_v62 = vmul.f32 %v18386_v29, %v18386_v29  ;;  %v9778_v44 = vadd.f32 1.1283791, %v9777_v53  ;;  %v9894_v8 = vadd.f32 0.05243302, %v9893_v40 }
0x1178   : > { %v18392_v48 = vadd.f32 1.0, %v9828_v45  ;;  %v18394_v23 = vadd.f32 1.0, %v9868_v25  ;;  %v9906_v16 = vmul.f32 %v9905_v39, %v18349_v41  ;;  %v9818_v59 = vadd.f32 1.1283791, %v9817_v21 }
0x1179   : > { %15354 = vrcp.f32 %v9789_v61  ;;  %v9799_v58 = vand.u32 2147483647, %v9789_v61  ;;  %v18403_v60 = vmul.f32 0.5, %v18313_v33  ;;  %v18406_v1 = vmul.f32 0.5, %v18315_v42  ;;  %v14845_v33 = vld [vmem:[#allocation32 + $0x118] sm:$0xff] }
0x117a   : > { %15356 = vrcp.f32 %v18392_v48  ;;  %v9858_v30 = vadd.f32 1.1283791, %v9857_v26  ;;  %v9779_v37 = vmul.f32 %v9778_v44, %v18322_v7  ;;  %v9895_v3 = vmul.f32 %v9894_v8, %v18349_v41  ;;  %10359 = vmatpush.bf16.msra.mxu2 %v14845_v33  ;;  %v14842_v44 = vld [vmem:[#allocation32 + $0x100] sm:$0xff] }
0x117b   : > { %15358 = vrcp.f32 %v18394_v23  ;;  %v9907_v34 = vadd.f32 0.4994258, %v9906_v16  ;;  %v18410_v49 = vmin.f32 %v9927_v62, 16.0  ;;  %vm9795_vm7 = vweird.f32 %v9789_v61 }
0x117c   : > { %v9801_v47 = vand.u32 2147483648, %v9789_v61  ;;  %v9819_v38 = vmul.f32 %v9818_v59, %v18325_v0  ;;  %vm9835_vm8 = vweird.f32 %v18392_v48  ;;  %vm18414_vm9 = vcmp.eq.f32.partialorder %v9799_v58, 8.507059e+37 }
0x117d   : > { %v9908_v7 = vmul.f32 %v9907_v34, %v18349_v41  ;;  %v9929_v18 = vmul.f32 2.1237322e-06, %v18410_v49  ;;  %v9839_v24 = vand.u32 2147483647, %v18392_v48  ;;  %v9841_v52 = vand.u32 2147483648, %v18392_v48 }
0x117e   : > { %v9859_v0 = vmul.f32 %v9858_v30, %v18328_v9  ;;  %v9940_v50 = vmul.f32 3.8918573e-05, %v18410_v49  ;;  %v9802_v27 = vor.u32 1.1754944e-38, %v9801_v47  ;;  %vm9875_vm10 = vweird.f32 %v18394_v23  ;;  %10360 = vmatpush.bf16.msra.mxu2 %v14844_v35 }
0x117f   : > { %v15355_v17 = vpop.eup %15354  ;;  %v18424_v19 = vadd.f32 1.0, %v9908_v7  ;;  %v9930_v13 = vadd.f32 0.00028619796, %v9929_v18  ;;  %v9896_v51 = vadd.f32 0.18741608, %v9895_v3  ;;  %v9881_v15 = vand.u32 2147483648, %v18394_v23 }
0x1180   : > { %v15357_v63 = vpop.eup %15356  ;;  %v9791_v11 = vmul.f32 %v15355_v17, %v9789_v61  ;;  %vm9796_vm11 = vweird.f32 %v15355_v17  ;;  %v9879_v31 = vand.u32 2147483647, %v18394_v23  ;;  %v9941_v46 = vadd.f32 0.001143296, %v9940_v50 }
0x1181   : > { %v9831_v5 = vmul.f32 %v15357_v63, %v18392_v48  ;;  %v15359_v28 = vpop.eup %15358  ;;  %15360 = vrcp.f32 %v18424_v19  ;;  %vm9836_vm12 = vweird.f32 %v15357_v63  ;;  %v9931_v54 = vmul.f32 %v9930_v13, %v18410_v49  ;;  %vm9797_vm13 = vmor %vm9795_vm7, %vm9796_vm11 }
0x1182   : > { %v9792_v56 = vsub.f32 1.0, %v9791_v11  ;;  %v9871_v22 = vmul.f32 %v15359_v28, %v18394_v23  ;;  %vm18434_vm14 = vcmp.eq.f32.partialorder %v9839_v24, 8.507059e+37  ;;  %vm9876_vm15 = vweird.f32 %v15359_v28  ;;  %vm9837_vm0 = vmor %vm9835_vm8, %vm9836_vm12  ;;  %10361 = vmatpush.bf16.msra.mxu2 %v14843_v20 }
0x1183   : > { %v9832_v36 = vsub.f32 1.0, %v9831_v5  ;;  %v9842_v45 = vor.u32 1.1754944e-38, %v9841_v52  ;;  %v9897_v25 = vmul.f32 %v9896_v51, %v18349_v41  ;;  %v9942_v39 = vmul.f32 %v9941_v46, %v18410_v49  ;;  %vm9877_vm1 = vmor %vm9875_vm10, %vm9876_vm15 }
0x1184   : > { %v9793_v32 = vmul.f32 %v15355_v17, %v9792_v56  ;;  %v9872_v57 = vsub.f32 1.0, %v9871_v22  ;;  %v9882_v62 = vor.u32 1.1754944e-38, %v9881_v15  ;;  %v9932_v41 = vadd.f32 0.0036580483, %v9931_v54 }
0x1185   : > { %v9833_v9 = vmul.f32 %v15357_v63, %v9832_v36  ;;  %v9943_v48 = vadd.f32 0.014752088, %v9942_v39  ;;  %vm9880_vm3 = vcmp.eq.f32.partialorder %v9879_v31, 8.507059e+37  ;;  %v9898_v47 = vadd.f32 1.1283791, %v9897_v25 }
0x1186   : > { %v9794_v55 = vadd.f32 %v15355_v17, %v9793_v32  ;;  %v9873_v40 = vmul.f32 %v15359_v28, %v9872_v57  ;;  %v9919_v42 = vand.u32 2147483647, %v18424_v19  ;;  %10362 = vmatpush.bf16.msra.mxu2 %v14842_v44  ;;  %v9921_v7 = vand.u32 2147483648, %v18424_v19 }
0x1187   : > { %v9834_v4 = vadd.f32 %v15357_v63, %v9833_v9  ;;  %v15361_v8 = vpop.eup %15360  ;;  %v9944_v33 = vmul.f32 %v9943_v48, %v18410_v49  ;;  %vm9915_vm5 = vweird.f32 %v18424_v19  ;;  %v9760_v31 = vmul.f32 0.5, %v18319_v43 }
0x1188   : > { %v9798_v53 = vsel %vm9797_vm13, %v15355_v17, %v9794_v55  ;;  %v9874_v26 = vadd.f32 %v15359_v28, %v9873_v40  ;;  %v9911_v3 = vmul.f32 %v15361_v8, %v18424_v19  ;;  %vm9916_vm4 = vweird.f32 %v15361_v8 }
0x1189   : > { %v9803_v61 = vsel %vm18414_vm9, %v9802_v27, %v9798_v53  ;;  %v9838_v21 = vsel %vm9837_vm0, %v15357_v63, %v9834_v4  ;;  %v9945_v18 = vadd.f32 0.112945676, %v9944_v33  ;;  %vm9917_vm6 = vmor %vm9915_vm5, %vm9916_vm4  ;;  %vm9920_vm7 = vcmp.eq.f32.partialorder %v9919_v42, 8.507059e+37 }
0x118a   : > { %v9804_v16 = vmul.f32 %v9803_v61, %v9779_v37  ;;  %v9843_v59 = vsel %vm18434_vm14, %v9842_v45, %v9838_v21  ;;  %v9878_v30 = vsel %vm9877_vm1, %v15359_v28, %v9874_v26  ;;  %v9912_v11 = vsub.f32 1.0, %v9911_v3 }
0x118b   : > { %v9844_v58 = vmul.f32 %v9843_v59, %v9819_v38  ;;  %v9883_v17 = vsel %vm9880_vm3, %v9882_v62, %v9878_v30  ;;  %v9933_v38 = vmul.f32 %v9932_v41, %v18410_v49  ;;  %v9759_v28 = vmul.f32 0.5, %v18317_v14 }
0x118c   : > { %v13878_v34 = vclamps-f32 %v9804_v16, 1.0  ;;  %v9884_v63 = vmul.f32 %v9883_v17, %v9859_v0  ;;  %v9913_v52 = vmul.f32 %v15361_v8, %v9912_v11  ;;  %v9899_v0 = vmul.f32 %v9898_v47, %v18331_v2 }
0x118d   : > { %v13879_v37 = vclamps-f32 %v9844_v58, 1.0  ;;  %v9946_v56 = vmul.f32 %v9945_v18, %v18410_v49  ;;  %v9922_v22 = vor.u32 1.1754944e-38, %v9921_v7  ;;  %v9934_v57 = vadd.f32 0.05243302, %v9933_v38 }
0x118e   : > { %v9967_v23 = vadd.f32 1.0, %v13878_v34  ;;  %v13880_v24 = vclamps-f32 %v9884_v63, 1.0  ;;  %v9914_v27 = vadd.f32 %v15361_v8, %v9913_v52 }
0x118f   : > { %v9968_v5 = vadd.f32 1.0, %v13879_v37  ;;  %v9947_v32 = vadd.f32 0.4994258, %v9946_v56  ;;  %v9935_v19 = vmul.f32 %v9934_v57, %v18410_v49 }
0x1190   : > { %v9972_v35 = vmul.f32 %v9967_v23, %v18403_v60  ;;  %v9969_v50 = vadd.f32 1.0, %v13880_v24  ;;  %v9918_v60 = vsel %vm9917_vm6, %v15361_v8, %v9914_v27  ;;  %v14857_v27 = vld [vmem:[#allocation38 + $0x38] sm:$0xff] }
0x1191   : > { %v9973_v13 = vmul.f32 %v9968_v5, %v18406_v1  ;;  %v9923_v14 = vsel %vm9920_vm7, %v9922_v22, %v9918_v60  ;;  %v9948_v2 = vmul.f32 %v9947_v32, %v18410_v49  ;;  %v9936_v4 = vadd.f32 0.18741608, %v9935_v19  ;;  %10504 = vmatpush.bf16.msra.mxu3 %v14857_v27  ;;  %v14856_v22 = vld [vmem:[#allocation38 + $0x30] sm:$0xff]  ;;  %v14855_v32 = vld [vmem:[#allocation38 + $0x28] sm:$0xff] }
0x1192   : > { %v9977_v36 = vpack.c.bf16 %v9972_v35, %v9972_v35  ;;  %v9974_v9 = vmul.f32 %v9969_v50, %v9759_v28  ;;  %v9924_v1 = vmul.f32 %v9923_v14, %v9899_v0  ;;  %v14853_v14 = vld [vmem:[#allocation38 + $0x18] sm:$0xff] }
0x1193   : > { %v9978_v51 = vpack.c.bf16 %v9973_v13, %v9973_v13  ;;  %v9949_v20 = vadd.f32 1.0, %v9948_v2  ;;  %v9937_v53 = vmul.f32 %v9936_v4, %v18410_v49  ;;  %v9761_v49 = vmul.f32 0.5, %v18366_v6 }
0x1194   : > { %10311 = vmatmul.bf16.vlgmr.msrb.gmra.mxu2 %v9977_v36  ;;  %v9979_v15 = vpack.c.bf16 %v9974_v9, %v9974_v9  ;;  %v13881_v55 = vclamps-f32 %v9924_v1, 1.0  ;;  %v14854_v9 = vld [vmem:[#allocation38 + $0x20] sm:$0xff]  ;;  %v14852_v1 = vld [vmem:[#allocation38 + $0x10] sm:$0xff] }
0x1195   : > { %10324 = vmatmul.bf16.vlgmr.msrb.gmra.mxu3 %v9978_v51  ;;  %15362 = vrcp.f32 %v9949_v20  ;;  %v9961_v39 = vand.u32 2147483648, %v9949_v20  ;;  %v9938_v61 = vadd.f32 1.1283791, %v9937_v53  ;;  %v9959_v26 = vand.u32 2147483647, %v9949_v20 }
0x1196   : > { %10337 = vmatmul.bf16.vlgmr.msra.gmra.mxu0 %v9979_v15  ;;  %v9970_v54 = vadd.f32 1.0, %v13881_v55  ;;  %vm9955_vm9 = vweird.f32 %v9949_v20  ;;  %10505 = vmatpush.bf16.msra.mxu3 %v14856_v22 }
0x1197   : > { %v9962_v44 = vor.u32 1.1754944e-38, %v9961_v39  ;;  %v9939_v43 = vmul.f32 %v9938_v61, %v18386_v29  ;;  %vm9960_vm11 = vcmp.eq.f32.partialorder %v9959_v26, 8.507059e+37  ;;  %v10062_v29 = vld [vmem:[#allocation34] sm:$0x1] }
0x1198   : > { %v9975_v46 = vmul.f32 %v9970_v54, %v9760_v31  ;;  %v14851_v31 = vld [vmem:[#allocation38 + $0x8] sm:$0xff]  ;;  %v10369_v54 = vld [vmem:[#allocation37] sm:$0x1] }
0x119a   : > { %v9980_v12 = vpack.c.bf16 %v9975_v46, %v9975_v46  ;;  %10506 = vmatpush.bf16.msra.mxu3 %v14855_v32 }
0x119b   : > { %v15363_v40 = vpop.eup %15362 }
0x119c   : > { %10350 = vmatmul.bf16.vlgmr.msrb.gmra.mxu1 %v9980_v12  ;;  %v9951_v45 = vmul.f32 %v15363_v40, %v9949_v20  ;;  %vm9956_vm8 = vweird.f32 %v15363_v40  ;;  %v10368_v20 = vld [vmem:[#allocation35] sm:$0x1]  ;;  %v14850_v12 = vld [vmem:[#allocation38] sm:$0xff] }
0x119d   : > { %vm9957_vm10 = vmor %vm9955_vm9, %vm9956_vm8 }
0x119e   : > { %v9952_v25 = vsub.f32 1.0, %v9951_v45  ;;  %10507 = vmatpush.bf16.msra.mxu3 %v14854_v9 }
0x11a0   : > { %v9953_v21 = vmul.f32 %v15363_v40, %v9952_v25 }
0x11a2   : > { %v9954_v62 = vadd.f32 %v15363_v40, %v9953_v21  ;;  %10508 = vmatpush.bf16.msra.mxu3 %v14853_v14 }
0x11a4   : > { %v9958_v8 = vsel %vm9957_vm10, %v15363_v40, %v9954_v62 }
0x11a5   : > { %v9963_v16 = vsel %vm9960_vm11, %v9962_v44, %v9958_v8 }
0x11a6   : > { %v9964_v59 = vmul.f32 %v9963_v16, %v9939_v43  ;;  %10509 = vmatpush.bf16.msra.mxu3 %v14852_v1 }
0x11a8   : > { %v13882_v41 = vclamps-f32 %v9964_v59, 1.0 }
0x11aa   : > { %v9971_v48 = vadd.f32 1.0, %v13882_v41  ;;  %10510 = vmatpush.bf16.msra.mxu3 %v14851_v31 }
0x11ac   : > { %v9976_v58 = vmul.f32 %v9971_v48, %v9761_v49 }
0x11ae   : > { %v9981_v30 = vpack.c.bf16 %v9976_v58, %v9976_v58  ;;  %10511 = vmatpush.bf16.msra.mxu3 %v14850_v12 }
0x11b0   : > { %10363 = vmatmul.bf16.vlgmr.msra.gmra.mxu2 %v9981_v30 }
0x1213   : > { %v10338_v3 = vpop.f32.mrf.mxu0 }
0x1217   : > { %v10312_v34 = vpop.f32.mrf.mxu2 }
0x1218   : > { %v10325_v17 = vpop.f32.mrf.mxu3  ;;  %v10313_v42 = vadd.f32 %v10312_v34, %v10062_v29 }
0x1219   : > { %v10351_v47 = vpop.f32.mrf.mxu1 }
0x121a   : > { %v10326_v23 = vadd.f32 %v10325_v17, %v10313_v42 }
0x121b   : > { %v10340_v33 = vpop.f32.mrf.mxu0 }
0x121c   : > { %v10339_v7 = vadd.f32 %v10338_v3, %v10326_v23 }
0x121e   : > { %v10352_v38 = vadd.f32 %v10351_v47, %v10339_v7 }
0x121f   : > { %v10314_v37 = vpop.f32.mrf.mxu2 }
0x1220   : > { %v10327_v63 = vpop.f32.mrf.mxu3 }
0x1221   : > { %v10353_v11 = vpop.f32.mrf.mxu1 }
0x1233   : > { %v10364_v18 = vpop.f32.mrf.mxu2 }
0x1234   : > { %v10365_v5 = vadd.f32 %v10364_v18, %v10352_v38 }
0x1236   : > { %v10370_v6 = vsel %vm9667_vm2, %v10365_v5, 0.0 }
0x1237   : > { %10371 = vadd.xlane.f32.xlu0 %v10370_v6 }
0x123b   : > { %v10366_v24 = vpop.f32.mrf.mxu2 }
0x12aa   : > { %v10372_v52 = vpop.xlane.xlu0 %10371 }
0x12ab   : > { %v10373_v35 = vmul.f32 %v10372_v52, %v16659_v10 }
0x12ad   : > { %v10374_v28 = vsub.f32 %v10365_v5, %v10373_v35 }
0x12af   : > { %v10375_v0 = vmul.f32 %v10374_v28, %v10374_v28 }
0x12b1   : > { %v10376_v56 = vsel %vm9667_vm2, %v10375_v0, 0.0 }
0x12b2   : > { %10377 = vadd.xlane.f32.xlu1 %v10376_v56 }
0x1325   : > { %v10378_v13 = vpop.xlane.xlu1 %10377 }
0x1326   : > { %v10379_v50 = vmul.f32 %v10378_v13, %v16659_v10 }
0x1328   : > { %v10380_v36 = vadd.f32 1e-05, %v10379_v50 }
0x132a   : > { %15364 = vrsqrt.f32 %v10380_v36  ;;  %vm10387_vm12 = vweird.f32 %v10380_v36 }
0x1330   : > { %v15365_v51 = vpop.eup %15364 }
0x1331   : > { %v10382_v60 = vmul.f32 %v15365_v51, %v10380_v36  ;;  %vm10388_vm2 = vweird.f32 %v15365_v51 }
0x1332   : > { %vm10389_vm13 = vmor %vm10387_vm12, %vm10388_vm2 }
0x1333   : > { %v10383_v57 = vmul.f32 %v15365_v51, %v10382_v60 }
0x1335   : > { %v10384_v2 = vmul.f32 0.5, %v10383_v57 }
0x1337   : > { %v10385_v15 = vsub.f32 1.5, %v10384_v2 }
0x1339   : > { %v10386_v10 = vmul.f32 %v15365_v51, %v10385_v15 }
0x133b   : > { %v10390_v55 = vsel %vm10389_vm13, %v15365_v51, %v10386_v10 }
0x133c   : > { %v10391_v19 = vmul.f32 %v10390_v55, %v10374_v28 }
0x133e   : > { %v10392_v46 = vmul.f32 %v10391_v19, %v10368_v20 }
0x1340   : > { %v10393_v4 = vadd.f32 %v10392_v46, %v10369_v54 }
0x1342   : > { %v10395_v40 = vmul.f32 0.70710677, %v10393_v4  ;;  %v10394_v52 = vmul.f32 0.5, %v10393_v4 }
0x1344   : > { %v10396_v53 = vmul.f32 %v10395_v40, %v10395_v40 }
0x1346   : > { %v10397_v45 = vmin.f32 %v10396_v53, 16.0 }
0x1348   : > { %v10398_v25 = vmul.f32 2.1237322e-06, %v10397_v45  ;;  %v10409_v39 = vmul.f32 3.8918573e-05, %v10397_v45 }
0x134a   : > { %v10399_v61 = vadd.f32 0.00028619796, %v10398_v25  ;;  %v10410_v21 = vadd.f32 0.001143296, %v10409_v39 }
0x134c   : > { %v10400_v26 = vmul.f32 %v10399_v61, %v10397_v45  ;;  %v10411_v62 = vmul.f32 %v10410_v21, %v10397_v45 }
0x134e   : > { %v10412_v44 = vadd.f32 0.014752088, %v10411_v62  ;;  %v10401_v43 = vadd.f32 0.0036580483, %v10400_v26 }
0x1350   : > { %v10413_v8 = vmul.f32 %v10412_v44, %v10397_v45  ;;  %v10402_v59 = vmul.f32 %v10401_v43, %v10397_v45 }
0x1352   : > { %v10414_v16 = vadd.f32 0.112945676, %v10413_v8  ;;  %v10403_v48 = vadd.f32 0.05243302, %v10402_v59 }
0x1354   : > { %v10415_v41 = vmul.f32 %v10414_v16, %v10397_v45  ;;  %v10404_v3 = vmul.f32 %v10403_v48, %v10397_v45 }
0x1356   : > { %v10416_v49 = vadd.f32 0.4994258, %v10415_v41  ;;  %v10405_v34 = vadd.f32 0.18741608, %v10404_v3 }
0x1358   : > { %v10417_v58 = vmul.f32 %v10416_v49, %v10397_v45  ;;  %v10406_v47 = vmul.f32 %v10405_v34, %v10397_v45 }
0x135a   : > { %v10418_v30 = vadd.f32 1.0, %v10417_v58  ;;  %v10407_v11 = vadd.f32 1.1283791, %v10406_v47 }
0x135c   : > { %15366 = vrcp.f32 %v10418_v30  ;;  %v10430_v63 = vand.u32 2147483648, %v10418_v30  ;;  %v10428_v42 = vand.u32 2147483647, %v10418_v30  ;;  %vm10424_vm15 = vweird.f32 %v10418_v30 }
0x135d   : > { %v10408_v38 = vmul.f32 %v10407_v11, %v10395_v40 }
0x135e   : > { %v10431_v7 = vor.u32 1.1754944e-38, %v10430_v63  ;;  %vm10429_vm1 = vcmp.eq.f32.partialorder %v10428_v42, 8.507059e+37 }
0x1362   : > { %v15367_v17 = vpop.eup %15366 }
0x1363   : > { %v10420_v33 = vmul.f32 %v15367_v17, %v10418_v30  ;;  %vm10425_vm14 = vweird.f32 %v15367_v17 }
0x1364   : > { %vm10426_vm0 = vmor %vm10424_vm15, %vm10425_vm14 }
0x1365   : > { %v10421_v37 = vsub.f32 1.0, %v10420_v33 }
0x1367   : > { %v10422_v29 = vmul.f32 %v15367_v17, %v10421_v37 }
0x1369   : > { %v10423_v23 = vadd.f32 %v15367_v17, %v10422_v29 }
0x136b   : > { %v10427_v18 = vsel %vm10426_vm0, %v15367_v17, %v10423_v23 }
0x136c   : > { %v10432_v5 = vsel %vm10429_vm1, %v10431_v7, %v10427_v18 }
0x136d   : > { %v10433_v6 = vmul.f32 %v10432_v5, %v10408_v38 }
0x136f   : > { %v14043_v24 = vclamps-f32 %v10433_v6, 1.0 }
0x1371   : > { %v10436_v35 = vadd.f32 1.0, %v14043_v24 }
0x1373   : > { %v10437_v28 = vmul.f32 %v10436_v35, %v10394_v52 }
0x1375   : > { %v10438_v0 = vpack.c.bf16 %v10437_v28, %v10437_v28 }
0x1377   : > { %10512 = vmatmul.bf16.vlgmr.msra.gmra.mxu3 %v10438_v0 }
0x1378   : > { %16101 = shalt.err (!%p16098_p7)
}
0x1379   : > { %s16233_s2 = smov 128   ;;  %s16234_s11 = smov 8   ;;  %v10455_v56 = vld [vmem:[#allocation40] sm:$0x1] }
0x137a   : > { %14957 = dma.vmem_to_hbm [thread:$0]  (%p16422_p11), %s10536_s27, 256, %s10538_s3, %s10520_s1, %s16233_s2, %s16233_s2, %s16234_s11  }
0x137b   : > { %p1182_p8 = scmp.lt.s32.totalorder %s16391_s8, 1  ;;  %s18655_s14 = sld [smem:[#allocation82_spill]] }
0x137d   : > { %s18664_s8 = smov (!%p1182_p8, %s16391_s8), 1 }
0x1381   : > { %s1184_s9 = scalar_lea.vmem %s18655_s14, %s18664_s8 }
0x13fa   : > { %v10513_v13 = vpop.f32.mrf.mxu3 }
0x13fb   : > { %v10514_v50 = vadd.f32 %v10513_v13, %v10455_v56 }
0x13fd   : > { %15368 = vtanh.f32 %v10514_v50 }
0x1402   : > { %v10515_v27 = vpop.f32.mrf.mxu3 }
0x1403   : > { %v15369_v36 = vpop.eup %15368 }
0x1404   : > { %10518 = vst [vmem:[%s1184_s9] sm:$0x1] %v15369_v36 }
0x1405 PF: > { %s18656_s7 = sld [smem:[#allocation56_spill]]  ;;  %p18658_p11 = scmp.ge.s32.totalorder %s16188_s28, 2 }
0x1407   : > { %p14964_p9 = pnand %p18658_p11, %p16426_p12 }
0x1409   : > { %p14965_p5 = pneg %p14964_p9 }
0x140b   : > { %s10555_s25 = sand.u32 1, %s18656_s7  }
0x140c   : > { %s10556_s13 = scalar_lea.sflag [#allocation4], %s10555_s25 }
0x140d   : > { %16171 = dma.done.wait (%p14965_p5), %s10556_s13, 256  }
0x140e   : > { %16173 = vsyncadd (%p14965_p5), %s10556_s13, 4294967040  ;;  %s18659_s28 = sld [smem:[#allocation59_spill]] }
0x140f   : > { %s18660_s27 = sld [smem:[#allocation57_spill]] }
0x1410   : > { %s18661_s3 = sld [smem:[#allocation58_spill]] }
0x1411   : > { %s18662_s7 = sld [smem:[#allocation60_spill]] }
0x1414   : > { %p52_p10 = scmp.ge.s32.totalorder %s18659_s28, 4  }
0x1416   :  { %54 = sbr.rel (!%p52_p10) target bundleno = 35 (0x23), region = 273 }
0x141b   :  { %10568 = vsyncpa [#allocation3], 1 }
0x141c   :  { %10570 = vsyncpa [#allocation3 + $0x1], 1 }
0x141d   :  { %10571 = vsyncpa [#allocation6], 1 }
0x141e   :  { %10572 = vsyncpa [#allocation9], 1 }
0x141f   :  { %10573 = vsyncpa [#allocation12], 1 }
0x1420   :  { %10574 = vsyncpa [#allocation15], 1 }
0x1421   :  { %10575 = vsyncpa [#allocation18], 1 }
0x1422   :  { %10576 = vsyncpa [#allocation21], 1 }
0x1423   :  { %10577 = vsyncpa [#allocation24], 1 }
0x1424   :  { %10578 = vsyncpa [#allocation27], 1 }
0x1425   :  { %10579 = vsyncpa [#allocation30], 1 }
0x1426   :  { %10580 = vsyncpa [#allocation33], 1 }
0x1427   :  { %10581 = vsyncpa [#allocation36], 1 }
0x1428   :  { %10582 = vsyncpa [#allocation39], 1 }
0x1429   :  { %10583 = vsyncpa [#allocation4], 1 }
0x142a   :  { %10585 = vsyncpa [#allocation4 + $0x1], 1 }

</bundles_post_ra>
